<compile_context>
chip_gen: v7x
topology: tpu7x:2x2x1
jax: 0.10.0
libtpu: 0.0.40
codegen_flags: <defaults>
</compile_context>

<pallas_src>
import functools
from dataclasses import dataclass
from typing import Optional, Tuple

import jax
import jax.numpy as jnp
from jax import lax
from jax.experimental import pallas as pl
from jax.experimental.pallas import tpu as pltpu


EPS = 1e-16

# Streaming dtype for the (large) adjacency operands fed to the Pallas kernels.
# float32 keeps the demo bit-comparable to the f32 reference; flip to
# jnp.bfloat16 in production to halve HBM traffic on the A stream
# (accumulation stays f32 via preferred_element_type).
A_STREAM_DTYPE = jnp.float32


# ----------------------------------------------------------------------------
# Per-generation tiling / VMEM configuration
# ----------------------------------------------------------------------------

def _device_config():
    try:
        kind = jax.devices()[0].device_kind.lower()
    except Exception:
        kind = ""
    if "v7" in kind:
        # v7x: 64 MiB VMEM per TC, 2 TCs -> moderate tiles, keep grid splittable.
        return {"vmem_limit": 48 * 1024 * 1024, "row_tile": 256, "min_grid_steps": 2}
    if ("v5 lite" in kind) or ("v5e" in kind) or ("v6" in kind):
        # 128 MiB physical VMEM: raise the scoped limit, use large row tiles.
        return {"vmem_limit": 96 * 1024 * 1024, "row_tile": 512, "min_grid_steps": 2}
    # Unknown / other generations: conservative (default scoped VMEM limit).
    return {"vmem_limit": None, "row_tile": 256, "min_grid_steps": 2}


_CFG = _device_config()


def _compiler_params(dimension_semantics):
    kw = {"dimension_semantics": dimension_semantics}
    if _CFG["vmem_limit"] is not None:
        kw["vmem_limit_bytes"] = _CFG["vmem_limit"]
    return pltpu.CompilerParams(**kw)


def _pick_row_tile(m, lane_constrained):
    """Largest row tile <= target that divides m and satisfies TPU alignment.

    If the tile appears as a last (lane) dim of some block (column tile of a
    transposed A, decode columns) it must be a multiple of 128 or == m,
    otherwise a multiple of 8 or == m.  We also try to keep >= min_grid_steps
    grid steps so v7x megacore can split the "parallel" axis.
    """
    quantum = 128 if lane_constrained else 8
    target = _CFG["row_tile"]
    min_steps = _CFG["min_grid_steps"]
    if m >= min_steps * quantum:
        target = min(target, m // min_steps)
    t = min(target, m)
    t = (t // quantum) * quantum
    while t >= quantum:
        if m % t == 0:
            return t
        t -= quantum
    return m


# ----------------------------------------------------------------------------
# Term descriptors for the fused graphconv + combine kernel
# ----------------------------------------------------------------------------

@dataclass(frozen=True)
class ConvGroup:
    """One (A or A^T) @ XW matmul whose H-wide output slices are each
    optionally row-L2-normalized and scaled by coef[coef_index]."""
    trans_a: bool
    # per H-wide slice of XW: (coef_index or None -> no scale, normalize?)
    sub: Tuple[Tuple[Optional[int], bool], ...]


@dataclass(frozen=True)
class Passthrough:
    """coef[coef_index] * existing embedding (already [rows, H] in HBM)."""
    coef_index: Optional[int]


# ----------------------------------------------------------------------------
# Pallas kernels
# ----------------------------------------------------------------------------

def _fused_combine_kernel(coef_ref, *refs, terms, feat_dim, eps):
    """out = sum over terms of their (scaled, optionally normalized) values.

    refs layout: per term, (A, XW) for ConvGroup or (P,) for Passthrough;
    final ref is the output row tile.  All intermediates stay in vregs/VMEM.
    """
    out_ref = refs[-1]
    in_refs = refs[:-1]

    def scale(ci, v):
        return v if ci is None else coef_ref[ci] * v

    pos = 0
    acc = None
    for term in terms:
        if isinstance(term, Passthrough):
            contrib = scale(term.coef_index, in_refs[pos][...])
            pos += 1
        else:
            a_ref, xw_ref = in_refs[pos], in_refs[pos + 1]
            pos += 2
            contract_lhs = (0,) if term.trans_a else (1,)
            # A (or A^T) @ XW on the MXU, no transpose materialization.
            y = lax.dot_general(
                a_ref[...], xw_ref[...],
                dimension_numbers=((contract_lhs, (0,)), ((), ())),
                preferred_element_type=jnp.float32)
            n_sub = len(term.sub)
            contrib = None
            for s, (ci, norm) in enumerate(term.sub):
                v = y if n_sub == 1 else y[:, s * feat_dim:(s + 1) * feat_dim]
                if norm:
                    # row-wise L2 normalization; rsqrt runs on the EUP slot.
                    sumsq = jnp.sum(v * v, axis=1, keepdims=True)
                    v = v * lax.rsqrt(sumsq + eps * eps)
                v = scale(ci, v)
                contrib = v if contrib is None else contrib + v
        acc = contrib if acc is None else acc + contrib
    out_ref[...] = acc.astype(out_ref.dtype)


def _decode_kernel(u_ref, i_ref, o_ref):
    # out_tile = U_tile @ I_tile^T (contract feature dims, no transpose copy).
    o_ref[...] = lax.dot_general(
        u_ref[...], i_ref[...],
        dimension_numbers=(((1,), (1,)), ((), ())),
        preferred_element_type=jnp.float32)


# ----------------------------------------------------------------------------
# pallas_call wrappers
# ----------------------------------------------------------------------------

def fused_graphconv_combine(coefs, terms, operands, out_rows, feat_dim):
    """One pallas_call computing the fused graphconv + combine, row-tiled.

    coefs:    (n_coefs,) float32, placed whole in SMEM.
    terms:    sequence of ConvGroup / Passthrough descriptors.
    operands: per-term arrays: (A, XW) for ConvGroup, (P,) for Passthrough.
    """
    lane_constrained = any(isinstance(t, ConvGroup) and t.trans_a for t in terms)
    tm = _pick_row_tile(out_rows, lane_constrained)
    grid = (out_rows // tm,)

    in_specs = [pl.BlockSpec(memory_space=pltpu.MemorySpace.SMEM)]  # coefficients
    inputs = [coefs.astype(jnp.float32)]
    for term, ops in zip(terms, operands):
        if isinstance(term, Passthrough):
            (p,) = ops
            in_specs.append(pl.BlockSpec((tm, feat_dim), lambda i: (i, 0)))
            inputs.append(p)
        else:
            a, xw = ops
            a = a.astype(A_STREAM_DTYPE)
            xw = xw.astype(A_STREAM_DTYPE)
            if term.trans_a:
                # A is [K, out_rows]: take a column tile (== row tile of A^T).
                in_specs.append(pl.BlockSpec((a.shape[0], tm), lambda i: (0, i)))
            else:
                in_specs.append(pl.BlockSpec((tm, a.shape[1]), lambda i: (i, 0)))
            # XW is small ([rows_X, 32/64]); constant index_map => fetched once
            # and kept resident across grid steps.
            in_specs.append(pl.BlockSpec(xw.shape, lambda i: (0, 0)))
            inputs += [a, xw]

    kernel = functools.partial(_fused_combine_kernel, terms=tuple(terms),
                               feat_dim=feat_dim, eps=EPS)
    return pl.pallas_call(
        kernel,
        grid=grid,
        in_specs=in_specs,
        out_specs=pl.BlockSpec((tm, feat_dim), lambda i: (i, 0)),
        out_shape=jax.ShapeDtypeStruct((out_rows, feat_dim), jnp.float32),
        compiler_params=_compiler_params(("parallel",)),
    )(*inputs)


def decode_ui(u_emb, i_emb):
    """U @ I^T, tiled over (user rows, item rows); lane-dense output blocks."""
    U, H = u_emb.shape
    I = i_emb.shape[0]
    tu = _pick_row_tile(U, lane_constrained=False)
    ti = _pick_row_tile(I, lane_constrained=True)   # appears as output lane dim
    return pl.pallas_call(
        _decode_kernel,
        grid=(U // tu, I // ti),
        in_specs=[pl.BlockSpec((tu, H), lambda i, j: (i, 0)),
                  pl.BlockSpec((ti, H), lambda i, j: (j, 0))],
        out_specs=pl.BlockSpec((tu, ti), lambda i, j: (i, j)),
        out_shape=jax.ShapeDtypeStruct((U, I), jnp.float32),
        compiler_params=_compiler_params(("parallel", "parallel")),
    )(u_emb, i_emb)


# ----------------------------------------------------------------------------
# Small XLA-side helpers (XW precompute, parameter init)
# ----------------------------------------------------------------------------

def _mm(x, w, transpose_x=False):
    """x @ w (or x^T @ w) without materializing the transpose."""
    lhs_contract = (0,) if transpose_x else (1,)
    return lax.dot_general(
        x, w, dimension_numbers=((lhs_contract, (0,)), ((), ())),
        preferred_element_type=jnp.float32)


def _xavier(key, shape, gain=1.0):
    fan_in, fan_out = shape[-2], shape[-1]
    a = gain * jnp.sqrt(6.0 / (fan_in + fan_out))
    return jax.random.uniform(key, shape, jnp.float32, minval=-a, maxval=a)


def init_params(key, user_num, item_num, user_attr_num, item_attr_num,
                attr_hid2, adj_hid2):
    names_shapes = {
        "Wui_iia":      (item_attr_num, attr_hid2),
        "Wuua_uau":     (user_num, attr_hid2),
        "Wui_iu":       (user_num, attr_hid2),
        "Wiu_uua":      (user_attr_num, attr_hid2),
        "Wiia_iai":     (item_num, attr_hid2),
        "Wiu_ui":       (item_num, attr_hid2),
        "Wuau_ui":      (item_num, attr_hid2),
        "Wuau_uua":     (user_attr_num, attr_hid2),
        "Wiai_iu":      (user_num, attr_hid2),
        "Wiai_iia":     (item_attr_num, attr_hid2),
        "W_user_aa":    (attr_hid2, attr_hid2),
        "W_item_aa":    (attr_hid2, attr_hid2),
        "W_ua_new":     (attr_hid2, adj_hid2),
        "W_ia_new":     (attr_hid2, adj_hid2),
        "W_ori_ui_iia": (item_attr_num, adj_hid2),
        "W_ori_iu_uua": (user_attr_num, adj_hid2),
    }
    params = {}
    keys = jax.random.split(key, len(names_shapes))
    for k, (name, shape) in zip(keys, names_shapes.items()):
        params[name] = _xavier(k, shape)
    for name, val in [("W_w_ulu_a", 0.33), ("W_w_ulu_b", 0.33),
                      ("W_w_ili_a", 0.33), ("W_w_ili_b", 0.33),
                      ("W_w_ualua_a", 0.5), ("W_w_ialia_a", 0.5),
                      ("W_w_uani_a", 0.5), ("W_w_iani_a", 0.5),
                      ("W_w_uen_a", 0.33), ("W_w_uen_b", 0.33),
                      ("W_w_ien_a", 0.33), ("W_w_ien_b", 0.33)]:
        params[name] = jnp.full((1,), val, jnp.float32)
    return params


# ----------------------------------------------------------------------------
# Forward pass (mirrors Recon_all.forward, eval mode) — 9 pallas_calls
# ----------------------------------------------------------------------------

@jax.jit
def recon_all_forward(params, x_u_ua, x_u_i, x_i_ia, A_u_ua, A_u_i, A_i_ia):
    p = params
    H = p["Wui_iia"].shape[1]            # recon_attr_hid2_dim (== adj_hid2_dim)
    U, I = A_u_i.shape
    UA = A_u_ua.shape[1]
    IA = A_i_ia.shape[1]

    # Scalar mixing coefficients.
    a_ulu, b_ulu = p["W_w_ulu_a"][0], p["W_w_ulu_b"][0]
    a_ili, b_ili = p["W_w_ili_a"][0], p["W_w_ili_b"][0]
    a_ualua = p["W_w_ualua_a"][0]
    a_ialia = p["W_w_ialia_a"][0]
    a_uani = p["W_w_uani_a"][0]
    a_iani = p["W_w_iani_a"][0]
    a_uen, b_uen = p["W_w_uen_a"][0], p["W_w_uen_b"][0]
    a_ien, b_ien = p["W_w_ien_a"][0], p["W_w_ien_b"][0]

    # ---- stage 1: latent embeddings ----------------------------------------
    # u_latent = A_u_i @ (a*XW1 + b*XW2)  +  (1-a-b) * norm(A_u_ua @ XW3)
    xw_u_fold = (a_ulu * _mm(x_i_ia, p["Wui_iia"])
                 + b_ulu * _mm(x_u_i, p["Wui_iu"], transpose_x=True))
    xw_u_norm = _mm(x_u_ua, p["Wuua_uau"], transpose_x=True)
    u_latent = fused_graphconv_combine(
        jnp.stack([1.0 - a_ulu - b_ulu]),
        (ConvGroup(False, ((None, False),)),
         ConvGroup(False, ((0, True),))),
        ((A_u_i, xw_u_fold), (A_u_ua, xw_u_norm)),
        out_rows=U, feat_dim=H)

    # i_latent = A_u_i^T @ (a*XW1 + b*XW2)  +  (1-a-b) * norm(A_i_ia @ XW3)
    xw_i_fold = (a_ili * _mm(x_u_ua, p["Wiu_uua"])
                 + b_ili * _mm(x_u_i, p["Wiu_ui"]))
    xw_i_norm = _mm(x_i_ia, p["Wiia_iai"], transpose_x=True)
    i_latent = fused_graphconv_combine(
        jnp.stack([1.0 - a_ili - b_ili]),
        (ConvGroup(True, ((None, False),)),
         ConvGroup(False, ((0, True),))),
        ((A_u_i, xw_i_fold), (A_i_ia, xw_i_norm)),
        out_rows=I, feat_dim=H)

    # ua_latent: both terms share A_u_ua^T -> one matmul on the 2H-wide concat.
    xw_ua_cat = jnp.concatenate([_mm(x_u_ua, p["Wuau_uua"]),
                                 _mm(x_u_i, p["Wuau_ui"])], axis=1)
    ua_latent = fused_graphconv_combine(
        jnp.stack([a_ualua, 1.0 - a_ualua]),
        (ConvGroup(True, ((0, True), (1, True))),),
        ((A_u_ua, xw_ua_cat),),
        out_rows=UA, feat_dim=H)

    # ia_latent: both terms share A_i_ia^T.
    xw_ia_cat = jnp.concatenate([_mm(x_i_ia, p["Wiai_iia"]),
                                 _mm(x_u_i, p["Wiai_iu"], transpose_x=True)], axis=1)
    ia_latent = fused_graphconv_combine(
        jnp.stack([a_ialia, 1.0 - a_ialia]),
        (ConvGroup(True, ((0, True), (1, True))),),
        ((A_i_ia, xw_ia_cat),),
        out_rows=IA, feat_dim=H)

    # ---- stage 2: attribute propagation + mixing (returned outputs) --------
    xw_ua_attr = _mm(ua_latent, p["W_user_aa"])
    ua_new_input = fused_graphconv_combine(
        jnp.stack([a_uani, 1.0 - a_uani]),
        (Passthrough(0), ConvGroup(False, ((1, True),))),
        ((u_latent,), (A_u_ua, xw_ua_attr)),
        out_rows=U, feat_dim=H)

    xw_ia_attr = _mm(ia_latent, p["W_item_aa"])
    ia_new_input = fused_graphconv_combine(
        jnp.stack([a_iani, 1.0 - a_iani]),
        (Passthrough(0), ConvGroup(False, ((1, True),))),
        ((i_latent,), (A_i_ia, xw_ia_attr)),
        out_rows=I, feat_dim=H)

    # ---- stage 3: new user / item embeddings --------------------------------
    # user_emb_new = a*norm(A_u_i@XW1) + b*u_latent + (1-a-b)*(A_u_i@XW2)
    # terms 1&3 share A_u_i: one matmul on the concat; the non-normalized half
    # is pre-scaled by (1-a-b) outside (scale commutes with the matmul).
    c_uen = 1.0 - a_uen - b_uen
    xw_un_cat = jnp.concatenate([_mm(ia_new_input, p["W_ia_new"]),
                                 c_uen * _mm(x_i_ia, p["W_ori_ui_iia"])], axis=1)
    user_emb_new = fused_graphconv_combine(
        jnp.stack([a_uen, b_uen]),
        (ConvGroup(False, ((0, True), (None, False))), Passthrough(1)),
        ((A_u_i, xw_un_cat), (u_latent,)),
        out_rows=U, feat_dim=H)

    c_ien = 1.0 - a_ien - b_ien
    xw_in_cat = jnp.concatenate([_mm(ua_new_input, p["W_ua_new"]),
                                 c_ien * _mm(x_u_ua, p["W_ori_iu_uua"])], axis=1)
    item_emb_new = fused_graphconv_combine(
        jnp.stack([a_ien, b_ien]),
        (ConvGroup(True, ((0, True), (None, False))), Passthrough(1)),
        ((A_u_i, xw_in_cat), (i_latent,)),
        out_rows=I, feat_dim=H)

    # ---- stage 4: decode U @ I^T --------------------------------------------
    latent_ui_nosig = decode_ui(user_emb_new, item_emb_new)
    return latent_ui_nosig, (ua_new_input, ia_new_input)


# ----------------------------------------------------------------------------
# Pure-JAX reference (numerical check)
# ----------------------------------------------------------------------------

def _ref_forward(params, x_u_ua, x_u_i, x_i_ia, A_u_ua, A_u_i, A_i_ia):
    eps = EPS
    p = params

    def gc(A, X, W, norm=False):
        out = A @ (X @ W)
        if norm:
            out = out / (eps + jnp.linalg.norm(out, axis=1, keepdims=True))
        return out

    def c3(a, b, x1, x2, x3):
        return a * x1 + b * x2 + (1.0 - a - b) * x3

    def c2(a, x1, x2):
        return a * x1 + (1.0 - a) * x2

    ue1 = gc(A_u_i, x_i_ia, p["Wui_iia"])
    ue2 = gc(A_u_i, x_u_i.T, p["Wui_iu"])
    ue3 = gc(A_u_ua, x_u_ua.T, p["Wuua_uau"], True)
    ie1 = gc(A_u_i.T, x_u_ua, p["Wiu_uua"])
    ie2 = gc(A_u_i.T, x_u_i, p["Wiu_ui"])
    ie3 = gc(A_i_ia, x_i_ia.T, p["Wiia_iai"], True)
    iae1 = gc(A_i_ia.T, x_i_ia, p["Wiai_iia"], True)
    iae2 = gc(A_i_ia.T, x_u_i.T, p["Wiai_iu"], True)
    uae1 = gc(A_u_ua.T, x_u_ua, p["Wuau_uua"], True)
    uae2 = gc(A_u_ua.T, x_u_i, p["Wuau_ui"], True)

    u_lat = c3(p["W_w_ulu_a"], p["W_w_ulu_b"], ue1, ue2, ue3)
    i_lat = c3(p["W_w_ili_a"], p["W_w_ili_b"], ie1, ie2, ie3)
    ua_lat = c2(p["W_w_ualua_a"], uae1, uae2)
    ia_lat = c2(p["W_w_ialia_a"], iae1, iae2)

    ua_attr = gc(A_u_ua, ua_lat, p["W_user_aa"], True)
    ia_attr = gc(A_i_ia, ia_lat, p["W_item_aa"], True)

    ua_new = c2(p["W_w_uani_a"], u_lat, ua_attr)
    ia_new = c2(p["W_w_iani_a"], i_lat, ia_attr)

    un1 = gc(A_u_i, ia_new, p["W_ia_new"], True)
    un2 = gc(A_u_i, x_i_ia, p["W_ori_ui_iia"])
    u_new = c3(p["W_w_uen_a"], p["W_w_uen_b"], un1, u_lat, un2)
    in1 = gc(A_u_i.T, ua_new, p["W_ua_new"], True)
    in2 = gc(A_u_i.T, x_u_ua, p["W_ori_iu_uua"])
    i_new = c3(p["W_w_ien_a"], p["W_w_ien_b"], in1, i_lat, in2)

    return u_new @ i_new.T, (ua_new, ia_new)


# ----------------------------------------------------------------------------
# Main
# ----------------------------------------------------------------------------

if __name__ == "__main__":
    # Small but tile-friendly sizes: user/item row spaces exercise multi-step
    # grids, attr row spaces exercise the full-dim fallback.
    USER_NUM, ITEM_NUM = 256, 384
    USER_ATTR_NUM, ITEM_ATTR_NUM = 96, 72
    ATTR_HID2 = ADJ_HID2 = 32     # the module's mixing requires these equal

    key = jax.random.PRNGKey(0)
    kp, k1, k2, k3, k4, k5, k6 = jax.random.split(key, 7)

    params = init_params(kp, USER_NUM, ITEM_NUM, USER_ATTR_NUM, ITEM_ATTR_NUM,
                         ATTR_HID2, ADJ_HID2)

    # Inputs (feature / adjacency matrices, dense float32).
    x_u_ua = (jax.random.uniform(k1, (USER_NUM, USER_ATTR_NUM)) > 0.5).astype(jnp.float32)
    x_u_i  = (jax.random.uniform(k2, (USER_NUM, ITEM_NUM)) > 0.5).astype(jnp.float32)
    x_i_ia = (jax.random.uniform(k3, (ITEM_NUM, ITEM_ATTR_NUM)) > 0.5).astype(jnp.float32)
    A_u_ua = jax.random.uniform(k4, (USER_NUM, USER_ATTR_NUM), jnp.float32)
    A_u_i  = jax.random.uniform(k5, (USER_NUM, ITEM_NUM), jnp.float32)
    A_i_ia = jax.random.uniform(k6, (ITEM_NUM, ITEM_ATTR_NUM), jnp.float32)

    latent_ui, (ua_new_input, ia_new_input) = recon_all_forward(
        params, x_u_ua, x_u_i, x_i_ia, A_u_ua, A_u_i, A_i_ia)
    jax.block_until_ready((latent_ui, ua_new_input, ia_new_input))

    # Numerical check against a pure-JAX f32 reference.
    ref_ui, (ref_ua, ref_ia) = _ref_forward(
        params, x_u_ua, x_u_i, x_i_ia, A_u_ua, A_u_i, A_i_ia)
    assert latent_ui.shape == (USER_NUM, ITEM_NUM)
    assert ua_new_input.shape == (USER_NUM, ATTR_HID2)
    assert ia_new_input.shape == (ITEM_NUM, ATTR_HID2)
    assert jnp.allclose(ua_new_input, ref_ua, rtol=1e-3, atol=1e-3)
    assert jnp.allclose(ia_new_input, ref_ia, rtol=1e-3, atol=1e-3)
    assert jnp.allclose(latent_ui, ref_ui, rtol=1e-3, atol=1e-2)

    print("KERNEL_OK")
</pallas_src>

<mosaic_0001>
module attributes {stable_mosaic.version = 11 : i64} {
  func.func @_fused_combine_kernel(%arg0: i32, %arg1: memref<1xf32, #tpu.memory_space<smem>>, %arg2: memref<256x128xf32, #tpu.memory_space<vmem>>, %arg3: memref<256x32xf32, #tpu.memory_space<vmem>>, %arg4: memref<128x72xf32, #tpu.memory_space<vmem>>, %arg5: memref<72x32xf32, #tpu.memory_space<vmem>>, %arg6: memref<128x32xf32, #tpu.memory_space<vmem>>) attributes {dimension_semantics = [#tpu.dimension_semantics<parallel>], iteration_bounds = array<i64: 3>, scalar_prefetch = 0 : i64, scratch_operands = 0 : i64, tpu.core_type = #tpu.core_type<tc>, window_params = [{transform_indices = @transform_0, window_bounds = array<i64: 1>}, {transform_indices = @transform_1, window_bounds = array<i64: 256, 128>}, {pipeline_mode = #tpu.pipeline_mode<synchronous>, transform_indices = @transform_2, window_bounds = array<i64: 256, 32>}, {transform_indices = @transform_3, window_bounds = array<i64: 128, 72>}, {pipeline_mode = #tpu.pipeline_mode<synchronous>, transform_indices = @transform_4, window_bounds = array<i64: 72, 32>}, {transform_indices = @transform_5, window_bounds = array<i64: 128, 32>}]} {
    %c0 = arith.constant 0 : index
    %c0_0 = arith.constant 0 : index
    %0 = vector.load %arg2[%c0, %c0_0] : memref<256x128xf32, #tpu.memory_space<vmem>>, vector<256x128xf32>
    %c0_1 = arith.constant 0 : index
    %c0_2 = arith.constant 0 : index
    %1 = vector.load %arg3[%c0_1, %c0_2] : memref<256x32xf32, #tpu.memory_space<vmem>>, vector<256x32xf32>
    %cst = arith.constant dense<0.000000e+00> : vector<128x32xf32>
    %2 = tpu.matmul %0, %1, %cst {dimension_numbers = #tpu.dot_dimension_numbers<[0], [0], [1], [1], [0, 1, 1, 1], [], []>} : vector<256x128xf32>, vector<256x32xf32>, vector<128x32xf32> -> vector<128x32xf32>
    %c0_3 = arith.constant 0 : index
    %c0_4 = arith.constant 0 : index
    %3 = vector.load %arg4[%c0_3, %c0_4] : memref<128x72xf32, #tpu.memory_space<vmem>>, vector<128x72xf32>
    %c0_5 = arith.constant 0 : index
    %c0_6 = arith.constant 0 : index
    %4 = vector.load %arg5[%c0_5, %c0_6] : memref<72x32xf32, #tpu.memory_space<vmem>>, vector<72x32xf32>
    %cst_7 = arith.constant dense<0.000000e+00> : vector<128x32xf32>
    %5 = tpu.matmul %3, %4, %cst_7 {dimension_numbers = #tpu.dot_dimension_numbers<[1], [0], [0], [1], [0, 0, 1, 1], [], []>} : vector<128x72xf32>, vector<72x32xf32>, vector<128x32xf32> -> vector<128x32xf32>
    %6 = arith.mulf %5, %5 : vector<128x32xf32>
    %cst_8 = arith.constant dense<0.000000e+00> : vector<128xf32>
    %7 = vector.multi_reduction <add>, %6, %cst_8 [1] : vector<128x32xf32> to vector<128xf32>
    %8 = vector.shape_cast %7 : vector<128xf32> to vector<128x1xf32>
    %cst_9 = arith.constant 1.000000e-32 : f32
    %9 = vector.broadcast %cst_9 : f32 to vector<128x1xf32>
    %10 = arith.addf %8, %9 : vector<128x1xf32>
    %11 = math.rsqrt %10 : vector<128x1xf32>
    %12 = vector.broadcast %11 : vector<128x1xf32> to vector<128x32xf32>
    %13 = arith.mulf %5, %12 : vector<128x32xf32>
    %c0_10 = arith.constant 0 : index
    %14 = memref.load %arg1[%c0_10] : memref<1xf32, #tpu.memory_space<smem>>
    %15 = vector.broadcast %14 : f32 to vector<128x32xf32>
    %16 = arith.mulf %15, %13 : vector<128x32xf32>
    %17 = arith.addf %2, %16 : vector<128x32xf32>
    %c0_11 = arith.constant 0 : index
    %c0_12 = arith.constant 0 : index
    %18 = vector.load %arg6[%c0_11, %c0_12] : memref<128x32xf32, #tpu.memory_space<vmem>>, vector<128x32xf32>
    tpu.vector_store %arg6[%c0_11, %c0_12], %17 {strides = array<i32>} : memref<128x32xf32, #tpu.memory_space<vmem>>, vector<128x32xf32>,
    return
  }
  func.func @transform_0(%arg0: i32) -> i32 {
    %c0_i32 = arith.constant 0 : i32
    %c0_i32_0 = arith.constant 0 : i32
    return %c0_i32 : i32
  }
  func.func @transform_1(%arg0: i32) -> (i32, i32) {
    %c0_i32 = arith.constant 0 : i32
    %c0_i32_0 = arith.constant 0 : i32
    return %c0_i32, %arg0 : i32, i32
  }
  func.func @transform_2(%arg0: i32) -> (i32, i32) {
    %c0_i32 = arith.constant 0 : i32
    %c0_i32_0 = arith.constant 0 : i32
    %c0_i32_1 = arith.constant 0 : i32
    return %c0_i32, %c0_i32_0 : i32, i32
  }
  func.func @transform_3(%arg0: i32) -> (i32, i32) {
    %c0_i32 = arith.constant 0 : i32
    %c0_i32_0 = arith.constant 0 : i32
    return %arg0, %c0_i32 : i32, i32
  }
  func.func @transform_4(%arg0: i32) -> (i32, i32) {
    %c0_i32 = arith.constant 0 : i32
    %c0_i32_0 = arith.constant 0 : i32
    %c0_i32_1 = arith.constant 0 : i32
    return %c0_i32, %c0_i32_0 : i32, i32
  }
  func.func @transform_5(%arg0: i32) -> (i32, i32) {
    %c0_i32 = arith.constant 0 : i32
    %c0_i32_0 = arith.constant 0 : i32
    return %arg0, %c0_i32 : i32, i32
  }
}

module attributes {stable_mosaic.version = 11 : i64} {
  func.func @_fused_combine_kernel(%arg0: i32, %arg1: memref<2xf32, #tpu.memory_space<smem>>, %arg2: memref<384x72xf32, #tpu.memory_space<vmem>>, %arg3: memref<384x64xf32, #tpu.memory_space<vmem>>, %arg4: memref<72x32xf32, #tpu.memory_space<vmem>>) attributes {dimension_semantics = [#tpu.dimension_semantics<parallel>], iteration_bounds = array<i64: 1>, scalar_prefetch = 0 : i64, scratch_operands = 0 : i64, tpu.core_type = #tpu.core_type<tc>, window_params = [{transform_indices = @transform_0, window_bounds = array<i64: 2>}, {transform_indices = @transform_1, window_bounds = array<i64: 384, 72>}, {pipeline_mode = #tpu.pipeline_mode<synchronous>, transform_indices = @transform_2, window_bounds = array<i64: 384, 64>}, {transform_indices = @transform_3, window_bounds = array<i64: 72, 32>}]} {
    %c0 = arith.constant 0 : index
    %c0_0 = arith.constant 0 : index
    %0 = vector.load %arg2[%c0, %c0_0] : memref<384x72xf32, #tpu.memory_space<vmem>>, vector<384x72xf32>
    %c0_1 = arith.constant 0 : index
    %c0_2 = arith.constant 0 : index
    %1 = vector.load %arg3[%c0_1, %c0_2] : memref<384x64xf32, #tpu.memory_space<vmem>>, vector<384x64xf32>
    %cst = arith.constant dense<0.000000e+00> : vector<72x64xf32>
    %2 = tpu.matmul %0, %1, %cst {dimension_numbers = #tpu.dot_dimension_numbers<[0], [0], [1], [1], [0, 1, 1, 1], [], []>} : vector<384x72xf32>, vector<384x64xf32>, vector<72x64xf32> -> vector<72x64xf32>
    %3 = vector.extract_strided_slice %2 {offsets = [0, 0], sizes = [72, 32], strides = [1, 1]} : vector<72x64xf32> to vector<72x32xf32>
    %4 = arith.mulf %3, %3 : vector<72x32xf32>
    %cst_3 = arith.constant dense<0.000000e+00> : vector<72xf32>
    %5 = vector.multi_reduction <add>, %4, %cst_3 [1] : vector<72x32xf32> to vector<72xf32>
    %6 = vector.shape_cast %5 : vector<72xf32> to vector<72x1xf32>
    %cst_4 = arith.constant 1.000000e-32 : f32
    %7 = vector.broadcast %cst_4 : f32 to vector<72x1xf32>
    %8 = arith.addf %6, %7 : vector<72x1xf32>
    %9 = math.rsqrt %8 : vector<72x1xf32>
    %10 = vector.broadcast %9 : vector<72x1xf32> to vector<72x32xf32>
    %11 = arith.mulf %3, %10 : vector<72x32xf32>
    %c0_5 = arith.constant 0 : index
    %12 = memref.load %arg1[%c0_5] : memref<2xf32, #tpu.memory_space<smem>>
    %13 = vector.broadcast %12 : f32 to vector<72x32xf32>
    %14 = arith.mulf %13, %11 : vector<72x32xf32>
    %15 = vector.extract_strided_slice %2 {offsets = [0, 32], sizes = [72, 32], strides = [1, 1]} : vector<72x64xf32> to vector<72x32xf32>
    %16 = arith.mulf %15, %15 : vector<72x32xf32>
    %cst_6 = arith.constant dense<0.000000e+00> : vector<72xf32>
    %17 = vector.multi_reduction <add>, %16, %cst_6 [1] : vector<72x32xf32> to vector<72xf32>
    %18 = vector.shape_cast %17 : vector<72xf32> to vector<72x1xf32>
    %cst_7 = arith.constant 1.000000e-32 : f32
    %19 = vector.broadcast %cst_7 : f32 to vector<72x1xf32>
    %20 = arith.addf %18, %19 : vector<72x1xf32>
    %21 = math.rsqrt %20 : vector<72x1xf32>
    %22 = vector.broadcast %21 : vector<72x1xf32> to vector<72x32xf32>
    %23 = arith.mulf %15, %22 : vector<72x32xf32>
    %c1 = arith.constant 1 : index
    %24 = memref.load %arg1[%c1] : memref<2xf32, #tpu.memory_space<smem>>
    %25 = vector.broadcast %24 : f32 to vector<72x32xf32>
    %26 = arith.mulf %25, %23 : vector<72x32xf32>
    %27 = arith.addf %14, %26 : vector<72x32xf32>
    %c0_8 = arith.constant 0 : index
    %c0_9 = arith.constant 0 : index
    %28 = vector.load %arg4[%c0_8, %c0_9] : memref<72x32xf32, #tpu.memory_space<vmem>>, vector<72x32xf32>
    tpu.vector_store %arg4[%c0_8, %c0_9], %27 {strides = array<i32>} : memref<72x32xf32, #tpu.memory_space<vmem>>, vector<72x32xf32>,
    return
  }
  func.func @transform_0(%arg0: i32) -> i32 {
    %c0_i32 = arith.constant 0 : i32
    %c0_i32_0 = arith.constant 0 : i32
    return %c0_i32 : i32
  }
  func.func @transform_1(%arg0: i32) -> (i32, i32) {
    %c0_i32 = arith.constant 0 : i32
    %c0_i32_0 = arith.constant 0 : i32
    return %c0_i32, %arg0 : i32, i32
  }
  func.func @transform_2(%arg0: i32) -> (i32, i32) {
    %c0_i32 = arith.constant 0 : i32
    %c0_i32_0 = arith.constant 0 : i32
    %c0_i32_1 = arith.constant 0 : i32
    return %c0_i32, %c0_i32_0 : i32, i32
  }
  func.func @transform_3(%arg0: i32) -> (i32, i32) {
    %c0_i32 = arith.constant 0 : i32
    %c0_i32_0 = arith.constant 0 : i32
    return %arg0, %c0_i32 : i32, i32
  }
}

module attributes {stable_mosaic.version = 11 : i64} {
  func.func @_fused_combine_kernel(%arg0: i32, %arg1: memref<2xf32, #tpu.memory_space<smem>>, %arg2: memref<192x32xf32, #tpu.memory_space<vmem>>, %arg3: memref<192x72xf32, #tpu.memory_space<vmem>>, %arg4: memref<72x32xf32, #tpu.memory_space<vmem>>, %arg5: memref<192x32xf32, #tpu.memory_space<vmem>>) attributes {dimension_semantics = [#tpu.dimension_semantics<parallel>], iteration_bounds = array<i64: 2>, scalar_prefetch = 0 : i64, scratch_operands = 0 : i64, tpu.core_type = #tpu.core_type<tc>, window_params = [{transform_indices = @transform_0, window_bounds = array<i64: 2>}, {transform_indices = @transform_1, window_bounds = array<i64: 192, 32>}, {transform_indices = @transform_2, window_bounds = array<i64: 192, 72>}, {pipeline_mode = #tpu.pipeline_mode<synchronous>, transform_indices = @transform_3, window_bounds = array<i64: 72, 32>}, {transform_indices = @transform_4, window_bounds = array<i64: 192, 32>}]} {
    %c0 = arith.constant 0 : index
    %c0_0 = arith.constant 0 : index
    %0 = vector.load %arg2[%c0, %c0_0] : memref<192x32xf32, #tpu.memory_space<vmem>>, vector<192x32xf32>
    %c0_1 = arith.constant 0 : index
    %1 = memref.load %arg1[%c0_1] : memref<2xf32, #tpu.memory_space<smem>>
    %2 = vector.broadcast %1 : f32 to vector<192x32xf32>
    %3 = arith.mulf %2, %0 : vector<192x32xf32>
    %c0_2 = arith.constant 0 : index
    %c0_3 = arith.constant 0 : index
    %4 = vector.load %arg3[%c0_2, %c0_3] : memref<192x72xf32, #tpu.memory_space<vmem>>, vector<192x72xf32>
    %c0_4 = arith.constant 0 : index
    %c0_5 = arith.constant 0 : index
    %5 = vector.load %arg4[%c0_4, %c0_5] : memref<72x32xf32, #tpu.memory_space<vmem>>, vector<72x32xf32>
    %cst = arith.constant dense<0.000000e+00> : vector<192x32xf32>
    %6 = tpu.matmul %4, %5, %cst {dimension_numbers = #tpu.dot_dimension_numbers<[1], [0], [0], [1], [0, 0, 1, 1], [], []>} : vector<192x72xf32>, vector<72x32xf32>, vector<192x32xf32> -> vector<192x32xf32>
    %7 = arith.mulf %6, %6 : vector<192x32xf32>
    %cst_6 = arith.constant dense<0.000000e+00> : vector<192xf32>
    %8 = vector.multi_reduction <add>, %7, %cst_6 [1] : vector<192x32xf32> to vector<192xf32>
    %9 = vector.shape_cast %8 : vector<192xf32> to vector<192x1xf32>
    %cst_7 = arith.constant 1.000000e-32 : f32
    %10 = vector.broadcast %cst_7 : f32 to vector<192x1xf32>
    %11 = arith.addf %9, %10 : vector<192x1xf32>
    %12 = math.rsqrt %11 : vector<192x1xf32>
    %13 = vector.broadcast %12 : vector<192x1xf32> to vector<192x32xf32>
    %14 = arith.mulf %6, %13 : vector<192x32xf32>
    %c1 = arith.constant 1 : index
    %15 = memref.load %arg1[%c1] : memref<2xf32, #tpu.memory_space<smem>>
    %16 = vector.broadcast %15 : f32 to vector<192x32xf32>
    %17 = arith.mulf %16, %14 : vector<192x32xf32>
    %18 = arith.addf %3, %17 : vector<192x32xf32>
    %c0_8 = arith.constant 0 : index
    %c0_9 = arith.constant 0 : index
    %19 = vector.load %arg5[%c0_8, %c0_9] : memref<192x32xf32, #tpu.memory_space<vmem>>, vector<192x32xf32>
    tpu.vector_store %arg5[%c0_8, %c0_9], %18 {strides = array<i32>} : memref<192x32xf32, #tpu.memory_space<vmem>>, vector<192x32xf32>,
    return
  }
  func.func @transform_0(%arg0: i32) -> i32 {
    %c0_i32 = arith.constant 0 : i32
    %c0_i32_0 = arith.constant 0 : i32
    return %c0_i32 : i32
  }
  func.func @transform_1(%arg0: i32) -> (i32, i32) {
    %c0_i32 = arith.constant 0 : i32
    %c0_i32_0 = arith.constant 0 : i32
    return %arg0, %c0_i32 : i32, i32
  }
  func.func @transform_2(%arg0: i32) -> (i32, i32) {
    %c0_i32 = arith.constant 0 : i32
    %c0_i32_0 = arith.constant 0 : i32
    return %arg0, %c0_i32 : i32, i32
  }
  func.func @transform_3(%arg0: i32) -> (i32, i32) {
    %c0_i32 = arith.constant 0 : i32
    %c0_i32_0 = arith.constant 0 : i32
    %c0_i32_1 = arith.constant 0 : i32
    return %c0_i32, %c0_i32_0 : i32, i32
  }
  func.func @transform_4(%arg0: i32) -> (i32, i32) {
    %c0_i32 = arith.constant 0 : i32
    %c0_i32_0 = arith.constant 0 : i32
    return %arg0, %c0_i32 : i32, i32
  }
}

module attributes {stable_mosaic.version = 11 : i64} {
  func.func @_fused_combine_kernel(%arg0: i32, %arg1: memref<2xf32, #tpu.memory_space<smem>>, %arg2: memref<128x384xf32, #tpu.memory_space<vmem>>, %arg3: memref<384x64xf32, #tpu.memory_space<vmem>>, %arg4: memref<128x32xf32, #tpu.memory_space<vmem>>, %arg5: memref<128x32xf32, #tpu.memory_space<vmem>>) attributes {dimension_semantics = [#tpu.dimension_semantics<parallel>], iteration_bounds = array<i64: 2>, scalar_prefetch = 0 : i64, scratch_operands = 0 : i64, tpu.core_type = #tpu.core_type<tc>, window_params = [{transform_indices = @transform_0, window_bounds = array<i64: 2>}, {transform_indices = @transform_1, window_bounds = array<i64: 128, 384>}, {pipeline_mode = #tpu.pipeline_mode<synchronous>, transform_indices = @transform_2, window_bounds = array<i64: 384, 64>}, {transform_indices = @transform_3, window_bounds = array<i64: 128, 32>}, {transform_indices = @transform_4, window_bounds = array<i64: 128, 32>}]} {
    %c0 = arith.constant 0 : index
    %c0_0 = arith.constant 0 : index
    %0 = vector.load %arg2[%c0, %c0_0] : memref<128x384xf32, #tpu.memory_space<vmem>>, vector<128x384xf32>
    %c0_1 = arith.constant 0 : index
    %c0_2 = arith.constant 0 : index
    %1 = vector.load %arg3[%c0_1, %c0_2] : memref<384x64xf32, #tpu.memory_space<vmem>>, vector<384x64xf32>
    %cst = arith.constant dense<0.000000e+00> : vector<128x64xf32>
    %2 = tpu.matmul %0, %1, %cst {dimension_numbers = #tpu.dot_dimension_numbers<[1], [0], [0], [1], [0, 0, 1, 1], [], []>} : vector<128x384xf32>, vector<384x64xf32>, vector<128x64xf32> -> vector<128x64xf32>
    %3 = vector.extract_strided_slice %2 {offsets = [0, 0], sizes = [128, 32], strides = [1, 1]} : vector<128x64xf32> to vector<128x32xf32>
    %4 = arith.mulf %3, %3 : vector<128x32xf32>
    %cst_3 = arith.constant dense<0.000000e+00> : vector<128xf32>
    %5 = vector.multi_reduction <add>, %4, %cst_3 [1] : vector<128x32xf32> to vector<128xf32>
    %6 = vector.shape_cast %5 : vector<128xf32> to vector<128x1xf32>
    %cst_4 = arith.constant 1.000000e-32 : f32
    %7 = vector.broadcast %cst_4 : f32 to vector<128x1xf32>
    %8 = arith.addf %6, %7 : vector<128x1xf32>
    %9 = math.rsqrt %8 : vector<128x1xf32>
    %10 = vector.broadcast %9 : vector<128x1xf32> to vector<128x32xf32>
    %11 = arith.mulf %3, %10 : vector<128x32xf32>
    %c0_5 = arith.constant 0 : index
    %12 = memref.load %arg1[%c0_5] : memref<2xf32, #tpu.memory_space<smem>>
    %13 = vector.broadcast %12 : f32 to vector<128x32xf32>
    %14 = arith.mulf %13, %11 : vector<128x32xf32>
    %15 = vector.extract_strided_slice %2 {offsets = [0, 32], sizes = [128, 32], strides = [1, 1]} : vector<128x64xf32> to vector<128x32xf32>
    %16 = arith.addf %14, %15 : vector<128x32xf32>
    %c0_6 = arith.constant 0 : index
    %c0_7 = arith.constant 0 : index
    %17 = vector.load %arg4[%c0_6, %c0_7] : memref<128x32xf32, #tpu.memory_space<vmem>>, vector<128x32xf32>
    %c1 = arith.constant 1 : index
    %18 = memref.load %arg1[%c1] : memref<2xf32, #tpu.memory_space<smem>>
    %19 = vector.broadcast %18 : f32 to vector<128x32xf32>
    %20 = arith.mulf %19, %17 : vector<128x32xf32>
    %21 = arith.addf %16, %20 : vector<128x32xf32>
    %c0_8 = arith.constant 0 : index
    %c0_9 = arith.constant 0 : index
    %22 = vector.load %arg5[%c0_8, %c0_9] : memref<128x32xf32, #tpu.memory_space<vmem>>, vector<128x32xf32>
    tpu.vector_store %arg5[%c0_8, %c0_9], %21 {strides = array<i32>} : memref<128x32xf32, #tpu.memory_space<vmem>>, vector<128x32xf32>,
    return
  }
  func.func @transform_0(%arg0: i32) -> i32 {
    %c0_i32 = arith.constant 0 : i32
    %c0_i32_0 = arith.constant 0 : i32
    return %c0_i32 : i32
  }
  func.func @transform_1(%arg0: i32) -> (i32, i32) {
    %c0_i32 = arith.constant 0 : i32
    %c0_i32_0 = arith.constant 0 : i32
    return %arg0, %c0_i32 : i32, i32
  }
  func.func @transform_2(%arg0: i32) -> (i32, i32) {
    %c0_i32 = arith.constant 0 : i32
    %c0_i32_0 = arith.constant 0 : i32
    %c0_i32_1 = arith.constant 0 : i32
    return %c0_i32, %c0_i32_0 : i32, i32
  }
  func.func @transform_3(%arg0: i32) -> (i32, i32) {
    %c0_i32 = arith.constant 0 : i32
    %c0_i32_0 = arith.constant 0 : i32
    return %arg0, %c0_i32 : i32, i32
  }
  func.func @transform_4(%arg0: i32) -> (i32, i32) {
    %c0_i32 = arith.constant 0 : i32
    %c0_i32_0 = arith.constant 0 : i32
    return %arg0, %c0_i32 : i32, i32
  }
}

module attributes {stable_mosaic.version = 11 : i64} {
  func.func @_fused_combine_kernel(%arg0: i32, %arg1: memref<1xf32, #tpu.memory_space<smem>>, %arg2: memref<128x384xf32, #tpu.memory_space<vmem>>, %arg3: memref<384x32xf32, #tpu.memory_space<vmem>>, %arg4: memref<128x96xf32, #tpu.memory_space<vmem>>, %arg5: memref<96x32xf32, #tpu.memory_space<vmem>>, %arg6: memref<128x32xf32, #tpu.memory_space<vmem>>) attributes {dimension_semantics = [#tpu.dimension_semantics<parallel>], iteration_bounds = array<i64: 2>, scalar_prefetch = 0 : i64, scratch_operands = 0 : i64, tpu.core_type = #tpu.core_type<tc>, window_params = [{transform_indices = @transform_0, window_bounds = array<i64: 1>}, {transform_indices = @transform_1, window_bounds = array<i64: 128, 384>}, {pipeline_mode = #tpu.pipeline_mode<synchronous>, transform_indices = @transform_2, window_bounds = array<i64: 384, 32>}, {transform_indices = @transform_3, window_bounds = array<i64: 128, 96>}, {pipeline_mode = #tpu.pipeline_mode<synchronous>, transform_indices = @transform_4, window_bounds = array<i64: 96, 32>}, {transform_indices = @transform_5, window_bounds = array<i64: 128, 32>}]} {
    %c0 = arith.constant 0 : index
    %c0_0 = arith.constant 0 : index
    %0 = vector.load %arg2[%c0, %c0_0] : memref<128x384xf32, #tpu.memory_space<vmem>>, vector<128x384xf32>
    %c0_1 = arith.constant 0 : index
    %c0_2 = arith.constant 0 : index
    %1 = vector.load %arg3[%c0_1, %c0_2] : memref<384x32xf32, #tpu.memory_space<vmem>>, vector<384x32xf32>
    %cst = arith.constant dense<0.000000e+00> : vector<128x32xf32>
    %2 = tpu.matmul %0, %1, %cst {dimension_numbers = #tpu.dot_dimension_numbers<[1], [0], [0], [1], [0, 0, 1, 1], [], []>} : vector<128x384xf32>, vector<384x32xf32>, vector<128x32xf32> -> vector<128x32xf32>
    %c0_3 = arith.constant 0 : index
    %c0_4 = arith.constant 0 : index
    %3 = vector.load %arg4[%c0_3, %c0_4] : memref<128x96xf32, #tpu.memory_space<vmem>>, vector<128x96xf32>
    %c0_5 = arith.constant 0 : index
    %c0_6 = arith.constant 0 : index
    %4 = vector.load %arg5[%c0_5, %c0_6] : memref<96x32xf32, #tpu.memory_space<vmem>>, vector<96x32xf32>
    %cst_7 = arith.constant dense<0.000000e+00> : vector<128x32xf32>
    %5 = tpu.matmul %3, %4, %cst_7 {dimension_numbers = #tpu.dot_dimension_numbers<[1], [0], [0], [1], [0, 0, 1, 1], [], []>} : vector<128x96xf32>, vector<96x32xf32>, vector<128x32xf32> -> vector<128x32xf32>
    %6 = arith.mulf %5, %5 : vector<128x32xf32>
    %cst_8 = arith.constant dense<0.000000e+00> : vector<128xf32>
    %7 = vector.multi_reduction <add>, %6, %cst_8 [1] : vector<128x32xf32> to vector<128xf32>
    %8 = vector.shape_cast %7 : vector<128xf32> to vector<128x1xf32>
    %cst_9 = arith.constant 1.000000e-32 : f32
    %9 = vector.broadcast %cst_9 : f32 to vector<128x1xf32>
    %10 = arith.addf %8, %9 : vector<128x1xf32>
    %11 = math.rsqrt %10 : vector<128x1xf32>
    %12 = vector.broadcast %11 : vector<128x1xf32> to vector<128x32xf32>
    %13 = arith.mulf %5, %12 : vector<128x32xf32>
    %c0_10 = arith.constant 0 : index
    %14 = memref.load %arg1[%c0_10] : memref<1xf32, #tpu.memory_space<smem>>
    %15 = vector.broadcast %14 : f32 to vector<128x32xf32>
    %16 = arith.mulf %15, %13 : vector<128x32xf32>
    %17 = arith.addf %2, %16 : vector<128x32xf32>
    %c0_11 = arith.constant 0 : index
    %c0_12 = arith.constant 0 : index
    %18 = vector.load %arg6[%c0_11, %c0_12] : memref<128x32xf32, #tpu.memory_space<vmem>>, vector<128x32xf32>
    tpu.vector_store %arg6[%c0_11, %c0_12], %17 {strides = array<i32>} : memref<128x32xf32, #tpu.memory_space<vmem>>, vector<128x32xf32>,
    return
  }
  func.func @transform_0(%arg0: i32) -> i32 {
    %c0_i32 = arith.constant 0 : i32
    %c0_i32_0 = arith.constant 0 : i32
    return %c0_i32 : i32
  }
  func.func @transform_1(%arg0: i32) -> (i32, i32) {
    %c0_i32 = arith.constant 0 : i32
    %c0_i32_0 = arith.constant 0 : i32
    return %arg0, %c0_i32 : i32, i32
  }
  func.func @transform_2(%arg0: i32) -> (i32, i32) {
    %c0_i32 = arith.constant 0 : i32
    %c0_i32_0 = arith.constant 0 : i32
    %c0_i32_1 = arith.constant 0 : i32
    return %c0_i32, %c0_i32_0 : i32, i32
  }
  func.func @transform_3(%arg0: i32) -> (i32, i32) {
    %c0_i32 = arith.constant 0 : i32
    %c0_i32_0 = arith.constant 0 : i32
    return %arg0, %c0_i32 : i32, i32
  }
  func.func @transform_4(%arg0: i32) -> (i32, i32) {
    %c0_i32 = arith.constant 0 : i32
    %c0_i32_0 = arith.constant 0 : i32
    %c0_i32_1 = arith.constant 0 : i32
    return %c0_i32, %c0_i32_0 : i32, i32
  }
  func.func @transform_5(%arg0: i32) -> (i32, i32) {
    %c0_i32 = arith.constant 0 : i32
    %c0_i32_0 = arith.constant 0 : i32
    return %arg0, %c0_i32 : i32, i32
  }
}

module attributes {stable_mosaic.version = 11 : i64} {
  func.func @_fused_combine_kernel(%arg0: i32, %arg1: memref<2xf32, #tpu.memory_space<smem>>, %arg2: memref<256x96xf32, #tpu.memory_space<vmem>>, %arg3: memref<256x64xf32, #tpu.memory_space<vmem>>, %arg4: memref<96x32xf32, #tpu.memory_space<vmem>>) attributes {dimension_semantics = [#tpu.dimension_semantics<parallel>], iteration_bounds = array<i64: 1>, scalar_prefetch = 0 : i64, scratch_operands = 0 : i64, tpu.core_type = #tpu.core_type<tc>, window_params = [{transform_indices = @transform_0, window_bounds = array<i64: 2>}, {transform_indices = @transform_1, window_bounds = array<i64: 256, 96>}, {pipeline_mode = #tpu.pipeline_mode<synchronous>, transform_indices = @transform_2, window_bounds = array<i64: 256, 64>}, {transform_indices = @transform_3, window_bounds = array<i64: 96, 32>}]} {
    %c0 = arith.constant 0 : index
    %c0_0 = arith.constant 0 : index
    %0 = vector.load %arg2[%c0, %c0_0] : memref<256x96xf32, #tpu.memory_space<vmem>>, vector<256x96xf32>
    %c0_1 = arith.constant 0 : index
    %c0_2 = arith.constant 0 : index
    %1 = vector.load %arg3[%c0_1, %c0_2] : memref<256x64xf32, #tpu.memory_space<vmem>>, vector<256x64xf32>
    %cst = arith.constant dense<0.000000e+00> : vector<96x64xf32>
    %2 = tpu.matmul %0, %1, %cst {dimension_numbers = #tpu.dot_dimension_numbers<[0], [0], [1], [1], [0, 1, 1, 1], [], []>} : vector<256x96xf32>, vector<256x64xf32>, vector<96x64xf32> -> vector<96x64xf32>
    %3 = vector.extract_strided_slice %2 {offsets = [0, 0], sizes = [96, 32], strides = [1, 1]} : vector<96x64xf32> to vector<96x32xf32>
    %4 = arith.mulf %3, %3 : vector<96x32xf32>
    %cst_3 = arith.constant dense<0.000000e+00> : vector<96xf32>
    %5 = vector.multi_reduction <add>, %4, %cst_3 [1] : vector<96x32xf32> to vector<96xf32>
    %6 = vector.shape_cast %5 : vector<96xf32> to vector<96x1xf32>
    %cst_4 = arith.constant 1.000000e-32 : f32
    %7 = vector.broadcast %cst_4 : f32 to vector<96x1xf32>
    %8 = arith.addf %6, %7 : vector<96x1xf32>
    %9 = math.rsqrt %8 : vector<96x1xf32>
    %10 = vector.broadcast %9 : vector<96x1xf32> to vector<96x32xf32>
    %11 = arith.mulf %3, %10 : vector<96x32xf32>
    %c0_5 = arith.constant 0 : index
    %12 = memref.load %arg1[%c0_5] : memref<2xf32, #tpu.memory_space<smem>>
    %13 = vector.broadcast %12 : f32 to vector<96x32xf32>
    %14 = arith.mulf %13, %11 : vector<96x32xf32>
    %15 = vector.extract_strided_slice %2 {offsets = [0, 32], sizes = [96, 32], strides = [1, 1]} : vector<96x64xf32> to vector<96x32xf32>
    %16 = arith.mulf %15, %15 : vector<96x32xf32>
    %cst_6 = arith.constant dense<0.000000e+00> : vector<96xf32>
    %17 = vector.multi_reduction <add>, %16, %cst_6 [1] : vector<96x32xf32> to vector<96xf32>
    %18 = vector.shape_cast %17 : vector<96xf32> to vector<96x1xf32>
    %cst_7 = arith.constant 1.000000e-32 : f32
    %19 = vector.broadcast %cst_7 : f32 to vector<96x1xf32>
    %20 = arith.addf %18, %19 : vector<96x1xf32>
    %21 = math.rsqrt %20 : vector<96x1xf32>
    %22 = vector.broadcast %21 : vector<96x1xf32> to vector<96x32xf32>
    %23 = arith.mulf %15, %22 : vector<96x32xf32>
    %c1 = arith.constant 1 : index
    %24 = memref.load %arg1[%c1] : memref<2xf32, #tpu.memory_space<smem>>
    %25 = vector.broadcast %24 : f32 to vector<96x32xf32>
    %26 = arith.mulf %25, %23 : vector<96x32xf32>
    %27 = arith.addf %14, %26 : vector<96x32xf32>
    %c0_8 = arith.constant 0 : index
    %c0_9 = arith.constant 0 : index
    %28 = vector.load %arg4[%c0_8, %c0_9] : memref<96x32xf32, #tpu.memory_space<vmem>>, vector<96x32xf32>
    tpu.vector_store %arg4[%c0_8, %c0_9], %27 {strides = array<i32>} : memref<96x32xf32, #tpu.memory_space<vmem>>, vector<96x32xf32>,
    return
  }
  func.func @transform_0(%arg0: i32) -> i32 {
    %c0_i32 = arith.constant 0 : i32
    %c0_i32_0 = arith.constant 0 : i32
    return %c0_i32 : i32
  }
  func.func @transform_1(%arg0: i32) -> (i32, i32) {
    %c0_i32 = arith.constant 0 : i32
    %c0_i32_0 = arith.constant 0 : i32
    return %c0_i32, %arg0 : i32, i32
  }
  func.func @transform_2(%arg0: i32) -> (i32, i32) {
    %c0_i32 = arith.constant 0 : i32
    %c0_i32_0 = arith.constant 0 : i32
    %c0_i32_1 = arith.constant 0 : i32
    return %c0_i32, %c0_i32_0 : i32, i32
  }
  func.func @transform_3(%arg0: i32) -> (i32, i32) {
    %c0_i32 = arith.constant 0 : i32
    %c0_i32_0 = arith.constant 0 : i32
    return %arg0, %c0_i32 : i32, i32
  }
}

module attributes {stable_mosaic.version = 11 : i64} {
  func.func @_fused_combine_kernel(%arg0: i32, %arg1: memref<2xf32, #tpu.memory_space<smem>>, %arg2: memref<128x32xf32, #tpu.memory_space<vmem>>, %arg3: memref<128x96xf32, #tpu.memory_space<vmem>>, %arg4: memref<96x32xf32, #tpu.memory_space<vmem>>, %arg5: memref<128x32xf32, #tpu.memory_space<vmem>>) attributes {dimension_semantics = [#tpu.dimension_semantics<parallel>], iteration_bounds = array<i64: 2>, scalar_prefetch = 0 : i64, scratch_operands = 0 : i64, tpu.core_type = #tpu.core_type<tc>, window_params = [{transform_indices = @transform_0, window_bounds = array<i64: 2>}, {transform_indices = @transform_1, window_bounds = array<i64: 128, 32>}, {transform_indices = @transform_2, window_bounds = array<i64: 128, 96>}, {pipeline_mode = #tpu.pipeline_mode<synchronous>, transform_indices = @transform_3, window_bounds = array<i64: 96, 32>}, {transform_indices = @transform_4, window_bounds = array<i64: 128, 32>}]} {
    %c0 = arith.constant 0 : index
    %c0_0 = arith.constant 0 : index
    %0 = vector.load %arg2[%c0, %c0_0] : memref<128x32xf32, #tpu.memory_space<vmem>>, vector<128x32xf32>
    %c0_1 = arith.constant 0 : index
    %1 = memref.load %arg1[%c0_1] : memref<2xf32, #tpu.memory_space<smem>>
    %2 = vector.broadcast %1 : f32 to vector<128x32xf32>
    %3 = arith.mulf %2, %0 : vector<128x32xf32>
    %c0_2 = arith.constant 0 : index
    %c0_3 = arith.constant 0 : index
    %4 = vector.load %arg3[%c0_2, %c0_3] : memref<128x96xf32, #tpu.memory_space<vmem>>, vector<128x96xf32>
    %c0_4 = arith.constant 0 : index
    %c0_5 = arith.constant 0 : index
    %5 = vector.load %arg4[%c0_4, %c0_5] : memref<96x32xf32, #tpu.memory_space<vmem>>, vector<96x32xf32>
    %cst = arith.constant dense<0.000000e+00> : vector<128x32xf32>
    %6 = tpu.matmul %4, %5, %cst {dimension_numbers = #tpu.dot_dimension_numbers<[1], [0], [0], [1], [0, 0, 1, 1], [], []>} : vector<128x96xf32>, vector<96x32xf32>, vector<128x32xf32> -> vector<128x32xf32>
    %7 = arith.mulf %6, %6 : vector<128x32xf32>
    %cst_6 = arith.constant dense<0.000000e+00> : vector<128xf32>
    %8 = vector.multi_reduction <add>, %7, %cst_6 [1] : vector<128x32xf32> to vector<128xf32>
    %9 = vector.shape_cast %8 : vector<128xf32> to vector<128x1xf32>
    %cst_7 = arith.constant 1.000000e-32 : f32
    %10 = vector.broadcast %cst_7 : f32 to vector<128x1xf32>
    %11 = arith.addf %9, %10 : vector<128x1xf32>
    %12 = math.rsqrt %11 : vector<128x1xf32>
    %13 = vector.broadcast %12 : vector<128x1xf32> to vector<128x32xf32>
    %14 = arith.mulf %6, %13 : vector<128x32xf32>
    %c1 = arith.constant 1 : index
    %15 = memref.load %arg1[%c1] : memref<2xf32, #tpu.memory_space<smem>>
    %16 = vector.broadcast %15 : f32 to vector<128x32xf32>
    %17 = arith.mulf %16, %14 : vector<128x32xf32>
    %18 = arith.addf %3, %17 : vector<128x32xf32>
    %c0_8 = arith.constant 0 : index
    %c0_9 = arith.constant 0 : index
    %19 = vector.load %arg5[%c0_8, %c0_9] : memref<128x32xf32, #tpu.memory_space<vmem>>, vector<128x32xf32>
    tpu.vector_store %arg5[%c0_8, %c0_9], %18 {strides = array<i32>} : memref<128x32xf32, #tpu.memory_space<vmem>>, vector<128x32xf32>,
    return
  }
  func.func @transform_0(%arg0: i32) -> i32 {
    %c0_i32 = arith.constant 0 : i32
    %c0_i32_0 = arith.constant 0 : i32
    return %c0_i32 : i32
  }
  func.func @transform_1(%arg0: i32) -> (i32, i32) {
    %c0_i32 = arith.constant 0 : i32
    %c0_i32_0 = arith.constant 0 : i32
    return %arg0, %c0_i32 : i32, i32
  }
  func.func @transform_2(%arg0: i32) -> (i32, i32) {
    %c0_i32 = arith.constant 0 : i32
    %c0_i32_0 = arith.constant 0 : i32
    return %arg0, %c0_i32 : i32, i32
  }
  func.func @transform_3(%arg0: i32) -> (i32, i32) {
    %c0_i32 = arith.constant 0 : i32
    %c0_i32_0 = arith.constant 0 : i32
    %c0_i32_1 = arith.constant 0 : i32
    return %c0_i32, %c0_i32_0 : i32, i32
  }
  func.func @transform_4(%arg0: i32) -> (i32, i32) {
    %c0_i32 = arith.constant 0 : i32
    %c0_i32_0 = arith.constant 0 : i32
    return %arg0, %c0_i32 : i32, i32
  }
}

module attributes {stable_mosaic.version = 11 : i64} {
  func.func @_fused_combine_kernel(%arg0: i32, %arg1: memref<2xf32, #tpu.memory_space<smem>>, %arg2: memref<256x128xf32, #tpu.memory_space<vmem>>, %arg3: memref<256x64xf32, #tpu.memory_space<vmem>>, %arg4: memref<128x32xf32, #tpu.memory_space<vmem>>, %arg5: memref<128x32xf32, #tpu.memory_space<vmem>>) attributes {dimension_semantics = [#tpu.dimension_semantics<parallel>], iteration_bounds = array<i64: 3>, scalar_prefetch = 0 : i64, scratch_operands = 0 : i64, tpu.core_type = #tpu.core_type<tc>, window_params = [{transform_indices = @transform_0, window_bounds = array<i64: 2>}, {transform_indices = @transform_1, window_bounds = array<i64: 256, 128>}, {pipeline_mode = #tpu.pipeline_mode<synchronous>, transform_indices = @transform_2, window_bounds = array<i64: 256, 64>}, {transform_indices = @transform_3, window_bounds = array<i64: 128, 32>}, {transform_indices = @transform_4, window_bounds = array<i64: 128, 32>}]} {
    %c0 = arith.constant 0 : index
    %c0_0 = arith.constant 0 : index
    %0 = vector.load %arg2[%c0, %c0_0] : memref<256x128xf32, #tpu.memory_space<vmem>>, vector<256x128xf32>
    %c0_1 = arith.constant 0 : index
    %c0_2 = arith.constant 0 : index
    %1 = vector.load %arg3[%c0_1, %c0_2] : memref<256x64xf32, #tpu.memory_space<vmem>>, vector<256x64xf32>
    %cst = arith.constant dense<0.000000e+00> : vector<128x64xf32>
    %2 = tpu.matmul %0, %1, %cst {dimension_numbers = #tpu.dot_dimension_numbers<[0], [0], [1], [1], [0, 1, 1, 1], [], []>} : vector<256x128xf32>, vector<256x64xf32>, vector<128x64xf32> -> vector<128x64xf32>
    %3 = vector.extract_strided_slice %2 {offsets = [0, 0], sizes = [128, 32], strides = [1, 1]} : vector<128x64xf32> to vector<128x32xf32>
    %4 = arith.mulf %3, %3 : vector<128x32xf32>
    %cst_3 = arith.constant dense<0.000000e+00> : vector<128xf32>
    %5 = vector.multi_reduction <add>, %4, %cst_3 [1] : vector<128x32xf32> to vector<128xf32>
    %6 = vector.shape_cast %5 : vector<128xf32> to vector<128x1xf32>
    %cst_4 = arith.constant 1.000000e-32 : f32
    %7 = vector.broadcast %cst_4 : f32 to vector<128x1xf32>
    %8 = arith.addf %6, %7 : vector<128x1xf32>
    %9 = math.rsqrt %8 : vector<128x1xf32>
    %10 = vector.broadcast %9 : vector<128x1xf32> to vector<128x32xf32>
    %11 = arith.mulf %3, %10 : vector<128x32xf32>
    %c0_5 = arith.constant 0 : index
    %12 = memref.load %arg1[%c0_5] : memref<2xf32, #tpu.memory_space<smem>>
    %13 = vector.broadcast %12 : f32 to vector<128x32xf32>
    %14 = arith.mulf %13, %11 : vector<128x32xf32>
    %15 = vector.extract_strided_slice %2 {offsets = [0, 32], sizes = [128, 32], strides = [1, 1]} : vector<128x64xf32> to vector<128x32xf32>
    %16 = arith.addf %14, %15 : vector<128x32xf32>
    %c0_6 = arith.constant 0 : index
    %c0_7 = arith.constant 0 : index
    %17 = vector.load %arg4[%c0_6, %c0_7] : memref<128x32xf32, #tpu.memory_space<vmem>>, vector<128x32xf32>
    %c1 = arith.constant 1 : index
    %18 = memref.load %arg1[%c1] : memref<2xf32, #tpu.memory_space<smem>>
    %19 = vector.broadcast %18 : f32 to vector<128x32xf32>
    %20 = arith.mulf %19, %17 : vector<128x32xf32>
    %21 = arith.addf %16, %20 : vector<128x32xf32>
    %c0_8 = arith.constant 0 : index
    %c0_9 = arith.constant 0 : index
    %22 = vector.load %arg5[%c0_8, %c0_9] : memref<128x32xf32, #tpu.memory_space<vmem>>, vector<128x32xf32>
    tpu.vector_store %arg5[%c0_8, %c0_9], %21 {strides = array<i32>} : memref<128x32xf32, #tpu.memory_space<vmem>>, vector<128x32xf32>,
    return
  }
  func.func @transform_0(%arg0: i32) -> i32 {
    %c0_i32 = arith.constant 0 : i32
    %c0_i32_0 = arith.constant 0 : i32
    return %c0_i32 : i32
  }
  func.func @transform_1(%arg0: i32) -> (i32, i32) {
    %c0_i32 = arith.constant 0 : i32
    %c0_i32_0 = arith.constant 0 : i32
    return %c0_i32, %arg0 : i32, i32
  }
  func.func @transform_2(%arg0: i32) -> (i32, i32) {
    %c0_i32 = arith.constant 0 : i32
    %c0_i32_0 = arith.constant 0 : i32
    %c0_i32_1 = arith.constant 0 : i32
    return %c0_i32, %c0_i32_0 : i32, i32
  }
  func.func @transform_3(%arg0: i32) -> (i32, i32) {
    %c0_i32 = arith.constant 0 : i32
    %c0_i32_0 = arith.constant 0 : i32
    return %arg0, %c0_i32 : i32, i32
  }
  func.func @transform_4(%arg0: i32) -> (i32, i32) {
    %c0_i32 = arith.constant 0 : i32
    %c0_i32_0 = arith.constant 0 : i32
    return %arg0, %c0_i32 : i32, i32
  }
}

module attributes {stable_mosaic.version = 11 : i64} {
  func.func @_decode_kernel(%arg0: i32, %arg1: i32, %arg2: memref<128x32xf32, #tpu.memory_space<vmem>>, %arg3: memref<128x32xf32, #tpu.memory_space<vmem>>, %arg4: memref<128x128xf32, #tpu.memory_space<vmem>>) attributes {dimension_semantics = [#tpu.dimension_semantics<parallel>, #tpu.dimension_semantics<parallel>], iteration_bounds = array<i64: 2, 3>, scalar_prefetch = 0 : i64, scratch_operands = 0 : i64, tpu.core_type = #tpu.core_type<tc>, window_params = [{transform_indices = @transform_0, window_bounds = array<i64: 128, 32>}, {transform_indices = @transform_1, window_bounds = array<i64: 128, 32>}, {transform_indices = @transform_2, window_bounds = array<i64: 128, 128>}]} {
    %c0 = arith.constant 0 : index
    %c0_0 = arith.constant 0 : index
    %0 = vector.load %arg2[%c0, %c0_0] : memref<128x32xf32, #tpu.memory_space<vmem>>, vector<128x32xf32>
    %c0_1 = arith.constant 0 : index
    %c0_2 = arith.constant 0 : index
    %1 = vector.load %arg3[%c0_1, %c0_2] : memref<128x32xf32, #tpu.memory_space<vmem>>, vector<128x32xf32>
    %cst = arith.constant dense<0.000000e+00> : vector<128x128xf32>
    %2 = tpu.matmul %0, %1, %cst {dimension_numbers = #tpu.dot_dimension_numbers<[1], [1], [0], [0], [0, 0, 1, 0], [], []>} : vector<128x32xf32>, vector<128x32xf32>, vector<128x128xf32> -> vector<128x128xf32>
    %c0_3 = arith.constant 0 : index
    %c0_4 = arith.constant 0 : index
    %3 = vector.load %arg4[%c0_3, %c0_4] : memref<128x128xf32, #tpu.memory_space<vmem>>, vector<128x128xf32>
    tpu.vector_store %arg4[%c0_3, %c0_4], %2 {strides = array<i32>} : memref<128x128xf32, #tpu.memory_space<vmem>>, vector<128x128xf32>,
    return
  }
  func.func @transform_0(%arg0: i32, %arg1: i32) -> (i32, i32) {
    %c0_i32 = arith.constant 0 : i32
    %c0_i32_0 = arith.constant 0 : i32
    return %arg0, %c0_i32 : i32, i32
  }
  func.func @transform_1(%arg0: i32, %arg1: i32) -> (i32, i32) {
    %c0_i32 = arith.constant 0 : i32
    %c0_i32_0 = arith.constant 0 : i32
    return %arg1, %c0_i32 : i32, i32
  }
  func.func @transform_2(%arg0: i32, %arg1: i32) -> (i32, i32) {
    %c0_i32 = arith.constant 0 : i32
    return %arg0, %arg1 : i32, i32
  }
}

</mosaic_0001>

<bundles_post_ra>
// kernel: recon_all_forward.10
= control target key start
LH: loop header
LB: loop body
LE: loop exit
PB: predicated region body
PF: predicated region fallthrough
CT: control target
= control target key end

     0   :  { %s2100_s0 = inlined_call_operand.<no memory space> [shape: f32[1], index: 0, kind: input, shape index: {}]   ;;  %s2101_s1 = inlined_call_operand.vmem [shape: f32[256,384], index: 1, kind: input, shape index: {}]   ;;  %s2102_s2 = inlined_call_operand.vmem [shape: f32[256,32], index: 2, kind: input, shape index: {}]   ;;  %s2103_s3 = inlined_call_operand.vmem [shape: f32[384,72], index: 3, kind: input, shape index: {}]   ;;  %s2104_s4 = inlined_call_operand.vmem [shape: f32[72,32], index: 4, kind: input, shape index: {}]   ;;  %s2105_s5 = inlined_call_operand.vmem [shape: f32[384,32], index: 5, kind: output, shape index: {}]  }
   0x1   :  { %10 = sst [smem:[#allocation2]] %s2100_s0 }
   0x2   :  { %s1586_s20 = smov 0   ;;  %s1588_s21 = smov 0  }
   0x3   :  { %s1590_s22 = smov 0  }
   0x4 LB: > { %s1120_s0 = sadd.s32 4294967295, %s1551_s22   ;;  %s1603_s23 = sadd.s32 1, %s1551_s22   ;;  %s1551_s22 = sphi %s1590_s22, %s2108_s22   ;;  %s1547_s21 = sphi %s1588_s21, %s2107_s21   ;;  %s1543_s20 = sphi %s1586_s20, %s2106_s20  }
   0x5   : > { %s41_s24 = ssub.s32 %s1551_s22, %s1603_s23  ;;  %s44_s25 = sadd.s32 1, %s1547_s21 }
   0x6   : > { %p42_p0 = scmp.eq.s32.totalorder %s41_s24, 0  ;;  %p51_p1 = scmp.ne.s32.totalorder %s1547_s21, %s1543_s20 }
   0x7   : > { %p52_p2 = scmp.eq.s32.totalorder %s1551_s22, 0  ;;  %p1123_p4 = scmp.ge.s32.totalorder %s1551_s22, 3 }
   0x8   : > { %s1612_s26 = scalar_select %p42_p0, %s1547_s21, %s44_s25  }
   0x9   : > { %p53_p3 = por %p52_p2, %p51_p1  ;;  %180 = sbr.rel (%p1123_p4) target bundleno = 36 (0x24), region = 28 }
  0x10   : > { %183 = sbr.rel (!%p53_p3) target bundleno = 36 (0x24), region = 32  ;;  %s185_s27 = sand.u32 (%p53_p3), 1, %s1547_s21  }
  0x11   : > { %s1125_s28 = sshll.u32 (%p53_p3), %s1551_s22, 3  ;;  %s1124_s29 = sshll.u32 (%p53_p3), %s185_s27, 8 }
  0x12   : > { %s1620_s7 = scalar_lea.vmem (%p53_p3), %s2101_s1, %s1125_s28  ;;  %s1625_s8 = scalar_lea.vmem (%p53_p3), [#allocation3], %s1124_s29 }
  0x13   : > { %v279_v0 = vld [vmem:[%s1620_s7] sm:$0xff] (%p53_p3)  ;;  %v281_v1 = vld [vmem:[%s1620_s7 + $0x18] sm:$0xff] (%p53_p3)  ;;  %v283_v2 = vld [vmem:[%s1620_s7 + $0x30] sm:$0xff] (%p53_p3) }
  0x14   : > { %280 = vst [vmem:[%s1625_s8] sm:$0xff] (%p53_p3), %v279_v0  ;;  %282 = vst [vmem:[%s1625_s8 + $0x8] sm:$0xff] (%p53_p3), %v281_v1  ;;  %v285_v3 = vld [vmem:[%s1620_s7 + $0x48] sm:$0xff] (%p53_p3)  ;;  %v287_v4 = vld [vmem:[%s1620_s7 + $0x60] sm:$0xff] (%p53_p3) }
  0x15   : > { %284 = vst [vmem:[%s1625_s8 + $0x10] sm:$0xff] (%p53_p3), %v283_v2  ;;  %v289_v5 = vld [vmem:[%s1620_s7 + $0x78] sm:$0xff] (%p53_p3)  ;;  %286 = vst [vmem:[%s1625_s8 + $0x18] sm:$0xff] (%p53_p3), %v285_v3  ;;  %v291_v6 = vld [vmem:[%s1620_s7 + $0x90] sm:$0xff] (%p53_p3) }
  0x16   : > { %288 = vst [vmem:[%s1625_s8 + $0x20] sm:$0xff] (%p53_p3), %v287_v4  ;;  %290 = vst [vmem:[%s1625_s8 + $0x28] sm:$0xff] (%p53_p3), %v289_v5  ;;  %v293_v7 = vld [vmem:[%s1620_s7 + $0xa8] sm:$0xff] (%p53_p3)  ;;  %v295_v8 = vld [vmem:[%s1620_s7 + $0xc0] sm:$0xff] (%p53_p3) }
  0x17   : > { %292 = vst [vmem:[%s1625_s8 + $0x30] sm:$0xff] %v291_v6  ;;  %294 = vst [vmem:[%s1625_s8 + $0x38] sm:$0xff] %v293_v7  ;;  %v297_v9 = vld [vmem:[%s1620_s7 + $0xd8] sm:$0xff]  ;;  %v299_v10 = vld [vmem:[%s1620_s7 + $0xf0] sm:$0xff] }
  0x18   : > { %296 = vst [vmem:[%s1625_s8 + $0x40] sm:$0xff] %v295_v8  ;;  %v301_v11 = vld [vmem:[%s1620_s7 + $0x108] sm:$0xff]  ;;  %298 = vst [vmem:[%s1625_s8 + $0x48] sm:$0xff] %v297_v9  ;;  %v303_v12 = vld [vmem:[%s1620_s7 + $0x120] sm:$0xff] }
  0x19   : > { %300 = vst [vmem:[%s1625_s8 + $0x50] sm:$0xff] %v299_v10  ;;  %302 = vst [vmem:[%s1625_s8 + $0x58] sm:$0xff] %v301_v11  ;;  %v305_v13 = vld [vmem:[%s1620_s7 + $0x138] sm:$0xff]  ;;  %v307_v14 = vld [vmem:[%s1620_s7 + $0x150] sm:$0xff] }
  0x1a   : > { %304 = vst [vmem:[%s1625_s8 + $0x60] sm:$0xff] %v303_v12  ;;  %306 = vst [vmem:[%s1625_s8 + $0x68] sm:$0xff] %v305_v13  ;;  %v309_v15 = vld [vmem:[%s1620_s7 + $0x168] sm:$0xff]  ;;  %v311_v16 = vld [vmem:[%s1620_s7 + $0x180] sm:$0xff] }
  0x1b   : > { %308 = vst [vmem:[%s1625_s8 + $0x70] sm:$0xff] %v307_v14  ;;  %v313_v17 = vld [vmem:[%s1620_s7 + $0x198] sm:$0xff]  ;;  %310 = vst [vmem:[%s1625_s8 + $0x78] sm:$0xff] %v309_v15  ;;  %v315_v18 = vld [vmem:[%s1620_s7 + $0x1b0] sm:$0xff] }
  0x1c   : > { %312 = vst [vmem:[%s1625_s8 + $0x80] sm:$0xff] %v311_v16  ;;  %314 = vst [vmem:[%s1625_s8 + $0x88] sm:$0xff] %v313_v17  ;;  %v317_v19 = vld [vmem:[%s1620_s7 + $0x1c8] sm:$0xff]  ;;  %v319_v20 = vld [vmem:[%s1620_s7 + $0x1e0] sm:$0xff] }
  0x1d   : > { %316 = vst [vmem:[%s1625_s8 + $0x90] sm:$0xff] %v315_v18  ;;  %318 = vst [vmem:[%s1625_s8 + $0x98] sm:$0xff] %v317_v19  ;;  %v321_v21 = vld [vmem:[%s1620_s7 + $0x1f8] sm:$0xff]  ;;  %v323_v22 = vld [vmem:[%s1620_s7 + $0x210] sm:$0xff] }
  0x1e   : > { %320 = vst [vmem:[%s1625_s8 + $0xa0] sm:$0xff] %v319_v20  ;;  %v325_v23 = vld [vmem:[%s1620_s7 + $0x228] sm:$0xff]  ;;  %322 = vst [vmem:[%s1625_s8 + $0xa8] sm:$0xff] %v321_v21  ;;  %v327_v24 = vld [vmem:[%s1620_s7 + $0x240] sm:$0xff] }
  0x1f   : > { %324 = vst [vmem:[%s1625_s8 + $0xb0] sm:$0xff] %v323_v22  ;;  %326 = vst [vmem:[%s1625_s8 + $0xb8] sm:$0xff] %v325_v23  ;;  %v329_v25 = vld [vmem:[%s1620_s7 + $0x258] sm:$0xff]  ;;  %v331_v26 = vld [vmem:[%s1620_s7 + $0x270] sm:$0xff] }
  0x20   : > { %328 = vst [vmem:[%s1625_s8 + $0xc0] sm:$0xff] %v327_v24  ;;  %330 = vst [vmem:[%s1625_s8 + $0xc8] sm:$0xff] %v329_v25  ;;  %v333_v27 = vld [vmem:[%s1620_s7 + $0x288] sm:$0xff]  ;;  %v335_v28 = vld [vmem:[%s1620_s7 + $0x2a0] sm:$0xff] }
  0x21   : > { %332 = vst [vmem:[%s1625_s8 + $0xd0] sm:$0xff] %v331_v26  ;;  %v337_v29 = vld [vmem:[%s1620_s7 + $0x2b8] sm:$0xff]  ;;  %334 = vst [vmem:[%s1625_s8 + $0xd8] sm:$0xff] %v333_v27  ;;  %v339_v30 = vld [vmem:[%s1620_s7 + $0x2d0] sm:$0xff] }
  0x22   : > { %336 = vst [vmem:[%s1625_s8 + $0xe0] sm:$0xff] %v335_v28  ;;  %338 = vst [vmem:[%s1625_s8 + $0xe8] sm:$0xff] %v337_v29  ;;  %v341_v31 = vld [vmem:[%s1620_s7 + $0x2e8] sm:$0xff] }
  0x23   : > { %340 = vst [vmem:[%s1625_s8 + $0xf0] sm:$0xff] %v339_v30  ;;  %342 = vst [vmem:[%s1625_s8 + $0xf8] sm:$0xff] %v341_v31 }
  0x24 PF: > { %p1126_p5 = scmp.ge.s32.totalorder %s1551_s22, 1  ;;  %p356_p6 = scmp.lt.s32.totalorder %s1551_s22, 4 }
  0x26   : > { %p357_p7 = pnand %p1126_p5, %p356_p6 }
  0x27   : > { %v487_v32 = vld [vmem:[%s2104_s4] sm:$0xff] (!%p357_p7)  ;;  %v488_v33 = vld [vmem:[%s2104_s4 + $0x8] sm:$0xff] (!%p357_p7)  ;;  %v489_v34 = vld [vmem:[%s2104_s4 + $0x10] sm:$0xff] (!%p357_p7)  ;;  %s1128_s15 = sshll.u32 (!%p357_p7), %s1120_s0, 4  ;;  %s363_s16 = sand.u32 (!%p357_p7), 1, %s1543_s20   ;;  %vm496_vm0 = vcmask (!%p357_p7), 588800  }
  0x28   : > { %360 = sbr.rel (%p357_p7) target bundleno = 498 (0x1f2), region = 74  ;;  %v1297_v35 = vpack.c.bf16 (!%p357_p7), %v488_v33, %v487_v32  ;;  %v490_v36 = vld [vmem:[%s2104_s4 + $0x18] sm:$0xff] (!%p357_p7)  ;;  %p396_p8 = scmp.lt.s32.totalorder (!%p357_p7), %s1128_s15, 47  ;;  %v491_v38 = vld [vmem:[%s2104_s4 + $0x20] sm:$0xff] (!%p357_p7)  ;;  %v492_v39 = vld [vmem:[%s2104_s4 + $0x28] sm:$0xff] (!%p357_p7)  ;;  %vm706_vm1 = vcmask (!%p357_p7), 261120  }
  0x29   : > { %s1127_s19 = sshll.u32 (!%p357_p7), %s363_s16, 8  ;;  %v1301_v37 = vpack.c.bf16 (!%p357_p7), %v490_v36, %v489_v34  ;;  %v1305_v45 = vpack.c.bf16 (!%p357_p7), %v492_v39, %v491_v38  ;;  %v493_v46 = vld [vmem:[%s2104_s4 + $0x30] sm:$0xff] (!%p357_p7)  ;;  %v494_v47 = vld [vmem:[%s2104_s4 + $0x38] sm:$0xff] (!%p357_p7)  ;;  %v495_v56 = vld [vmem:[%s2104_s4 + $0x40] sm:$0xff] (!%p357_p7) }
  0x2a   : > { %1298 = vmatprep.subr.bf16.mxu0 (!%p357_p7), %v1297_v35  ;;  %s1713_s20 = scalar_lea.vmem (!%p357_p7), [#allocation3], %s1127_s19  ;;  %v1309_v52 = vpack.c.bf16 (!%p357_p7), %v494_v47, %v493_v46  ;;  %v455_v1 = vld [vmem:[%s2102_s2 + $0x80] sm:$0xff] (!%p357_p7)  ;;  %v456_v2 = vld [vmem:[%s2102_s2 + $0x88] sm:$0xff] (!%p357_p7)  ;;  %v457_v6 = vld [vmem:[%s2102_s2 + $0x90] sm:$0xff] (!%p357_p7) }
  0x2b   : > { %v407_v40 = vld [vmem:[%s1713_s20] sm:$0xff] (!%p357_p7)  ;;  %v408_v42 = vld [vmem:[%s1713_s20 + $0x8] sm:$0xff] (!%p357_p7)  ;;  %1300 = vmatpush3.bf16.msra.mxu0 (!%p357_p7), %v1297_v35  ;;  %v409_v50 = vld [vmem:[%s1713_s20 + $0x10] sm:$0xff] (!%p357_p7)  ;;  %v1313_v4 = vpack.c.bf16 (!%p357_p7), %v456_v2, %v455_v1 }
  0x2c   : > { %v423_v41 = vld [vmem:[%s1713_s20 + $0x80] sm:$0xff] (!%p357_p7)  ;;  %v424_v44 = vld [vmem:[%s1713_s20 + $0x88] sm:$0xff] (!%p357_p7)  ;;  %1302 = vmatprep.subr.bf16.mxu0 (!%p357_p7), %v1301_v37  ;;  %v425_v51 = vld [vmem:[%s1713_s20 + $0x90] sm:$0xff] (!%p357_p7) }
  0x2d   : > { %v1385_v43 = vpack.i.bf16 (!%p357_p7), %v407_v40, %v423_v41  ;;  %v1387_v48 = vpack.i.bf16 (!%p357_p7), %v408_v42, %v424_v44  ;;  %v1389_v53 = vpack.i.bf16 (!%p357_p7), %v409_v50, %v425_v51  ;;  %v410_v54 = vld [vmem:[%s1713_s20 + $0x18] sm:$0xff] (!%p357_p7)  ;;  %v411_v58 = vld [vmem:[%s1713_s20 + $0x20] sm:$0xff] (!%p357_p7)  ;;  %v412_v60 = vld [vmem:[%s1713_s20 + $0x28] sm:$0xff] (!%p357_p7)  ;;  %1345 = vmatprep.subr.bf16.mxu1 (!%p357_p7), %v1313_v4 }
  0x2e   : > { %v426_v55 = vld [vmem:[%s1713_s20 + $0x98] sm:$0xff] (!%p357_p7)  ;;  %v427_v59 = vld [vmem:[%s1713_s20 + $0xa0] sm:$0xff] (!%p357_p7)  ;;  %v428_v0 = vld [vmem:[%s1713_s20 + $0xa8] sm:$0xff] (!%p357_p7) }
  0x2f   : > { %s2110_s15 = smov (!%p396_p8, %s1128_s15), 47  ;;  %1386 = vxpose.xlu0.b32.start [1/16] %v1385_v43, 128  ;;  %1304 = vmatpush3.bf16.msra.mxu0 %v1301_v37  ;;  %v1391_v57 = vpack.i.bf16 %v410_v54, %v426_v55  ;;  %v1393_v63 = vpack.i.bf16 %v411_v58, %v427_v59  ;;  %v439_v3 = vld [vmem:[%s2102_s2] sm:$0xff]  ;;  %v440_v5 = vld [vmem:[%s2102_s2 + $0x8] sm:$0xff]  ;;  %v458_v7 = vld [vmem:[%s2102_s2 + $0x98] sm:$0xff]  ;;  %v1395_v13 = vpack.i.bf16 %v412_v60, %v428_v0 }
  0x30   : > { %s1129_s22 = sshll.u32 %s2110_s15, 3  ;;  %1306 = vmatprep.subr.bf16.mxu0 %v1305_v45  ;;  %v1315_v8 = vpack.c.bf16 %v440_v5, %v439_v3  ;;  %v1317_v9 = vpack.c.bf16 %v458_v7, %v457_v6  ;;  %v441_v10 = vld [vmem:[%s2102_s2 + $0x10] sm:$0xff]  ;;  %v442_v11 = vld [vmem:[%s2102_s2 + $0x18] sm:$0xff]  ;;  %v459_v14 = vld [vmem:[%s2102_s2 + $0xa0] sm:$0xff] }
  0x31   : > { %s1731_s9 = scalar_lea.vmem %s2103_s3, %s1129_s22  ;;  %v460_v15 = vld [vmem:[%s2102_s2 + $0xa8] sm:$0xff]  ;;  %v413_v17 = vld [vmem:[%s1713_s20 + $0x30] sm:$0xff]  ;;  %v1319_v19 = vpack.c.bf16 %v442_v11, %v441_v10  ;;  %v443_v21 = vld [vmem:[%s2102_s2 + $0x20] sm:$0xff]  ;;  %s2001_s25 = scalar_lea.vmem %s2105_s5, %s1129_s22 }
  0x32   : > { %v471_v49 = vld [vmem:[%s1731_s9] sm:$0xff]  ;;  %v472_v61 = vld [vmem:[%s1731_s9 + $0x8] sm:$0xff]  ;;  %v473_v62 = vld [vmem:[%s1731_s9 + $0x10] sm:$0xff]  ;;  %1353 = vmatpush3.bf16.msra.mxu1 %v1315_v8  ;;  %v1321_v20 = vpack.c.bf16 %v460_v15, %v459_v14 }
  0x33   : > { %1273 = vmatprep.mubr.msk.f32.mxu0 %vm496_vm0, %v471_v49  ;;  %1388 = vxpose.xlu0.b32.cont [2/16] %v1387_v48, 128  ;;  %v474_v12 = vld [vmem:[%s1731_s9 + $0x18] sm:$0xff]  ;;  %v475_v16 = vld [vmem:[%s1731_s9 + $0x20] sm:$0xff]  ;;  %v429_v18 = vld [vmem:[%s1713_s20 + $0xb0] sm:$0xff] }
  0x34   : > { %1308 = vmatpush3.bf16.msra.mxu0 %v1305_v45  ;;  %v444_v22 = vld [vmem:[%s2102_s2 + $0x28] sm:$0xff]  ;;  %v1397_v24 = vpack.i.bf16 %v413_v17, %v429_v18  ;;  %v461_v25 = vld [vmem:[%s2102_s2 + $0xb0] sm:$0xff]  ;;  %v462_v26 = vld [vmem:[%s2102_s2 + $0xb8] sm:$0xff]  ;;  %1346 = vmatprep.subr.bf16.mxu1 %v1317_v9 }
  0x35   : > { %1310 = vmatprep.subr.bf16.mxu0 %v1309_v52  ;;  %v476_v23 = vld [vmem:[%s1731_s9 + $0x28] sm:$0xff]  ;;  %v477_v27 = vld [vmem:[%s1731_s9 + $0x30] sm:$0xff]  ;;  %v414_v28 = vld [vmem:[%s1713_s20 + $0x38] sm:$0xff]  ;;  %v1323_v30 = vpack.c.bf16 %v444_v22, %v443_v21  ;;  %v1325_v31 = vpack.c.bf16 %v462_v26, %v461_v25 }
  0x36   : > { %v430_v29 = vld [vmem:[%s1713_s20 + $0xb8] sm:$0xff]  ;;  %1354 = vmatpush3.bf16.msra.mxu1 %v1319_v19  ;;  %v445_v32 = vld [vmem:[%s2102_s2 + $0x30] sm:$0xff]  ;;  %v463_v36 = vld [vmem:[%s2102_s2 + $0xc0] sm:$0xff] }
  0x37   : > { %1390 = vxpose.xlu0.b32.cont [3/16] %v1389_v53, 128  ;;  %v446_v33 = vld [vmem:[%s2102_s2 + $0x38] sm:$0xff]  ;;  %v1399_v35 = vpack.i.bf16 %v414_v28, %v430_v29  ;;  %v464_v37 = vld [vmem:[%s2102_s2 + $0xc8] sm:$0xff]  ;;  %v479_v38 = vld [vmem:[%s1731_s9 + $0x40] sm:$0xff]  ;;  %1347 = vmatprep.subr.bf16.mxu1 %v1321_v20 }
  0x38   : > { %1312 = vmatpush3.bf16.msra.mxu0 %v1309_v52  ;;  %v478_v34 = vld [vmem:[%s1731_s9 + $0x38] sm:$0xff]  ;;  %v415_v39 = vld [vmem:[%s1713_s20 + $0x40] sm:$0xff]  ;;  %v1327_v41 = vpack.c.bf16 %v446_v33, %v445_v32  ;;  %v1329_v42 = vpack.c.bf16 %v464_v37, %v463_v36  ;;  %v448_v44 = vld [vmem:[%s2102_s2 + $0x48] sm:$0xff] }
  0x39   : > { %1271 = vmatprep.subr.mxu0 %v495_v56  ;;  %v431_v40 = vld [vmem:[%s1713_s20 + $0xc0] sm:$0xff]  ;;  %v480_v45 = vld [vmem:[%s1731_s9 + $0x48] sm:$0xff]  ;;  %v465_v47 = vld [vmem:[%s2102_s2 + $0xd0] sm:$0xff] }
  0x3a   : > { %1355 = vmatpush3.bf16.msra.mxu1 %v1323_v30  ;;  %v447_v43 = vld [vmem:[%s2102_s2 + $0x40] sm:$0xff]  ;;  %v1401_v46 = vpack.i.bf16 %v415_v39, %v431_v40  ;;  %v466_v48 = vld [vmem:[%s2102_s2 + $0xd8] sm:$0xff]  ;;  %v481_v49 = vld [vmem:[%s1731_s9 + $0x50] sm:$0xff] }
  0x3b   : > { %1392 = vxpose.xlu0.b32.cont [4/16] %v1391_v57, 128  ;;  %v416_v50 = vld [vmem:[%s1713_s20 + $0x48] sm:$0xff]  ;;  %1348 = vmatprep.subr.bf16.mxu1 %v1325_v31  ;;  %v1331_v52 = vpack.c.bf16 %v448_v44, %v447_v43  ;;  %v1333_v53 = vpack.c.bf16 %v466_v48, %v465_v47  ;;  %v449_v54 = vld [vmem:[%s2102_s2 + $0x50] sm:$0xff]  ;;  %v450_v55 = vld [vmem:[%s2102_s2 + $0x58] sm:$0xff] }
  0x3c   : > { %1272 = vmatpush3.msra.mxu0 %v495_v56  ;;  %v432_v51 = vld [vmem:[%s1713_s20 + $0xc8] sm:$0xff]  ;;  %v482_v56 = vld [vmem:[%s1731_s9 + $0x58] sm:$0xff]  ;;  %v467_v58 = vld [vmem:[%s2102_s2 + $0xe0] sm:$0xff] }
  0x3d   : > { %1274 = vmatmul.mubr.msk.f32.vlgmr.msra.gmra.mrb[0].mxu0 %vm496_vm0, %v472_v61  ;;  %1314 = vmatprep.subr.bf16.mxu0 %v1313_v4  ;;  %v1403_v57 = vpack.i.bf16 %v416_v50, %v432_v51  ;;  %v468_v59 = vld [vmem:[%s2102_s2 + $0xe8] sm:$0xff]  ;;  %v483_v60 = vld [vmem:[%s1731_s9 + $0x60] sm:$0xff]  ;;  %v417_v61 = vld [vmem:[%s1713_s20 + $0x50] sm:$0xff] }
  0x3e   : > { %1276 = vmatprep.mubr.msk.f32.mxu0 %vm496_vm0, %v473_v62  ;;  %1316 = vmatpush3.bf16.msra.mxu0 %v1315_v8  ;;  %v433_v62 = vld [vmem:[%s1713_s20 + $0xd0] sm:$0xff]  ;;  %v1337_v0 = vpack.c.bf16 %v468_v59, %v467_v58  ;;  %v451_v1 = vld [vmem:[%s2102_s2 + $0x60] sm:$0xff]  ;;  %v452_v2 = vld [vmem:[%s2102_s2 + $0x68] sm:$0xff] }
  0x3f   : > { %1394 = vxpose.xlu0.b32.cont [5/16] %v1393_v63, 128  ;;  %1318 = vmatprep.subr.bf16.mxu0 %v1317_v9  ;;  %v1335_v63 = vpack.c.bf16 %v450_v55, %v449_v54  ;;  %v484_v3 = vld [vmem:[%s1731_s9 + $0x68] sm:$0xff]  ;;  %v1405_v4 = vpack.i.bf16 %v417_v61, %v433_v62  ;;  %v469_v5 = vld [vmem:[%s2102_s2 + $0xf0] sm:$0xff]  ;;  %v470_v6 = vld [vmem:[%s2102_s2 + $0xf8] sm:$0xff]  ;;  %v1339_v10 = vpack.c.bf16 %v452_v2, %v451_v1 }
  0x40   : > { %1356 = vmatpush3.bf16.msra.mxu1 %v1327_v41  ;;  %v485_v7 = vld [vmem:[%s1731_s9 + $0x70] sm:$0xff]  ;;  %v418_v8 = vld [vmem:[%s1713_s20 + $0x58] sm:$0xff]  ;;  %v1341_v11 = vpack.c.bf16 %v470_v6, %v469_v5  ;;  %v435_v17 = vld [vmem:[%s1713_s20 + $0xe0] sm:$0xff] }
  0x41   : > { %1277 = vmatmul.mubr.msk.f32.gmra.mrb[2].mxu0 %vm496_vm0, %v474_v12  ;;  %1349 = vmatprep.subr.bf16.mxu1 %v1329_v42  ;;  %v434_v9 = vld [vmem:[%s1713_s20 + $0xd8] sm:$0xff]  ;;  %v453_v12 = vld [vmem:[%s2102_s2 + $0x70] sm:$0xff]  ;;  %v436_v21 = vld [vmem:[%s1713_s20 + $0xe8] sm:$0xff] }
  0x42   : > { %1279 = vmatprep.mubr.msk.f32.mxu0 %vm496_vm0, %v475_v16  ;;  %1320 = vmatpush3.bf16.msra.mxu0 %v1319_v19  ;;  %v486_v14 = vld [vmem:[%s1731_s9 + $0x78] sm:$0xff]  ;;  %v1407_v15 = vpack.i.bf16 %v418_v8, %v434_v9  ;;  %v419_v16 = vld [vmem:[%s1713_s20 + $0x60] sm:$0xff] }
  0x43   : > { %1396 = vxpose.xlu0.b32.cont [6/16] %v1395_v13, 128  ;;  %1322 = vmatprep.subr.bf16.mxu0 %v1321_v20  ;;  %v454_v13 = vld [vmem:[%s2102_s2 + $0x78] sm:$0xff]  ;;  %v1409_v19 = vpack.i.bf16 %v419_v16, %v435_v17  ;;  %v420_v20 = vld [vmem:[%s1713_s20 + $0x68] sm:$0xff] }
  0x44   : > { %1357 = vmatpush3.bf16.msra.mxu1 %v1331_v52  ;;  %v1343_v18 = vpack.c.bf16 %v454_v13, %v453_v12  ;;  %v1411_v22 = vpack.i.bf16 %v420_v20, %v436_v21  ;;  %v422_v26 = vld [vmem:[%s1713_s20 + $0x78] sm:$0xff] }
  0x45   : > { %1280 = vmatmul.mubr.msk.f32.gmra.mrb[4].mxu0 %vm496_vm0, %v476_v23  ;;  %1350 = vmatprep.subr.bf16.mxu1 %v1333_v53  ;;  %v421_v23 = vld [vmem:[%s1713_s20 + $0x70] sm:$0xff] }
  0x46   : > { %1282 = vmatprep.mubr.msk.f32.mxu0 %vm496_vm0, %v477_v27  ;;  %1324 = vmatpush3.bf16.msra.mxu0 %v1323_v30  ;;  %v438_v27 = vld [vmem:[%s1713_s20 + $0xf8] sm:$0xff] }
  0x47   : > { %1398 = vxpose.xlu0.b32.cont [7/16] %v1397_v24, 128  ;;  %1326 = vmatprep.subr.bf16.mxu0 %v1325_v31  ;;  %v437_v24 = vld [vmem:[%s1713_s20 + $0xf0] sm:$0xff]  ;;  %v1415_v28 = vpack.i.bf16 %v422_v26, %v438_v27  ;;  %s803_s20 = sld [smem:[#allocation2]] }
  0x48   : > { %1358 = vmatpush3.bf16.msra.mxu1 %v1335_v63  ;;  %v1413_v25 = vpack.i.bf16 %v421_v23, %v437_v24 }
  0x49   : > { %1283 = vmatmul.mubr.msk.f32.gmra.mrb[6].mxu0 %vm496_vm0, %v478_v34  ;;  %1351 = vmatprep.subr.bf16.mxu1 %v1337_v0 }
  0x4a   : > { %1285 = vmatprep.mubr.msk.f32.mxu0 %vm496_vm0, %v479_v38  ;;  %1328 = vmatpush3.bf16.msra.mxu0 %v1327_v41 }
  0x4b   : > { %1400 = vxpose.xlu0.b32.cont [8/16] %v1399_v35, 128  ;;  %1330 = vmatprep.subr.bf16.mxu0 %v1329_v42 }
  0x4c   : > { %1359 = vmatpush3.bf16.msra.mxu1 %v1339_v10 }
  0x4d   : > { %1286 = vmatmul.mubr.msk.f32.gmra.mrb[8].mxu0 %vm496_vm0, %v480_v45  ;;  %1352 = vmatprep.subr.bf16.mxu1 %v1341_v11 }
  0x4e   : > { %1288 = vmatprep.mubr.msk.f32.mxu0 %vm496_vm0, %v481_v49  ;;  %1332 = vmatpush3.bf16.msra.mxu0 %v1331_v52 }
  0x4f   : > { %1402 = vxpose.xlu0.b32.cont [9/16] %v1401_v46, 128  ;;  %1334 = vmatprep.subr.bf16.mxu0 %v1333_v53 }
  0x50   : > { %1360 = vmatpush3.bf16.msra.mxu1 %v1343_v18 }
  0x51   : > { %1289 = vmatmul.mubr.msk.f32.gmra.mrb[10].mxu0 %vm496_vm0, %v482_v56 }
  0x52   : > { %1291 = vmatprep.mubr.msk.f32.mxu0 %vm496_vm0, %v483_v60  ;;  %1336 = vmatpush3.bf16.msra.mxu0 %v1335_v63 }
  0x53   : > { %1404 = vxpose.xlu0.b32.cont [10/16] %v1403_v57, 128  ;;  %1338 = vmatprep.subr.bf16.mxu0 %v1337_v0 }
  0x55   : > { %1292 = vmatmul.mubr.msk.f32.gmra.mrb[12].mxu0 %vm496_vm0, %v484_v3 }
  0x56   : > { %1294 = vmatprep.mubr.msk.f32.mxu0 %vm496_vm0, %v485_v7  ;;  %1340 = vmatpush3.bf16.msra.mxu0 %v1339_v10 }
  0x57   : > { %1406 = vxpose.xlu0.b32.cont [11/16] %v1405_v4, 128  ;;  %1342 = vmatprep.subr.bf16.mxu0 %v1341_v11 }
  0x59   : > { %1295 = vmatmul.mubr.msk.f32.gmra.mrb[14].mxu0 %vm496_vm0, %v486_v14 }
  0x5a   : > { %1344 = vmatpush3.bf16.msra.mxu0 %v1343_v18 }
  0x5b   : > { %1408 = vxpose.xlu0.b32.cont [12/16] %v1407_v15, 128 }
  0x5f   : > { %1410 = vxpose.xlu0.b32.cont [13/16] %v1409_v19, 128 }
  0x63   : > { %1412 = vxpose.xlu0.b32.cont [14/16] %v1411_v22, 128 }
  0x67   : > { %1414 = vxpose.xlu0.b32.cont [15/16] %v1413_v25, 128 }
  0x6b   : > { %1416 = vxpose.xlu0.b32.end [16/16] %v1415_v28, 128 }
  0xaf   : > { %v1417_v29 = vpop.trf.xlu0 }
  0xb0   : > { %v1421_v30 = vunpack.i.h.bf16 %v1417_v29  ;;  %v1418_v31 = vunpack.i.l.bf16 %v1417_v29 }
  0xb2   : > { %949 = vmatprep.mubr.f32.mxu0 %v1418_v31 }
  0xb3   : > { %v1422_v32 = vpop.trf.xlu0  ;;  %950 = vmatmul.mubr.f32.vlgmr.msra.gmra.mrb[16].mxu0 %v1421_v30 }
  0xb4   : > { %v1423_v33 = vunpack.i.l.bf16 %v1422_v32  ;;  %v1426_v34 = vunpack.i.h.bf16 %v1422_v32 }
  0xb6   : > { %954 = vmatprep.mubr.f32.mxu0 %v1423_v33 }
  0xb7   : > { %v1427_v35 = vpop.trf.xlu0  ;;  %955 = vmatmul.mubr.f32.gmra.mrb[18].mxu0 %v1426_v34 }
  0xb8   : > { %v1428_v36 = vunpack.i.l.bf16 %v1427_v35  ;;  %v1431_v37 = vunpack.i.h.bf16 %v1427_v35 }
  0xba   : > { %959 = vmatprep.mubr.f32.mxu0 %v1428_v36 }
  0xbb   : > { %v1432_v38 = vpop.trf.xlu0  ;;  %960 = vmatmul.mubr.f32.gmra.mrb[20].mxu0 %v1431_v37 }
  0xbc   : > { %v1433_v39 = vunpack.i.l.bf16 %v1432_v38  ;;  %v1436_v40 = vunpack.i.h.bf16 %v1432_v38 }
  0xbe   : > { %964 = vmatprep.mubr.f32.mxu0 %v1433_v39 }
  0xbf   : > { %v1437_v41 = vpop.trf.xlu0  ;;  %965 = vmatmul.mubr.f32.gmra.mrb[22].mxu0 %v1436_v40 }
  0xc0   : > { %v1438_v42 = vunpack.i.l.bf16 %v1437_v41  ;;  %v1441_v43 = vunpack.i.h.bf16 %v1437_v41 }
  0xc2   : > { %969 = vmatprep.mubr.f32.mxu0 %v1438_v42 }
  0xc3   : > { %v1442_v44 = vpop.trf.xlu0  ;;  %970 = vmatmul.mubr.f32.gmra.mrb[24].mxu0 %v1441_v43 }
  0xc4   : > { %v1443_v45 = vunpack.i.l.bf16 %v1442_v44  ;;  %v1446_v46 = vunpack.i.h.bf16 %v1442_v44 }
  0xc6   : > { %974 = vmatprep.mubr.f32.mxu1 %v1443_v45 }
  0xc7   : > { %v1447_v47 = vpop.trf.xlu0  ;;  %975 = vmatmul.mubr.f32.vlgmr.msra.gmra.mrb[0].mxu1 %v1446_v46 }
  0xc8   : > { %v1448_v48 = vunpack.i.l.bf16 %v1447_v47  ;;  %v1451_v49 = vunpack.i.h.bf16 %v1447_v47 }
  0xca   : > { %979 = vmatprep.mubr.f32.mxu1 %v1448_v48 }
  0xcb   : > { %v1452_v50 = vpop.trf.xlu0  ;;  %980 = vmatmul.mubr.f32.gmra.mrb[2].mxu1 %v1451_v49 }
  0xcc   : > { %v1453_v51 = vunpack.i.l.bf16 %v1452_v50  ;;  %v1456_v52 = vunpack.i.h.bf16 %v1452_v50 }
  0xce   : > { %984 = vmatprep.mubr.f32.mxu1 %v1453_v51 }
  0xcf   : > { %v1457_v53 = vpop.trf.xlu0  ;;  %985 = vmatmul.mubr.f32.gmra.mrb[4].mxu1 %v1456_v52 }
  0xd0   : > { %v1458_v54 = vunpack.i.l.bf16 %v1457_v53  ;;  %v1461_v55 = vunpack.i.h.bf16 %v1457_v53 }
  0xd2   : > { %989 = vmatprep.mubr.f32.mxu1 %v1458_v54 }
  0xd3   : > { %v1462_v56 = vpop.trf.xlu0  ;;  %990 = vmatmul.mubr.f32.gmra.mrb[6].mxu1 %v1461_v55 }
  0xd4   : > { %v1463_v57 = vunpack.i.l.bf16 %v1462_v56  ;;  %v1466_v58 = vunpack.i.h.bf16 %v1462_v56 }
  0xd6   : > { %994 = vmatprep.mubr.f32.mxu1 %v1463_v57 }
  0xd7   : > { %v1467_v59 = vpop.trf.xlu0  ;;  %995 = vmatmul.mubr.f32.gmra.mrb[8].mxu1 %v1466_v58 }
  0xd8   : > { %v1468_v60 = vunpack.i.l.bf16 %v1467_v59  ;;  %v1471_v61 = vunpack.i.h.bf16 %v1467_v59 }
  0xda   : > { %999 = vmatprep.mubr.f32.mxu1 %v1468_v60 }
  0xdb   : > { %v1472_v62 = vpop.trf.xlu0  ;;  %1000 = vmatmul.mubr.f32.gmra.mrb[10].mxu1 %v1471_v61 }
  0xdc   : > { %v1473_v63 = vunpack.i.l.bf16 %v1472_v62  ;;  %v1476_v0 = vunpack.i.h.bf16 %v1472_v62 }
  0xde   : > { %1004 = vmatprep.mubr.f32.mxu1 %v1473_v63 }
  0xdf   : > { %v1477_v1 = vpop.trf.xlu0  ;;  %1005 = vmatmul.mubr.f32.gmra.mrb[12].mxu1 %v1476_v0 }
  0xe0   : > { %v1478_v2 = vunpack.i.l.bf16 %v1477_v1  ;;  %v1481_v3 = vunpack.i.h.bf16 %v1477_v1 }
  0xe2   : > { %1009 = vmatprep.mubr.f32.mxu1 %v1478_v2 }
  0xe3   : > { %v1482_v4 = vpop.trf.xlu0  ;;  %1010 = vmatmul.mubr.f32.gmra.mrb[14].mxu1 %v1481_v3 }
  0xe4   : > { %v1483_v5 = vunpack.i.l.bf16 %v1482_v4  ;;  %v1486_v6 = vunpack.i.h.bf16 %v1482_v4 }
  0xe6   : > { %1014 = vmatprep.mubr.f32.mxu1 %v1483_v5 }
  0xe7   : > { %1015 = vmatmul.mubr.f32.gmra.mrb[16].mxu1 %v1486_v6  ;;  %v1487_v7 = vpop.trf.xlu0 }
  0xe8   : > { %v1488_v8 = vunpack.i.l.bf16 %v1487_v7  ;;  %v1491_v9 = vunpack.i.h.bf16 %v1487_v7 }
  0xea   : > { %1019 = vmatprep.mubr.f32.mxu1 %v1488_v8 }
  0xeb   : > { %v1492_v10 = vpop.trf.xlu0  ;;  %1020 = vmatmul.mubr.f32.gmra.mrb[18].mxu1 %v1491_v9 }
  0xec   : > { %v1496_v11 = vunpack.i.h.bf16 %v1492_v10  ;;  %v1493_v12 = vunpack.i.l.bf16 %v1492_v10 }
  0xee   : > { %1024 = vmatprep.mubr.f32.mxu1 %v1493_v12 }
  0xef   : > { %1025 = vmatmul.mubr.f32.gmra.mrb[20].mxu1 %v1496_v11 }
 0x110   : > { %v1892_v13 = vpop.f32.mrb[0].mxu0 }
 0x111   : > { %v1894_v14 = vpop.f32.mrb[1].mxu0  ;;  %v691_v15 = vmul.f32 %v1892_v13, %v1892_v13 }
 0x112   : > { %v690_v16 = vmul.f32 %v1894_v14, %v1894_v14 }
 0x113   : > { %v710_v17 = vsel %vm706_vm1, %v691_v15, 0.0 }
 0x114   : > { %711 = vadd.xlane.f32.xlu1 %v710_v17  ;;  %v1901_v18 = vpop.f32.mrb[2].mxu0  ;;  %v707_v21 = vsel %vm706_vm1, %v690_v16, 0.0 }
 0x115   : > { %v693_v19 = vmul.f32 %v1901_v18, %v1901_v18  ;;  %v1905_v20 = vpop.f32.mrb[3].mxu0 }
 0x116   : > { %v692_v25 = vmul.f32 %v1905_v20, %v1905_v20 }
 0x117   : > { %v716_v23 = vsel %vm706_vm1, %v693_v19, 0.0 }
 0x118   : > { %708 = vadd.xlane.f32.xlu1 %v707_v21  ;;  %v1908_v22 = vpop.f32.mrb[4].mxu0  ;;  %v713_v29 = vsel %vm706_vm1, %v692_v25, 0.0 }
 0x119   : > { %v1911_v24 = vpop.f32.mrb[5].mxu0  ;;  %v695_v27 = vmul.f32 %v1908_v22, %v1908_v22 }
 0x11a   : > { %v694_v33 = vmul.f32 %v1911_v24, %v1911_v24 }
 0x11b   : > { %v722_v31 = vsel %vm706_vm1, %v695_v27, 0.0 }
 0x11c   : > { %717 = vadd.xlane.f32.xlu1 %v716_v23  ;;  %v1915_v26 = vpop.f32.mrb[6].mxu0  ;;  %v719_v37 = vsel %vm706_vm1, %v694_v33, 0.0 }
 0x11d   : > { %v1919_v28 = vpop.f32.mrb[7].mxu0  ;;  %v697_v35 = vmul.f32 %v1915_v26, %v1915_v26 }
 0x11e   : > { %v696_v41 = vmul.f32 %v1919_v28, %v1919_v28 }
 0x11f   : > { %v728_v39 = vsel %vm706_vm1, %v697_v35, 0.0 }
 0x120   : > { %714 = vadd.xlane.f32.xlu1 %v713_v29  ;;  %v1922_v30 = vpop.f32.mrb[8].mxu0  ;;  %v725_v45 = vsel %vm706_vm1, %v696_v41, 0.0 }
 0x121   : > { %v1925_v32 = vpop.f32.mrb[9].mxu0  ;;  %v699_v43 = vmul.f32 %v1922_v30, %v1922_v30 }
 0x122   : > { %v698_v47 = vmul.f32 %v1925_v32, %v1925_v32 }
 0x123   : > { %v734_v46 = vsel %vm706_vm1, %v699_v43, 0.0 }
 0x124   : > { %723 = vadd.xlane.f32.xlu1 %v722_v31  ;;  %v1929_v34 = vpop.f32.mrb[10].mxu0  ;;  %v731_v49 = vsel %vm706_vm1, %v698_v47, 0.0 }
 0x125   : > { %v1933_v36 = vpop.f32.mrb[11].mxu0  ;;  %v701_v48 = vmul.f32 %v1929_v34, %v1929_v34 }
 0x126   : > { %v700_v51 = vmul.f32 %v1933_v36, %v1933_v36 }
 0x127   : > { %v740_v50 = vsel %vm706_vm1, %v701_v48, 0.0 }
 0x128   : > { %720 = vadd.xlane.f32.xlu1 %v719_v37  ;;  %v1936_v38 = vpop.f32.mrb[12].mxu0  ;;  %v737_v53 = vsel %vm706_vm1, %v700_v51, 0.0 }
 0x129   : > { %v1939_v40 = vpop.f32.mrb[13].mxu0  ;;  %v703_v52 = vmul.f32 %v1936_v38, %v1936_v38 }
 0x12a   : > { %v702_v55 = vmul.f32 %v1939_v40, %v1939_v40 }
 0x12b   : > { %v746_v54 = vsel %vm706_vm1, %v703_v52, 0.0 }
 0x12c   : > { %729 = vadd.xlane.f32.xlu1 %v728_v39  ;;  %v1943_v42 = vpop.f32.mrb[14].mxu0  ;;  %v743_v57 = vsel %vm706_vm1, %v702_v55, 0.0 }
 0x12d   : > { %v1947_v44 = vpop.f32.mrb[15].mxu0  ;;  %v705_v59 = vmul.f32 %v1943_v42, %v1943_v42 }
 0x12e   : > { %v704_v56 = vmul.f32 %v1947_v44, %v1947_v44 }
 0x12f   : > { %v752_v60 = vsel %vm706_vm1, %v705_v59, 0.0 }
 0x130   : > { %726 = vadd.xlane.f32.xlu1 %v725_v45  ;;  %v749_v58 = vsel %vm706_vm1, %v704_v56, 0.0 }
 0x134   : > { %735 = vadd.xlane.f32.xlu1 %v734_v46 }
 0x138   : > { %732 = vadd.xlane.f32.xlu1 %v731_v49 }
 0x13c   : > { %741 = vadd.xlane.f32.xlu1 %v740_v50 }
 0x140   : > { %738 = vadd.xlane.f32.xlu1 %v737_v53  ;;  %v1990_v53 = vstv %s803_s20 }
 0x144   : > { %747 = vadd.xlane.f32.xlu1 %v746_v54 }
 0x148   : > { %744 = vadd.xlane.f32.xlu1 %v743_v57 }
 0x14c   : > { %750 = vadd.xlane.f32.xlu1 %v749_v58 }
 0x150   : > { %753 = vadd.xlane.f32.xlu1 %v752_v60 }
 0x186   : > { %v1207_v61 = vpop.f32.mrb[16].mxu0 }
 0x187   : > { %v1208_v62 = vpop.f32.mrb[17].mxu0 }
 0x188   : > { %v1972_v63 = vadd.f32 %v1208_v62, %v1207_v61 }
 0x18a   : > { %v1210_v0 = vpop.f32.mrb[18].mxu0 }
 0x18b   : > { %v1211_v1 = vpop.f32.mrb[19].mxu0 }
 0x18c   : > { %v1212_v2 = vadd.f32 %v1211_v1, %v1210_v0 }
 0x18e   : > { %v1213_v3 = vpop.f32.mrb[20].mxu0 }
 0x18f   : > { %v1214_v4 = vpop.f32.mrb[21].mxu0 }
 0x190   : > { %v1974_v5 = vadd.f32 %v1214_v4, %v1213_v3 }
 0x192   : > { %v1216_v6 = vpop.f32.mrb[22].mxu0 }
 0x193   : > { %v1217_v7 = vpop.f32.mrb[23].mxu0 }
 0x194   : > { %v1976_v8 = vadd.f32 %v1217_v7, %v1216_v6 }
 0x196   : > { %v1219_v9 = vpop.f32.mrb[24].mxu0 }
 0x197   : > { %v1220_v10 = vpop.f32.mrb[25].mxu0 }
 0x198   : > { %v1978_v11 = vadd.f32 %v1220_v10, %v1219_v9 }
 0x19a   : > { %v1222_v12 = vpop.f32.mrb[0].mxu1 }
 0x19b   : > { %v1223_v15 = vpop.f32.mrb[1].mxu1 }
 0x19c   : > { %v1980_v16 = vadd.f32 %v1223_v15, %v1222_v12 }
 0x19e   : > { %v1225_v17 = vpop.f32.mrb[2].mxu1 }
 0x19f   : > { %v1226_v19 = vpop.f32.mrb[3].mxu1 }
 0x1a0   : > { %v1982_v21 = vadd.f32 %v1226_v19, %v1225_v17 }
 0x1a1   : > { %v712_v23 = vpop.xlane.xlu1 %711 }
 0x1a2   : > { %v1228_v25 = vpop.f32.mrb[4].mxu1  ;;  %v756_v27 = vadd.f32 1e-32, %v712_v23 }
 0x1a3   : > { %v1229_v29 = vpop.f32.mrb[5].mxu1 }
 0x1a4   : > { %v1984_v31 = vadd.f32 %v1229_v29, %v1228_v25  ;;  %1497 = vrsqrt.f32 %v756_v27 }
 0x1a5   : > { %v709_v33 = vpop.xlane.xlu1 %708 }
 0x1a6   : > { %v1231_v35 = vpop.f32.mrb[6].mxu1  ;;  %v755_v37 = vadd.f32 1e-32, %v709_v33 }
 0x1a7   : > { %v1232_v39 = vpop.f32.mrb[7].mxu1 }
 0x1a8   : > { %v1986_v41 = vadd.f32 %v1232_v39, %v1231_v35  ;;  %1499 = vrsqrt.f32 %v755_v37 }
 0x1a9   : > { %v718_v43 = vpop.xlane.xlu1 %717 }
 0x1aa   : > { %v1234_v45 = vpop.f32.mrb[8].mxu1  ;;  %v758_v46 = vadd.f32 1e-32, %v718_v43 }
 0x1ab   : > { %v1235_v47 = vpop.f32.mrb[9].mxu1 }
 0x1ac   : > { %v1988_v48 = vadd.f32 %v1235_v47, %v1234_v45  ;;  %1501 = vrsqrt.f32 %v758_v46 }
 0x1ad   : > { %v715_v49 = vpop.xlane.xlu1 %714 }
 0x1ae   : > { %v1237_v50 = vpop.f32.mrb[10].mxu1  ;;  %v1498_v51 = vpop.eup %1497  ;;  %v757_v52 = vadd.f32 1e-32, %v715_v49 }
 0x1af   : > { %v1238_v54 = vpop.f32.mrb[11].mxu1  ;;  %v788_v55 = vmul.f32 %v1498_v51, %v1892_v13 }
 0x1b0   : > { %v1993_v56 = vadd.f32 %v1238_v54, %v1237_v50  ;;  %1503 = vrsqrt.f32 %v757_v52 }
 0x1b1   : > { %v806_v57 = vmul.f32 %v1990_v53, %v788_v55  ;;  %v724_v58 = vpop.xlane.xlu1 %723 }
 0x1b2   : > { %v1240_v59 = vpop.f32.mrb[12].mxu1  ;;  %v1500_v60 = vpop.eup %1499  ;;  %v760_v61 = vadd.f32 1e-32, %v724_v58 }
 0x1b3   : > { %v1241_v62 = vpop.f32.mrb[13].mxu1  ;;  %v787_v13 = vmul.f32 %v1500_v60, %v1894_v14  ;;  %v957_v0 = vadd.f32 %v1212_v2, %v806_v57 }
 0x1b4   : > { %v2004_v1 = vadd.f32 %v1241_v62, %v1240_v59  ;;  %1505 = vrsqrt.f32 %v760_v61 }
 0x1b5   : > { %v805_v3 = vmul.f32 %v1990_v53, %v787_v13  ;;  %1031 = vst.msk [vmem:[%s2001_s25 + $0x8] sm:$0xff] %vm706_vm1, %v957_v0  ;;  %v721_v4 = vpop.xlane.xlu1 %720 }
 0x1b6   : > { %v1243_v6 = vpop.f32.mrb[14].mxu1  ;;  %v1502_v7 = vpop.eup %1501  ;;  %v759_v9 = vadd.f32 1e-32, %v721_v4 }
 0x1b7   : > { %v1244_v10 = vpop.f32.mrb[15].mxu1  ;;  %v952_v12 = vadd.f32 %v1972_v63, %v805_v3  ;;  %v790_v15 = vmul.f32 %v1502_v7, %v1901_v18 }
 0x1b8   : > { %v2011_v17 = vadd.f32 %v1244_v10, %v1243_v6  ;;  %1507 = vrsqrt.f32 %v759_v9 }
 0x1b9   : > { %1030 = vst.msk [vmem:[%s2001_s25] sm:$0xff] %vm706_vm1, %v952_v12  ;;  %v808_v14 = vmul.f32 %v1990_v53, %v790_v15  ;;  %v730_v2 = vpop.xlane.xlu1 %729 }
 0x1ba   : > { %v1246_v19 = vpop.f32.mrb[16].mxu1  ;;  %v1504_v23 = vpop.eup %1503  ;;  %v762_v25 = vadd.f32 1e-32, %v730_v2 }
 0x1bb   : > { %v1247_v27 = vpop.f32.mrb[17].mxu1  ;;  %v789_v29 = vmul.f32 %v1504_v23, %v1905_v20  ;;  %v967_v63 = vadd.f32 %v1976_v8, %v808_v14 }
 0x1bc   : > { %v2018_v33 = vadd.f32 %v1247_v27, %v1246_v19  ;;  %1509 = vrsqrt.f32 %v762_v25 }
 0x1bd   : > { %v807_v18 = vmul.f32 %v1990_v53, %v789_v29  ;;  %1033 = vst.msk [vmem:[%s2001_s25 + $0x18] sm:$0xff] %vm706_vm1, %v967_v63  ;;  %v727_v35 = vpop.xlane.xlu1 %726 }
 0x1be   : > { %v1249_v37 = vpop.f32.mrb[18].mxu1  ;;  %v1506_v39 = vpop.eup %1505  ;;  %v761_v43 = vadd.f32 1e-32, %v727_v35 }
 0x1bf   : > { %v1250_v45 = vpop.f32.mrb[19].mxu1  ;;  %v962_v46 = vadd.f32 %v1974_v5, %v807_v18  ;;  %v792_v47 = vmul.f32 %v1506_v39, %v1908_v22 }
 0x1c0   : > { %v2025_v20 = vadd.f32 %v1250_v45, %v1249_v37  ;;  %1511 = vrsqrt.f32 %v761_v43 }
 0x1c1   : > { %1032 = vst.msk [vmem:[%s2001_s25 + $0x10] sm:$0xff] %vm706_vm1, %v962_v46  ;;  %v810_v8 = vmul.f32 %v1990_v53, %v792_v47  ;;  %v736_v49 = vpop.xlane.xlu1 %735 }
 0x1c2   : > { %v1252_v50 = vpop.f32.mrb[20].mxu1  ;;  %v1508_v51 = vpop.eup %1507  ;;  %v764_v52 = vadd.f32 1e-32, %v736_v49 }
 0x1c3   : > { %v1253_v54 = vpop.f32.mrb[21].mxu1  ;;  %v791_v55 = vmul.f32 %v1508_v51, %v1911_v24  ;;  %v977_v5 = vadd.f32 %v1980_v16, %v810_v8 }
 0x1c4   : > { %v2032_v57 = vadd.f32 %v1253_v54, %v1252_v50  ;;  %1513 = vrsqrt.f32 %v764_v52 }
 0x1c5   : > { %v809_v22 = vmul.f32 %v1990_v53, %v791_v55  ;;  %1035 = vst.msk [vmem:[%s2001_s25 + $0x28] sm:$0xff] %vm706_vm1, %v977_v5  ;;  %v733_v58 = vpop.xlane.xlu1 %732 }
 0x1c6   : > { %v1510_v59 = vpop.eup %1509  ;;  %v763_v60 = vadd.f32 1e-32, %v733_v58 }
 0x1c7   : > { %v972_v61 = vadd.f32 %v1978_v11, %v809_v22  ;;  %v794_v62 = vmul.f32 %v1510_v59, %v1915_v26 }
 0x1c8   : > { %1515 = vrsqrt.f32 %v763_v60 }
 0x1c9   : > { %1034 = vst.msk [vmem:[%s2001_s25 + $0x20] sm:$0xff] %vm706_vm1, %v972_v61  ;;  %v812_v24 = vmul.f32 %v1990_v53, %v794_v62  ;;  %v742_v16 = vpop.xlane.xlu1 %741 }
 0x1ca   : > { %v1512_v13 = vpop.eup %1511  ;;  %v766_v0 = vadd.f32 1e-32, %v742_v16 }
 0x1cb   : > { %v793_v3 = vmul.f32 %v1512_v13, %v1919_v28  ;;  %v987_v4 = vadd.f32 %v1984_v31, %v812_v24 }
 0x1cc   : > { %1517 = vrsqrt.f32 %v766_v0 }
 0x1cd   : > { %v811_v6 = vmul.f32 %v1990_v53, %v793_v3  ;;  %1037 = vst.msk [vmem:[%s2001_s25 + $0x38] sm:$0xff] %vm706_vm1, %v987_v4  ;;  %v739_v26 = vpop.xlane.xlu1 %738 }
 0x1ce   : > { %v1514_v11 = vpop.eup %1513  ;;  %v765_v7 = vadd.f32 1e-32, %v739_v26 }
 0x1cf   : > { %v982_v9 = vadd.f32 %v1982_v21, %v811_v6  ;;  %v796_v10 = vmul.f32 %v1514_v11, %v1922_v30 }
 0x1d0   : > { %1519 = vrsqrt.f32 %v765_v7 }
 0x1d1   : > { %1036 = vst.msk [vmem:[%s2001_s25 + $0x30] sm:$0xff] %vm706_vm1, %v982_v9  ;;  %v814_v28 = vmul.f32 %v1990_v53, %v796_v10  ;;  %v748_v31 = vpop.xlane.xlu1 %747 }
 0x1d2   : > { %v1516_v12 = vpop.eup %1515  ;;  %v768_v15 = vadd.f32 1e-32, %v748_v31 }
 0x1d3   : > { %v795_v14 = vmul.f32 %v1516_v12, %v1925_v32  ;;  %v997_v2 = vadd.f32 %v1988_v48, %v814_v28 }
 0x1d4   : > { %1521 = vrsqrt.f32 %v768_v15 }
 0x1d5   : > { %v813_v19 = vmul.f32 %v1990_v53, %v795_v14  ;;  %1039 = vst.msk [vmem:[%s2001_s25 + $0x48] sm:$0xff] %vm706_vm1, %v997_v2  ;;  %v745_v30 = vpop.xlane.xlu1 %744 }
 0x1d6   : > { %v1518_v21 = vpop.eup %1517  ;;  %v767_v23 = vadd.f32 1e-32, %v745_v30 }
 0x1d7   : > { %v992_v25 = vadd.f32 %v1986_v41, %v813_v19  ;;  %v798_v27 = vmul.f32 %v1518_v21, %v1929_v34 }
 0x1d8   : > { %1523 = vrsqrt.f32 %v767_v23 }
 0x1d9   : > { %1038 = vst.msk [vmem:[%s2001_s25 + $0x40] sm:$0xff] %vm706_vm1, %v992_v25  ;;  %v816_v32 = vmul.f32 %v1990_v53, %v798_v27  ;;  %v751_v48 = vpop.xlane.xlu1 %750 }
 0x1da   : > { %v1520_v29 = vpop.eup %1519  ;;  %v769_v63 = vadd.f32 1e-32, %v751_v48 }
 0x1db   : > { %v797_v18 = vmul.f32 %v1520_v29, %v1933_v36  ;;  %v1007_v35 = vadd.f32 %v2004_v1, %v816_v32 }
 0x1dc   : > { %1525 = vrsqrt.f32 %v769_v63 }
 0x1dd   : > { %v815_v37 = vmul.f32 %v1990_v53, %v797_v18  ;;  %1041 = vst.msk [vmem:[%s2001_s25 + $0x58] sm:$0xff] %vm706_vm1, %v1007_v35  ;;  %v754_v34 = vpop.xlane.xlu1 %753 }
 0x1de   : > { %v1522_v41 = vpop.eup %1521  ;;  %v770_v39 = vadd.f32 1e-32, %v754_v34 }
 0x1df   : > { %v1002_v43 = vadd.f32 %v1993_v56, %v815_v37  ;;  %v800_v45 = vmul.f32 %v1522_v41, %v1936_v38 }
 0x1e0   : > { %1527 = vrsqrt.f32 %v770_v39 }
 0x1e1   : > { %1040 = vst.msk [vmem:[%s2001_s25 + $0x50] sm:$0xff] %vm706_vm1, %v1002_v43  ;;  %v818_v36 = vmul.f32 %v1990_v53, %v800_v45 }
 0x1e2   : > { %v1524_v1 = vpop.eup %1523 }
 0x1e3   : > { %v799_v46 = vmul.f32 %v1524_v1, %v1939_v40  ;;  %v1017_v47 = vadd.f32 %v2018_v33, %v818_v36 }
 0x1e5   : > { %v817_v8 = vmul.f32 %v1990_v53, %v799_v46  ;;  %1043 = vst.msk [vmem:[%s2001_s25 + $0x68] sm:$0xff] %vm706_vm1, %v1017_v47 }
 0x1e6   : > { %v1526_v49 = vpop.eup %1525 }
 0x1e7   : > { %v1012_v56 = vadd.f32 %v2011_v17, %v817_v8  ;;  %v801_v38 = vmul.f32 %v1526_v49, %v1947_v44 }
 0x1e9   : > { %1042 = vst.msk [vmem:[%s2001_s25 + $0x60] sm:$0xff] %vm706_vm1, %v1012_v56  ;;  %v819_v50 = vmul.f32 %v1990_v53, %v801_v38 }
 0x1ea   : > { %v1528_v51 = vpop.eup %1527 }
 0x1eb   : > { %v1022_v52 = vadd.f32 %v2025_v20, %v819_v50  ;;  %v802_v40 = vmul.f32 %v1528_v51, %v1943_v42 }
 0x1ed   : > { %1044 = vst.msk [vmem:[%s2001_s25 + $0x70] sm:$0xff] %vm706_vm1, %v1022_v52  ;;  %v820_v33 = vmul.f32 %v1990_v53, %v802_v40 }
 0x1ef   : > { %v1027_v54 = vadd.f32 %v2032_v57, %v820_v33 }
 0x1f1   : > { %1045 = vst.msk [vmem:[%s2001_s25 + $0x78] sm:$0xff] %vm706_vm1, %v1027_v54 }
 0x1f2 PF: > { %p13_p9 = scmp.ge.s32.totalorder %s1603_s23, 5   ;;  %s2106_s20 = smov %s1547_s21 }
 0x1f3   : > { %s2107_s21 = smov %s1612_s26  ;;  %s2108_s22 = smov %s1603_s23 }
 0x1f4   :  { %15 = sbr.rel (!%p13_p9) target bundleno = 4 (0x4), region = 116 }

// kernel: recon_all_forward.12
= control target key start
LH: loop header
LB: loop body
LE: loop exit
PB: predicated region body
PF: predicated region fallthrough
CT: control target
= control target key end

     0   :  { %8 = vsyncpa [#allocation3], 0  ;;  %s1490_s0 = inlined_call_operand.vmem [shape: f32[2], index: 0, kind: input, shape index: {}]   ;;  %s1491_s1 = inlined_call_operand.vmem [shape: f32[384,72], index: 1, kind: input, shape index: {}]   ;;  %s1492_s2 = inlined_call_operand.vmem [shape: f32[384,64], index: 2, kind: input, shape index: {}]   ;;  %s1493_s3 = inlined_call_operand.vmem [shape: f32[72,32], index: 3, kind: output, shape index: {}]  }
   0x1   :  { %s15_s14 = sshll.u32 %s1490_s0, 4  ;;  %s16_s14 = int_to_ptr.vmem [resolvable:$true] %s15_s14 }
   0x2   :  { %s992_s15 = scalar_lea.vmem %s16_s14, 16  ;;  %p997_p1 = scmp.lt.s32.totalorder %s16_s14, %s16_s14 }
   0x3   :  { %p993_p0 = scmp.ne.s32.totalorder %s16_s14, %s992_s15  ;;  %p998_p2 = scmp.lt.s32.totalorder %s992_s15, %s992_s15 }
   0x5   :  { %p999_p3 = por %p998_p2, %p997_p1 }
   0x7   :  { %p1000_p4 = pnand %p999_p3, %p993_p0 }
   0x9   :  { %1003 = shalt.err (!%p1000_p4)
}
   0xa   :  { %s1006_s16 = smov [#allocation2]  }
   0xb   :  { %18 = dma.vmem_to_smem %s16_s14, 16, %s1006_s16, [#allocation3]  }
   0xc   :  { %1004 = dma.done.wait [#allocation3], 16  }
   0xd   :  { %1005 = vsyncadd [#allocation3], 4294967280 }
   0xe   :  { %26 = sfence }
   0xf   :  { %v27_v0 = vld [vmem:[%s1491_s1] sm:$0xff]  ;;  %v28_v2 = vld [vmem:[%s1491_s1 + $0x8] sm:$0xff]  ;;  %v1007_v6 = vmov 0.0|0.0   ;;  %v29_v9 = vld [vmem:[%s1491_s1 + $0x10] sm:$0xff]  ;;  %vm1008_vm0 = vmmov 0   ;;  %v1009_v15 = vmov 0.0  }
  0x10   :  { %v43_v1 = vld [vmem:[%s1491_s1 + $0x80] sm:$0xff]  ;;  %v44_v4 = vld [vmem:[%s1491_s1 + $0x88] sm:$0xff]  ;;  %850 = vmatprep.subr.bf16.mxu1 %v1007_v6  ;;  %v45_v10 = vld [vmem:[%s1491_s1 + $0x90] sm:$0xff]  ;;  %791 = vmatprep.mubr.msk.f32.mxu1 %vm1008_vm0, %v1009_v15  ;;  %vm448_vm1 = vcmask 261120   ;;  %s674_s12 = sld [smem:[#allocation2 + $0x1]]  ;;  %s503_s13 = sld [smem:[#allocation2]] }
  0x11   :  { %v879_v3 = vpack.i.bf16 %v27_v0, %v43_v1  ;;  %v59_v5 = vld [vmem:[%s1491_s1 + $0x100] sm:$0xff]  ;;  %v881_v7 = vpack.i.bf16 %v28_v2, %v44_v4  ;;  %v60_v8 = vld [vmem:[%s1491_s1 + $0x108] sm:$0xff]  ;;  %v883_v11 = vpack.i.bf16 %v29_v9, %v45_v10  ;;  %v61_v12 = vld [vmem:[%s1491_s1 + $0x110] sm:$0xff] }
  0x12   :  { %187 = vxpose.xlu1.b32.start [1/16] (narrow) %v59_v5, 72  ;;  %v30_v13 = vld [vmem:[%s1491_s1 + $0x18] sm:$0xff]  ;;  %v31_v18 = vld [vmem:[%s1491_s1 + $0x20] sm:$0xff]  ;;  %v32_v21 = vld [vmem:[%s1491_s1 + $0x28] sm:$0xff] }
  0x13   :  { %880 = vxpose.xlu0.b32.start [1/16] (narrow) %v879_v3, 72  ;;  %v46_v14 = vld [vmem:[%s1491_s1 + $0x98] sm:$0xff]  ;;  %v47_v19 = vld [vmem:[%s1491_s1 + $0xa0] sm:$0xff]  ;;  %v48_v22 = vld [vmem:[%s1491_s1 + $0xa8] sm:$0xff] }
  0x14   :  { %v885_v16 = vpack.i.bf16 %v30_v13, %v46_v14  ;;  %v62_v17 = vld [vmem:[%s1491_s1 + $0x118] sm:$0xff]  ;;  %v887_v20 = vpack.i.bf16 %v31_v18, %v47_v19  ;;  %v63_v23 = vld [vmem:[%s1491_s1 + $0x120] sm:$0xff]  ;;  %v92_v25 = vld [vmem:[%s1492_s2 + $0x88] sm:$0xff]  ;;  %v889_v39 = vpack.i.bf16 %v32_v21, %v48_v22 }
  0x15   :  { %v91_v24 = vld [vmem:[%s1492_s2 + $0x80] sm:$0xff]  ;;  %v64_v27 = vld [vmem:[%s1491_s1 + $0x128] sm:$0xff]  ;;  %v33_v32 = vld [vmem:[%s1491_s1 + $0x30] sm:$0xff] }
  0x16   :  { %188 = vxpose.xlu1.b32.cont [2/16] (narrow) %v60_v8, 72  ;;  %v75_v26 = vld [vmem:[%s1492_s2] sm:$0xff]  ;;  %v818_v28 = vpack.c.bf16 %v92_v25, %v91_v24  ;;  %v76_v29 = vld [vmem:[%s1492_s2 + $0x8] sm:$0xff]  ;;  %v49_v33 = vld [vmem:[%s1491_s1 + $0xb0] sm:$0xff] }
  0x17   :  { %882 = vxpose.xlu0.b32.cont [2/16] (narrow) %v881_v7, 72  ;;  %v107_v30 = vld [vmem:[%s1492_s2 + $0x100] sm:$0xff]  ;;  %v108_v31 = vld [vmem:[%s1492_s2 + $0x108] sm:$0xff]  ;;  %v820_v34 = vpack.c.bf16 %v76_v29, %v75_v26  ;;  %v93_v36 = vld [vmem:[%s1492_s2 + $0x90] sm:$0xff]  ;;  %v891_v55 = vpack.i.bf16 %v33_v32, %v49_v33 }
  0x18   :  { %v851_v35 = vpack.c.bf16 %v108_v31, %v107_v30  ;;  %v94_v37 = vld [vmem:[%s1492_s2 + $0x98] sm:$0xff]  ;;  %v77_v38 = vld [vmem:[%s1492_s2 + $0x10] sm:$0xff]  ;;  %819 = vmatprep.subr.bf16.mxu0 %v818_v28  ;;  %v95_v46 = vld [vmem:[%s1492_s2 + $0xa0] sm:$0xff] }
  0x19   :  { %v822_v40 = vpack.c.bf16 %v94_v37, %v93_v36  ;;  %v78_v41 = vld [vmem:[%s1492_s2 + $0x18] sm:$0xff]  ;;  %v109_v42 = vld [vmem:[%s1492_s2 + $0x110] sm:$0xff]  ;;  %821 = vmatpush3.bf16.msra.mxu0 %v820_v34  ;;  %v96_v47 = vld [vmem:[%s1492_s2 + $0xa8] sm:$0xff] }
  0x1a   :  { %189 = vxpose.xlu1.b32.cont [3/16] (narrow) %v61_v12, 72  ;;  %v110_v43 = vld [vmem:[%s1492_s2 + $0x118] sm:$0xff]  ;;  %852 = vmatpush3.bf16.msra.mxu1 %v851_v35  ;;  %v824_v44 = vpack.c.bf16 %v78_v41, %v77_v38  ;;  %v79_v48 = vld [vmem:[%s1492_s2 + $0x20] sm:$0xff]  ;;  %v826_v49 = vpack.c.bf16 %v96_v47, %v95_v46  ;;  %v80_v50 = vld [vmem:[%s1492_s2 + $0x28] sm:$0xff] }
  0x1b   :  { %884 = vxpose.xlu0.b32.cont [3/16] (narrow) %v883_v11, 72  ;;  %v854_v45 = vpack.c.bf16 %v110_v43, %v109_v42  ;;  %823 = vmatprep.subr.bf16.mxu0 %v822_v40  ;;  %v111_v51 = vld [vmem:[%s1492_s2 + $0x120] sm:$0xff]  ;;  %v112_v52 = vld [vmem:[%s1492_s2 + $0x128] sm:$0xff]  ;;  %v97_v53 = vld [vmem:[%s1492_s2 + $0xb0] sm:$0xff]  ;;  %v828_v59 = vpack.c.bf16 %v80_v50, %v79_v48 }
  0x1c   :  { %853 = vmatprep.subr.bf16.mxu1 %v1007_v6  ;;  %v98_v54 = vld [vmem:[%s1492_s2 + $0xb8] sm:$0xff]  ;;  %v65_v56 = vld [vmem:[%s1491_s1 + $0x130] sm:$0xff]  ;;  %v857_v60 = vpack.c.bf16 %v112_v52, %v111_v51  ;;  %v99_v2 = vld [vmem:[%s1492_s2 + $0xc0] sm:$0xff] }
  0x1d   :  { %v34_v57 = vld [vmem:[%s1491_s1 + $0x38] sm:$0xff]  ;;  %825 = vmatpush3.bf16.msra.mxu0 %v824_v44  ;;  %v81_v61 = vld [vmem:[%s1492_s2 + $0x30] sm:$0xff]  ;;  %v830_v62 = vpack.c.bf16 %v98_v54, %v97_v53  ;;  %v100_v3 = vld [vmem:[%s1492_s2 + $0xc8] sm:$0xff] }
  0x1e   :  { %190 = vxpose.xlu1.b32.cont [4/16] (narrow) %v62_v17, 72  ;;  %v50_v58 = vld [vmem:[%s1491_s1 + $0xb8] sm:$0xff]  ;;  %855 = vmatpush3.bf16.msra.mxu1 %v854_v45  ;;  %v113_v0 = vld [vmem:[%s1492_s2 + $0x130] sm:$0xff]  ;;  %v35_v7 = vld [vmem:[%s1491_s1 + $0x40] sm:$0xff]  ;;  %v834_v12 = vpack.c.bf16 %v100_v3, %v99_v2 }
  0x1f   :  { %886 = vxpose.xlu0.b32.cont [4/16] (narrow) %v885_v16, 72  ;;  %827 = vmatprep.subr.bf16.mxu0 %v826_v49  ;;  %v82_v63 = vld [vmem:[%s1492_s2 + $0x38] sm:$0xff]  ;;  %v893_v4 = vpack.i.bf16 %v34_v57, %v50_v58  ;;  %v51_v8 = vld [vmem:[%s1491_s1 + $0xc0] sm:$0xff]  ;;  %v84_v13 = vld [vmem:[%s1492_s2 + $0x48] sm:$0xff] }
  0x20   :  { %856 = vmatprep.subr.bf16.mxu1 %v1007_v6  ;;  %v114_v1 = vld [vmem:[%s1492_s2 + $0x138] sm:$0xff]  ;;  %v832_v9 = vpack.c.bf16 %v82_v63, %v81_v61  ;;  %v83_v11 = vld [vmem:[%s1492_s2 + $0x40] sm:$0xff]  ;;  %v116_v16 = vld [vmem:[%s1492_s2 + $0x148] sm:$0xff]  ;;  %v895_v19 = vpack.i.bf16 %v35_v7, %v51_v8 }
  0x21   :  { %v66_v5 = vld [vmem:[%s1491_s1 + $0x138] sm:$0xff]  ;;  %829 = vmatpush3.bf16.msra.mxu0 %v828_v59  ;;  %v860_v10 = vpack.c.bf16 %v114_v1, %v113_v0  ;;  %v115_v14 = vld [vmem:[%s1492_s2 + $0x140] sm:$0xff]  ;;  %v101_v17 = vld [vmem:[%s1492_s2 + $0xd0] sm:$0xff] }
  0x22   :  { %191 = vxpose.xlu1.b32.cont [5/16] (narrow) %v63_v23, 72  ;;  %858 = vmatpush3.bf16.msra.mxu1 %v857_v60  ;;  %v102_v18 = vld [vmem:[%s1492_s2 + $0xd8] sm:$0xff]  ;;  %v36_v21 = vld [vmem:[%s1491_s1 + $0x48] sm:$0xff]  ;;  %v836_v23 = vpack.c.bf16 %v84_v13, %v83_v11  ;;  %v863_v24 = vpack.c.bf16 %v116_v16, %v115_v14  ;;  %v85_v25 = vld [vmem:[%s1492_s2 + $0x50] sm:$0xff] }
  0x23   :  { %888 = vxpose.xlu0.b32.cont [5/16] (narrow) %v887_v20, 72  ;;  %831 = vmatprep.subr.bf16.mxu0 %v830_v62  ;;  %v67_v20 = vld [vmem:[%s1491_s1 + $0x140] sm:$0xff]  ;;  %v52_v22 = vld [vmem:[%s1491_s1 + $0xc8] sm:$0xff]  ;;  %v838_v26 = vpack.c.bf16 %v102_v18, %v101_v17  ;;  %v117_v28 = vld [vmem:[%s1492_s2 + $0x150] sm:$0xff] }
  0x24   :  { %859 = vmatprep.subr.bf16.mxu1 %v1007_v6  ;;  %v118_v29 = vld [vmem:[%s1492_s2 + $0x158] sm:$0xff]  ;;  %v103_v30 = vld [vmem:[%s1492_s2 + $0xe0] sm:$0xff]  ;;  %v104_v31 = vld [vmem:[%s1492_s2 + $0xe8] sm:$0xff]  ;;  %v897_v32 = vpack.i.bf16 %v36_v21, %v52_v22 }
  0x25   :  { %833 = vmatpush3.bf16.msra.mxu0 %v832_v9  ;;  %v68_v33 = vld [vmem:[%s1491_s1 + $0x148] sm:$0xff]  ;;  %v37_v34 = vld [vmem:[%s1491_s1 + $0x50] sm:$0xff]  ;;  %v866_v37 = vpack.c.bf16 %v118_v29, %v117_v28  ;;  %v87_v38 = vld [vmem:[%s1492_s2 + $0x60] sm:$0xff] }
  0x26   :  { %192 = vxpose.xlu1.b32.cont [6/16] (narrow) %v64_v27, 72  ;;  %861 = vmatpush3.bf16.msra.mxu1 %v860_v10  ;;  %v86_v27 = vld [vmem:[%s1492_s2 + $0x58] sm:$0xff]  ;;  %v53_v35 = vld [vmem:[%s1491_s1 + $0xd0] sm:$0xff]  ;;  %v88_v40 = vld [vmem:[%s1492_s2 + $0x68] sm:$0xff] }
  0x27   :  { %890 = vxpose.xlu0.b32.cont [6/16] (narrow) %v889_v39, 72  ;;  %835 = vmatprep.subr.bf16.mxu0 %v834_v12  ;;  %v840_v36 = vpack.c.bf16 %v86_v27, %v85_v25  ;;  %v842_v39 = vpack.c.bf16 %v104_v31, %v103_v30  ;;  %v119_v41 = vld [vmem:[%s1492_s2 + $0x160] sm:$0xff]  ;;  %v120_v42 = vld [vmem:[%s1492_s2 + $0x168] sm:$0xff]  ;;  %v105_v43 = vld [vmem:[%s1492_s2 + $0xf0] sm:$0xff]  ;;  %v899_v45 = vpack.i.bf16 %v37_v34, %v53_v35 }
  0x28   :  { %862 = vmatprep.subr.bf16.mxu1 %v1007_v6  ;;  %v106_v44 = vld [vmem:[%s1492_s2 + $0xf8] sm:$0xff]  ;;  %v69_v46 = vld [vmem:[%s1491_s1 + $0x150] sm:$0xff]  ;;  %v844_v49 = vpack.c.bf16 %v88_v40, %v87_v38  ;;  %v869_v50 = vpack.c.bf16 %v120_v42, %v119_v41  ;;  %v39_v58 = vld [vmem:[%s1491_s1 + $0x60] sm:$0xff] }
  0x29   :  { %837 = vmatpush3.bf16.msra.mxu0 %v836_v23  ;;  %v38_v47 = vld [vmem:[%s1491_s1 + $0x58] sm:$0xff]  ;;  %v89_v51 = vld [vmem:[%s1492_s2 + $0x70] sm:$0xff]  ;;  %v846_v52 = vpack.c.bf16 %v106_v44, %v105_v43  ;;  %v55_v59 = vld [vmem:[%s1491_s1 + $0xe0] sm:$0xff] }
  0x2a   :  { %193 = vxpose.xlu1.b32.cont [7/16] (narrow) %v65_v56, 72  ;;  %864 = vmatpush3.bf16.msra.mxu1 %v863_v24  ;;  %v54_v48 = vld [vmem:[%s1491_s1 + $0xd8] sm:$0xff]  ;;  %v121_v54 = vld [vmem:[%s1492_s2 + $0x170] sm:$0xff]  ;;  %v903_v62 = vpack.i.bf16 %v39_v58, %v55_v59  ;;  %v71_v63 = vld [vmem:[%s1491_s1 + $0x160] sm:$0xff] }
  0x2b   :  { %892 = vxpose.xlu0.b32.cont [7/16] (narrow) %v891_v55, 72  ;;  %839 = vmatprep.subr.bf16.mxu0 %v838_v26  ;;  %v90_v53 = vld [vmem:[%s1492_s2 + $0x78] sm:$0xff]  ;;  %v901_v56 = vpack.i.bf16 %v38_v47, %v54_v48  ;;  %v40_v0 = vld [vmem:[%s1491_s1 + $0x68] sm:$0xff]  ;;  %v41_v3 = vld [vmem:[%s1491_s1 + $0x70] sm:$0xff] }
  0x2c   :  { %865 = vmatprep.subr.bf16.mxu1 %v1007_v6  ;;  %v122_v55 = vld [vmem:[%s1492_s2 + $0x178] sm:$0xff]  ;;  %v848_v60 = vpack.c.bf16 %v90_v53, %v89_v51  ;;  %v56_v1 = vld [vmem:[%s1491_s1 + $0xe8] sm:$0xff]  ;;  %v73_v7 = vld [vmem:[%s1491_s1 + $0x170] sm:$0xff] }
  0x2d   :  { %841 = vmatpush3.bf16.msra.mxu0 %v840_v36  ;;  %v70_v57 = vld [vmem:[%s1491_s1 + $0x158] sm:$0xff]  ;;  %v872_v61 = vpack.c.bf16 %v122_v55, %v121_v54  ;;  %v72_v2 = vld [vmem:[%s1491_s1 + $0x168] sm:$0xff] }
  0x2e   :  { %194 = vxpose.xlu1.b32.cont [8/16] (narrow) %v66_v5, 72  ;;  %867 = vmatpush3.bf16.msra.mxu1 %v866_v37  ;;  %v42_v8 = vld [vmem:[%s1491_s1 + $0x78] sm:$0xff] }
  0x2f   :  { %894 = vxpose.xlu0.b32.cont [8/16] (narrow) %v893_v4, 72  ;;  %843 = vmatprep.subr.bf16.mxu0 %v842_v39  ;;  %v57_v4 = vld [vmem:[%s1491_s1 + $0xf0] sm:$0xff]  ;;  %v58_v9 = vld [vmem:[%s1491_s1 + $0xf8] sm:$0xff] }
  0x30   :  { %868 = vmatprep.subr.bf16.mxu1 %v1007_v6  ;;  %v907_v5 = vpack.i.bf16 %v41_v3, %v57_v4  ;;  %v909_v10 = vpack.i.bf16 %v42_v8, %v58_v9  ;;  %v74_v11 = vld [vmem:[%s1491_s1 + $0x178] sm:$0xff]  ;;  %s1010_s1 = smov 96  }
  0x31   :  { %845 = vmatpush3.bf16.msra.mxu0 %v844_v49 }
  0x32   :  { %195 = vxpose.xlu1.b32.cont [9/16] (narrow) %v67_v20, 72  ;;  %870 = vmatpush3.bf16.msra.mxu1 %v869_v50 }
  0x33   :  { %896 = vxpose.xlu0.b32.cont [9/16] (narrow) %v895_v19, 72  ;;  %847 = vmatprep.subr.bf16.mxu0 %v846_v52 }
  0x34   :  { %871 = vmatprep.subr.bf16.mxu1 %v1007_v6  ;;  %v905_v6 = vpack.i.bf16 %v40_v0, %v56_v1 }
  0x35   :  { %849 = vmatpush3.bf16.msra.mxu0 %v848_v60 }
  0x36   :  { %196 = vxpose.xlu1.b32.cont [10/16] (narrow) %v68_v33, 72  ;;  %873 = vmatpush3.bf16.msra.mxu1 %v872_v61 }
  0x37   :  { %898 = vxpose.xlu0.b32.cont [10/16] (narrow) %v897_v32, 72 }
  0x3a   :  { %197 = vxpose.xlu1.b32.cont [11/16] (narrow) %v69_v46, 72 }
  0x3b   :  { %900 = vxpose.xlu0.b32.cont [11/16] (narrow) %v899_v45, 72 }
  0x3e   :  { %198 = vxpose.xlu1.b32.cont [12/16] (narrow) %v70_v57, 72 }
  0x3f   :  { %902 = vxpose.xlu0.b32.cont [12/16] (narrow) %v901_v56, 72 }
  0x42   :  { %199 = vxpose.xlu1.b32.cont [13/16] (narrow) %v71_v63, 72 }
  0x43   :  { %904 = vxpose.xlu0.b32.cont [13/16] (narrow) %v903_v62, 72 }
  0x46   :  { %200 = vxpose.xlu1.b32.cont [14/16] (narrow) %v72_v2, 72 }
  0x47   :  { %906 = vxpose.xlu0.b32.cont [14/16] (narrow) %v905_v6, 72 }
  0x4a   :  { %201 = vxpose.xlu1.b32.cont [15/16] (narrow) %v73_v7, 72 }
  0x4b   :  { %908 = vxpose.xlu0.b32.cont [15/16] (narrow) %v907_v5, 72 }
  0x4e   :  { %202 = vxpose.xlu1.b32.end [16/16] (narrow) %v74_v11, 72 }
  0x4f   :  { %910 = vxpose.xlu0.b32.end [16/16] (narrow) %v909_v10, 72 }
  0x92   :  { %v203_v12 = vpop.trf.xlu1 }
  0x93   :  { %v911_v13 = vpop.trf.xlu0  ;;  %792 = vmatmul.mubr.f32.vlgmr.msra.gmra.mrb[0].mxu1 %v203_v12 }
  0x94   :  { %v912_v14 = vunpack.i.l.bf16 %v911_v13  ;;  %v915_v16 = vunpack.i.h.bf16 %v911_v13  ;;  %794 = vmatprep.mubr.msk.f32.mxu1 %vm1008_vm0, %v1009_v15 }
  0x96   :  { %283 = vmatprep.mubr.f32.mxu0 %v912_v14  ;;  %v204_v17 = vpop.trf.xlu1 }
  0x97   :  { %v916_v18 = vpop.trf.xlu0  ;;  %284 = vmatmul.mubr.f32.vlgmr.msra.gmra.mrb[0].mxu0 %v915_v16  ;;  %795 = vmatmul.mubr.f32.gmra.mrb[2].mxu1 %v204_v17 }
  0x98   :  { %v917_v19 = vunpack.i.l.bf16 %v916_v18  ;;  %v920_v20 = vunpack.i.h.bf16 %v916_v18  ;;  %797 = vmatprep.mubr.msk.f32.mxu1 %vm1008_vm0, %v1009_v15 }
  0x9a   :  { %288 = vmatprep.mubr.f32.mxu0 %v917_v19  ;;  %v205_v21 = vpop.trf.xlu1 }
  0x9b   :  { %v921_v22 = vpop.trf.xlu0  ;;  %289 = vmatmul.mubr.f32.gmra.mrb[2].mxu0 %v920_v20  ;;  %798 = vmatmul.mubr.f32.gmra.mrb[4].mxu1 %v205_v21 }
  0x9c   :  { %v922_v23 = vunpack.i.l.bf16 %v921_v22  ;;  %v925_v24 = vunpack.i.h.bf16 %v921_v22  ;;  %800 = vmatprep.mubr.msk.f32.mxu1 %vm1008_vm0, %v1009_v15 }
  0x9e   :  { %293 = vmatprep.mubr.f32.mxu0 %v922_v23  ;;  %v206_v25 = vpop.trf.xlu1 }
  0x9f   :  { %v926_v26 = vpop.trf.xlu0  ;;  %294 = vmatmul.mubr.f32.gmra.mrb[4].mxu0 %v925_v24  ;;  %801 = vmatmul.mubr.f32.gmra.mrb[6].mxu1 %v206_v25 }
  0xa0   :  { %v927_v27 = vunpack.i.l.bf16 %v926_v26  ;;  %v930_v28 = vunpack.i.h.bf16 %v926_v26  ;;  %803 = vmatprep.mubr.msk.f32.mxu1 %vm1008_vm0, %v1009_v15 }
  0xa2   :  { %298 = vmatprep.mubr.f32.mxu0 %v927_v27  ;;  %v207_v29 = vpop.trf.xlu1 }
  0xa3   :  { %v931_v30 = vpop.trf.xlu0  ;;  %299 = vmatmul.mubr.f32.gmra.mrb[6].mxu0 %v930_v28  ;;  %804 = vmatmul.mubr.f32.gmra.mrb[8].mxu1 %v207_v29 }
  0xa4   :  { %v932_v31 = vunpack.i.l.bf16 %v931_v30  ;;  %v935_v32 = vunpack.i.h.bf16 %v931_v30  ;;  %806 = vmatprep.mubr.msk.f32.mxu1 %vm1008_vm0, %v1009_v15 }
  0xa6   :  { %303 = vmatprep.mubr.f32.mxu0 %v932_v31  ;;  %v208_v33 = vpop.trf.xlu1 }
  0xa7   :  { %v936_v34 = vpop.trf.xlu0  ;;  %304 = vmatmul.mubr.f32.gmra.mrb[8].mxu0 %v935_v32  ;;  %807 = vmatmul.mubr.f32.gmra.mrb[10].mxu1 %v208_v33 }
  0xa8   :  { %v937_v35 = vunpack.i.l.bf16 %v936_v34  ;;  %v940_v36 = vunpack.i.h.bf16 %v936_v34  ;;  %809 = vmatprep.mubr.msk.f32.mxu1 %vm1008_vm0, %v1009_v15 }
  0xaa   :  { %308 = vmatprep.mubr.f32.mxu0 %v937_v35  ;;  %v209_v37 = vpop.trf.xlu1 }
  0xab   :  { %v941_v38 = vpop.trf.xlu0  ;;  %309 = vmatmul.mubr.f32.gmra.mrb[10].mxu0 %v940_v36  ;;  %810 = vmatmul.mubr.f32.gmra.mrb[12].mxu1 %v209_v37 }
  0xac   :  { %v942_v39 = vunpack.i.l.bf16 %v941_v38  ;;  %v945_v40 = vunpack.i.h.bf16 %v941_v38  ;;  %812 = vmatprep.mubr.msk.f32.mxu1 %vm1008_vm0, %v1009_v15 }
  0xae   :  { %313 = vmatprep.mubr.f32.mxu0 %v942_v39  ;;  %v210_v41 = vpop.trf.xlu1 }
  0xaf   :  { %v946_v42 = vpop.trf.xlu0  ;;  %314 = vmatmul.mubr.f32.gmra.mrb[12].mxu0 %v945_v40  ;;  %813 = vmatmul.mubr.f32.gmra.mrb[14].mxu1 %v210_v41 }
  0xb0   :  { %v947_v43 = vunpack.i.l.bf16 %v946_v42  ;;  %v950_v44 = vunpack.i.h.bf16 %v946_v42  ;;  %815 = vmatprep.mubr.msk.f32.mxu1 %vm1008_vm0, %v1009_v15 }
  0xb2   :  { %318 = vmatprep.mubr.f32.mxu0 %v947_v43  ;;  %v211_v45 = vpop.trf.xlu1 }
  0xb3   :  { %v951_v46 = vpop.trf.xlu0  ;;  %319 = vmatmul.mubr.f32.gmra.mrb[14].mxu0 %v950_v44  ;;  %816 = vmatmul.mubr.f32.gmra.mrb[16].mxu1 %v211_v45 }
  0xb4   :  { %v952_v47 = vunpack.i.l.bf16 %v951_v46  ;;  %v955_v48 = vunpack.i.h.bf16 %v951_v46 }
  0xb6   :  { %323 = vmatprep.mubr.f32.mxu0 %v952_v47 }
  0xb7   :  { %324 = vmatmul.mubr.f32.gmra.mrb[16].mxu0 %v955_v48 }
 0x166   :  { %v395_v49 = vpop.f32.mrb[0].mxu1 }
 0x167   :  { %v793_v50 = vpop.f32.mrb[1].mxu1 }
 0x16a   :  { %v707_v51 = vpop.f32.mrb[0].mxu0  ;;  %v400_v52 = vpop.f32.mrb[2].mxu1 }
 0x16b   :  { %v708_v53 = vpop.f32.mrb[1].mxu0  ;;  %v796_v54 = vpop.f32.mrb[3].mxu1 }
 0x16c   :  { %v709_v55 = vadd.f32 %v708_v53, %v707_v51 }
 0x16e   :  { %v1348_v56 = vadd.f32 %v709_v55, %v395_v49  ;;  %v710_v57 = vpop.f32.mrb[2].mxu0  ;;  %v405_v15 = vpop.f32.mrb[4].mxu1 }
 0x16f   :  { %v711_v58 = vpop.f32.mrb[3].mxu0  ;;  %v799_v59 = vpop.f32.mrb[5].mxu1 }
 0x170   :  { %v712_v60 = vadd.f32 %v711_v58, %v710_v57  ;;  %v1352_v61 = vmul.f32 %v1348_v56, %v1348_v56 }
 0x172   :  { %v1354_v62 = vadd.f32 %v712_v60, %v400_v52  ;;  %v713_v63 = vpop.f32.mrb[4].mxu0  ;;  %523 = vrot.lane.b32.xlu0 %v1352_v61, %s1010_s1  ;;  %v410_v0 = vpop.f32.mrb[6].mxu1 }
 0x173   :  { %v714_v1 = vpop.f32.mrb[5].mxu0  ;;  %v802_v6 = vpop.f32.mrb[7].mxu1 }
 0x174   :  { %v715_v2 = vadd.f32 %v714_v1, %v713_v63  ;;  %v1360_v3 = vmul.f32 %v1354_v62, %v1354_v62 }
 0x176   :  { %v1362_v4 = vadd.f32 %v715_v2, %v405_v15  ;;  %v716_v5 = vpop.f32.mrb[6].mxu0  ;;  %525 = vrot.lane.b32.xlu1 %v1360_v3, %s1010_s1  ;;  %v415_v7 = vpop.f32.mrb[8].mxu1 }
 0x177   :  { %v717_v8 = vpop.f32.mrb[7].mxu0  ;;  %v805_v9 = vpop.f32.mrb[9].mxu1 }
 0x178   :  { %v718_v10 = vadd.f32 %v717_v8, %v716_v5  ;;  %v1368_v11 = vmul.f32 %v1362_v4, %v1362_v4  ;;  %v449_v5 = vsel %vm448_vm1, %v1352_v61, 0.0 }
 0x17a   :  { %v1370_v12 = vadd.f32 %v718_v10, %v410_v0  ;;  %v719_v13 = vpop.f32.mrb[8].mxu0  ;;  %527 = vrot.lane.b32.xlu1 %v1368_v11, %s1010_s1  ;;  %v420_v14 = vpop.f32.mrb[10].mxu1  ;;  %v455_v8 = vsel %vm448_vm1, %v1368_v11, 0.0 }
 0x17b   :  { %v720_v16 = vpop.f32.mrb[9].mxu0  ;;  %v808_v17 = vpop.f32.mrb[11].mxu1 }
 0x17c   :  { %v721_v18 = vadd.f32 %v720_v16, %v719_v13  ;;  %v1376_v19 = vmul.f32 %v1370_v12, %v1370_v12 }
 0x17e   :  { %v1378_v20 = vadd.f32 %v721_v18, %v415_v7  ;;  %v722_v21 = vpop.f32.mrb[10].mxu0  ;;  %529 = vrot.lane.b32.xlu1 %v1376_v19, %s1010_s1  ;;  %v425_v22 = vpop.f32.mrb[12].mxu1  ;;  %v452_v7 = vsel %vm448_vm1, %v1360_v3, 0.0  ;;  %v458_v9 = vsel %vm448_vm1, %v1376_v19, 0.0 }
 0x17f   :  { %v723_v23 = vpop.f32.mrb[11].mxu0  ;;  %v811_v24 = vpop.f32.mrb[13].mxu1 }
 0x180   :  { %v724_v25 = vadd.f32 %v723_v23, %v722_v21  ;;  %v443_v26 = vmul.f32 %v1378_v20, %v1378_v20 }
 0x182   :  { %v1384_v27 = vadd.f32 %v724_v25, %v420_v14  ;;  %v725_v28 = vpop.f32.mrb[12].mxu0  ;;  %531 = vrot.lane.b32.xlu1 %v443_v26, %s1010_s1  ;;  %v430_v29 = vpop.f32.mrb[14].mxu1  ;;  %v461_v10 = vsel %vm448_vm1, %v443_v26, 0.0  ;;  %v605_v25 = vstv %s674_s12 }
 0x183   :  { %v726_v30 = vpop.f32.mrb[13].mxu0  ;;  %v814_v31 = vpop.f32.mrb[15].mxu1 }
 0x184   :  { %v727_v32 = vadd.f32 %v726_v30, %v725_v28  ;;  %v444_v33 = vmul.f32 %v1384_v27, %v1384_v27 }
 0x186   :  { %v1389_v34 = vadd.f32 %v727_v32, %v425_v22  ;;  %v728_v35 = vpop.f32.mrb[14].mxu0  ;;  %533 = vrot.lane.b32.xlu0 %v444_v33, %s1010_s1  ;;  %v435_v36 = vpop.f32.mrb[16].mxu1  ;;  %v464_v13 = vsel %vm448_vm1, %v444_v33, 0.0 }
 0x187   :  { %v729_v37 = vpop.f32.mrb[15].mxu0  ;;  %v817_v38 = vpop.f32.mrb[17].mxu1 }
 0x188   :  { %v730_v39 = vadd.f32 %v729_v37, %v728_v35  ;;  %v445_v40 = vmul.f32 %v1389_v34, %v1389_v34 }
 0x18a   :  { %v1394_v41 = vadd.f32 %v730_v39, %v430_v29  ;;  %v731_v42 = vpop.f32.mrb[16].mxu0  ;;  %535 = vrot.lane.b32.xlu1 %v445_v40, %s1010_s1  ;;  %v467_v61 = vsel %vm448_vm1, %v445_v40, 0.0 }
 0x18b   :  { %v732_v43 = vpop.f32.mrb[17].mxu0 }
 0x18c   :  { %v733_v44 = vadd.f32 %v732_v43, %v731_v42  ;;  %v446_v45 = vmul.f32 %v1394_v41, %v1394_v41 }
 0x18e   :  { %v1399_v46 = vadd.f32 %v733_v44, %v435_v36  ;;  %537 = vrot.lane.b32.xlu0 %v446_v45, %s1010_s1  ;;  %v470_v3 = vsel %vm448_vm1, %v446_v45, 0.0 }
 0x190   :  { %v447_v47 = vmul.f32 %v1399_v46, %v1399_v46 }
 0x192   :  { %539 = vrot.lane.b32.xlu1 %v447_v47, %s1010_s1  ;;  %v473_v14 = vsel %vm448_vm1, %v447_v47, 0.0 }
 0x1e4   :  { %v524_v48 = vpop.permute.xlu0 %523 }
 0x1e5   :  { %v550_v49 = vsel %vm448_vm1, %v524_v48, 0.0 }
 0x1e6   :  { %551 = vadd.xlane.f32.xlu0 %v550_v49 }
 0x1e8   :  { %v526_v50 = vpop.permute.xlu1 %525 }
 0x1e9   :  { %v553_v51 = vsel %vm448_vm1, %v526_v50, 0.0 }
 0x1ea   :  { %554 = vadd.xlane.f32.xlu1 %v553_v51 }
 0x1ec   :  { %v528_v52 = vpop.permute.xlu1 %527 }
 0x1ed   :  { %v556_v53 = vsel %vm448_vm1, %v528_v52, 0.0 }
 0x1ee   :  { %557 = vadd.xlane.f32.xlu0 %v556_v53 }
 0x1f0   :  { %v530_v54 = vpop.permute.xlu1 %529 }
 0x1f1   :  { %v559_v55 = vsel %vm448_vm1, %v530_v54, 0.0 }
 0x1f2   :  { %560 = vadd.xlane.f32.xlu0 %v559_v55 }
 0x1f4   :  { %v532_v57 = vpop.permute.xlu1 %531 }
 0x1f5   :  { %v562_v15 = vsel %vm448_vm1, %v532_v57, 0.0 }
 0x1f6   :  { %563 = vadd.xlane.f32.xlu1 %v562_v15 }
 0x1f8   :  { %v534_v58 = vpop.permute.xlu0 %533 }
 0x1f9   :  { %v565_v59 = vsel %vm448_vm1, %v534_v58, 0.0 }
 0x1fa   :  { %566 = vadd.xlane.f32.xlu0 %v565_v59 }
 0x1fc   :  { %v536_v60 = vpop.permute.xlu1 %535 }
 0x1fd   :  { %v568_v63 = vsel %vm448_vm1, %v536_v60, 0.0 }
 0x1fe   :  { %569 = vadd.xlane.f32.xlu1 %v568_v63 }
 0x200   :  { %v538_v0 = vpop.permute.xlu0 %537 }
 0x201   :  { %v571_v1 = vsel %vm448_vm1, %v538_v0, 0.0 }
 0x202   :  { %572 = vadd.xlane.f32.xlu0 %v571_v1 }
 0x204   :  { %v540_v6 = vpop.permute.xlu1 %539 }
 0x205   :  { %v574_v2 = vsel %vm448_vm1, %v540_v6, 0.0 }
 0x206   :  { %575 = vadd.xlane.f32.xlu1 %v574_v2  ;;  %450 = vadd.xlane.f32.xlu0 %v449_v5 }
 0x20a   :  { %453 = vadd.xlane.f32.xlu1 %v452_v7  ;;  %456 = vadd.xlane.f32.xlu0 %v455_v8 }
 0x20e   :  { %459 = vadd.xlane.f32.xlu1 %v458_v9  ;;  %462 = vadd.xlane.f32.xlu0 %v461_v10 }
 0x212   :  { %465 = vadd.xlane.f32.xlu1 %v464_v13  ;;  %468 = vadd.xlane.f32.xlu0 %v467_v61 }
 0x216   :  { %471 = vadd.xlane.f32.xlu1 %v470_v3  ;;  %474 = vadd.xlane.f32.xlu0 %v473_v14 }
 0x273   :  { %v552_v11 = vpop.xlane.xlu0 %551 }
 0x274   :  { %v577_v16 = vadd.f32 1e-32, %v552_v11 }
 0x276   :  { %956 = vrsqrt.f32 %v577_v16 }
 0x277   :  { %v555_v17 = vpop.xlane.xlu1 %554 }
 0x278   :  { %v578_v18 = vadd.f32 1e-32, %v555_v17 }
 0x27a   :  { %958 = vrsqrt.f32 %v578_v18 }
 0x27b   :  { %v558_v19 = vpop.xlane.xlu0 %557 }
 0x27c   :  { %v579_v21 = vadd.f32 1e-32, %v558_v19 }
 0x27e   :  { %960 = vrsqrt.f32 %v579_v21 }
 0x27f   :  { %v561_v22 = vpop.xlane.xlu0 %560 }
 0x280   :  { %v957_v23 = vpop.eup %956  ;;  %v580_v24 = vadd.f32 1e-32, %v561_v22 }
 0x281   :  { %v595_v26 = vmul.f32 %v957_v23, %v1348_v56  ;;  %v504_v23 = vstv %s503_s13 }
 0x282   :  { %962 = vrsqrt.f32 %v580_v24 }
 0x283   :  { %v564_v28 = vpop.xlane.xlu1 %563  ;;  %v606_v29 = vmul.f32 %v605_v25, %v595_v26 }
 0x284   :  { %v959_v30 = vpop.eup %958  ;;  %v581_v31 = vadd.f32 1e-32, %v564_v28 }
 0x285   :  { %624 = vrot.lane.b32.xlu1 %v606_v29, %s1010_s1  ;;  %v596_v32 = vmul.f32 %v959_v30, %v1354_v62 }
 0x286   :  { %964 = vrsqrt.f32 %v581_v31 }
 0x287   :  { %v567_v33 = vpop.xlane.xlu0 %566  ;;  %v607_v35 = vmul.f32 %v605_v25, %v596_v32 }
 0x288   :  { %v961_v36 = vpop.eup %960  ;;  %v582_v37 = vadd.f32 1e-32, %v567_v33 }
 0x289   :  { %626 = vrot.lane.b32.xlu0 %v607_v35, %s1010_s1  ;;  %v597_v38 = vmul.f32 %v961_v36, %v1362_v4 }
 0x28a   :  { %966 = vrsqrt.f32 %v582_v37 }
 0x28b   :  { %v570_v39 = vpop.xlane.xlu1 %569  ;;  %v608_v40 = vmul.f32 %v605_v25, %v597_v38 }
 0x28c   :  { %v963_v42 = vpop.eup %962  ;;  %v583_v43 = vadd.f32 1e-32, %v570_v39 }
 0x28d   :  { %628 = vrot.lane.b32.xlu1 %v608_v40, %s1010_s1  ;;  %v598_v44 = vmul.f32 %v963_v42, %v1370_v12 }
 0x28e   :  { %968 = vrsqrt.f32 %v583_v43 }
 0x28f   :  { %v573_v45 = vpop.xlane.xlu0 %572  ;;  %v609_v47 = vmul.f32 %v605_v25, %v598_v44 }
 0x290   :  { %v965_v48 = vpop.eup %964  ;;  %v584_v49 = vadd.f32 1e-32, %v573_v45 }
 0x291   :  { %630 = vrot.lane.b32.xlu1 %v609_v47, %s1010_s1  ;;  %v599_v50 = vmul.f32 %v965_v48, %v1378_v20 }
 0x292   :  { %970 = vrsqrt.f32 %v584_v49 }
 0x293   :  { %v576_v51 = vpop.xlane.xlu1 %575  ;;  %v610_v52 = vmul.f32 %v605_v25, %v599_v50  ;;  %v451_v5 = vpop.xlane.xlu0 %450 }
 0x294   :  { %v967_v53 = vpop.eup %966  ;;  %v585_v54 = vadd.f32 1e-32, %v576_v51  ;;  %v476_v7 = vadd.f32 1e-32, %v451_v5 }
 0x295   :  { %632 = vrot.lane.b32.xlu0 %v610_v52, %s1010_s1  ;;  %v600_v55 = vmul.f32 %v967_v53, %v1384_v27 }
 0x296   :  { %972 = vrsqrt.f32 %v585_v54 }
 0x297   :  { %v611_v57 = vmul.f32 %v605_v25, %v600_v55  ;;  %v454_v8 = vpop.xlane.xlu1 %453  ;;  %974 = vrsqrt.f32 %v476_v7  ;;  %v457_v10 = vpop.xlane.xlu0 %456 }
 0x298   :  { %v969_v15 = vpop.eup %968  ;;  %v477_v9 = vadd.f32 1e-32, %v454_v8  ;;  %v478_v61 = vadd.f32 1e-32, %v457_v10 }
 0x299   :  { %634 = vrot.lane.b32.xlu1 %v611_v57, %s1010_s1  ;;  %v601_v58 = vmul.f32 %v969_v15, %v1389_v34 }
 0x29a   :  { %976 = vrsqrt.f32 %v477_v9 }
 0x29b   :  { %v612_v59 = vmul.f32 %v605_v25, %v601_v58  ;;  %v460_v13 = vpop.xlane.xlu1 %459  ;;  %v463_v3 = vpop.xlane.xlu0 %462  ;;  %978 = vrsqrt.f32 %v478_v61 }
 0x29c   :  { %v971_v60 = vpop.eup %970  ;;  %v479_v14 = vadd.f32 1e-32, %v460_v13  ;;  %v480_v17 = vadd.f32 1e-32, %v463_v3 }
 0x29d   :  { %636 = vrot.lane.b32.xlu0 %v612_v59, %s1010_s1  ;;  %v602_v63 = vmul.f32 %v971_v60, %v1394_v41 }
 0x29e   :  { %980 = vrsqrt.f32 %v479_v14 }
 0x29f   :  { %v613_v0 = vmul.f32 %v605_v25, %v602_v63  ;;  %v466_v11 = vpop.xlane.xlu1 %465  ;;  %v469_v18 = vpop.xlane.xlu0 %468  ;;  %982 = vrsqrt.f32 %v480_v17 }
 0x2a0   :  { %v973_v1 = vpop.eup %972  ;;  %v481_v24 = vadd.f32 1e-32, %v466_v11  ;;  %v482_v32 = vadd.f32 1e-32, %v469_v18 }
 0x2a1   :  { %638 = vrot.lane.b32.xlu1 %v613_v0, %s1010_s1  ;;  %v603_v6 = vmul.f32 %v973_v1, %v1399_v46  ;;  %v975_v16 = vpop.eup %974 }
 0x2a2   :  { %v494_v19 = vmul.f32 %v975_v16, %v1348_v56  ;;  %984 = vrsqrt.f32 %v481_v24 }
 0x2a3   :  { %v614_v2 = vmul.f32 %v605_v25, %v603_v6  ;;  %v472_v22 = vpop.xlane.xlu1 %471  ;;  %v475_v29 = vpop.xlane.xlu0 %474  ;;  %986 = vrsqrt.f32 %v482_v32 }
 0x2a4   :  { %v977_v21 = vpop.eup %976  ;;  %v505_v25 = vmul.f32 %v504_v23, %v494_v19  ;;  %v483_v38 = vadd.f32 1e-32, %v472_v22  ;;  %v484_v44 = vadd.f32 1e-32, %v475_v29 }
 0x2a5   :  { %640 = vrot.lane.b32.xlu0 %v614_v2, %s1010_s1  ;;  %v495_v26 = vmul.f32 %v977_v21, %v1354_v62  ;;  %v979_v28 = vpop.eup %978 }
 0x2a6   :  { %v496_v33 = vmul.f32 %v979_v28, %v1362_v4  ;;  %988 = vrsqrt.f32 %v483_v38 }
 0x2a7   :  { %v506_v56 = vmul.f32 %v504_v23, %v495_v26  ;;  %990 = vrsqrt.f32 %v484_v44 }
 0x2a8   :  { %v981_v35 = vpop.eup %980  ;;  %v507_v62 = vmul.f32 %v504_v23, %v496_v33 }
 0x2a9   :  { %v497_v39 = vmul.f32 %v981_v35, %v1370_v12  ;;  %v983_v40 = vpop.eup %982 }
 0x2aa   :  { %v498_v45 = vmul.f32 %v983_v40, %v1378_v20 }
 0x2ab   :  { %v508_v4 = vmul.f32 %v504_v23, %v497_v39 }
 0x2ac   :  { %v985_v47 = vpop.eup %984  ;;  %v509_v12 = vmul.f32 %v504_v23, %v498_v45 }
 0x2ad   :  { %v499_v50 = vmul.f32 %v985_v47, %v1384_v27  ;;  %v987_v51 = vpop.eup %986 }
 0x2ae   :  { %v500_v54 = vmul.f32 %v987_v51, %v1389_v34 }
 0x2af   :  { %v510_v20 = vmul.f32 %v504_v23, %v499_v50 }
 0x2b0   :  { %v989_v55 = vpop.eup %988  ;;  %v511_v27 = vmul.f32 %v504_v23, %v500_v54 }
 0x2b1   :  { %v501_v58 = vmul.f32 %v989_v55, %v1394_v41  ;;  %v991_v59 = vpop.eup %990 }
 0x2b2   :  { %v502_v0 = vmul.f32 %v991_v59, %v1399_v46 }
 0x2b3   :  { %v512_v34 = vmul.f32 %v504_v23, %v501_v58 }
 0x2b4   :  { %v513_v2 = vmul.f32 %v504_v23, %v502_v0 }
 0x2f7   :  { %v625_v30 = vpop.permute.xlu1 %624 }
 0x2f8   :  { %v651_v31 = vadd.f32 %v625_v30, %v505_v25 }
 0x2fa   :  { %660 = vst.msk [vmem:[%s1493_s3] sm:$0xff] %vm448_vm1, %v651_v31 }
 0x2fb   :  { %v627_v36 = vpop.permute.xlu0 %626 }
 0x2fc   :  { %v652_v37 = vadd.f32 %v627_v36, %v506_v56 }
 0x2fe   :  { %661 = vst.msk [vmem:[%s1493_s3 + $0x8] sm:$0xff] %vm448_vm1, %v652_v37 }
 0x2ff   :  { %v629_v42 = vpop.permute.xlu1 %628 }
 0x300   :  { %v653_v43 = vadd.f32 %v629_v42, %v507_v62 }
 0x302   :  { %662 = vst.msk [vmem:[%s1493_s3 + $0x10] sm:$0xff] %vm448_vm1, %v653_v43 }
 0x303   :  { %v631_v48 = vpop.permute.xlu1 %630 }
 0x304   :  { %v654_v49 = vadd.f32 %v631_v48, %v508_v4 }
 0x306   :  { %663 = vst.msk [vmem:[%s1493_s3 + $0x18] sm:$0xff] %vm448_vm1, %v654_v49 }
 0x307   :  { %v633_v52 = vpop.permute.xlu0 %632 }
 0x308   :  { %v655_v53 = vadd.f32 %v633_v52, %v509_v12 }
 0x30a   :  { %664 = vst.msk [vmem:[%s1493_s3 + $0x20] sm:$0xff] %vm448_vm1, %v655_v53 }
 0x30b   :  { %v635_v57 = vpop.permute.xlu1 %634 }
 0x30c   :  { %v656_v15 = vadd.f32 %v635_v57, %v510_v20 }
 0x30e   :  { %665 = vst.msk [vmem:[%s1493_s3 + $0x28] sm:$0xff] %vm448_vm1, %v656_v15 }
 0x30f   :  { %v637_v60 = vpop.permute.xlu0 %636 }
 0x310   :  { %v657_v63 = vadd.f32 %v637_v60, %v511_v27 }
 0x312   :  { %666 = vst.msk [vmem:[%s1493_s3 + $0x30] sm:$0xff] %vm448_vm1, %v657_v63 }
 0x313   :  { %v639_v1 = vpop.permute.xlu1 %638 }
 0x314   :  { %v658_v6 = vadd.f32 %v639_v1, %v512_v34 }
 0x316   :  { %667 = vst.msk [vmem:[%s1493_s3 + $0x38] sm:$0xff] %vm448_vm1, %v658_v6 }
 0x317   :  { %v641_v41 = vpop.permute.xlu0 %640 }
 0x318   :  { %v659_v5 = vadd.f32 %v641_v41, %v513_v2 }
 0x31a   :  { %668 = vst.msk [vmem:[%s1493_s3 + $0x40] sm:$0xff] %vm448_vm1, %v659_v5 }
 0x31b   :  { %673 = vsyncpa [#allocation3], 1 }

// kernel: recon_all_forward.14
= control target key start
LH: loop header
LB: loop body
LE: loop exit
PB: predicated region body
PF: predicated region fallthrough
CT: control target
= control target key end

     0   :  { %9 = vsyncpa [#allocation3], 0  ;;  %s1171_s15 = smov 0   ;;  %s1566_s0 = inlined_call_operand.vmem [shape: f32[2], index: 0, kind: input, shape index: {}]   ;;  %s1567_s1 = inlined_call_operand.vmem [shape: f32[384,32], index: 1, kind: input, shape index: {}]   ;;  %s1568_s2 = inlined_call_operand.vmem [shape: f32[384,72], index: 2, kind: input, shape index: {}]   ;;  %s1569_s3 = inlined_call_operand.vmem [shape: f32[72,32], index: 3, kind: input, shape index: {}]   ;;  %s1570_s4 = inlined_call_operand.vmem [shape: f32[384,32], index: 4, kind: output, shape index: {}]  }
   0x1 LB: > { %s901_s16 = sadd.s32 4294967295, %s1143_s15   ;;  %p903_p0 = scmp.ge.s32.totalorder %s1143_s15, 1  ;;  %s1143_s15 = sphi %s1171_s15, %s15_s15  }
   0x2   : > { %p140_p1 = scmp.lt.s32.totalorder %s1143_s15, 3  ;;  %s153_s19 = sshll.u32 %s1566_s0, 4  ;;  %s154_s19 = int_to_ptr.vmem [resolvable:$true] %s153_s19 }
   0x3   : > { %p1186_p3 = scmp.eq.s32.totalorder %s901_s16, 0  ;;  %s1118_s22 = scalar_lea.vmem %s154_s19, 16 }
   0x4   : > { %p1182_p2 = pnand %p903_p0, %p140_p1  ;;  %p1119_p6 = scmp.ne.s32.totalorder %s154_s19, %s1118_s22 }
   0x5   : > { %p1126_p10 = scmp.lt.s32.totalorder %s154_s19, %s154_s19  ;;  %p1127_p11 = scmp.lt.s32.totalorder %s1118_s22, %s1118_s22 }
   0x6   : > { %p1055_p4 = pneg %p1182_p2 }
   0x7   : > { %p1128_p12 = por %p1127_p11, %p1126_p10 }
   0x8   : > { %p1056_p5 = pnand %p1186_p3, %p1055_p4 }
   0xa   : > { %p1120_p7 = pneg %p1056_p5 }
   0xc   : > { %p1121_p8 = pnand %p1120_p7, %p1119_p6 }
   0xe   : > { %p1122_p9 = pneg %p1121_p8 }
  0x10   : > { %p1129_p13 = pnand %p1128_p12, %p1122_p9 }
  0x12   : > { %1132 = shalt.err (!%p1129_p13)
}
  0x13   : > { %s1145_s23 = smov [#allocation2]   ;;  %187 = sbr.rel (%p1182_p2) target bundleno = 472 (0x1d8), region = 36 }
  0x14   : > { %1058 = dma.vmem_to_smem (!%p1056_p5), %s154_s19, 16, %s1145_s23, [#allocation3]  }
  0x1a   : > { %1138 = dma.done.wait (%p1186_p3), [#allocation3], 16  }
  0x1b   : > { %1140 = vsyncadd (%p1186_p3), [#allocation3], 4294967280 }
  0x1c   : > { %193 = sfence }
  0x1d   : > { %v311_v0 = vld [vmem:[%s1569_s3] sm:$0xff]  ;;  %v312_v1 = vld [vmem:[%s1569_s3 + $0x8] sm:$0xff]  ;;  %v313_v2 = vld [vmem:[%s1569_s3 + $0x10] sm:$0xff]  ;;  %s219_s30 = smul.u32 24, %s901_s16  ;;  %vm320_vm0 = vcmask 588800   ;;  %vm602_vm1 = vcmask 261120  }
  0x1e   : > { %v1025_v3 = vpack.c.bf16 %v312_v1, %v311_v0  ;;  %v314_v4 = vld [vmem:[%s1569_s3 + $0x18] sm:$0xff]  ;;  %v315_v6 = vld [vmem:[%s1569_s3 + $0x20] sm:$0xff]  ;;  %v316_v7 = vld [vmem:[%s1569_s3 + $0x28] sm:$0xff]  ;;  %s261_s22 = sld [smem:[#allocation2]]  ;;  %s935_s23 = sld [smem:[#allocation2 + $0x1]] }
  0x1f   : > { %v1029_v5 = vpack.c.bf16 %v314_v4, %v313_v2  ;;  %p220_p0 = scmp.lt.s32.totalorder %s219_s30, 47  ;;  %v1033_v8 = vpack.c.bf16 %v316_v7, %v315_v6  ;;  %v317_v9 = vld [vmem:[%s1569_s3 + $0x30] sm:$0xff]  ;;  %v318_v10 = vld [vmem:[%s1569_s3 + $0x38] sm:$0xff]  ;;  %v319_v14 = vld [vmem:[%s1569_s3 + $0x40] sm:$0xff] }
  0x20   : > { %1026 = vmatprep.subr.bf16.mxu0 %v1025_v3  ;;  %1041 = vmatprep.subr.bf16.mxu1 %v1025_v3  ;;  %v1037_v13 = vpack.c.bf16 %v318_v10, %v317_v9 }
  0x21   : > { %1028 = vmatpush3.bf16.msra.mxu0 %v1025_v3  ;;  %1046 = vmatpush3.bf16.msra.mxu1 %v1025_v3  ;;  %s1574_s30 = smov (!%p220_p0, %s219_s30), 47 }
  0x22   : > { %1030 = vmatprep.subr.bf16.mxu0 %v1029_v5  ;;  %1042 = vmatprep.subr.bf16.mxu1 %v1029_v5  ;;  %s1224_s16 = sshll.u32 %s1574_s30, 3 }
  0x23   : > { %s1230_s19 = scalar_lea.vmem %s1568_s2, %s1224_s16  ;;  %s1407_s26 = scalar_lea.vmem %s1567_s1, %s1224_s16 }
  0x24   : > { %v287_v11 = vld [vmem:[%s1230_s19] sm:$0xff]  ;;  %v288_v15 = vld [vmem:[%s1230_s19 + $0x8] sm:$0xff]  ;;  %v289_v17 = vld [vmem:[%s1230_s19 + $0x10] sm:$0xff]  ;;  %s1426_s29 = scalar_lea.vmem %s1570_s4, %s1224_s16 }
  0x25   : > { %1032 = vmatpush3.bf16.msra.mxu0 %v1029_v5  ;;  %1047 = vmatpush3.bf16.msra.mxu1 %v1029_v5  ;;  %v299_v12 = vld [vmem:[%s1230_s19 + $0x60] sm:$0xff]  ;;  %v300_v16 = vld [vmem:[%s1230_s19 + $0x68] sm:$0xff]  ;;  %v301_v18 = vld [vmem:[%s1230_s19 + $0x70] sm:$0xff] }
  0x26   : > { %1034 = vmatprep.subr.bf16.mxu0 %v1033_v8  ;;  %1043 = vmatprep.subr.bf16.mxu1 %v1033_v8  ;;  %v290_v19 = vld [vmem:[%s1230_s19 + $0x18] sm:$0xff]  ;;  %v291_v21 = vld [vmem:[%s1230_s19 + $0x20] sm:$0xff]  ;;  %v292_v23 = vld [vmem:[%s1230_s19 + $0x28] sm:$0xff] }
  0x27   : > { %989 = vmatprep.mubr.msk.f32.mxu0 %vm320_vm0, %v287_v11  ;;  %1007 = vmatprep.mubr.msk.f32.mxu1 %vm320_vm0, %v299_v12  ;;  %v302_v20 = vld [vmem:[%s1230_s19 + $0x78] sm:$0xff]  ;;  %v303_v22 = vld [vmem:[%s1230_s19 + $0x80] sm:$0xff]  ;;  %v304_v24 = vld [vmem:[%s1230_s19 + $0x88] sm:$0xff] }
  0x28   : > { %v293_v25 = vld [vmem:[%s1230_s19 + $0x30] sm:$0xff]  ;;  %v294_v27 = vld [vmem:[%s1230_s19 + $0x38] sm:$0xff]  ;;  %v295_v29 = vld [vmem:[%s1230_s19 + $0x40] sm:$0xff] }
  0x29   : > { %1036 = vmatpush3.bf16.msra.mxu0 %v1033_v8  ;;  %1048 = vmatpush3.bf16.msra.mxu1 %v1033_v8  ;;  %v305_v26 = vld [vmem:[%s1230_s19 + $0x90] sm:$0xff]  ;;  %v306_v28 = vld [vmem:[%s1230_s19 + $0x98] sm:$0xff]  ;;  %v307_v30 = vld [vmem:[%s1230_s19 + $0xa0] sm:$0xff] }
  0x2a   : > { %1038 = vmatprep.subr.bf16.mxu0 %v1037_v13  ;;  %1044 = vmatprep.subr.bf16.mxu1 %v1037_v13  ;;  %v296_v31 = vld [vmem:[%s1230_s19 + $0x48] sm:$0xff]  ;;  %v297_v33 = vld [vmem:[%s1230_s19 + $0x50] sm:$0xff]  ;;  %v298_v35 = vld [vmem:[%s1230_s19 + $0x58] sm:$0xff] }
  0x2b   : > { %v308_v32 = vld [vmem:[%s1230_s19 + $0xa8] sm:$0xff]  ;;  %v309_v34 = vld [vmem:[%s1230_s19 + $0xb0] sm:$0xff]  ;;  %v310_v36 = vld [vmem:[%s1230_s19 + $0xb8] sm:$0xff] }
  0x2d   : > { %1040 = vmatpush3.bf16.msra.mxu0 %v1037_v13  ;;  %1049 = vmatpush3.bf16.msra.mxu1 %v1037_v13 }
  0x2e   : > { %987 = vmatprep.subr.mxu0 %v319_v14  ;;  %1045 = vmatprep.subr.mxu1 %v319_v14 }
  0x31   : > { %988 = vmatpush3.msra.mxu0 %v319_v14  ;;  %1050 = vmatpush3.msra.mxu1 %v319_v14 }
  0x32   : > { %990 = vmatmul.mubr.msk.f32.vlgmr.msra.gmra.mrb[0].mxu0 %vm320_vm0, %v288_v15  ;;  %1008 = vmatmul.mubr.msk.f32.vlgmr.msra.gmra.mrb[0].mxu1 %vm320_vm0, %v300_v16 }
  0x33   : > { %992 = vmatprep.mubr.msk.f32.mxu0 %vm320_vm0, %v289_v17  ;;  %1010 = vmatprep.mubr.msk.f32.mxu1 %vm320_vm0, %v301_v18 }
  0x36   : > { %993 = vmatmul.mubr.msk.f32.gmra.mrb[2].mxu0 %vm320_vm0, %v290_v19  ;;  %1011 = vmatmul.mubr.msk.f32.gmra.mrb[2].mxu1 %vm320_vm0, %v302_v20 }
  0x37   : > { %995 = vmatprep.mubr.msk.f32.mxu0 %vm320_vm0, %v291_v21  ;;  %1013 = vmatprep.mubr.msk.f32.mxu1 %vm320_vm0, %v303_v22 }
  0x3a   : > { %996 = vmatmul.mubr.msk.f32.gmra.mrb[4].mxu0 %vm320_vm0, %v292_v23  ;;  %1014 = vmatmul.mubr.msk.f32.gmra.mrb[4].mxu1 %vm320_vm0, %v304_v24 }
  0x3b   : > { %998 = vmatprep.mubr.msk.f32.mxu0 %vm320_vm0, %v293_v25  ;;  %1016 = vmatprep.mubr.msk.f32.mxu1 %vm320_vm0, %v305_v26 }
  0x3e   : > { %999 = vmatmul.mubr.msk.f32.gmra.mrb[6].mxu0 %vm320_vm0, %v294_v27  ;;  %1017 = vmatmul.mubr.msk.f32.gmra.mrb[6].mxu1 %vm320_vm0, %v306_v28 }
  0x3f   : > { %1001 = vmatprep.mubr.msk.f32.mxu0 %vm320_vm0, %v295_v29  ;;  %1019 = vmatprep.mubr.msk.f32.mxu1 %vm320_vm0, %v307_v30 }
  0x42   : > { %1002 = vmatmul.mubr.msk.f32.gmra.mrb[8].mxu0 %vm320_vm0, %v296_v31  ;;  %1020 = vmatmul.mubr.msk.f32.gmra.mrb[8].mxu1 %vm320_vm0, %v308_v32 }
  0x43   : > { %1004 = vmatprep.mubr.msk.f32.mxu0 %vm320_vm0, %v297_v33  ;;  %1022 = vmatprep.mubr.msk.f32.mxu1 %vm320_vm0, %v309_v34 }
  0x46   : > { %1005 = vmatmul.mubr.msk.f32.gmra.mrb[10].mxu0 %vm320_vm0, %v298_v35  ;;  %1023 = vmatmul.mubr.msk.f32.gmra.mrb[10].mxu1 %vm320_vm0, %v310_v36 }
 0x105   : > { %v1283_v37 = vpop.f32.mrb[0].mxu0  ;;  %v1285_v38 = vpop.f32.mrb[0].mxu1 }
 0x106   : > { %v1287_v39 = vpop.f32.mrb[1].mxu0  ;;  %v1289_v40 = vpop.f32.mrb[1].mxu1  ;;  %v591_v41 = vmul.f32 %v1285_v38, %v1285_v38  ;;  %v579_v42 = vmul.f32 %v1283_v37, %v1283_v37 }
 0x107   : > { %v578_v43 = vmul.f32 %v1287_v39, %v1287_v39  ;;  %v590_v52 = vmul.f32 %v1289_v40, %v1289_v40 }
 0x108   : > { %v642_v44 = vsel %vm602_vm1, %v591_v41, 0.0  ;;  %v606_v45 = vsel %vm602_vm1, %v579_v42, 0.0 }
 0x109   : > { %643 = vadd.xlane.f32.xlu1 %v642_v44  ;;  %607 = vadd.xlane.f32.xlu0 %v606_v45  ;;  %v1299_v46 = vpop.f32.mrb[2].mxu0  ;;  %v1301_v47 = vpop.f32.mrb[2].mxu1  ;;  %v603_v53 = vsel %vm602_vm1, %v578_v43, 0.0  ;;  %v639_v62 = vsel %vm602_vm1, %v590_v52, 0.0 }
 0x10a   : > { %v581_v48 = vmul.f32 %v1299_v46, %v1299_v46  ;;  %v1305_v49 = vpop.f32.mrb[3].mxu0  ;;  %v593_v50 = vmul.f32 %v1301_v47, %v1301_v47  ;;  %v1309_v51 = vpop.f32.mrb[3].mxu1 }
 0x10b   : > { %v580_v60 = vmul.f32 %v1305_v49, %v1305_v49  ;;  %v592_v61 = vmul.f32 %v1309_v51, %v1309_v51 }
 0x10c   : > { %v612_v54 = vsel %vm602_vm1, %v581_v48, 0.0  ;;  %v648_v57 = vsel %vm602_vm1, %v593_v50, 0.0 }
 0x10d   : > { %604 = vadd.xlane.f32.xlu0 %v603_v53  ;;  %613 = vadd.xlane.f32.xlu1 %v612_v54  ;;  %v1315_v55 = vpop.f32.mrb[4].mxu0  ;;  %v1317_v56 = vpop.f32.mrb[4].mxu1  ;;  %v645_v5 = vsel %vm602_vm1, %v592_v61, 0.0  ;;  %v609_v6 = vsel %vm602_vm1, %v580_v60, 0.0 }
 0x10e   : > { %v1320_v58 = vpop.f32.mrb[5].mxu0  ;;  %v1322_v59 = vpop.f32.mrb[5].mxu1  ;;  %v583_v1 = vmul.f32 %v1315_v55, %v1315_v55  ;;  %v595_v9 = vmul.f32 %v1317_v56, %v1317_v56 }
 0x10f   : > { %v582_v2 = vmul.f32 %v1320_v58, %v1320_v58  ;;  %v594_v10 = vmul.f32 %v1322_v59, %v1322_v59 }
 0x110   : > { %v618_v11 = vsel %vm602_vm1, %v583_v1, 0.0  ;;  %v654_v19 = vsel %vm602_vm1, %v595_v9, 0.0 }
 0x111   : > { %640 = vadd.xlane.f32.xlu0 %v639_v62  ;;  %649 = vadd.xlane.f32.xlu1 %v648_v57  ;;  %v1329_v63 = vpop.f32.mrb[6].mxu0  ;;  %v1331_v0 = vpop.f32.mrb[6].mxu1  ;;  %v615_v12 = vsel %vm602_vm1, %v582_v2, 0.0  ;;  %v651_v20 = vsel %vm602_vm1, %v594_v10, 0.0 }
 0x112   : > { %v1337_v3 = vpop.f32.mrb[7].mxu0  ;;  %v1339_v4 = vpop.f32.mrb[7].mxu1  ;;  %v585_v17 = vmul.f32 %v1329_v63, %v1329_v63  ;;  %v597_v23 = vmul.f32 %v1331_v0, %v1331_v0 }
 0x113   : > { %v584_v18 = vmul.f32 %v1337_v3, %v1337_v3  ;;  %v596_v24 = vmul.f32 %v1339_v4, %v1339_v4 }
 0x114   : > { %v624_v25 = vsel %vm602_vm1, %v585_v17, 0.0  ;;  %v660_v29 = vsel %vm602_vm1, %v597_v23, 0.0  ;;  %v238_v17 = vld [vmem:[%s1407_s26 + $0x8] sm:$0xff]  ;;  %v1413_v23 = vstv %s935_s23 }
 0x115   : > { %646 = vadd.xlane.f32.xlu0 %v645_v5  ;;  %610 = vadd.xlane.f32.xlu1 %v609_v6  ;;  %v1343_v7 = vpop.f32.mrb[8].mxu0  ;;  %v1345_v8 = vpop.f32.mrb[8].mxu1  ;;  %v621_v26 = vsel %vm602_vm1, %v584_v18, 0.0  ;;  %v657_v30 = vsel %vm602_vm1, %v596_v24, 0.0 }
 0x116   : > { %v1353_v13 = vpop.f32.mrb[9].mxu0  ;;  %v1355_v14 = vpop.f32.mrb[9].mxu1  ;;  %v587_v27 = vmul.f32 %v1343_v7, %v1343_v7  ;;  %v599_v31 = vmul.f32 %v1345_v8, %v1345_v8 }
 0x117   : > { %v586_v28 = vmul.f32 %v1353_v13, %v1353_v13  ;;  %v598_v32 = vmul.f32 %v1355_v14, %v1355_v14 }
 0x118   : > { %v630_v33 = vsel %vm602_vm1, %v587_v27, 0.0  ;;  %v666_v41 = vsel %vm602_vm1, %v599_v31, 0.0  ;;  %v237_v31 = vld [vmem:[%s1407_s26] sm:$0xff] }
 0x119   : > { %619 = vadd.xlane.f32.xlu1 %v618_v11  ;;  %616 = vadd.xlane.f32.xlu0 %v615_v12  ;;  %v1357_v15 = vpop.f32.mrb[10].mxu0  ;;  %v1359_v16 = vpop.f32.mrb[10].mxu1  ;;  %v627_v34 = vsel %vm602_vm1, %v586_v28, 0.0  ;;  %v663_v42 = vsel %vm602_vm1, %v598_v32, 0.0  ;;  %v1409_v11 = vstv %s261_s22  ;;  %v250_v12 = vld [vmem:[%s1407_s26 + $0x68] sm:$0xff] }
 0x11a   : > { %v1367_v21 = vpop.f32.mrb[11].mxu0  ;;  %v1369_v22 = vpop.f32.mrb[11].mxu1  ;;  %v589_v35 = vmul.f32 %v1357_v15, %v1357_v15  ;;  %v601_v43 = vmul.f32 %v1359_v16, %v1359_v16  ;;  %v276_v27 = vmul.f32 %v1409_v11, %v250_v12 }
 0x11b   : > { %v588_v36 = vmul.f32 %v1367_v21, %v1367_v21  ;;  %v600_v44 = vmul.f32 %v1369_v22, %v1369_v22 }
 0x11c   : > { %v636_v45 = vsel %vm602_vm1, %v589_v35, 0.0  ;;  %v672_v50 = vsel %vm602_vm1, %v601_v43, 0.0 }
 0x11d   : > { %655 = vadd.xlane.f32.xlu1 %v654_v19  ;;  %652 = vadd.xlane.f32.xlu0 %v651_v20  ;;  %v633_v48 = vsel %vm602_vm1, %v588_v36, 0.0  ;;  %v669_v52 = vsel %vm602_vm1, %v600_v44, 0.0  ;;  %v263_v44 = vmul.f32 %v1409_v11, %v237_v31 }
 0x121   : > { %625 = vadd.xlane.f32.xlu1 %v624_v25  ;;  %622 = vadd.xlane.f32.xlu0 %v621_v26 }
 0x125   : > { %661 = vadd.xlane.f32.xlu1 %v660_v29  ;;  %658 = vadd.xlane.f32.xlu0 %v657_v30  ;;  %v264_v29 = vmul.f32 %v1409_v11, %v238_v17 }
 0x129   : > { %631 = vadd.xlane.f32.xlu1 %v630_v33  ;;  %628 = vadd.xlane.f32.xlu0 %v627_v34  ;;  %v240_v33 = vld [vmem:[%s1407_s26 + $0x18] sm:$0xff] }
 0x12d   : > { %667 = vadd.xlane.f32.xlu1 %v666_v41  ;;  %664 = vadd.xlane.f32.xlu0 %v663_v42 }
 0x131   : > { %637 = vadd.xlane.f32.xlu1 %v636_v45  ;;  %634 = vadd.xlane.f32.xlu0 %v633_v48 }
 0x135   : > { %673 = vadd.xlane.f32.xlu1 %v672_v50  ;;  %670 = vadd.xlane.f32.xlu0 %v669_v52  ;;  %v266_v50 = vmul.f32 %v1409_v11, %v240_v33 }
 0x196   : > { %v644_v53 = vpop.xlane.xlu1 %643  ;;  %v608_v54 = vpop.xlane.xlu0 %607 }
 0x197   : > { %v688_v57 = vadd.f32 1e-32, %v644_v53  ;;  %v676_v60 = vadd.f32 1e-32, %v608_v54  ;;  %v249_v53 = vld [vmem:[%s1407_s26 + $0x60] sm:$0xff] }
 0x199   : > { %1070 = vrsqrt.f32 %v688_v57  ;;  %v252_v57 = vld [vmem:[%s1407_s26 + $0x78] sm:$0xff] }
 0x19a   : > { %1072 = vrsqrt.f32 %v676_v60  ;;  %v605_v61 = vpop.xlane.xlu0 %604  ;;  %v614_v62 = vpop.xlane.xlu1 %613  ;;  %v278_v12 = vmul.f32 %v1409_v11, %v252_v57  ;;  %v254_v57 = vld [vmem:[%s1407_s26 + $0x88] sm:$0xff] }
 0x19b   : > { %v675_v1 = vadd.f32 1e-32, %v605_v61  ;;  %v678_v2 = vadd.f32 1e-32, %v614_v62 }
 0x19d   : > { %1074 = vrsqrt.f32 %v675_v1 }
 0x19e   : > { %1076 = vrsqrt.f32 %v678_v2  ;;  %v641_v5 = vpop.xlane.xlu0 %640  ;;  %v650_v6 = vpop.xlane.xlu1 %649 }
 0x19f   : > { %v687_v9 = vadd.f32 1e-32, %v641_v5  ;;  %v690_v10 = vadd.f32 1e-32, %v650_v6  ;;  %v275_v6 = vmul.f32 %v1409_v11, %v249_v53 }
 0x1a1   : > { %1078 = vrsqrt.f32 %v687_v9 }
 0x1a2   : > { %1080 = vrsqrt.f32 %v690_v10  ;;  %v647_v18 = vpop.xlane.xlu0 %646  ;;  %v611_v19 = vpop.xlane.xlu1 %610 }
 0x1a3   : > { %v1071_v20 = vpop.eup %1070  ;;  %v689_v24 = vadd.f32 1e-32, %v647_v18  ;;  %v677_v25 = vadd.f32 1e-32, %v611_v19  ;;  %v251_v18 = vld [vmem:[%s1407_s26 + $0x70] sm:$0xff] }
 0x1a4   : > { %v1073_v26 = vpop.eup %1072  ;;  %v736_v28 = vmul.f32 %v1071_v20, %v1285_v38  ;;  %v239_v20 = vld [vmem:[%s1407_s26 + $0x10] sm:$0xff] }
 0x1a5   : > { %v724_v30 = vmul.f32 %v1073_v26, %v1283_v37  ;;  %1082 = vrsqrt.f32 %v689_v24  ;;  %v265_v33 = vmul.f32 %v1409_v11, %v239_v20  ;;  %v243_v20 = vld [vmem:[%s1407_s26 + $0x30] sm:$0xff] }
 0x1a6   : > { %v762_v32 = vmul.f32 %v1413_v23, %v736_v28  ;;  %1084 = vrsqrt.f32 %v677_v25  ;;  %v620_v34 = vpop.xlane.xlu1 %619  ;;  %v617_v35 = vpop.xlane.xlu0 %616 }
 0x1a7   : > { %v1075_v36 = vpop.eup %1074  ;;  %v750_v38 = vmul.f32 %v1413_v23, %v724_v30  ;;  %v680_v37 = vadd.f32 1e-32, %v620_v34  ;;  %v679_v41 = vadd.f32 1e-32, %v617_v35  ;;  %v277_v30 = vmul.f32 %v1409_v11, %v251_v18  ;;  %v242_v35 = vld [vmem:[%s1407_s26 + $0x28] sm:$0xff]  ;;  %v244_v18 = vld [vmem:[%s1407_s26 + $0x38] sm:$0xff] }
 0x1a8   : > { %v1077_v42 = vpop.eup %1076  ;;  %v786_v43 = vadd.f32 %v762_v32, %v276_v27  ;;  %v723_v45 = vmul.f32 %v1075_v36, %v1287_v39 }
 0x1a9   : > { %v774_v48 = vadd.f32 %v750_v38, %v264_v29  ;;  %v726_v52 = vmul.f32 %v1077_v42, %v1299_v46  ;;  %1086 = vrsqrt.f32 %v680_v37  ;;  %v241_v38 = vld [vmem:[%s1407_s26 + $0x20] sm:$0xff] }
 0x1aa   : > { %810 = vst.msk [vmem:[%s1426_s29 + $0x68] sm:$0xff] %vm602_vm1, %v786_v43  ;;  %v749_v54 = vmul.f32 %v1413_v23, %v723_v45  ;;  %1088 = vrsqrt.f32 %v679_v41  ;;  %v656_v60 = vpop.xlane.xlu1 %655  ;;  %v653_v61 = vpop.xlane.xlu0 %652  ;;  %v267_v53 = vmul.f32 %v1409_v11, %v241_v38 }
 0x1ab   : > { %v1079_v62 = vpop.eup %1078  ;;  %798 = vst.msk [vmem:[%s1426_s29 + $0x8] sm:$0xff] %vm602_vm1, %v774_v48  ;;  %v752_v39 = vmul.f32 %v1413_v23, %v726_v52  ;;  %v692_v1 = vadd.f32 1e-32, %v656_v60  ;;  %v691_v46 = vadd.f32 1e-32, %v653_v61  ;;  %v268_v48 = vmul.f32 %v1409_v11, %v242_v35  ;;  %v253_v61 = vld [vmem:[%s1407_s26 + $0x80] sm:$0xff] }
 0x1ac   : > { %v1081_v2 = vpop.eup %1080  ;;  %v773_v5 = vadd.f32 %v749_v54, %v263_v44  ;;  %v735_v9 = vmul.f32 %v1079_v62, %v1289_v40  ;;  %v255_v35 = vld [vmem:[%s1407_s26 + $0x90] sm:$0xff] }
 0x1ad   : > { %v776_v10 = vadd.f32 %v752_v39, %v266_v50  ;;  %v738_v17 = vmul.f32 %v1081_v2, %v1301_v47  ;;  %1090 = vrsqrt.f32 %v692_v1 }
 0x1ae   : > { %797 = vst.msk [vmem:[%s1426_s29] sm:$0xff] %vm602_vm1, %v773_v5  ;;  %v761_v19 = vmul.f32 %v1413_v23, %v735_v9  ;;  %1092 = vrsqrt.f32 %v691_v46  ;;  %v626_v24 = vpop.xlane.xlu1 %625  ;;  %v623_v25 = vpop.xlane.xlu0 %622 }
 0x1af   : > { %v1083_v26 = vpop.eup %1082  ;;  %800 = vst.msk [vmem:[%s1426_s29 + $0x18] sm:$0xff] %vm602_vm1, %v776_v10  ;;  %v764_v40 = vmul.f32 %v1413_v23, %v738_v17  ;;  %v682_v27 = vadd.f32 1e-32, %v626_v24  ;;  %v681_v47 = vadd.f32 1e-32, %v623_v25 }
 0x1b0   : > { %v1085_v28 = vpop.eup %1084  ;;  %v785_v29 = vadd.f32 %v761_v19, %v275_v6  ;;  %v737_v31 = vmul.f32 %v1083_v26, %v1309_v51  ;;  %v280_v6 = vmul.f32 %v1409_v11, %v254_v57 }
 0x1b1   : > { %v788_v32 = vadd.f32 %v764_v40, %v278_v12  ;;  %v725_v34 = vmul.f32 %v1085_v28, %v1305_v49  ;;  %1094 = vrsqrt.f32 %v682_v27  ;;  %v279_v12 = vmul.f32 %v1409_v11, %v253_v61 }
 0x1b2   : > { %809 = vst.msk [vmem:[%s1426_s29 + $0x60] sm:$0xff] %vm602_vm1, %v785_v29  ;;  %v763_v36 = vmul.f32 %v1413_v23, %v737_v31  ;;  %1096 = vrsqrt.f32 %v681_v47  ;;  %v662_v37 = vpop.xlane.xlu1 %661  ;;  %v659_v41 = vpop.xlane.xlu0 %658  ;;  %v270_v28 = vmul.f32 %v1409_v11, %v244_v18  ;;  %v269_v31 = vmul.f32 %v1409_v11, %v243_v20 }
 0x1b3   : > { %v1087_v42 = vpop.eup %1086  ;;  %812 = vst.msk [vmem:[%s1426_s29 + $0x78] sm:$0xff] %vm602_vm1, %v788_v32  ;;  %v751_v51 = vmul.f32 %v1413_v23, %v725_v34  ;;  %v694_v43 = vadd.f32 1e-32, %v662_v37  ;;  %v693_v49 = vadd.f32 1e-32, %v659_v41 }
 0x1b4   : > { %v1089_v44 = vpop.eup %1088  ;;  %v787_v45 = vadd.f32 %v763_v36, %v277_v30  ;;  %v728_v50 = vmul.f32 %v1087_v42, %v1315_v55 }
 0x1b5   : > { %v775_v52 = vadd.f32 %v751_v51, %v265_v33  ;;  %v727_v54 = vmul.f32 %v1089_v44, %v1320_v58  ;;  %1098 = vrsqrt.f32 %v694_v43  ;;  %v256_v33 = vld [vmem:[%s1407_s26 + $0x98] sm:$0xff] }
 0x1b6   : > { %811 = vst.msk [vmem:[%s1426_s29 + $0x70] sm:$0xff] %vm602_vm1, %v787_v45  ;;  %v754_v60 = vmul.f32 %v1413_v23, %v728_v50  ;;  %1100 = vrsqrt.f32 %v693_v49  ;;  %v632_v62 = vpop.xlane.xlu1 %631  ;;  %v629_v39 = vpop.xlane.xlu0 %628  ;;  %v282_v43 = vmul.f32 %v1409_v11, %v256_v33  ;;  %v281_v45 = vmul.f32 %v1409_v11, %v255_v35  ;;  %v246_v50 = vld [vmem:[%s1407_s26 + $0x48] sm:$0xff]  ;;  %v259_v33 = vld [vmem:[%s1407_s26 + $0xb0] sm:$0xff] }
 0x1b7   : > { %v1091_v1 = vpop.eup %1090  ;;  %799 = vst.msk [vmem:[%s1426_s29 + $0x10] sm:$0xff] %vm602_vm1, %v775_v52  ;;  %v753_v55 = vmul.f32 %v1413_v23, %v727_v54  ;;  %v684_v46 = vadd.f32 1e-32, %v632_v62  ;;  %v683_v58 = vadd.f32 1e-32, %v629_v39 }
 0x1b8   : > { %v1093_v2 = vpop.eup %1092  ;;  %v778_v5 = vadd.f32 %v754_v60, %v268_v48  ;;  %v740_v9 = vmul.f32 %v1091_v1, %v1317_v56  ;;  %v272_v1 = vmul.f32 %v1409_v11, %v246_v50 }
 0x1b9   : > { %v777_v10 = vadd.f32 %v753_v55, %v267_v53  ;;  %v739_v17 = vmul.f32 %v1093_v2, %v1322_v59  ;;  %1102 = vrsqrt.f32 %v684_v46  ;;  %v245_v53 = vld [vmem:[%s1407_s26 + $0x40] sm:$0xff] }
 0x1ba   : > { %802 = vst.msk [vmem:[%s1426_s29 + $0x28] sm:$0xff] %vm602_vm1, %v778_v5  ;;  %v766_v19 = vmul.f32 %v1413_v23, %v740_v9  ;;  %1104 = vrsqrt.f32 %v683_v58  ;;  %v668_v24 = vpop.xlane.xlu1 %667  ;;  %v665_v25 = vpop.xlane.xlu0 %664  ;;  %v271_v58 = vmul.f32 %v1409_v11, %v245_v53  ;;  %v258_v5 = vld [vmem:[%s1407_s26 + $0xa8] sm:$0xff]  ;;  %v257_v9 = vld [vmem:[%s1407_s26 + $0xa0] sm:$0xff] }
 0x1bb   : > { %v1095_v26 = vpop.eup %1094  ;;  %801 = vst.msk [vmem:[%s1426_s29 + $0x20] sm:$0xff] %vm602_vm1, %v777_v10  ;;  %v765_v56 = vmul.f32 %v1413_v23, %v739_v17  ;;  %v696_v40 = vadd.f32 1e-32, %v668_v24  ;;  %v695_v59 = vadd.f32 1e-32, %v665_v25  ;;  %v283_v20 = vmul.f32 %v1409_v11, %v257_v9  ;;  %v248_v25 = vld [vmem:[%s1407_s26 + $0x58] sm:$0xff] }
 0x1bc   : > { %v1097_v27 = vpop.eup %1096  ;;  %v790_v47 = vadd.f32 %v766_v19, %v280_v6  ;;  %v730_v29 = vmul.f32 %v1095_v26, %v1329_v63 }
 0x1bd   : > { %v789_v30 = vadd.f32 %v765_v56, %v279_v12  ;;  %v729_v32 = vmul.f32 %v1097_v27, %v1337_v3  ;;  %1106 = vrsqrt.f32 %v696_v40  ;;  %v247_v56 = vld [vmem:[%s1407_s26 + $0x50] sm:$0xff] }
 0x1be   : > { %814 = vst.msk [vmem:[%s1426_s29 + $0x88] sm:$0xff] %vm602_vm1, %v790_v47  ;;  %v756_v34 = vmul.f32 %v1413_v23, %v730_v29  ;;  %1108 = vrsqrt.f32 %v695_v59  ;;  %v638_v36 = vpop.xlane.xlu1 %637  ;;  %v635_v38 = vpop.xlane.xlu0 %634  ;;  %v274_v47 = vmul.f32 %v1409_v11, %v248_v25  ;;  %v273_v29 = vmul.f32 %v1409_v11, %v247_v56 }
 0x1bf   : > { %v1099_v37 = vpop.eup %1098  ;;  %813 = vst.msk [vmem:[%s1426_s29 + $0x80] sm:$0xff] %vm602_vm1, %v789_v30  ;;  %v755_v63 = vmul.f32 %v1413_v23, %v729_v32  ;;  %v686_v41 = vadd.f32 1e-32, %v638_v36  ;;  %v685_v3 = vadd.f32 1e-32, %v635_v38 }
 0x1c0   : > { %v1101_v42 = vpop.eup %1100  ;;  %v780_v51 = vadd.f32 %v756_v34, %v270_v28  ;;  %v742_v49 = vmul.f32 %v1099_v37, %v1331_v0 }
 0x1c1   : > { %v779_v44 = vadd.f32 %v755_v63, %v269_v31  ;;  %v741_v48 = vmul.f32 %v1101_v42, %v1339_v4  ;;  %1110 = vrsqrt.f32 %v686_v41  ;;  %v260_v31 = vld [vmem:[%s1407_s26 + $0xb8] sm:$0xff]  ;;  %v285_v63 = vmul.f32 %v1409_v11, %v259_v33 }
 0x1c2   : > { %804 = vst.msk [vmem:[%s1426_s29 + $0x38] sm:$0xff] %vm602_vm1, %v780_v51  ;;  %v768_v52 = vmul.f32 %v1413_v23, %v742_v49  ;;  %1112 = vrsqrt.f32 %v685_v3  ;;  %v674_v54 = vpop.xlane.xlu1 %673  ;;  %v671_v57 = vpop.xlane.xlu0 %670  ;;  %v286_v38 = vmul.f32 %v1409_v11, %v260_v31 }
 0x1c3   : > { %v1103_v60 = vpop.eup %1102  ;;  %803 = vst.msk [vmem:[%s1426_s29 + $0x30] sm:$0xff] %vm602_vm1, %v779_v44  ;;  %v767_v0 = vmul.f32 %v1413_v23, %v741_v48  ;;  %v698_v61 = vadd.f32 1e-32, %v674_v54  ;;  %v697_v4 = vadd.f32 1e-32, %v671_v57 }
 0x1c4   : > { %v1105_v62 = vpop.eup %1104  ;;  %v792_v39 = vadd.f32 %v768_v52, %v282_v43  ;;  %v732_v55 = vmul.f32 %v1103_v60, %v1343_v7 }
 0x1c5   : > { %v791_v46 = vadd.f32 %v767_v0, %v281_v45  ;;  %v731_v2 = vmul.f32 %v1105_v62, %v1353_v13  ;;  %1114 = vrsqrt.f32 %v698_v61  ;;  %v284_v13 = vmul.f32 %v1409_v11, %v258_v5 }
 0x1c6   : > { %816 = vst.msk [vmem:[%s1426_s29 + $0x98] sm:$0xff] %vm602_vm1, %v792_v39  ;;  %v758_v6 = vmul.f32 %v1413_v23, %v732_v55  ;;  %1116 = vrsqrt.f32 %v697_v4 }
 0x1c7   : > { %v1107_v10 = vpop.eup %1106  ;;  %815 = vst.msk [vmem:[%s1426_s29 + $0x90] sm:$0xff] %vm602_vm1, %v791_v46  ;;  %v757_v7 = vmul.f32 %v1413_v23, %v731_v2 }
 0x1c8   : > { %v1109_v12 = vpop.eup %1108  ;;  %v782_v17 = vadd.f32 %v758_v6, %v272_v1  ;;  %v744_v18 = vmul.f32 %v1107_v10, %v1345_v8 }
 0x1c9   : > { %v781_v19 = vadd.f32 %v757_v7, %v271_v58  ;;  %v743_v24 = vmul.f32 %v1109_v12, %v1355_v14 }
 0x1ca   : > { %806 = vst.msk [vmem:[%s1426_s29 + $0x48] sm:$0xff] %vm602_vm1, %v782_v17  ;;  %v770_v26 = vmul.f32 %v1413_v23, %v744_v18 }
 0x1cb   : > { %v1111_v40 = vpop.eup %1110  ;;  %805 = vst.msk [vmem:[%s1426_s29 + $0x40] sm:$0xff] %vm602_vm1, %v781_v19  ;;  %v769_v8 = vmul.f32 %v1413_v23, %v743_v24 }
 0x1cc   : > { %v1113_v59 = vpop.eup %1112  ;;  %v794_v27 = vadd.f32 %v770_v26, %v284_v13  ;;  %v734_v14 = vmul.f32 %v1111_v40, %v1357_v15 }
 0x1cd   : > { %v793_v28 = vadd.f32 %v769_v8, %v283_v20  ;;  %v733_v30 = vmul.f32 %v1113_v59, %v1367_v21 }
 0x1ce   : > { %818 = vst.msk [vmem:[%s1426_s29 + $0xa8] sm:$0xff] %vm602_vm1, %v794_v27  ;;  %v760_v32 = vmul.f32 %v1413_v23, %v734_v14 }
 0x1cf   : > { %v1115_v34 = vpop.eup %1114  ;;  %817 = vst.msk [vmem:[%s1426_s29 + $0xa0] sm:$0xff] %vm602_vm1, %v793_v28  ;;  %v759_v15 = vmul.f32 %v1413_v23, %v733_v30 }
 0x1d0   : > { %v1117_v35 = vpop.eup %1116  ;;  %v784_v36 = vadd.f32 %v760_v32, %v274_v47  ;;  %v746_v21 = vmul.f32 %v1115_v34, %v1359_v16 }
 0x1d1   : > { %v783_v37 = vadd.f32 %v759_v15, %v273_v29  ;;  %v745_v41 = vmul.f32 %v1117_v35, %v1369_v22 }
 0x1d2   : > { %808 = vst.msk [vmem:[%s1426_s29 + $0x58] sm:$0xff] %vm602_vm1, %v784_v36  ;;  %v772_v3 = vmul.f32 %v1413_v23, %v746_v21 }
 0x1d3   : > { %807 = vst.msk [vmem:[%s1426_s29 + $0x50] sm:$0xff] %vm602_vm1, %v783_v37  ;;  %v771_v42 = vmul.f32 %v1413_v23, %v745_v41 }
 0x1d4   : > { %v796_v51 = vadd.f32 %v772_v3, %v286_v38 }
 0x1d5   : > { %v795_v43 = vadd.f32 %v771_v42, %v285_v63 }
 0x1d6   : > { %820 = vst.msk [vmem:[%s1426_s29 + $0xb8] sm:$0xff] %vm602_vm1, %v796_v51 }
 0x1d7   : > { %819 = vst.msk [vmem:[%s1426_s29 + $0xb0] sm:$0xff] %vm602_vm1, %v795_v43 }
 0x1d8 PF: > { %s15_s15 = sadd.s32 1, %s1143_s15  }
 0x1d9   : > { %p12_p1 = scmp.ge.s32.totalorder %s15_s15, 4  }
 0x1db   :  { %14 = sbr.rel (!%p12_p1) target bundleno = 1 (0x1), region = 74 }
 0x1e2   :  { %843 = vsyncpa [#allocation3], 1 }
 0x1e3   :  { %845 = vsyncpa [#allocation3 + $0x1], 1 }

// kernel: recon_all_forward.15
= control target key start
LH: loop header
LB: loop body
LE: loop exit
PB: predicated region body
PF: predicated region fallthrough
CT: control target
= control target key end

     0   :  { %9 = vsyncpa [#allocation3], 0  ;;  %s1338_s15 = smov 0   ;;  %s1794_s0 = inlined_call_operand.vmem [shape: f32[2], index: 0, kind: input, shape index: {}]   ;;  %s1795_s1 = inlined_call_operand.vmem [shape: f32[256,384], index: 1, kind: input, shape index: {}]   ;;  %s1796_s2 = inlined_call_operand.vmem [shape: f32[384,64], index: 2, kind: input, shape index: {}]   ;;  %s1797_s3 = inlined_call_operand.vmem [shape: f32[256,32], index: 3, kind: input, shape index: {}]   ;;  %s1798_s4 = inlined_call_operand.vmem [shape: f32[256,32], index: 4, kind: output, shape index: {}]  }
   0x1 LB: > { %s983_s16 = sadd.s32 4294967295, %s1309_s15   ;;  %p985_p0 = scmp.ge.s32.totalorder %s1309_s15, 1  ;;  %s1309_s15 = sphi %s1338_s15, %s15_s15  }
   0x2   : > { %p140_p1 = scmp.lt.s32.totalorder %s1309_s15, 3  ;;  %s153_s19 = sshll.u32 %s1794_s0, 4  ;;  %s154_s19 = int_to_ptr.vmem [resolvable:$true] %s153_s19 }
   0x3   : > { %p1353_p3 = scmp.eq.s32.totalorder %s983_s16, 0  ;;  %s1284_s22 = scalar_lea.vmem %s154_s19, 16 }
   0x4   : > { %p1349_p2 = pnand %p985_p0, %p140_p1  ;;  %p1285_p6 = scmp.ne.s32.totalorder %s154_s19, %s1284_s22 }
   0x5   : > { %p1292_p10 = scmp.lt.s32.totalorder %s154_s19, %s154_s19  ;;  %p1293_p11 = scmp.lt.s32.totalorder %s1284_s22, %s1284_s22 }
   0x6   : > { %p1236_p4 = pneg %p1349_p2 }
   0x7   : > { %p1294_p12 = por %p1293_p11, %p1292_p10 }
   0x8   : > { %p1237_p5 = pnand %p1353_p3, %p1236_p4 }
   0xa   : > { %p1286_p7 = pneg %p1237_p5 }
   0xc   : > { %p1287_p8 = pnand %p1286_p7, %p1285_p6 }
   0xe   : > { %p1288_p9 = pneg %p1287_p8 }
  0x10   : > { %p1295_p13 = pnand %p1294_p12, %p1288_p9 }
  0x12   : > { %1298 = shalt.err (!%p1295_p13)
}
  0x13   : > { %s1311_s23 = smov [#allocation2]   ;;  %188 = sbr.rel (%p1349_p2) target bundleno = 811 (0x32b), region = 36 }
  0x14   : > { %1239 = dma.vmem_to_smem (!%p1237_p5), %s154_s19, 16, %s1311_s23, [#allocation3]  }
  0x1a   : > { %1304 = dma.done.wait (%p1353_p3), [#allocation3], 16  }
  0x1b   : > { %1306 = vsyncadd (%p1353_p3), [#allocation3], 4294967280 }
  0x1c   : > { %194 = sfence }
  0x1d   : > { %v304_v0 = vld [vmem:[%s1796_s2 + $0x80] sm:$0xff]  ;;  %v305_v1 = vld [vmem:[%s1796_s2 + $0x88] sm:$0xff]  ;;  %s990_s30 = sshll.u32 %s983_s16, 4  ;;  %v306_v9 = vld [vmem:[%s1796_s2 + $0x90] sm:$0xff]  ;;  %s1312_s29 = smov 96   ;;  %vm642_vm0 = vcmask 261120  }
  0x1e   : > { %v288_v2 = vld [vmem:[%s1796_s2] sm:$0xff]  ;;  %v1167_v3 = vpack.c.bf16 %v305_v1, %v304_v0  ;;  %v289_v4 = vld [vmem:[%s1796_s2 + $0x8] sm:$0xff]  ;;  %p222_p0 = scmp.lt.s32.totalorder %s990_s30, 31  ;;  %v307_v10 = vld [vmem:[%s1796_s2 + $0x98] sm:$0xff]  ;;  %s996_s5 = sld [smem:[#allocation2 + $0x1]] }
  0x1f   : > { %v320_v5 = vld [vmem:[%s1796_s2 + $0x100] sm:$0xff]  ;;  %v321_v6 = vld [vmem:[%s1796_s2 + $0x108] sm:$0xff]  ;;  %v1169_v7 = vpack.c.bf16 %v289_v4, %v288_v2  ;;  %v290_v11 = vld [vmem:[%s1796_s2 + $0x10] sm:$0xff]  ;;  %v1171_v12 = vpack.c.bf16 %v307_v10, %v306_v9 }
  0x20   : > { %v1199_v8 = vpack.c.bf16 %v321_v6, %v320_v5  ;;  %1168 = vmatprep.subr.bf16.mxu0 %v1167_v3  ;;  %v291_v13 = vld [vmem:[%s1796_s2 + $0x18] sm:$0xff]  ;;  %v322_v14 = vld [vmem:[%s1796_s2 + $0x110] sm:$0xff]  ;;  %v308_v18 = vld [vmem:[%s1796_s2 + $0xa0] sm:$0xff]  ;;  %s1802_s30 = smov (!%p222_p0, %s990_s30), 31 }
  0x21   : > { %v323_v15 = vld [vmem:[%s1796_s2 + $0x118] sm:$0xff]  ;;  %1170 = vmatpush3.bf16.msra.mxu0 %v1169_v7  ;;  %v1173_v16 = vpack.c.bf16 %v291_v13, %v290_v11  ;;  %v309_v19 = vld [vmem:[%s1796_s2 + $0xa8] sm:$0xff]  ;;  %v292_v20 = vld [vmem:[%s1796_s2 + $0x20] sm:$0xff]  ;;  %s1231_s24 = smul.u32 24, %s1802_s30  ;;  %s993_s6 = sshll.u32 %s1802_s30, 3 }
  0x22   : > { %1200 = vmatprep.subr.bf16.mxu1 %v1199_v8  ;;  %v1203_v17 = vpack.c.bf16 %v323_v15, %v322_v14  ;;  %1172 = vmatprep.subr.bf16.mxu0 %v1171_v12  ;;  %v1175_v21 = vpack.c.bf16 %v309_v19, %v308_v18  ;;  %v293_v22 = vld [vmem:[%s1796_s2 + $0x28] sm:$0xff]  ;;  %v324_v23 = vld [vmem:[%s1796_s2 + $0x120] sm:$0xff]  ;;  %v310_v26 = vld [vmem:[%s1796_s2 + $0xb0] sm:$0xff]  ;;  %s1639_s9 = scalar_lea.vmem %s1797_s3, %s993_s6  ;;  %s1658_s11 = scalar_lea.vmem %s1798_s4, %s993_s6 }
  0x23   : > { %1202 = vmatpush3.bf16.msra.mxu1 %v1199_v8  ;;  %v325_v24 = vld [vmem:[%s1796_s2 + $0x128] sm:$0xff]  ;;  %v311_v27 = vld [vmem:[%s1796_s2 + $0xb8] sm:$0xff]  ;;  %v326_v28 = vld [vmem:[%s1796_s2 + $0x130] sm:$0xff]  ;;  %v1177_v30 = vpack.c.bf16 %v293_v22, %v292_v20  ;;  %s1464_s14 = scalar_lea.vmem %s1795_s1, %s1231_s24 }
  0x24   : > { %1204 = vmatprep.subr.bf16.mxu1 %v1203_v17  ;;  %v1207_v25 = vpack.c.bf16 %v325_v24, %v324_v23  ;;  %v327_v29 = vld [vmem:[%s1796_s2 + $0x138] sm:$0xff]  ;;  %v1179_v31 = vpack.c.bf16 %v311_v27, %v310_v26  ;;  %v294_v32 = vld [vmem:[%s1796_s2 + $0x30] sm:$0xff]  ;;  %v312_v35 = vld [vmem:[%s1796_s2 + $0xc0] sm:$0xff] }
  0x25   : > { %1174 = vmatpush3.bf16.msra.mxu0 %v1173_v16  ;;  %v295_v33 = vld [vmem:[%s1796_s2 + $0x38] sm:$0xff]  ;;  %v1211_v34 = vpack.c.bf16 %v327_v29, %v326_v28  ;;  %v313_v36 = vld [vmem:[%s1796_s2 + $0xc8] sm:$0xff]  ;;  %v328_v37 = vld [vmem:[%s1796_s2 + $0x140] sm:$0xff] }
  0x26   : > { %1176 = vmatprep.subr.bf16.mxu0 %v1175_v21  ;;  %v329_v38 = vld [vmem:[%s1796_s2 + $0x148] sm:$0xff]  ;;  %v1181_v39 = vpack.c.bf16 %v295_v33, %v294_v32  ;;  %v1183_v40 = vpack.c.bf16 %v313_v36, %v312_v35  ;;  %v296_v41 = vld [vmem:[%s1796_s2 + $0x40] sm:$0xff]  ;;  %v314_v44 = vld [vmem:[%s1796_s2 + $0xd0] sm:$0xff] }
  0x27   : > { %1206 = vmatpush3.bf16.msra.mxu1 %v1203_v17  ;;  %v297_v42 = vld [vmem:[%s1796_s2 + $0x48] sm:$0xff]  ;;  %v1215_v43 = vpack.c.bf16 %v329_v38, %v328_v37  ;;  %v315_v45 = vld [vmem:[%s1796_s2 + $0xd8] sm:$0xff]  ;;  %v330_v46 = vld [vmem:[%s1796_s2 + $0x150] sm:$0xff] }
  0x28   : > { %1208 = vmatprep.subr.bf16.mxu1 %v1207_v25  ;;  %v331_v47 = vld [vmem:[%s1796_s2 + $0x158] sm:$0xff]  ;;  %v1185_v48 = vpack.c.bf16 %v297_v42, %v296_v41  ;;  %v241_v49 = vld [vmem:[%s1464_s14 + $0x8] sm:$0xff]  ;;  %v242_v50 = vld [vmem:[%s1464_s14 + $0x10] sm:$0xff]  ;;  %v1187_v51 = vpack.c.bf16 %v315_v45, %v314_v44 }
  0x29   : > { %1178 = vmatpush3.bf16.msra.mxu0 %v1177_v30  ;;  %v298_v52 = vld [vmem:[%s1796_s2 + $0x50] sm:$0xff]  ;;  %v299_v53 = vld [vmem:[%s1796_s2 + $0x58] sm:$0xff]  ;;  %v1219_v54 = vpack.c.bf16 %v331_v47, %v330_v46  ;;  %v316_v55 = vld [vmem:[%s1796_s2 + $0xe0] sm:$0xff]  ;;  %400 = vmatprep.mubr.f32.mxu0 %v241_v49 }
  0x2a   : > { %1180 = vmatprep.subr.bf16.mxu0 %v1179_v31  ;;  %v317_v56 = vld [vmem:[%s1796_s2 + $0xe8] sm:$0xff]  ;;  %v332_v57 = vld [vmem:[%s1796_s2 + $0x160] sm:$0xff]  ;;  %1143 = vmatprep.mubr.f32.mxu1 %v242_v50  ;;  %v1189_v59 = vpack.c.bf16 %v299_v53, %v298_v52  ;;  %v318_v0 = vld [vmem:[%s1796_s2 + $0xf0] sm:$0xff] }
  0x2b   : > { %1210 = vmatpush3.bf16.msra.mxu1 %v1207_v25  ;;  %v333_v58 = vld [vmem:[%s1796_s2 + $0x168] sm:$0xff]  ;;  %v1191_v60 = vpack.c.bf16 %v317_v56, %v316_v55  ;;  %v300_v61 = vld [vmem:[%s1796_s2 + $0x60] sm:$0xff]  ;;  %v319_v1 = vld [vmem:[%s1796_s2 + $0xf8] sm:$0xff] }
  0x2c   : > { %1212 = vmatprep.subr.bf16.mxu1 %v1211_v34  ;;  %v301_v62 = vld [vmem:[%s1796_s2 + $0x68] sm:$0xff]  ;;  %v1223_v63 = vpack.c.bf16 %v333_v58, %v332_v57  ;;  %v334_v2 = vld [vmem:[%s1796_s2 + $0x170] sm:$0xff]  ;;  %v335_v3 = vld [vmem:[%s1796_s2 + $0x178] sm:$0xff]  ;;  %v1195_v5 = vpack.c.bf16 %v319_v1, %v318_v0 }
  0x2d   : > { %1182 = vmatpush3.bf16.msra.mxu0 %v1181_v39  ;;  %v1193_v4 = vpack.c.bf16 %v301_v62, %v300_v61  ;;  %v302_v6 = vld [vmem:[%s1796_s2 + $0x70] sm:$0xff]  ;;  %v303_v7 = vld [vmem:[%s1796_s2 + $0x78] sm:$0xff]  ;;  %v1227_v8 = vpack.c.bf16 %v335_v3, %v334_v2  ;;  %v240_v10 = vld [vmem:[%s1464_s14] sm:$0xff] }
  0x2e   : > { %1184 = vmatprep.subr.bf16.mxu0 %v1183_v40  ;;  %v1197_v9 = vpack.c.bf16 %v303_v7, %v302_v6  ;;  %v245_v11 = vld [vmem:[%s1464_s14 + $0x28] sm:$0xff]  ;;  %v244_v12 = vld [vmem:[%s1464_s14 + $0x20] sm:$0xff]  ;;  %v243_v14 = vld [vmem:[%s1464_s14 + $0x18] sm:$0xff] }
  0x2f   : > { %1214 = vmatpush3.bf16.msra.mxu1 %v1211_v34  ;;  %v248_v13 = vld [vmem:[%s1464_s14 + $0x40] sm:$0xff]  ;;  %v247_v15 = vld [vmem:[%s1464_s14 + $0x38] sm:$0xff]  ;;  %v254_v17 = vld [vmem:[%s1464_s14 + $0x70] sm:$0xff] }
  0x30   : > { %1216 = vmatprep.subr.bf16.mxu1 %v1215_v43  ;;  %v251_v16 = vld [vmem:[%s1464_s14 + $0x58] sm:$0xff]  ;;  %v246_v18 = vld [vmem:[%s1464_s14 + $0x30] sm:$0xff]  ;;  %v257_v20 = vld [vmem:[%s1464_s14 + $0x88] sm:$0xff] }
  0x31   : > { %1186 = vmatpush3.bf16.msra.mxu0 %v1185_v48  ;;  %v250_v19 = vld [vmem:[%s1464_s14 + $0x50] sm:$0xff]  ;;  %v260_v21 = vld [vmem:[%s1464_s14 + $0xa0] sm:$0xff]  ;;  %v249_v22 = vld [vmem:[%s1464_s14 + $0x48] sm:$0xff] }
  0x32   : > { %1188 = vmatprep.subr.bf16.mxu0 %v1187_v51  ;;  %v253_v23 = vld [vmem:[%s1464_s14 + $0x68] sm:$0xff]  ;;  %v263_v24 = vld [vmem:[%s1464_s14 + $0xb8] sm:$0xff]  ;;  %v266_v25 = vld [vmem:[%s1464_s14 + $0xd0] sm:$0xff] }
  0x33   : > { %1218 = vmatpush3.bf16.msra.mxu1 %v1215_v43  ;;  %v252_v26 = vld [vmem:[%s1464_s14 + $0x60] sm:$0xff]  ;;  %v269_v28 = vld [vmem:[%s1464_s14 + $0xe8] sm:$0xff]  ;;  %v255_v29 = vld [vmem:[%s1464_s14 + $0x78] sm:$0xff] }
  0x34   : > { %1220 = vmatprep.subr.bf16.mxu1 %v1219_v54  ;;  %v256_v27 = vld [vmem:[%s1464_s14 + $0x80] sm:$0xff]  ;;  %v259_v30 = vld [vmem:[%s1464_s14 + $0x98] sm:$0xff]  ;;  %v258_v31 = vld [vmem:[%s1464_s14 + $0x90] sm:$0xff] }
  0x35   : > { %1190 = vmatpush3.bf16.msra.mxu0 %v1189_v59  ;;  %v262_v32 = vld [vmem:[%s1464_s14 + $0xb0] sm:$0xff]  ;;  %v261_v33 = vld [vmem:[%s1464_s14 + $0xa8] sm:$0xff]  ;;  %v264_v35 = vld [vmem:[%s1464_s14 + $0xc0] sm:$0xff] }
  0x36   : > { %1192 = vmatprep.subr.bf16.mxu0 %v1191_v60  ;;  %v265_v34 = vld [vmem:[%s1464_s14 + $0xc8] sm:$0xff]  ;;  %v268_v36 = vld [vmem:[%s1464_s14 + $0xe0] sm:$0xff]  ;;  %v267_v37 = vld [vmem:[%s1464_s14 + $0xd8] sm:$0xff] }
  0x37   : > { %1222 = vmatpush3.bf16.msra.mxu1 %v1219_v54  ;;  %v271_v38 = vld [vmem:[%s1464_s14 + $0xf8] sm:$0xff]  ;;  %v270_v39 = vld [vmem:[%s1464_s14 + $0xf0] sm:$0xff]  ;;  %v272_v40 = vld [vmem:[%s1464_s14 + $0x100] sm:$0xff] }
  0x38   : > { %1224 = vmatprep.subr.bf16.mxu1 %v1223_v63  ;;  %v275_v41 = vld [vmem:[%s1464_s14 + $0x118] sm:$0xff]  ;;  %v274_v42 = vld [vmem:[%s1464_s14 + $0x110] sm:$0xff]  ;;  %v273_v43 = vld [vmem:[%s1464_s14 + $0x108] sm:$0xff] }
  0x39   : > { %1194 = vmatpush3.bf16.msra.mxu0 %v1193_v4  ;;  %v277_v44 = vld [vmem:[%s1464_s14 + $0x128] sm:$0xff]  ;;  %v278_v45 = vld [vmem:[%s1464_s14 + $0x130] sm:$0xff]  ;;  %v276_v47 = vld [vmem:[%s1464_s14 + $0x120] sm:$0xff] }
  0x3a   : > { %1196 = vmatprep.subr.bf16.mxu0 %v1195_v5  ;;  %v281_v46 = vld [vmem:[%s1464_s14 + $0x148] sm:$0xff]  ;;  %v280_v48 = vld [vmem:[%s1464_s14 + $0x140] sm:$0xff]  ;;  %v279_v49 = vld [vmem:[%s1464_s14 + $0x138] sm:$0xff] }
  0x3b   : > { %1226 = vmatpush3.bf16.msra.mxu1 %v1223_v63  ;;  %v283_v50 = vld [vmem:[%s1464_s14 + $0x158] sm:$0xff]  ;;  %v284_v51 = vld [vmem:[%s1464_s14 + $0x160] sm:$0xff]  ;;  %v282_v53 = vld [vmem:[%s1464_s14 + $0x150] sm:$0xff] }
  0x3c   : > { %1228 = vmatprep.subr.bf16.mxu1 %v1227_v8  ;;  %v287_v52 = vld [vmem:[%s1464_s14 + $0x178] sm:$0xff] }
  0x3d   : > { %1198 = vmatpush3.bf16.msra.mxu0 %v1197_v9 }
  0x3f   : > { %1230 = vmatpush3.bf16.msra.mxu1 %v1227_v8 }
  0x40   : > { %401 = vmatmul.mubr.f32.vlgmr.msra.gmra.mrb[0].mxu0 %v240_v10 }
  0x41   : > { %405 = vmatprep.mubr.f32.mxu0 %v244_v12 }
  0x42   : > { %1144 = vmatmul.mubr.f32.vlgmr.msra.gmra.mrb[0].mxu1 %v245_v11 }
  0x43   : > { %1146 = vmatprep.mubr.f32.mxu1 %v248_v13 }
  0x44   : > { %406 = vmatmul.mubr.f32.gmra.mrb[2].mxu0 %v243_v14 }
  0x45   : > { %410 = vmatprep.mubr.f32.mxu0 %v247_v15 }
  0x46   : > { %1147 = vmatmul.mubr.f32.gmra.mrb[2].mxu1 %v251_v16 }
  0x47   : > { %1149 = vmatprep.mubr.f32.mxu1 %v254_v17  ;;  %v286_v17 = vld [vmem:[%s1464_s14 + $0x170] sm:$0xff] }
  0x48   : > { %411 = vmatmul.mubr.f32.gmra.mrb[4].mxu0 %v246_v18  ;;  %v285_v18 = vld [vmem:[%s1464_s14 + $0x168] sm:$0xff]  ;;  %s739_s14 = sld [smem:[#allocation2]] }
  0x49   : > { %415 = vmatprep.mubr.f32.mxu0 %v250_v19 }
  0x4a   : > { %1150 = vmatmul.mubr.f32.gmra.mrb[4].mxu1 %v257_v20 }
  0x4b   : > { %1152 = vmatprep.mubr.f32.mxu1 %v260_v21 }
  0x4c   : > { %416 = vmatmul.mubr.f32.gmra.mrb[6].mxu0 %v249_v22 }
  0x4d   : > { %420 = vmatprep.mubr.f32.mxu0 %v253_v23 }
  0x4e   : > { %1153 = vmatmul.mubr.f32.gmra.mrb[6].mxu1 %v263_v24 }
  0x4f   : > { %1155 = vmatprep.mubr.f32.mxu1 %v266_v25 }
  0x50   : > { %421 = vmatmul.mubr.f32.gmra.mrb[8].mxu0 %v252_v26 }
  0x51   : > { %425 = vmatprep.mubr.f32.mxu0 %v256_v27 }
  0x52   : > { %1156 = vmatmul.mubr.f32.gmra.mrb[8].mxu1 %v269_v28 }
  0x53   : > { %1158 = vmatprep.mubr.f32.mxu1 %v272_v40 }
  0x54   : > { %426 = vmatmul.mubr.f32.gmra.mrb[10].mxu0 %v255_v29 }
  0x55   : > { %430 = vmatprep.mubr.f32.mxu0 %v259_v30 }
  0x56   : > { %1159 = vmatmul.mubr.f32.gmra.mrb[10].mxu1 %v275_v41 }
  0x57   : > { %1161 = vmatprep.mubr.f32.mxu1 %v278_v45 }
  0x58   : > { %431 = vmatmul.mubr.f32.gmra.mrb[12].mxu0 %v258_v31 }
  0x59   : > { %435 = vmatprep.mubr.f32.mxu0 %v262_v32 }
  0x5a   : > { %1162 = vmatmul.mubr.f32.gmra.mrb[12].mxu1 %v281_v46 }
  0x5b   : > { %1164 = vmatprep.mubr.f32.mxu1 %v284_v51 }
  0x5c   : > { %436 = vmatmul.mubr.f32.gmra.mrb[14].mxu0 %v261_v33 }
  0x5d   : > { %440 = vmatprep.mubr.f32.mxu0 %v265_v34 }
  0x5e   : > { %1165 = vmatmul.mubr.f32.gmra.mrb[14].mxu1 %v287_v52 }
  0x60   : > { %441 = vmatmul.mubr.f32.gmra.mrb[16].mxu0 %v264_v35 }
  0x61   : > { %445 = vmatprep.mubr.f32.mxu0 %v268_v36 }
  0x64   : > { %446 = vmatmul.mubr.f32.gmra.mrb[18].mxu0 %v267_v37 }
  0x65   : > { %450 = vmatprep.mubr.f32.mxu0 %v271_v38 }
  0x68   : > { %451 = vmatmul.mubr.f32.gmra.mrb[20].mxu0 %v270_v39 }
  0x69   : > { %455 = vmatprep.mubr.f32.mxu0 %v274_v42 }
  0x6c   : > { %456 = vmatmul.mubr.f32.gmra.mrb[22].mxu0 %v273_v43 }
  0x6d   : > { %460 = vmatprep.mubr.f32.mxu0 %v277_v44 }
  0x70   : > { %461 = vmatmul.mubr.f32.gmra.mrb[24].mxu0 %v276_v47 }
  0x71   : > { %465 = vmatprep.mubr.f32.mxu0 %v280_v48 }
  0x74   : > { %466 = vmatmul.mubr.f32.gmra.mrb[26].mxu0 %v279_v49 }
  0x75   : > { %470 = vmatprep.mubr.f32.mxu0 %v283_v50 }
  0x78   : > { %471 = vmatmul.mubr.f32.gmra.mrb[28].mxu0 %v282_v53 }
  0x79   : > { %475 = vmatprep.mubr.f32.mxu0 %v286_v17 }
  0x7c   : > { %476 = vmatmul.mubr.f32.gmra.mrb[30].mxu0 %v285_v18 }
 0x113   : > { %v1031_v54 = vpop.f32.mrb[0].mxu0 }
 0x114   : > { %v1032_v55 = vpop.f32.mrb[1].mxu0 }
 0x115   : > { %v1145_v56 = vpop.f32.mrb[0].mxu1  ;;  %v1033_v57 = vadd.f32 %v1032_v55, %v1031_v54 }
 0x116   : > { %v547_v58 = vpop.f32.mrb[1].mxu1 }
 0x117   : > { %v1566_v59 = vadd.f32 %v1033_v57, %v547_v58  ;;  %v1034_v60 = vpop.f32.mrb[2].mxu0 }
 0x118   : > { %v1035_v61 = vpop.f32.mrb[3].mxu0 }
 0x119   : > { %v1148_v62 = vpop.f32.mrb[2].mxu1  ;;  %v1036_v63 = vadd.f32 %v1035_v61, %v1034_v60  ;;  %773 = vrot.lane.b32.xlu0 %v1566_v59, %s1312_s29  ;;  %v626_v33 = vmul.f32 %v1566_v59, %v1566_v59 }
 0x11a   : > { %v557_v0 = vpop.f32.mrb[3].mxu1 }
 0x11b   : > { %v1570_v1 = vadd.f32 %v1145_v56, %v1036_v63  ;;  %v1037_v2 = vpop.f32.mrb[4].mxu0  ;;  %v643_v38 = vsel %vm642_vm0, %v626_v33, 0.0  ;;  %v1644_v33 = vstv %s996_s5 }
 0x11c   : > { %v1038_v3 = vpop.f32.mrb[5].mxu0 }
 0x11d   : > { %v1151_v4 = vpop.f32.mrb[4].mxu1  ;;  %v1039_v5 = vadd.f32 %v1038_v3, %v1037_v2  ;;  %775 = vrot.lane.b32.xlu1 %v1570_v1, %s1312_s29  ;;  %v627_v39 = vmul.f32 %v1570_v1, %v1570_v1 }
 0x11e   : > { %v567_v6 = vpop.f32.mrb[5].mxu1 }
 0x11f   : > { %v1574_v7 = vadd.f32 %v1039_v5, %v557_v0  ;;  %v1040_v8 = vpop.f32.mrb[6].mxu0  ;;  %v646_v41 = vsel %vm642_vm0, %v627_v39, 0.0 }
 0x120   : > { %v1041_v9 = vpop.f32.mrb[7].mxu0 }
 0x121   : > { %v1154_v10 = vpop.f32.mrb[6].mxu1  ;;  %v1042_v11 = vadd.f32 %v1041_v9, %v1040_v8  ;;  %777 = vrot.lane.b32.xlu1 %v1574_v7, %s1312_s29  ;;  %v628_v42 = vmul.f32 %v1574_v7, %v1574_v7 }
 0x122   : > { %v577_v12 = vpop.f32.mrb[7].mxu1 }
 0x123   : > { %v1578_v13 = vadd.f32 %v1148_v62, %v1042_v11  ;;  %v1043_v14 = vpop.f32.mrb[8].mxu0  ;;  %v649_v43 = vsel %vm642_vm0, %v628_v42, 0.0 }
 0x124   : > { %v1044_v15 = vpop.f32.mrb[9].mxu0 }
 0x125   : > { %v1045_v16 = vadd.f32 %v1044_v15, %v1043_v14  ;;  %v1157_v29 = vpop.f32.mrb[8].mxu1  ;;  %v629_v56 = vmul.f32 %v1578_v13, %v1578_v13 }
 0x126   : > { %v587_v31 = vpop.f32.mrb[9].mxu1 }
 0x127   : > { %v1582_v19 = vadd.f32 %v1045_v16, %v567_v6  ;;  %v1046_v20 = vpop.f32.mrb[10].mxu0  ;;  %v652_v57 = vsel %vm642_vm0, %v629_v56, 0.0 }
 0x128   : > { %v1047_v21 = vpop.f32.mrb[11].mxu0 }
 0x129   : > { %v1048_v22 = vadd.f32 %v1047_v21, %v1046_v20  ;;  %v630_v46 = vmul.f32 %v1582_v19, %v1582_v19  ;;  %v1160_v52 = vpop.f32.mrb[10].mxu1 }
 0x12a   : > { %v597_v54 = vpop.f32.mrb[11].mxu1 }
 0x12b   : > { %v1584_v23 = vadd.f32 %v1151_v4, %v1048_v22  ;;  %v1049_v24 = vpop.f32.mrb[12].mxu0  ;;  %v655_v53 = vsel %vm642_vm0, %v630_v46, 0.0 }
 0x12c   : > { %v1050_v25 = vpop.f32.mrb[13].mxu0 }
 0x12d   : > { %v1051_v26 = vadd.f32 %v1050_v25, %v1049_v24  ;;  %v1163_v60 = vpop.f32.mrb[12].mxu1  ;;  %v631_v9 = vmul.f32 %v1584_v23, %v1584_v23 }
 0x12e   : > { %v607_v62 = vpop.f32.mrb[13].mxu1 }
 0x12f   : > { %v1586_v27 = vadd.f32 %v1051_v26, %v577_v12  ;;  %v1052_v28 = vpop.f32.mrb[14].mxu0 }
 0x130   : > { %v1053_v30 = vpop.f32.mrb[15].mxu0 }
 0x131   : > { %v1054_v32 = vadd.f32 %v1053_v30, %v1052_v28  ;;  %v632_v63 = vmul.f32 %v1586_v27, %v1586_v27  ;;  %v1166_v18 = vpop.f32.mrb[14].mxu1 }
 0x132   : > { %v617_v20 = vpop.f32.mrb[15].mxu1 }
 0x133   : > { %v1590_v34 = vadd.f32 %v1154_v10, %v1054_v32  ;;  %v1055_v35 = vpop.f32.mrb[16].mxu0  ;;  %v661_v6 = vsel %vm642_vm0, %v632_v63, 0.0  ;;  %v658_v10 = vsel %vm642_vm0, %v631_v9, 0.0  ;;  %v837_v32 = vld [vmem:[%s1639_s9] sm:$0xff] }
 0x134   : > { %v1056_v36 = vpop.f32.mrb[17].mxu0  ;;  %v855_v42 = vmul.f32 %v1644_v33, %v837_v32 }
 0x135   : > { %v1057_v37 = vadd.f32 %v1056_v36, %v1055_v35  ;;  %v633_v56 = vmul.f32 %v1590_v34, %v1590_v34 }
 0x137   : > { %v1595_v40 = vadd.f32 %v1057_v37, %v587_v31  ;;  %v1058_v44 = vpop.f32.mrb[18].mxu0  ;;  %v1641_v31 = vstv %s739_s14 }
 0x138   : > { %644 = vadd.xlane.f32.xlu0 %v643_v38  ;;  %v1059_v45 = vpop.f32.mrb[19].mxu0 }
 0x139   : > { %v1060_v47 = vadd.f32 %v1059_v45, %v1058_v44  ;;  %v634_v39 = vmul.f32 %v1595_v40, %v1595_v40  ;;  %v838_v45 = vld [vmem:[%s1639_s9 + $0x8] sm:$0xff] }
 0x13b   : > { %v1061_v48 = vpop.f32.mrb[20].mxu0  ;;  %v1607_v49 = vadd.f32 %v1157_v29, %v1060_v47 }
 0x13c   : > { %647 = vadd.xlane.f32.xlu0 %v646_v41  ;;  %v1062_v50 = vpop.f32.mrb[21].mxu0 }
 0x13d   : > { %v1063_v51 = vadd.f32 %v1062_v50, %v1061_v48  ;;  %v856_v50 = vmul.f32 %v1644_v33, %v838_v45 }
 0x13f   : > { %v1610_v55 = vadd.f32 %v1063_v51, %v597_v54  ;;  %v1064_v58 = vpop.f32.mrb[22].mxu0  ;;  %v839_v54 = vld [vmem:[%s1639_s9 + $0x10] sm:$0xff] }
 0x140   : > { %v1065_v61 = vpop.f32.mrb[23].mxu0 }
 0x141   : > { %v1066_v0 = vadd.f32 %v1065_v61, %v1064_v58  ;;  %v857_v58 = vmul.f32 %v1644_v33, %v839_v54  ;;  %v664_v61 = vsel %vm642_vm0, %v633_v56, 0.0 }
 0x143   : > { %v1067_v2 = vpop.f32.mrb[24].mxu0  ;;  %v1621_v4 = vadd.f32 %v1160_v52, %v1066_v0 }
 0x144   : > { %v1068_v3 = vpop.f32.mrb[25].mxu0 }
 0x145   : > { %650 = vadd.xlane.f32.xlu1 %v649_v43  ;;  %v1069_v5 = vadd.f32 %v1068_v3, %v1067_v2 }
 0x147   : > { %v1624_v8 = vadd.f32 %v1069_v5, %v607_v62  ;;  %v1070_v11 = vpop.f32.mrb[26].mxu0 }
 0x148   : > { %v1071_v12 = vpop.f32.mrb[27].mxu0 }
 0x149   : > { %v1072_v36 = vadd.f32 %v1071_v12, %v1070_v11  ;;  %v638_v45 = vmul.f32 %v1624_v8, %v1624_v8 }
 0x14b   : > { %v1073_v14 = vpop.f32.mrb[28].mxu0  ;;  %v1649_v41 = vadd.f32 %v1163_v60, %v1072_v36 }
 0x14c   : > { %v1074_v16 = vpop.f32.mrb[29].mxu0 }
 0x14d   : > { %v1075_v17 = vadd.f32 %v1074_v16, %v1073_v14  ;;  %v636_v14 = vmul.f32 %v1610_v55, %v1610_v55  ;;  %v841_v16 = vld [vmem:[%s1639_s9 + $0x20] sm:$0xff] }
 0x14f   : > { %v1633_v21 = vadd.f32 %v1075_v17, %v617_v20  ;;  %v673_v20 = vsel %vm642_vm0, %v636_v14, 0.0 }
 0x152   : > { %781 = vrot.lane.b32.xlu0 %v1582_v19, %s1312_s29 }
 0x156   : > { %779 = vrot.lane.b32.xlu1 %v1578_v13, %s1312_s29 }
 0x171   : > { %656 = vadd.xlane.f32.xlu0 %v655_v53 }
 0x17a   : > { %653 = vadd.xlane.f32.xlu1 %v652_v57 }
 0x187   : > { %785 = vrot.lane.b32.xlu0 %v1586_v27, %s1312_s29 }
 0x18b   : > { %783 = vrot.lane.b32.xlu1 %v1584_v23, %s1312_s29  ;;  %v774_v15 = vpop.permute.xlu0 %773 }
 0x18f   : > { %v776_v25 = vpop.permute.xlu1 %775 }
 0x193   : > { %v778_v29 = vpop.permute.xlu1 %777 }
 0x1a6   : > { %662 = vadd.xlane.f32.xlu0 %v661_v6 }
 0x1af   : > { %659 = vadd.xlane.f32.xlu1 %v658_v10 }
 0x1bc   : > { %789 = vrot.lane.b32.xlu0 %v1595_v40, %s1312_s29 }
 0x1c0   : > { %787 = vrot.lane.b32.xlu1 %v1590_v34, %s1312_s29 }
 0x1c5   : > { %v645_v22 = vpop.xlane.xlu0 %644 }
 0x1c6   : > { %v691_v24 = vadd.f32 1e-32, %v645_v22  ;;  %v859_v22 = vmul.f32 %v1644_v33, %v841_v16 }
 0x1c8   : > { %1252 = vrsqrt.f32 %v691_v24 }
 0x1c9   : > { %v648_v26 = vpop.xlane.xlu0 %647 }
 0x1ca   : > { %v692_v28 = vadd.f32 1e-32, %v648_v26 }
 0x1cc   : > { %1254 = vrsqrt.f32 %v692_v28  ;;  %v840_v28 = vld [vmem:[%s1639_s9 + $0x18] sm:$0xff] }
 0x1cd   : > { %v782_v0 = vpop.permute.xlu0 %781 }
 0x1d2   : > { %v1253_v30 = vpop.eup %1252  ;;  %v651_v35 = vpop.xlane.xlu1 %650 }
 0x1d3   : > { %v723_v37 = vmul.f32 %v1253_v30, %v1566_v59  ;;  %v693_v38 = vadd.f32 1e-32, %v651_v35  ;;  %v667_v59 = vsel %vm642_vm0, %v634_v39, 0.0 }
 0x1d5   : > { %v741_v43 = vmul.f32 %v1641_v31, %v723_v37  ;;  %1256 = vrsqrt.f32 %v693_v38 }
 0x1d6   : > { %v1255_v44 = vpop.eup %1254  ;;  %v780_v10 = vpop.permute.xlu1 %779 }
 0x1d7   : > { %v821_v46 = vadd.f32 %v774_v15, %v741_v43  ;;  %v724_v47 = vmul.f32 %v1255_v44, %v1570_v1 }
 0x1d9   : > { %v871_v48 = vadd.f32 %v855_v42, %v821_v46  ;;  %v742_v51 = vmul.f32 %v1641_v31, %v724_v47  ;;  %v843_v47 = vld [vmem:[%s1639_s9 + $0x30] sm:$0xff] }
 0x1db   : > { %887 = vst.msk [vmem:[%s1658_s11] sm:$0xff] %vm642_vm0, %v871_v48  ;;  %v822_v52 = vadd.f32 %v776_v25, %v742_v51  ;;  %668 = vadd.xlane.f32.xlu0 %v667_v59  ;;  %v679_v48 = vsel %vm642_vm0, %v638_v45, 0.0  ;;  %v861_v51 = vmul.f32 %v1644_v33, %v843_v47 }
 0x1dd   : > { %v872_v1 = vadd.f32 %v856_v50, %v822_v52  ;;  %v640_v50 = vmul.f32 %v1633_v21, %v1633_v21 }
 0x1df   : > { %v1257_v53 = vpop.eup %1256  ;;  %888 = vst.msk [vmem:[%s1658_s11 + $0x8] sm:$0xff] %vm642_vm0, %v872_v1 }
 0x1e0   : > { %v725_v57 = vmul.f32 %v1257_v53, %v1574_v7  ;;  %v1076_v7 = vpop.f32.mrb[30].mxu0  ;;  %v685_v53 = vsel %vm642_vm0, %v640_v50, 0.0 }
 0x1e1   : > { %v1077_v3 = vpop.f32.mrb[31].mxu0 }
 0x1e2   : > { %v743_v60 = vmul.f32 %v1641_v31, %v725_v57  ;;  %v1078_v6 = vadd.f32 %v1077_v3, %v1076_v7  ;;  %v842_v57 = vld [vmem:[%s1639_s9 + $0x28] sm:$0xff] }
 0x1e4   : > { %v823_v62 = vadd.f32 %v778_v29, %v743_v60  ;;  %665 = vadd.xlane.f32.xlu1 %v664_v61  ;;  %v1680_v9 = vadd.f32 %v1166_v18, %v1078_v6  ;;  %v635_v29 = vmul.f32 %v1607_v49, %v1607_v49  ;;  %v860_v60 = vmul.f32 %v1644_v33, %v842_v57 }
 0x1e6   : > { %v873_v63 = vadd.f32 %v857_v58, %v823_v62  ;;  %v670_v35 = vsel %vm642_vm0, %v635_v29, 0.0 }
 0x1e8   : > { %889 = vst.msk [vmem:[%s1658_s11 + $0x10] sm:$0xff] %vm642_vm0, %v873_v63 }
 0x1f1   : > { %793 = vrot.lane.b32.xlu0 %v1610_v55, %s1312_s29 }
 0x1f5   : > { %791 = vrot.lane.b32.xlu1 %v1607_v49, %s1312_s29 }
 0x1fe   : > { %v657_v2 = vpop.xlane.xlu0 %656 }
 0x1ff   : > { %v695_v5 = vadd.f32 1e-32, %v657_v2 }
 0x201   : > { %1258 = vrsqrt.f32 %v695_v5 }
 0x202   : > { %v786_v38 = vpop.permute.xlu0 %785 }
 0x207   : > { %v654_v11 = vpop.xlane.xlu1 %653 }
 0x208   : > { %v694_v12 = vadd.f32 1e-32, %v654_v11  ;;  %v845_v11 = vld [vmem:[%s1639_s9 + $0x40] sm:$0xff] }
 0x209   : > { %v863_v14 = vmul.f32 %v1644_v33, %v845_v11 }
 0x20a   : > { %1260 = vrsqrt.f32 %v694_v12 }
 0x20b   : > { %v1259_v15 = vpop.eup %1258  ;;  %v784_v42 = vpop.permute.xlu1 %783 }
 0x20c   : > { %v727_v17 = vmul.f32 %v1259_v15, %v1582_v19  ;;  %v858_v19 = vmul.f32 %v1644_v33, %v840_v28 }
 0x20e   : > { %v745_v18 = vmul.f32 %v1641_v31, %v727_v17 }
 0x210   : > { %v825_v24 = vadd.f32 %v782_v0, %v745_v18  ;;  %674 = vadd.xlane.f32.xlu0 %v673_v20  ;;  %v639_v18 = vmul.f32 %v1649_v41, %v1649_v41 }
 0x212   : > { %v875_v25 = vadd.f32 %v859_v22, %v825_v24  ;;  %v844_v22 = vld [vmem:[%s1639_s9 + $0x38] sm:$0xff]  ;;  %v682_v28 = vsel %vm642_vm0, %v639_v18, 0.0 }
 0x214   : > { %v1261_v26 = vpop.eup %1260  ;;  %891 = vst.msk [vmem:[%s1658_s11 + $0x20] sm:$0xff] %vm642_vm0, %v875_v25  ;;  %v641_v25 = vmul.f32 %v1680_v9, %v1680_v9 }
 0x215   : > { %v726_v30 = vmul.f32 %v1261_v26, %v1578_v13 }
 0x217   : > { %v744_v32 = vmul.f32 %v1641_v31, %v726_v30  ;;  %v688_v30 = vsel %vm642_vm0, %v641_v25, 0.0 }
 0x219   : > { %v824_v36 = vadd.f32 %v780_v10, %v744_v32  ;;  %671 = vadd.xlane.f32.xlu1 %v670_v35 }
 0x21b   : > { %v874_v37 = vadd.f32 %v858_v19, %v824_v36 }
 0x21d   : > { %890 = vst.msk [vmem:[%s1658_s11 + $0x18] sm:$0xff] %vm642_vm0, %v874_v37 }
 0x226   : > { %797 = vrot.lane.b32.xlu0 %v1624_v8, %s1312_s29 }
 0x22a   : > { %795 = vrot.lane.b32.xlu1 %v1621_v4, %s1312_s29 }
 0x233   : > { %v663_v13 = vpop.xlane.xlu0 %662 }
 0x234   : > { %v697_v39 = vadd.f32 1e-32, %v663_v13 }
 0x236   : > { %1262 = vrsqrt.f32 %v697_v39  ;;  %v847_v39 = vld [vmem:[%s1639_s9 + $0x50] sm:$0xff] }
 0x237   : > { %v790_v7 = vpop.permute.xlu0 %789 }
 0x23c   : > { %v660_v43 = vpop.xlane.xlu1 %659 }
 0x23d   : > { %v696_v44 = vadd.f32 1e-32, %v660_v43  ;;  %v865_v43 = vmul.f32 %v1644_v33, %v847_v39 }
 0x23f   : > { %1264 = vrsqrt.f32 %v696_v44 }
 0x240   : > { %v1263_v46 = vpop.eup %1262  ;;  %v788_v3 = vpop.permute.xlu1 %787 }
 0x241   : > { %v729_v59 = vmul.f32 %v1263_v46, %v1586_v27  ;;  %v637_v27 = vmul.f32 %v1621_v4, %v1621_v4 }
 0x243   : > { %v747_v52 = vmul.f32 %v1641_v31, %v729_v59  ;;  %v676_v62 = vsel %vm642_vm0, %v637_v27, 0.0  ;;  %v846_v59 = vld [vmem:[%s1639_s9 + $0x48] sm:$0xff] }
 0x244   : > { %v864_v50 = vmul.f32 %v1644_v33, %v846_v59 }
 0x245   : > { %v827_v1 = vadd.f32 %v786_v38, %v747_v52  ;;  %680 = vadd.xlane.f32.xlu0 %v679_v48 }
 0x247   : > { %v877_v54 = vadd.f32 %v861_v51, %v827_v1 }
 0x249   : > { %v1265_v56 = vpop.eup %1264  ;;  %893 = vst.msk [vmem:[%s1658_s11 + $0x30] sm:$0xff] %vm642_vm0, %v877_v54  ;;  %686 = vadd.xlane.f32.xlu0 %v685_v53 }
 0x24a   : > { %v728_v58 = vmul.f32 %v1265_v56, %v1584_v23 }
 0x24c   : > { %v746_v61 = vmul.f32 %v1641_v31, %v728_v58 }
 0x24e   : > { %v826_v63 = vadd.f32 %v784_v42, %v746_v61  ;;  %677 = vadd.xlane.f32.xlu1 %v676_v62  ;;  %v849_v61 = vld [vmem:[%s1639_s9 + $0x60] sm:$0xff] }
 0x250   : > { %v876_v0 = vadd.f32 %v860_v60, %v826_v63  ;;  %v867_v63 = vmul.f32 %v1644_v33, %v849_v61 }
 0x252   : > { %892 = vst.msk [vmem:[%s1658_s11 + $0x28] sm:$0xff] %vm642_vm0, %v876_v0 }
 0x25f   : > { %799 = vrot.lane.b32.xlu1 %v1649_v41, %s1312_s29  ;;  %801 = vrot.lane.b32.xlu0 %v1633_v21, %s1312_s29 }
 0x268   : > { %v669_v23 = vpop.xlane.xlu0 %668 }
 0x269   : > { %v699_v2 = vadd.f32 1e-32, %v669_v23  ;;  %v851_v23 = vld [vmem:[%s1639_s9 + $0x70] sm:$0xff] }
 0x26a   : > { %v869_v11 = vmul.f32 %v1644_v33, %v851_v23 }
 0x26b   : > { %1266 = vrsqrt.f32 %v699_v2 }
 0x271   : > { %v666_v5 = vpop.xlane.xlu1 %665 }
 0x272   : > { %v698_v6 = vadd.f32 1e-32, %v666_v5 }
 0x274   : > { %1268 = vrsqrt.f32 %v698_v6 }
 0x275   : > { %v1267_v10 = vpop.eup %1266  ;;  %v792_v36 = vpop.permute.xlu1 %791 }
 0x276   : > { %v731_v12 = vmul.f32 %v1267_v10, %v1595_v40  ;;  %v862_v40 = vmul.f32 %v1644_v33, %v844_v22 }
 0x278   : > { %v749_v15 = vmul.f32 %v1641_v31, %v731_v12 }
 0x27a   : > { %v829_v16 = vadd.f32 %v790_v7, %v749_v15 }
 0x27c   : > { %v879_v17 = vadd.f32 %v863_v14, %v829_v16 }
 0x27e   : > { %v1269_v20 = vpop.eup %1268  ;;  %895 = vst.msk [vmem:[%s1658_s11 + $0x40] sm:$0xff] %vm642_vm0, %v879_v17 }
 0x27f   : > { %v730_v24 = vmul.f32 %v1269_v20, %v1590_v34  ;;  %v794_v34 = vpop.permute.xlu0 %793 }
 0x281   : > { %v748_v26 = vmul.f32 %v1641_v31, %v730_v24 }
 0x283   : > { %v828_v29 = vadd.f32 %v788_v3, %v748_v26  ;;  %683 = vadd.xlane.f32.xlu1 %v682_v28  ;;  %v850_v28 = vld [vmem:[%s1639_s9 + $0x68] sm:$0xff] }
 0x285   : > { %v878_v19 = vadd.f32 %v862_v40, %v828_v29 }
 0x287   : > { %894 = vst.msk [vmem:[%s1658_s11 + $0x38] sm:$0xff] %vm642_vm0, %v878_v19  ;;  %689 = vadd.xlane.f32.xlu1 %v688_v30  ;;  %v868_v30 = vmul.f32 %v1644_v33, %v850_v28 }
 0x298   : > { %803 = vrot.lane.b32.xlu1 %v1680_v9, %s1312_s29 }
 0x29d   : > { %v675_v32 = vpop.xlane.xlu0 %674 }
 0x29e   : > { %v701_v35 = vadd.f32 1e-32, %v675_v32  ;;  %v852_v32 = vld [vmem:[%s1639_s9 + $0x78] sm:$0xff] }
 0x2a0   : > { %1270 = vrsqrt.f32 %v701_v35 }
 0x2a6   : > { %v672_v37 = vpop.xlane.xlu1 %671 }
 0x2a7   : > { %v700_v38 = vadd.f32 1e-32, %v672_v37 }
 0x2a9   : > { %1272 = vrsqrt.f32 %v700_v38 }
 0x2aa   : > { %v1271_v13 = vpop.eup %1270  ;;  %v796_v57 = vpop.permute.xlu1 %795 }
 0x2ab   : > { %v733_v42 = vmul.f32 %v1271_v13, %v1610_v55  ;;  %v798_v55 = vpop.permute.xlu0 %797  ;;  %v870_v13 = vmul.f32 %v1644_v33, %v852_v32 }
 0x2ad   : > { %v751_v44 = vmul.f32 %v1641_v31, %v733_v42 }
 0x2af   : > { %v831_v45 = vadd.f32 %v794_v34, %v751_v44 }
 0x2b1   : > { %v881_v46 = vadd.f32 %v865_v43, %v831_v45 }
 0x2b3   : > { %v1273_v47 = vpop.eup %1272  ;;  %897 = vst.msk [vmem:[%s1658_s11 + $0x50] sm:$0xff] %vm642_vm0, %v881_v46 }
 0x2b4   : > { %v732_v48 = vmul.f32 %v1273_v47, %v1607_v49 }
 0x2b6   : > { %v750_v51 = vmul.f32 %v1641_v31, %v732_v48 }
 0x2b8   : > { %v830_v52 = vadd.f32 %v792_v36, %v750_v51 }
 0x2ba   : > { %v880_v1 = vadd.f32 %v864_v50, %v830_v52 }
 0x2bc   : > { %896 = vst.msk [vmem:[%s1658_s11 + $0x48] sm:$0xff] %vm642_vm0, %v880_v1 }
 0x2d2   : > { %v681_v53 = vpop.xlane.xlu0 %680 }
 0x2d3   : > { %v703_v54 = vadd.f32 1e-32, %v681_v53 }
 0x2d5   : > { %1274 = vrsqrt.f32 %v703_v54 }
 0x2d6   : > { %v687_v56 = vpop.xlane.xlu0 %686 }
 0x2d7   : > { %v705_v27 = vadd.f32 1e-32, %v687_v56 }
 0x2d9   : > { %1276 = vrsqrt.f32 %v705_v27 }
 0x2da   : > { %v802_v5 = vpop.permute.xlu0 %801 }
 0x2db   : > { %v678_v58 = vpop.xlane.xlu1 %677 }
 0x2dc   : > { %v702_v49 = vadd.f32 1e-32, %v678_v58 }
 0x2de   : > { %1278 = vrsqrt.f32 %v702_v49 }
 0x2df   : > { %v1275_v60 = vpop.eup %1274  ;;  %v800_v18 = vpop.permute.xlu1 %799 }
 0x2e0   : > { %v735_v62 = vmul.f32 %v1275_v60, %v1624_v8  ;;  %v848_v8 = vld [vmem:[%s1639_s9 + $0x58] sm:$0xff] }
 0x2e1   : > { %v866_v17 = vmul.f32 %v1644_v33, %v848_v8 }
 0x2e2   : > { %v753_v0 = vmul.f32 %v1641_v31, %v735_v62 }
 0x2e3   : > { %v1277_v7 = vpop.eup %1276 }
 0x2e4   : > { %v833_v2 = vadd.f32 %v798_v55, %v753_v0  ;;  %v737_v3 = vmul.f32 %v1277_v7, %v1633_v21 }
 0x2e6   : > { %v883_v6 = vadd.f32 %v867_v63, %v833_v2  ;;  %v755_v10 = vmul.f32 %v1641_v31, %v737_v3 }
 0x2e8   : > { %v1279_v12 = vpop.eup %1278  ;;  %899 = vst.msk [vmem:[%s1658_s11 + $0x60] sm:$0xff] %vm642_vm0, %v883_v6  ;;  %v835_v14 = vadd.f32 %v802_v5, %v755_v10 }
 0x2e9   : > { %v734_v15 = vmul.f32 %v1279_v12, %v1621_v4 }
 0x2ea   : > { %v885_v16 = vadd.f32 %v869_v11, %v835_v14 }
 0x2eb   : > { %v752_v21 = vmul.f32 %v1641_v31, %v734_v15 }
 0x2ec   : > { %901 = vst.msk [vmem:[%s1658_s11 + $0x70] sm:$0xff] %vm642_vm0, %v885_v16 }
 0x2ed   : > { %v832_v20 = vadd.f32 %v796_v57, %v752_v21 }
 0x2ef   : > { %v882_v22 = vadd.f32 %v866_v17, %v832_v20 }
 0x2f1   : > { %898 = vst.msk [vmem:[%s1658_s11 + $0x58] sm:$0xff] %vm642_vm0, %v882_v22 }
 0x310   : > { %v684_v24 = vpop.xlane.xlu1 %683 }
 0x311   : > { %v704_v25 = vadd.f32 1e-32, %v684_v24 }
 0x313   : > { %1280 = vrsqrt.f32 %v704_v25 }
 0x314   : > { %v690_v40 = vpop.xlane.xlu1 %689 }
 0x315   : > { %v706_v4 = vadd.f32 1e-32, %v690_v40 }
 0x317   : > { %1282 = vrsqrt.f32 %v706_v4 }
 0x318   : > { %v804_v39 = vpop.permute.xlu1 %803 }
 0x31d   : > { %v1281_v26 = vpop.eup %1280 }
 0x31e   : > { %v736_v29 = vmul.f32 %v1281_v26, %v1649_v41 }
 0x320   : > { %v754_v19 = vmul.f32 %v1641_v31, %v736_v29 }
 0x321   : > { %v1283_v34 = vpop.eup %1282 }
 0x322   : > { %v834_v35 = vadd.f32 %v800_v18, %v754_v19  ;;  %v738_v36 = vmul.f32 %v1283_v34, %v1680_v9 }
 0x324   : > { %v884_v37 = vadd.f32 %v868_v30, %v834_v35  ;;  %v756_v38 = vmul.f32 %v1641_v31, %v738_v36 }
 0x326   : > { %900 = vst.msk [vmem:[%s1658_s11 + $0x68] sm:$0xff] %vm642_vm0, %v884_v37  ;;  %v836_v42 = vadd.f32 %v804_v39, %v756_v38 }
 0x328   : > { %v886_v43 = vadd.f32 %v870_v13, %v836_v42 }
 0x32a   : > { %902 = vst.msk [vmem:[%s1658_s11 + $0x78] sm:$0xff] %vm642_vm0, %v886_v43 }
 0x32b PF: > { %s15_s15 = sadd.s32 1, %s1309_s15  }
 0x32c   : > { %p12_p1 = scmp.ge.s32.totalorder %s15_s15, 4  }
 0x32e   :  { %14 = sbr.rel (!%p12_p1) target bundleno = 1 (0x1), region = 74 }
 0x335   :  { %925 = vsyncpa [#allocation3], 1 }
 0x336   :  { %927 = vsyncpa [#allocation3 + $0x1], 1 }

// kernel: recon_all_forward.9
= control target key start
LH: loop header
LB: loop body
LE: loop exit
PB: predicated region body
PF: predicated region fallthrough
CT: control target
= control target key end

     0   :  { %s1520_s20 = smov 0   ;;  %s2056_s0 = inlined_call_operand.<no memory space> [shape: f32[1], index: 0, kind: input, shape index: {}]   ;;  %s2057_s1 = inlined_call_operand.vmem [shape: f32[256,384], index: 1, kind: input, shape index: {}]   ;;  %s2058_s2 = inlined_call_operand.vmem [shape: f32[384,32], index: 2, kind: input, shape index: {}]   ;;  %s2059_s3 = inlined_call_operand.vmem [shape: f32[256,96], index: 3, kind: input, shape index: {}]   ;;  %s2060_s4 = inlined_call_operand.vmem [shape: f32[96,32], index: 4, kind: input, shape index: {}]   ;;  %s2061_s5 = inlined_call_operand.vmem [shape: f32[256,32], index: 5, kind: output, shape index: {}]  }
   0x1   :  { %10 = sst [smem:[#allocation2]] %s2056_s0 }
   0x2 LB: > { %s1077_s21 = sadd.s32 4294967295, %s1485_s20   ;;  %p1081_p0 = scmp.ge.s32.totalorder %s1485_s20, 1  ;;  %s1485_s20 = sphi %s1520_s20, %s16_s20  }
   0x3   : > { %p201_p1 = scmp.lt.s32.totalorder %s1485_s20, 3 }
   0x5   : > { %p202_p2 = pnand %p1081_p0, %p201_p1 }
   0x6   : > { %v366_v0 = vld [vmem:[%s2060_s4] sm:$0xff] (!%p202_p2)  ;;  %v367_v1 = vld [vmem:[%s2060_s4 + $0x8] sm:$0xff] (!%p202_p2)  ;;  %v368_v2 = vld [vmem:[%s2060_s4 + $0x10] sm:$0xff] (!%p202_p2)  ;;  %s1082_s27 = sshll.u32 (!%p202_p2), %s1077_s21, 4  ;;  %vm378_vm0 = vcmask (!%p202_p2), 785408   ;;  %vm588_vm1 = vcmask (!%p202_p2), 261120  }
   0x7   : > { %205 = sbr.rel (%p202_p2) target bundleno = 444 (0x1bc), region = 40  ;;  %v1350_v3 = vpack.c.bf16 (!%p202_p2), %v367_v1, %v366_v0  ;;  %v369_v4 = vld [vmem:[%s2060_s4 + $0x18] sm:$0xff] (!%p202_p2)  ;;  %p236_p3 = scmp.lt.s32.totalorder (!%p202_p2), %s1082_s27, 31  ;;  %v370_v6 = vld [vmem:[%s2060_s4 + $0x20] sm:$0xff] (!%p202_p2)  ;;  %v371_v7 = vld [vmem:[%s2060_s4 + $0x28] sm:$0xff] (!%p202_p2) }
   0x8   : > { %v1354_v5 = vpack.c.bf16 (!%p202_p2), %v369_v4, %v368_v2  ;;  %v372_v8 = vld [vmem:[%s2060_s4 + $0x30] sm:$0xff] (!%p202_p2)  ;;  %v318_v9 = vld [vmem:[%s2058_s2 + $0x80] sm:$0xff] (!%p202_p2)  ;;  %v319_v10 = vld [vmem:[%s2058_s2 + $0x88] sm:$0xff] (!%p202_p2)  ;;  %v1358_v12 = vpack.c.bf16 (!%p202_p2), %v371_v7, %v370_v6 }
   0x9   : > { %1351 = vmatprep.subr.bf16.mxu0 (!%p202_p2), %v1350_v3  ;;  %v302_v11 = vld [vmem:[%s2058_s2] sm:$0xff] (!%p202_p2)  ;;  %v1374_v13 = vpack.c.bf16 (!%p202_p2), %v319_v10, %v318_v9  ;;  %v303_v14 = vld [vmem:[%s2058_s2 + $0x8] sm:$0xff] (!%p202_p2)  ;;  %v320_v15 = vld [vmem:[%s2058_s2 + $0x90] sm:$0xff] (!%p202_p2) }
   0xa   : > { %1353 = vmatpush3.bf16.msra.mxu0 (!%p202_p2), %v1350_v3  ;;  %v321_v16 = vld [vmem:[%s2058_s2 + $0x98] sm:$0xff] (!%p202_p2)  ;;  %v1376_v18 = vpack.c.bf16 (!%p202_p2), %v303_v14, %v302_v11  ;;  %v304_v20 = vld [vmem:[%s2058_s2 + $0x10] sm:$0xff] (!%p202_p2)  ;;  %v374_v25 = vld [vmem:[%s2060_s4 + $0x40] sm:$0xff] (!%p202_p2) }
   0xb   : > { %1355 = vmatprep.subr.bf16.mxu0 (!%p202_p2), %v1354_v5  ;;  %v373_v17 = vld [vmem:[%s2060_s4 + $0x38] sm:$0xff] (!%p202_p2)  ;;  %v1378_v19 = vpack.c.bf16 (!%p202_p2), %v321_v16, %v320_v15  ;;  %1375 = vmatprep.subr.bf16.mxu1 (!%p202_p2), %v1374_v13  ;;  %v375_v26 = vld [vmem:[%s2060_s4 + $0x48] sm:$0xff] (!%p202_p2)  ;;  %v322_v27 = vld [vmem:[%s2058_s2 + $0xa0] sm:$0xff] (!%p202_p2) }
   0xc   : > { %v305_v21 = vld [vmem:[%s2058_s2 + $0x18] sm:$0xff] (!%p202_p2)  ;;  %v1362_v23 = vpack.c.bf16 (!%p202_p2), %v373_v17, %v372_v8  ;;  %1377 = vmatpush3.bf16.msra.mxu1 (!%p202_p2), %v1376_v18  ;;  %v376_v28 = vld [vmem:[%s2060_s4 + $0x50] sm:$0xff] (!%p202_p2)  ;;  %v323_v29 = vld [vmem:[%s2058_s2 + $0xa8] sm:$0xff] (!%p202_p2)  ;;  %v1366_v31 = vpack.c.bf16 (!%p202_p2), %v375_v26, %v374_v25 }
   0xd   : > { %v1380_v24 = vpack.c.bf16 (!%p202_p2), %v305_v21, %v304_v20  ;;  %1379 = vmatprep.subr.bf16.mxu1 (!%p202_p2), %v1378_v19  ;;  %v306_v30 = vld [vmem:[%s2058_s2 + $0x20] sm:$0xff] (!%p202_p2)  ;;  %v1382_v32 = vpack.c.bf16 (!%p202_p2), %v323_v29, %v322_v27  ;;  %v307_v33 = vld [vmem:[%s2058_s2 + $0x28] sm:$0xff] (!%p202_p2)  ;;  %v324_v34 = vld [vmem:[%s2058_s2 + $0xb0] sm:$0xff] (!%p202_p2) }
   0xe   : > { %s2063_s27 = smov (!%p236_p3, %s1082_s27), 31  ;;  %1357 = vmatpush3.bf16.msra.mxu0 %v1354_v5  ;;  %v325_v35 = vld [vmem:[%s2058_s2 + $0xb8] sm:$0xff]  ;;  %v1384_v37 = vpack.c.bf16 %v307_v33, %v306_v30  ;;  %v308_v39 = vld [vmem:[%s2058_s2 + $0x30] sm:$0xff]  ;;  %v326_v41 = vld [vmem:[%s2058_s2 + $0xc0] sm:$0xff] }
   0xf   : > { %s1085_s17 = sshll.u32 %s2063_s27, 3  ;;  %1359 = vmatprep.subr.bf16.mxu0 %v1358_v12  ;;  %s1438_s23 = smul.u32 24, %s2063_s27  ;;  %v377_v36 = vld [vmem:[%s2060_s4 + $0x58] sm:$0xff]  ;;  %v1386_v38 = vpack.c.bf16 %v325_v35, %v324_v34  ;;  %v327_v42 = vld [vmem:[%s2058_s2 + $0xc8] sm:$0xff]  ;;  %v310_v46 = vld [vmem:[%s2058_s2 + $0x40] sm:$0xff] }
  0x10   : > { %s1578_s29 = scalar_lea.vmem %s2059_s3, %s1085_s17  ;;  %1381 = vmatpush3.bf16.msra.mxu1 %v1380_v24  ;;  %v309_v40 = vld [vmem:[%s2058_s2 + $0x38] sm:$0xff]  ;;  %v1370_v43 = vpack.c.bf16 %v377_v36, %v376_v28  ;;  %v1390_v45 = vpack.c.bf16 %v327_v42, %v326_v41  ;;  %v311_v47 = vld [vmem:[%s2058_s2 + $0x48] sm:$0xff]  ;;  %v328_v48 = vld [vmem:[%s2058_s2 + $0xd0] sm:$0xff]  ;;  %s1959_s16 = scalar_lea.vmem %s2061_s5, %s1085_s17 }
  0x11   : > { %v350_v22 = vld [vmem:[%s1578_s29] sm:$0xff]  ;;  %1383 = vmatprep.subr.bf16.mxu1 %v1382_v32  ;;  %s1634_s19 = scalar_lea.vmem %s2057_s1, %s1438_s23  ;;  %v1388_v44 = vpack.c.bf16 %v309_v40, %v308_v39  ;;  %v329_v49 = vld [vmem:[%s2058_s2 + $0xd8] sm:$0xff]  ;;  %v1392_v52 = vpack.c.bf16 %v311_v47, %v310_v46  ;;  %v312_v53 = vld [vmem:[%s2058_s2 + $0x50] sm:$0xff] }
  0x12   : > { %1270 = vmatprep.mubr.msk.f32.mxu0 %vm378_vm0, %v350_v22  ;;  %1361 = vmatpush3.bf16.msra.mxu0 %v1358_v12  ;;  %v255_v50 = vld [vmem:[%s1634_s19 + $0x8] sm:$0xff]  ;;  %v334_v51 = vld [vmem:[%s2058_s2 + $0x100] sm:$0xff]  ;;  %v1394_v55 = vpack.c.bf16 %v329_v49, %v328_v48  ;;  %v313_v56 = vld [vmem:[%s2058_s2 + $0x58] sm:$0xff] }
  0x13   : > { %1363 = vmatprep.subr.bf16.mxu0 %v1362_v23  ;;  %v335_v54 = vld [vmem:[%s2058_s2 + $0x108] sm:$0xff]  ;;  %767 = vmatprep.mubr.f32.mxu1 %v255_v50  ;;  %v336_v58 = vld [vmem:[%s2058_s2 + $0x110] sm:$0xff]  ;;  %v337_v59 = vld [vmem:[%s2058_s2 + $0x118] sm:$0xff]  ;;  %v1396_v0 = vpack.c.bf16 %v313_v56, %v312_v53 }
  0x14   : > { %1385 = vmatpush3.bf16.msra.mxu1 %v1384_v37  ;;  %v1406_v57 = vpack.c.bf16 %v335_v54, %v334_v51  ;;  %v330_v60 = vld [vmem:[%s2058_s2 + $0xe0] sm:$0xff]  ;;  %v331_v61 = vld [vmem:[%s2058_s2 + $0xe8] sm:$0xff]  ;;  %v352_v63 = vld [vmem:[%s1578_s29 + $0x10] sm:$0xff]  ;;  %v1410_v2 = vpack.c.bf16 %v337_v59, %v336_v58 }
  0x15   : > { %1387 = vmatprep.subr.bf16.mxu1 %v1386_v38  ;;  %v351_v62 = vld [vmem:[%s1578_s29 + $0x8] sm:$0xff]  ;;  %v314_v1 = vld [vmem:[%s2058_s2 + $0x60] sm:$0xff]  ;;  %v1398_v3 = vpack.c.bf16 %v331_v61, %v330_v60  ;;  %v332_v7 = vld [vmem:[%s2058_s2 + $0xf0] sm:$0xff] }
  0x16   : > { %1365 = vmatpush3.bf16.msra.mxu0 %v1362_v23  ;;  %v315_v4 = vld [vmem:[%s2058_s2 + $0x68] sm:$0xff]  ;;  %v338_v5 = vld [vmem:[%s2058_s2 + $0x120] sm:$0xff]  ;;  %v333_v8 = vld [vmem:[%s2058_s2 + $0xf8] sm:$0xff] }
  0x17   : > { %1367 = vmatprep.subr.bf16.mxu0 %v1366_v31  ;;  %v339_v6 = vld [vmem:[%s2058_s2 + $0x128] sm:$0xff]  ;;  %v353_v9 = vld [vmem:[%s1578_s29 + $0x18] sm:$0xff]  ;;  %v354_v10 = vld [vmem:[%s1578_s29 + $0x20] sm:$0xff]  ;;  %v1400_v11 = vpack.c.bf16 %v315_v4, %v314_v1  ;;  %v1402_v14 = vpack.c.bf16 %v333_v8, %v332_v7 }
  0x18   : > { %1389 = vmatpush3.bf16.msra.mxu1 %v1388_v44  ;;  %v316_v12 = vld [vmem:[%s2058_s2 + $0x70] sm:$0xff]  ;;  %v1414_v13 = vpack.c.bf16 %v339_v6, %v338_v5  ;;  %v317_v15 = vld [vmem:[%s2058_s2 + $0x78] sm:$0xff]  ;;  %v355_v18 = vld [vmem:[%s1578_s29 + $0x28] sm:$0xff] }
  0x19   : > { %1391 = vmatprep.subr.bf16.mxu1 %v1390_v45  ;;  %v340_v16 = vld [vmem:[%s2058_s2 + $0x130] sm:$0xff]  ;;  %v341_v17 = vld [vmem:[%s2058_s2 + $0x138] sm:$0xff]  ;;  %v1404_v20 = vpack.c.bf16 %v317_v15, %v316_v12  ;;  %v342_v22 = vld [vmem:[%s2058_s2 + $0x140] sm:$0xff] }
  0x1a   : > { %1369 = vmatpush3.bf16.msra.mxu0 %v1366_v31  ;;  %v356_v19 = vld [vmem:[%s1578_s29 + $0x30] sm:$0xff]  ;;  %v1418_v21 = vpack.c.bf16 %v341_v17, %v340_v16  ;;  %v343_v23 = vld [vmem:[%s2058_s2 + $0x148] sm:$0xff]  ;;  %v357_v24 = vld [vmem:[%s1578_s29 + $0x38] sm:$0xff] }
  0x1b   : > { %1371 = vmatprep.subr.bf16.mxu0 %v1370_v43  ;;  %v358_v25 = vld [vmem:[%s1578_s29 + $0x40] sm:$0xff]  ;;  %v1422_v28 = vpack.c.bf16 %v343_v23, %v342_v22  ;;  %v344_v29 = vld [vmem:[%s2058_s2 + $0x150] sm:$0xff]  ;;  %v345_v30 = vld [vmem:[%s2058_s2 + $0x158] sm:$0xff] }
  0x1c   : > { %1393 = vmatpush3.bf16.msra.mxu1 %v1392_v52  ;;  %v254_v26 = vld [vmem:[%s1634_s19] sm:$0xff]  ;;  %v359_v31 = vld [vmem:[%s1578_s29 + $0x48] sm:$0xff]  ;;  %v360_v32 = vld [vmem:[%s1578_s29 + $0x50] sm:$0xff]  ;;  %v1426_v35 = vpack.c.bf16 %v345_v30, %v344_v29 }
  0x1d   : > { %1395 = vmatprep.subr.bf16.mxu1 %v1394_v55  ;;  %v258_v27 = vld [vmem:[%s1634_s19 + $0x20] sm:$0xff]  ;;  %v257_v33 = vld [vmem:[%s1634_s19 + $0x18] sm:$0xff]  ;;  %v347_v37 = vld [vmem:[%s2058_s2 + $0x168] sm:$0xff] }
  0x1e   : > { %1373 = vmatpush3.bf16.msra.mxu0 %v1370_v43  ;;  %v261_v34 = vld [vmem:[%s1634_s19 + $0x38] sm:$0xff]  ;;  %v346_v36 = vld [vmem:[%s2058_s2 + $0x160] sm:$0xff]  ;;  %v260_v40 = vld [vmem:[%s1634_s19 + $0x30] sm:$0xff] }
  0x1f   : > { %1407 = vmatprep.subr.bf16.mxu0 %v1406_v57  ;;  %v361_v38 = vld [vmem:[%s1578_s29 + $0x58] sm:$0xff]  ;;  %v362_v39 = vld [vmem:[%s1578_s29 + $0x60] sm:$0xff]  ;;  %v264_v41 = vld [vmem:[%s1634_s19 + $0x50] sm:$0xff]  ;;  %v1430_v42 = vpack.c.bf16 %v347_v37, %v346_v36 }
  0x20   : > { %1397 = vmatpush3.bf16.msra.mxu1 %v1396_v0  ;;  %v348_v43 = vld [vmem:[%s2058_s2 + $0x170] sm:$0xff]  ;;  %v349_v44 = vld [vmem:[%s2058_s2 + $0x178] sm:$0xff]  ;;  %v363_v45 = vld [vmem:[%s1578_s29 + $0x68] sm:$0xff] }
  0x21   : > { %1271 = vmatmul.mubr.msk.f32.vlgmr.msra.gmra.mrb[0].mxu0 %vm378_vm0, %v351_v62  ;;  %1399 = vmatprep.subr.bf16.mxu1 %v1398_v3  ;;  %v364_v46 = vld [vmem:[%s1578_s29 + $0x70] sm:$0xff]  ;;  %v263_v47 = vld [vmem:[%s1634_s19 + $0x48] sm:$0xff]  ;;  %v1434_v49 = vpack.c.bf16 %v349_v44, %v348_v43  ;;  %v365_v50 = vld [vmem:[%s1578_s29 + $0x78] sm:$0xff]  ;;  %s685_s29 = sld [smem:[#allocation2]] }
  0x22   : > { %1273 = vmatprep.mubr.msk.f32.mxu0 %vm378_vm0, %v352_v63  ;;  %1409 = vmatpush3.bf16.msra.mxu0 %v1406_v57  ;;  %v267_v48 = vld [vmem:[%s1634_s19 + $0x68] sm:$0xff]  ;;  %v266_v51 = vld [vmem:[%s1634_s19 + $0x60] sm:$0xff]  ;;  %v256_v52 = vld [vmem:[%s1634_s19 + $0x10] sm:$0xff] }
  0x23   : > { %1411 = vmatprep.subr.bf16.mxu0 %v1410_v2  ;;  %v270_v53 = vld [vmem:[%s1634_s19 + $0x80] sm:$0xff]  ;;  %v269_v54 = vld [vmem:[%s1634_s19 + $0x78] sm:$0xff]  ;;  %v259_v55 = vld [vmem:[%s1634_s19 + $0x28] sm:$0xff] }
  0x24   : > { %1401 = vmatpush3.bf16.msra.mxu1 %v1400_v11  ;;  %v273_v56 = vld [vmem:[%s1634_s19 + $0x98] sm:$0xff]  ;;  %v262_v57 = vld [vmem:[%s1634_s19 + $0x40] sm:$0xff]  ;;  %v272_v58 = vld [vmem:[%s1634_s19 + $0x90] sm:$0xff] }
  0x25   : > { %1274 = vmatmul.mubr.msk.f32.gmra.mrb[2].mxu0 %vm378_vm0, %v353_v9  ;;  %1403 = vmatprep.subr.bf16.mxu1 %v1402_v14  ;;  %v265_v59 = vld [vmem:[%s1634_s19 + $0x58] sm:$0xff]  ;;  %v276_v60 = vld [vmem:[%s1634_s19 + $0xb0] sm:$0xff]  ;;  %v275_v62 = vld [vmem:[%s1634_s19 + $0xa8] sm:$0xff] }
  0x26   : > { %1276 = vmatprep.mubr.msk.f32.mxu0 %vm378_vm0, %v354_v10  ;;  %1413 = vmatpush3.bf16.msra.mxu0 %v1410_v2  ;;  %v268_v61 = vld [vmem:[%s1634_s19 + $0x70] sm:$0xff]  ;;  %v271_v63 = vld [vmem:[%s1634_s19 + $0x88] sm:$0xff]  ;;  %v274_v1 = vld [vmem:[%s1634_s19 + $0xa0] sm:$0xff] }
  0x27   : > { %1415 = vmatprep.subr.bf16.mxu0 %v1414_v13  ;;  %v279_v0 = vld [vmem:[%s1634_s19 + $0xc8] sm:$0xff]  ;;  %v278_v2 = vld [vmem:[%s1634_s19 + $0xc0] sm:$0xff]  ;;  %v277_v3 = vld [vmem:[%s1634_s19 + $0xb8] sm:$0xff] }
  0x28   : > { %1405 = vmatpush3.bf16.msra.mxu1 %v1404_v20  ;;  %v282_v4 = vld [vmem:[%s1634_s19 + $0xe0] sm:$0xff]  ;;  %v280_v5 = vld [vmem:[%s1634_s19 + $0xd0] sm:$0xff]  ;;  %v281_v6 = vld [vmem:[%s1634_s19 + $0xd8] sm:$0xff] }
  0x29   : > { %1277 = vmatmul.mubr.msk.f32.gmra.mrb[4].mxu0 %vm378_vm0, %v355_v18  ;;  %v283_v7 = vld [vmem:[%s1634_s19 + $0xe8] sm:$0xff]  ;;  %v285_v8 = vld [vmem:[%s1634_s19 + $0xf8] sm:$0xff]  ;;  %v286_v9 = vld [vmem:[%s1634_s19 + $0x100] sm:$0xff] }
  0x2a   : > { %1279 = vmatprep.mubr.msk.f32.mxu0 %vm378_vm0, %v356_v19  ;;  %1417 = vmatpush3.bf16.msra.mxu0 %v1414_v13  ;;  %v284_v10 = vld [vmem:[%s1634_s19 + $0xf0] sm:$0xff]  ;;  %v289_v11 = vld [vmem:[%s1634_s19 + $0x118] sm:$0xff]  ;;  %v287_v14 = vld [vmem:[%s1634_s19 + $0x108] sm:$0xff] }
  0x2b   : > { %1419 = vmatprep.subr.bf16.mxu0 %v1418_v21  ;;  %768 = vmatmul.mubr.f32.vlgmr.msra.gmra.mrb[0].mxu1 %v254_v26  ;;  %v288_v12 = vld [vmem:[%s1634_s19 + $0x110] sm:$0xff]  ;;  %v295_v15 = vld [vmem:[%s1634_s19 + $0x148] sm:$0xff]  ;;  %v298_v17 = vld [vmem:[%s1634_s19 + $0x160] sm:$0xff] }
  0x2c   : > { %772 = vmatprep.mubr.f32.mxu1 %v258_v27  ;;  %v292_v13 = vld [vmem:[%s1634_s19 + $0x130] sm:$0xff]  ;;  %v291_v16 = vld [vmem:[%s1634_s19 + $0x128] sm:$0xff]  ;;  %v290_v18 = vld [vmem:[%s1634_s19 + $0x120] sm:$0xff] }
  0x2d   : > { %1280 = vmatmul.mubr.msk.f32.gmra.mrb[6].mxu0 %vm378_vm0, %v357_v24  ;;  %v301_v19 = vld [vmem:[%s1634_s19 + $0x178] sm:$0xff]  ;;  %v294_v20 = vld [vmem:[%s1634_s19 + $0x140] sm:$0xff]  ;;  %v296_v23 = vld [vmem:[%s1634_s19 + $0x150] sm:$0xff] }
  0x2e   : > { %1282 = vmatprep.mubr.msk.f32.mxu0 %vm378_vm0, %v358_v25  ;;  %1421 = vmatpush3.bf16.msra.mxu0 %v1418_v21  ;;  %v293_v21 = vld [vmem:[%s1634_s19 + $0x138] sm:$0xff]  ;;  %v300_v24 = vld [vmem:[%s1634_s19 + $0x170] sm:$0xff]  ;;  %v299_v25 = vld [vmem:[%s1634_s19 + $0x168] sm:$0xff] }
  0x2f   : > { %1423 = vmatprep.subr.bf16.mxu0 %v1422_v28  ;;  %773 = vmatmul.mubr.f32.gmra.mrb[2].mxu1 %v257_v33  ;;  %v297_v22 = vld [vmem:[%s1634_s19 + $0x158] sm:$0xff] }
  0x30   : > { %777 = vmatprep.mubr.f32.mxu1 %v261_v34 }
  0x31   : > { %1283 = vmatmul.mubr.msk.f32.gmra.mrb[8].mxu0 %vm378_vm0, %v359_v31 }
  0x32   : > { %1285 = vmatprep.mubr.msk.f32.mxu0 %vm378_vm0, %v360_v32  ;;  %1425 = vmatpush3.bf16.msra.mxu0 %v1422_v28 }
  0x33   : > { %1427 = vmatprep.subr.bf16.mxu0 %v1426_v35  ;;  %778 = vmatmul.mubr.f32.gmra.mrb[4].mxu1 %v260_v40 }
  0x34   : > { %782 = vmatprep.mubr.f32.mxu1 %v264_v41 }
  0x35   : > { %1286 = vmatmul.mubr.msk.f32.gmra.mrb[10].mxu0 %vm378_vm0, %v361_v38 }
  0x36   : > { %1288 = vmatprep.mubr.msk.f32.mxu0 %vm378_vm0, %v362_v39  ;;  %1429 = vmatpush3.bf16.msra.mxu0 %v1426_v35 }
  0x37   : > { %1431 = vmatprep.subr.bf16.mxu0 %v1430_v42  ;;  %783 = vmatmul.mubr.f32.gmra.mrb[6].mxu1 %v263_v47 }
  0x38   : > { %787 = vmatprep.mubr.f32.mxu1 %v267_v48 }
  0x39   : > { %1289 = vmatmul.mubr.msk.f32.gmra.mrb[12].mxu0 %vm378_vm0, %v363_v45 }
  0x3a   : > { %1291 = vmatprep.mubr.msk.f32.mxu0 %vm378_vm0, %v364_v46  ;;  %1433 = vmatpush3.bf16.msra.mxu0 %v1430_v42 }
  0x3b   : > { %1435 = vmatprep.subr.bf16.mxu0 %v1434_v49  ;;  %788 = vmatmul.mubr.f32.gmra.mrb[8].mxu1 %v266_v51 }
  0x3c   : > { %792 = vmatprep.mubr.f32.mxu1 %v270_v53 }
  0x3d   : > { %1292 = vmatmul.mubr.msk.f32.gmra.mrb[14].mxu0 %vm378_vm0, %v365_v50 }
  0x3e   : > { %1326 = vmatprep.mubr.f32.mxu0 %v256_v52  ;;  %1437 = vmatpush3.bf16.msra.mxu0 %v1434_v49 }
  0x3f   : > { %793 = vmatmul.mubr.f32.gmra.mrb[10].mxu1 %v269_v54 }
  0x40   : > { %797 = vmatprep.mubr.f32.mxu1 %v273_v56 }
  0x41   : > { %1327 = vmatmul.mubr.f32.vlgmr.msra.gmra.mrb[16].mxu0 %v259_v55 }
  0x42   : > { %1329 = vmatprep.mubr.f32.mxu0 %v262_v57 }
  0x43   : > { %798 = vmatmul.mubr.f32.gmra.mrb[12].mxu1 %v272_v58 }
  0x44   : > { %802 = vmatprep.mubr.f32.mxu1 %v276_v60 }
  0x45   : > { %1330 = vmatmul.mubr.f32.gmra.mrb[18].mxu0 %v265_v59 }
  0x46   : > { %1332 = vmatprep.mubr.f32.mxu0 %v268_v61 }
  0x47   : > { %803 = vmatmul.mubr.f32.gmra.mrb[14].mxu1 %v275_v62 }
  0x48   : > { %807 = vmatprep.mubr.f32.mxu1 %v279_v0 }
  0x49   : > { %1333 = vmatmul.mubr.f32.gmra.mrb[20].mxu0 %v271_v63 }
  0x4a   : > { %1335 = vmatprep.mubr.f32.mxu0 %v274_v1 }
  0x4b   : > { %808 = vmatmul.mubr.f32.gmra.mrb[16].mxu1 %v278_v2 }
  0x4c   : > { %812 = vmatprep.mubr.f32.mxu1 %v282_v4 }
  0x4d   : > { %1336 = vmatmul.mubr.f32.gmra.mrb[22].mxu0 %v277_v3 }
  0x4e   : > { %1338 = vmatprep.mubr.f32.mxu0 %v280_v5 }
  0x4f   : > { %813 = vmatmul.mubr.f32.gmra.mrb[18].mxu1 %v281_v6 }
  0x50   : > { %817 = vmatprep.mubr.f32.mxu1 %v285_v8 }
  0x51   : > { %1339 = vmatmul.mubr.f32.gmra.mrb[24].mxu0 %v283_v7 }
  0x52   : > { %1341 = vmatprep.mubr.f32.mxu0 %v286_v9 }
  0x53   : > { %818 = vmatmul.mubr.f32.gmra.mrb[20].mxu1 %v284_v10 }
  0x54   : > { %822 = vmatprep.mubr.f32.mxu1 %v288_v12 }
  0x55   : > { %1342 = vmatmul.mubr.f32.gmra.mrb[26].mxu0 %v289_v11 }
  0x56   : > { %1344 = vmatprep.mubr.f32.mxu0 %v292_v13 }
  0x57   : > { %823 = vmatmul.mubr.f32.gmra.mrb[22].mxu1 %v287_v14 }
  0x58   : > { %827 = vmatprep.mubr.f32.mxu1 %v291_v16 }
  0x59   : > { %1345 = vmatmul.mubr.f32.gmra.mrb[28].mxu0 %v295_v15 }
  0x5a   : > { %1347 = vmatprep.mubr.f32.mxu0 %v298_v17 }
  0x5b   : > { %828 = vmatmul.mubr.f32.gmra.mrb[24].mxu1 %v290_v18 }
  0x5c   : > { %832 = vmatprep.mubr.f32.mxu1 %v294_v20 }
  0x5d   : > { %1348 = vmatmul.mubr.f32.gmra.mrb[30].mxu0 %v301_v19 }
  0x5f   : > { %833 = vmatmul.mubr.f32.gmra.mrb[26].mxu1 %v293_v21 }
  0x60   : > { %837 = vmatprep.mubr.f32.mxu1 %v297_v22 }
  0x63   : > { %838 = vmatmul.mubr.f32.gmra.mrb[28].mxu1 %v296_v23 }
  0x64   : > { %842 = vmatprep.mubr.f32.mxu1 %v300_v24 }
  0x67   : > { %843 = vmatmul.mubr.f32.gmra.mrb[30].mxu1 %v299_v25 }
  0xf4   : > { %v1804_v26 = vpop.f32.mrb[0].mxu0 }
  0xf5   : > { %v1806_v27 = vpop.f32.mrb[1].mxu0  ;;  %v573_v28 = vmul.f32 %v1804_v26, %v1804_v26 }
  0xf6   : > { %v572_v29 = vmul.f32 %v1806_v27, %v1806_v27 }
  0xf7   : > { %v592_v30 = vsel %vm588_vm1, %v573_v28, 0.0 }
  0xf8   : > { %593 = vadd.xlane.f32.xlu0 %v592_v30  ;;  %v1813_v31 = vpop.f32.mrb[2].mxu0  ;;  %v589_v35 = vsel %vm588_vm1, %v572_v29, 0.0 }
  0xf9   : > { %v1815_v32 = vpop.f32.mrb[3].mxu0  ;;  %v575_v33 = vmul.f32 %v1813_v31, %v1813_v31 }
  0xfa   : > { %v574_v34 = vmul.f32 %v1815_v32, %v1815_v32 }
  0xfb   : > { %v598_v36 = vsel %vm588_vm1, %v575_v33, 0.0 }
  0xfc   : > { %590 = vadd.xlane.f32.xlu0 %v589_v35  ;;  %599 = vadd.xlane.f32.xlu1 %v598_v36  ;;  %v1823_v37 = vpop.f32.mrb[4].mxu0  ;;  %v595_v41 = vsel %vm588_vm1, %v574_v34, 0.0 }
  0xfd   : > { %v577_v38 = vmul.f32 %v1823_v37, %v1823_v37  ;;  %v1827_v39 = vpop.f32.mrb[5].mxu0 }
  0xfe   : > { %v576_v40 = vmul.f32 %v1827_v39, %v1827_v39  ;;  %v1166_v47 = vpop.f32.mrb[0].mxu1 }
  0xff   : > { %v604_v46 = vsel %vm588_vm1, %v577_v38, 0.0  ;;  %v1167_v49 = vpop.f32.mrb[1].mxu1 }
 0x100   : > { %596 = vadd.xlane.f32.xlu1 %v595_v41  ;;  %v1832_v42 = vpop.f32.mrb[6].mxu0  ;;  %v601_v43 = vsel %vm588_vm1, %v576_v40, 0.0  ;;  %v1842_v50 = vadd.f32 %v1167_v49, %v1166_v47 }
 0x101   : > { %v579_v44 = vmul.f32 %v1832_v42, %v1832_v42  ;;  %602 = vadd.xlane.f32.xlu0 %v601_v43  ;;  %v1837_v45 = vpop.f32.mrb[7].mxu0 }
 0x102   : > { %v578_v48 = vmul.f32 %v1837_v45, %v1837_v45  ;;  %v1169_v56 = vpop.f32.mrb[2].mxu1 }
 0x103   : > { %v610_v55 = vsel %vm588_vm1, %v579_v44, 0.0  ;;  %v1170_v58 = vpop.f32.mrb[3].mxu1 }
 0x104   : > { %605 = vadd.xlane.f32.xlu1 %v604_v46  ;;  %v1844_v51 = vpop.f32.mrb[8].mxu0  ;;  %v607_v52 = vsel %vm588_vm1, %v578_v48, 0.0  ;;  %v1854_v59 = vadd.f32 %v1170_v58, %v1169_v56 }
 0x105   : > { %v581_v53 = vmul.f32 %v1844_v51, %v1844_v51  ;;  %608 = vadd.xlane.f32.xlu0 %v607_v52  ;;  %v1849_v54 = vpop.f32.mrb[9].mxu0 }
 0x106   : > { %v580_v57 = vmul.f32 %v1849_v54, %v1849_v54  ;;  %v1172_v1 = vpop.f32.mrb[4].mxu1 }
 0x107   : > { %v616_v0 = vsel %vm588_vm1, %v581_v53, 0.0  ;;  %v1173_v3 = vpop.f32.mrb[5].mxu1 }
 0x108   : > { %611 = vadd.xlane.f32.xlu1 %v610_v55  ;;  %v1856_v60 = vpop.f32.mrb[10].mxu0  ;;  %v613_v61 = vsel %vm588_vm1, %v580_v57, 0.0  ;;  %v1866_v4 = vadd.f32 %v1173_v3, %v1172_v1 }
 0x109   : > { %v583_v62 = vmul.f32 %v1856_v60, %v1856_v60  ;;  %614 = vadd.xlane.f32.xlu0 %v613_v61  ;;  %v1861_v63 = vpop.f32.mrb[11].mxu0 }
 0x10a   : > { %v582_v2 = vmul.f32 %v1861_v63, %v1861_v63  ;;  %v1175_v10 = vpop.f32.mrb[6].mxu1 }
 0x10b   : > { %v622_v9 = vsel %vm588_vm1, %v583_v62, 0.0  ;;  %v1176_v12 = vpop.f32.mrb[7].mxu1 }
 0x10c   : > { %617 = vadd.xlane.f32.xlu1 %v616_v0  ;;  %v1868_v5 = vpop.f32.mrb[12].mxu0  ;;  %v619_v6 = vsel %vm588_vm1, %v582_v2, 0.0  ;;  %v1878_v13 = vadd.f32 %v1176_v12, %v1175_v10 }
 0x10d   : > { %v585_v7 = vmul.f32 %v1868_v5, %v1868_v5  ;;  %620 = vadd.xlane.f32.xlu0 %v619_v6  ;;  %v1873_v8 = vpop.f32.mrb[13].mxu0 }
 0x10e   : > { %v584_v11 = vmul.f32 %v1873_v8, %v1873_v8  ;;  %v1178_v19 = vpop.f32.mrb[8].mxu1 }
 0x10f   : > { %v628_v18 = vsel %vm588_vm1, %v585_v7, 0.0  ;;  %v1179_v21 = vpop.f32.mrb[9].mxu1 }
 0x110   : > { %623 = vadd.xlane.f32.xlu1 %v622_v9  ;;  %v1880_v14 = vpop.f32.mrb[14].mxu0  ;;  %v625_v15 = vsel %vm588_vm1, %v584_v11, 0.0  ;;  %v1890_v22 = vadd.f32 %v1179_v21, %v1178_v19 }
 0x111   : > { %v587_v16 = vmul.f32 %v1880_v14, %v1880_v14  ;;  %626 = vadd.xlane.f32.xlu0 %v625_v15  ;;  %v1885_v17 = vpop.f32.mrb[15].mxu0 }
 0x112   : > { %v586_v20 = vmul.f32 %v1885_v17, %v1885_v17  ;;  %v1181_v25 = vpop.f32.mrb[10].mxu1 }
 0x113   : > { %v634_v24 = vsel %vm588_vm1, %v587_v16, 0.0  ;;  %v1182_v28 = vpop.f32.mrb[11].mxu1 }
 0x114   : > { %629 = vadd.xlane.f32.xlu1 %v628_v18  ;;  %v631_v23 = vsel %vm588_vm1, %v586_v20, 0.0  ;;  %v1894_v29 = vadd.f32 %v1182_v28, %v1181_v25  ;;  %v1896_v33 = vpop.f32.mrb[16].mxu0 }
 0x115   : > { %632 = vadd.xlane.f32.xlu0 %v631_v23  ;;  %v1900_v36 = vpop.f32.mrb[17].mxu0 }
 0x116   : > { %v1184_v30 = vpop.f32.mrb[12].mxu1 }
 0x117   : > { %v1185_v34 = vpop.f32.mrb[13].mxu1 }
 0x118   : > { %635 = vadd.xlane.f32.xlu1 %v634_v24  ;;  %v1898_v35 = vadd.f32 %v1185_v34, %v1184_v30  ;;  %v1902_v40 = vpop.f32.mrb[18].mxu0 }
 0x119   : > { %v1906_v44 = vpop.f32.mrb[19].mxu0 }
 0x11a   : > { %v1187_v38 = vpop.f32.mrb[14].mxu1 }
 0x11b   : > { %v1188_v41 = vpop.f32.mrb[15].mxu1 }
 0x11c   : > { %v1904_v43 = vadd.f32 %v1188_v41, %v1187_v38  ;;  %v1908_v47 = vpop.f32.mrb[20].mxu0 }
 0x11d   : > { %v1910_v49 = vpop.f32.mrb[21].mxu0 }
 0x11e   : > { %v1190_v46 = vpop.f32.mrb[16].mxu1 }
 0x11f   : > { %v1191_v48 = vpop.f32.mrb[17].mxu1 }
 0x120   : > { %v1912_v52 = vadd.f32 %v1191_v48, %v1190_v46  ;;  %v1914_v55 = vpop.f32.mrb[22].mxu0 }
 0x121   : > { %v1916_v57 = vpop.f32.mrb[23].mxu0 }
 0x122   : > { %v1193_v53 = vpop.f32.mrb[18].mxu1 }
 0x123   : > { %v1194_v56 = vpop.f32.mrb[19].mxu1 }
 0x124   : > { %v1918_v58 = vadd.f32 %v1194_v56, %v1193_v53  ;;  %v1920_v62 = vpop.f32.mrb[24].mxu0 }
 0x125   : > { %v1922_v1 = vpop.f32.mrb[25].mxu0 }
 0x126   : > { %v1196_v61 = vpop.f32.mrb[20].mxu1 }
 0x127   : > { %v1197_v0 = vpop.f32.mrb[21].mxu1 }
 0x128   : > { %v1924_v2 = vadd.f32 %v1197_v0, %v1196_v61  ;;  %v1926_v6 = vpop.f32.mrb[26].mxu0 }
 0x129   : > { %v1928_v9 = vpop.f32.mrb[27].mxu0 }
 0x12a   : > { %v1199_v3 = vpop.f32.mrb[22].mxu1 }
 0x12b   : > { %v1200_v7 = vpop.f32.mrb[23].mxu1 }
 0x12c   : > { %v1930_v10 = vadd.f32 %v1200_v7, %v1199_v3  ;;  %v1932_v12 = vpop.f32.mrb[28].mxu0 }
 0x12d   : > { %v1934_v16 = vpop.f32.mrb[29].mxu0 }
 0x12e   : > { %v1202_v11 = vpop.f32.mrb[24].mxu1 }
 0x12f   : > { %v1203_v15 = vpop.f32.mrb[25].mxu1 }
 0x130   : > { %v1936_v18 = vadd.f32 %v1203_v15, %v1202_v11  ;;  %v1938_v20 = vpop.f32.mrb[30].mxu0 }
 0x131   : > { %v1940_v23 = vpop.f32.mrb[31].mxu0 }
 0x132   : > { %v1205_v19 = vpop.f32.mrb[26].mxu1 }
 0x133   : > { %v1206_v21 = vpop.f32.mrb[27].mxu1 }
 0x134   : > { %v1942_v24 = vadd.f32 %v1206_v21, %v1205_v19 }
 0x136   : > { %v1208_v25 = vpop.f32.mrb[28].mxu1 }
 0x137   : > { %v1209_v28 = vpop.f32.mrb[29].mxu1 }
 0x138   : > { %v1944_v30 = vadd.f32 %v1209_v28, %v1208_v25 }
 0x13a   : > { %v1211_v34 = vpop.f32.mrb[30].mxu1 }
 0x13b   : > { %v1212_v38 = vpop.f32.mrb[31].mxu1 }
 0x13c   : > { %v1946_v41 = vadd.f32 %v1212_v38, %v1211_v34  ;;  %v1948_v34 = vstv %s685_s29 }
 0x185   : > { %v594_v46 = vpop.xlane.xlu0 %593 }
 0x186   : > { %v638_v48 = vadd.f32 1e-32, %v594_v46 }
 0x188   : > { %1447 = vrsqrt.f32 %v638_v48 }
 0x189   : > { %v591_v53 = vpop.xlane.xlu0 %590  ;;  %v600_v56 = vpop.xlane.xlu1 %599 }
 0x18a   : > { %v637_v61 = vadd.f32 1e-32, %v591_v53  ;;  %v640_v0 = vadd.f32 1e-32, %v600_v56 }
 0x18c   : > { %1449 = vrsqrt.f32 %v637_v61 }
 0x18d   : > { %1451 = vrsqrt.f32 %v640_v0  ;;  %v597_v3 = vpop.xlane.xlu1 %596 }
 0x18e   : > { %v639_v7 = vadd.f32 1e-32, %v597_v3  ;;  %v603_v11 = vpop.xlane.xlu0 %602 }
 0x18f   : > { %v641_v15 = vadd.f32 1e-32, %v603_v11 }
 0x190   : > { %1453 = vrsqrt.f32 %v639_v7 }
 0x191   : > { %1455 = vrsqrt.f32 %v641_v15  ;;  %v606_v19 = vpop.xlane.xlu1 %605 }
 0x192   : > { %v1448_v21 = vpop.eup %1447  ;;  %v642_v25 = vadd.f32 1e-32, %v606_v19  ;;  %v609_v28 = vpop.xlane.xlu0 %608 }
 0x193   : > { %v643_v38 = vadd.f32 1e-32, %v609_v28  ;;  %v670_v46 = vmul.f32 %v1448_v21, %v1804_v26 }
 0x194   : > { %1457 = vrsqrt.f32 %v642_v25 }
 0x195   : > { %1459 = vrsqrt.f32 %v643_v38  ;;  %v612_v48 = vpop.xlane.xlu1 %611  ;;  %v688_v53 = vmul.f32 %v1948_v34, %v670_v46 }
 0x196   : > { %v1450_v56 = vpop.eup %1449  ;;  %v644_v61 = vadd.f32 1e-32, %v612_v48  ;;  %v615_v0 = vpop.xlane.xlu0 %614 }
 0x197   : > { %v1452_v3 = vpop.eup %1451  ;;  %v645_v7 = vadd.f32 1e-32, %v615_v0  ;;  %v775_v11 = vadd.f32 %v1854_v59, %v688_v53  ;;  %v669_v15 = vmul.f32 %v1450_v56, %v1806_v27 }
 0x198   : > { %1461 = vrsqrt.f32 %v644_v61  ;;  %v672_v26 = vmul.f32 %v1452_v3, %v1813_v31 }
 0x199   : > { %1463 = vrsqrt.f32 %v645_v7  ;;  %v920_v19 = vadd.f32 %v1896_v33, %v775_v11  ;;  %v618_v21 = vpop.xlane.xlu1 %617  ;;  %v687_v25 = vmul.f32 %v1948_v34, %v669_v15 }
 0x19a   : > { %v1454_v28 = vpop.eup %1453  ;;  %v646_v59 = vadd.f32 1e-32, %v618_v21  ;;  %v621_v38 = vpop.xlane.xlu0 %620  ;;  %v690_v27 = vmul.f32 %v1948_v34, %v672_v26 }
 0x19b   : > { %v1456_v46 = vpop.eup %1455  ;;  %994 = vst.msk [vmem:[%s1959_s16 + $0x8] sm:$0xff] %vm588_vm1, %v920_v19  ;;  %v647_v48 = vadd.f32 1e-32, %v621_v38  ;;  %v770_v53 = vadd.f32 %v1842_v50, %v687_v25  ;;  %v671_v31 = vmul.f32 %v1454_v28, %v1815_v32 }
 0x19c   : > { %1465 = vrsqrt.f32 %v646_v59  ;;  %v785_v33 = vadd.f32 %v1878_v13, %v690_v27  ;;  %v673_v56 = vmul.f32 %v1456_v46, %v1827_v39 }
 0x19d   : > { %1467 = vrsqrt.f32 %v647_v48  ;;  %v915_v61 = vadd.f32 %v1900_v36, %v770_v53  ;;  %v624_v0 = vpop.xlane.xlu1 %623  ;;  %v689_v3 = vmul.f32 %v1948_v34, %v671_v31 }
 0x19e   : > { %v1458_v7 = vpop.eup %1457  ;;  %v930_v11 = vadd.f32 %v1902_v40, %v785_v33  ;;  %v648_v15 = vadd.f32 1e-32, %v624_v0  ;;  %v627_v26 = vpop.xlane.xlu0 %626  ;;  %v691_v50 = vmul.f32 %v1948_v34, %v673_v56 }
 0x19f   : > { %v1460_v32 = vpop.eup %1459  ;;  %993 = vst.msk [vmem:[%s1959_s16] sm:$0xff] %vm588_vm1, %v915_v61  ;;  %v649_v13 = vadd.f32 1e-32, %v627_v26  ;;  %v780_v19 = vadd.f32 %v1866_v4, %v689_v3  ;;  %v674_v39 = vmul.f32 %v1458_v7, %v1823_v37 }
 0x1a0   : > { %996 = vst.msk [vmem:[%s1959_s16 + $0x18] sm:$0xff] %vm588_vm1, %v930_v11  ;;  %1469 = vrsqrt.f32 %v648_v15  ;;  %v790_v36 = vadd.f32 %v1890_v22, %v691_v50  ;;  %v675_v40 = vmul.f32 %v1460_v32, %v1837_v45 }
 0x1a1   : > { %1471 = vrsqrt.f32 %v649_v13  ;;  %v925_v21 = vadd.f32 %v1906_v44, %v780_v19  ;;  %v692_v25 = vmul.f32 %v1948_v34, %v674_v39  ;;  %v630_v28 = vpop.xlane.xlu1 %629 }
 0x1a2   : > { %v1462_v59 = vpop.eup %1461  ;;  %v650_v38 = vadd.f32 1e-32, %v630_v28  ;;  %v935_v4 = vadd.f32 %v1910_v49, %v790_v36  ;;  %v633_v27 = vpop.xlane.xlu0 %632  ;;  %v693_v37 = vmul.f32 %v1948_v34, %v675_v40 }
 0x1a3   : > { %v1464_v46 = vpop.eup %1463  ;;  %995 = vst.msk [vmem:[%s1959_s16 + $0x10] sm:$0xff] %vm588_vm1, %v925_v21  ;;  %v795_v22 = vadd.f32 %v1894_v29, %v692_v25  ;;  %v651_v45 = vadd.f32 1e-32, %v633_v27  ;;  %v676_v48 = vmul.f32 %v1462_v59, %v1832_v42 }
 0x1a4   : > { %1473 = vrsqrt.f32 %v650_v38  ;;  %997 = vst.msk [vmem:[%s1959_s16 + $0x20] sm:$0xff] %vm588_vm1, %v935_v4  ;;  %v800_v44 = vadd.f32 %v1898_v35, %v693_v37  ;;  %v677_v49 = vmul.f32 %v1464_v46, %v1849_v54 }
 0x1a5   : > { %v940_v53 = vadd.f32 %v1908_v47, %v795_v22  ;;  %1475 = vrsqrt.f32 %v651_v45  ;;  %v694_v31 = vmul.f32 %v1948_v34, %v676_v48  ;;  %v636_v33 = vpop.xlane.xlu1 %635 }
 0x1a6   : > { %v1466_v56 = vpop.eup %1465  ;;  %v652_v29 = vadd.f32 1e-32, %v636_v33  ;;  %v945_v61 = vadd.f32 %v1916_v57, %v800_v44  ;;  %v695_v42 = vmul.f32 %v1948_v34, %v677_v49 }
 0x1a7   : > { %v1468_v0 = vpop.eup %1467  ;;  %998 = vst.msk [vmem:[%s1959_s16 + $0x28] sm:$0xff] %vm588_vm1, %v940_v53  ;;  %v805_v35 = vadd.f32 %v1904_v43, %v694_v31  ;;  %v678_v54 = vmul.f32 %v1466_v56, %v1844_v51 }
 0x1a8   : > { %1477 = vrsqrt.f32 %v652_v29  ;;  %999 = vst.msk [vmem:[%s1959_s16 + $0x30] sm:$0xff] %vm588_vm1, %v945_v61  ;;  %v810_v47 = vadd.f32 %v1912_v52, %v695_v42  ;;  %v679_v3 = vmul.f32 %v1468_v0, %v1861_v63 }
 0x1a9   : > { %v950_v57 = vadd.f32 %v1914_v55, %v805_v35  ;;  %v696_v7 = vmul.f32 %v1948_v34, %v678_v54 }
 0x1aa   : > { %v1470_v11 = vpop.eup %1469  ;;  %v955_v15 = vadd.f32 %v1922_v1, %v810_v47  ;;  %v697_v26 = vmul.f32 %v1948_v34, %v679_v3 }
 0x1ab   : > { %v1472_v43 = vpop.eup %1471  ;;  %1000 = vst.msk [vmem:[%s1959_s16 + $0x38] sm:$0xff] %vm588_vm1, %v950_v57  ;;  %v815_v51 = vadd.f32 %v1918_v58, %v696_v7  ;;  %v680_v52 = vmul.f32 %v1470_v11, %v1856_v60 }
 0x1ac   : > { %1001 = vst.msk [vmem:[%s1959_s16 + $0x40] sm:$0xff] %vm588_vm1, %v955_v15  ;;  %v820_v63 = vadd.f32 %v1924_v2, %v697_v26  ;;  %v681_v55 = vmul.f32 %v1472_v43, %v1873_v8 }
 0x1ad   : > { %v960_v50 = vadd.f32 %v1920_v62, %v815_v51  ;;  %v698_v1 = vmul.f32 %v1948_v34, %v680_v52 }
 0x1ae   : > { %v1474_v32 = vpop.eup %1473  ;;  %v965_v13 = vadd.f32 %v1928_v9, %v820_v63  ;;  %v699_v19 = vmul.f32 %v1948_v34, %v681_v55 }
 0x1af   : > { %v1476_v58 = vpop.eup %1475  ;;  %1002 = vst.msk [vmem:[%s1959_s16 + $0x48] sm:$0xff] %vm588_vm1, %v960_v50  ;;  %v825_v60 = vadd.f32 %v1930_v10, %v698_v1  ;;  %v682_v2 = vmul.f32 %v1474_v32, %v1868_v5 }
 0x1b0   : > { %1003 = vst.msk [vmem:[%s1959_s16 + $0x50] sm:$0xff] %vm588_vm1, %v965_v13  ;;  %v830_v8 = vadd.f32 %v1936_v18, %v699_v19  ;;  %v683_v62 = vmul.f32 %v1476_v58, %v1885_v17 }
 0x1b1   : > { %v970_v9 = vadd.f32 %v1926_v6, %v825_v60  ;;  %v700_v39 = vmul.f32 %v1948_v34, %v682_v2 }
 0x1b2   : > { %v1478_v36 = vpop.eup %1477  ;;  %v975_v40 = vadd.f32 %v1934_v16, %v830_v8  ;;  %v701_v10 = vmul.f32 %v1948_v34, %v683_v62 }
 0x1b3   : > { %1004 = vst.msk [vmem:[%s1959_s16 + $0x58] sm:$0xff] %vm588_vm1, %v970_v9  ;;  %v835_v5 = vadd.f32 %v1942_v24, %v700_v39  ;;  %v684_v21 = vmul.f32 %v1478_v36, %v1880_v14 }
 0x1b4   : > { %1005 = vst.msk [vmem:[%s1959_s16 + $0x60] sm:$0xff] %vm588_vm1, %v975_v40  ;;  %v840_v17 = vadd.f32 %v1944_v30, %v701_v10 }
 0x1b5   : > { %v980_v6 = vadd.f32 %v1932_v12, %v835_v5  ;;  %v702_v18 = vmul.f32 %v1948_v34, %v684_v21 }
 0x1b6   : > { %v985_v25 = vadd.f32 %v1940_v23, %v840_v17 }
 0x1b7   : > { %1006 = vst.msk [vmem:[%s1959_s16 + $0x68] sm:$0xff] %vm588_vm1, %v980_v6  ;;  %v845_v16 = vadd.f32 %v1946_v41, %v702_v18 }
 0x1b8   : > { %1007 = vst.msk [vmem:[%s1959_s16 + $0x70] sm:$0xff] %vm588_vm1, %v985_v25 }
 0x1b9   : > { %v990_v24 = vadd.f32 %v1938_v20, %v845_v16 }
 0x1bb   : > { %1008 = vst.msk [vmem:[%s1959_s16 + $0x78] sm:$0xff] %vm588_vm1, %v990_v24 }
 0x1bc PF: > { %s16_s20 = sadd.s32 1, %s1485_s20  }
 0x1bd   : > { %p13_p4 = scmp.ge.s32.totalorder %s16_s20, 4  }
 0x1bf   :  { %15 = sbr.rel (!%p13_p4) target bundleno = 2 (0x2), region = 73 }

// kernel: recon_all_forward.11
= control target key start
LH: loop header
LB: loop body
LE: loop exit
PB: predicated region body
PF: predicated region fallthrough
CT: control target
= control target key end

     0   :  { %8 = vsyncpa [#allocation3], 0  ;;  %s1316_s0 = inlined_call_operand.vmem [shape: f32[2], index: 0, kind: input, shape index: {}]   ;;  %s1317_s1 = inlined_call_operand.vmem [shape: f32[256,96], index: 1, kind: input, shape index: {}]   ;;  %s1318_s2 = inlined_call_operand.vmem [shape: f32[256,64], index: 2, kind: input, shape index: {}]   ;;  %s1319_s3 = inlined_call_operand.vmem [shape: f32[96,32], index: 3, kind: output, shape index: {}]  }
   0x1   :  { %s15_s14 = sshll.u32 %s1316_s0, 4  ;;  %s16_s14 = int_to_ptr.vmem [resolvable:$true] %s15_s14 }
   0x2   :  { %s849_s15 = scalar_lea.vmem %s16_s14, 16  ;;  %p854_p1 = scmp.lt.s32.totalorder %s16_s14, %s16_s14 }
   0x3   :  { %p850_p0 = scmp.ne.s32.totalorder %s16_s14, %s849_s15  ;;  %p855_p2 = scmp.lt.s32.totalorder %s849_s15, %s849_s15 }
   0x5   :  { %p856_p3 = por %p855_p2, %p854_p1 }
   0x7   :  { %p857_p4 = pnand %p856_p3, %p850_p0 }
   0x9   :  { %860 = shalt.err (!%p857_p4)
}
   0xa   :  { %s863_s16 = smov [#allocation2]  }
   0xb   :  { %18 = dma.vmem_to_smem %s16_s14, 16, %s863_s16, [#allocation3]  }
   0xc   :  { %861 = dma.done.wait [#allocation3], 16  }
   0xd   :  { %862 = vsyncadd [#allocation3], 4294967280 }
   0xe   :  { %26 = sfence }
   0xf   :  { %v27_v0 = vld [vmem:[%s1317_s1] sm:$0xff]  ;;  %v28_v2 = vld [vmem:[%s1317_s1 + $0x8] sm:$0xff]  ;;  %v29_v6 = vld [vmem:[%s1317_s1 + $0x10] sm:$0xff]  ;;  %vm292_vm0 = vcmask 261120   ;;  %s590_s4 = sld [smem:[#allocation2 + $0x1]]  ;;  %s365_s5 = sld [smem:[#allocation2]] }
  0x10   :  { %v43_v1 = vld [vmem:[%s1317_s1 + $0x80] sm:$0xff]  ;;  %v44_v4 = vld [vmem:[%s1317_s1 + $0x88] sm:$0xff]  ;;  %v45_v7 = vld [vmem:[%s1317_s1 + $0x90] sm:$0xff] }
  0x11   :  { %v709_v3 = vpack.i.bf16 %v27_v0, %v43_v1  ;;  %v711_v5 = vpack.i.bf16 %v28_v2, %v44_v4  ;;  %v713_v8 = vpack.i.bf16 %v29_v6, %v45_v7  ;;  %v30_v9 = vld [vmem:[%s1317_s1 + $0x18] sm:$0xff]  ;;  %v31_v11 = vld [vmem:[%s1317_s1 + $0x20] sm:$0xff]  ;;  %v76_v15 = vld [vmem:[%s1318_s2 + $0x88] sm:$0xff] }
  0x12   :  { %v46_v10 = vld [vmem:[%s1317_s1 + $0x98] sm:$0xff]  ;;  %v47_v12 = vld [vmem:[%s1317_s1 + $0xa0] sm:$0xff]  ;;  %v60_v17 = vld [vmem:[%s1318_s2 + $0x8] sm:$0xff] }
  0x13   :  { %710 = vxpose.xlu0.b32.start [1/16] (narrow) %v709_v3, 96  ;;  %v75_v13 = vld [vmem:[%s1318_s2 + $0x80] sm:$0xff]  ;;  %v715_v14 = vpack.i.bf16 %v30_v9, %v46_v10  ;;  %v77_v20 = vld [vmem:[%s1318_s2 + $0x90] sm:$0xff]  ;;  %v78_v21 = vld [vmem:[%s1318_s2 + $0x98] sm:$0xff]  ;;  %v717_v27 = vpack.i.bf16 %v31_v11, %v47_v12 }
  0x14   :  { %v59_v16 = vld [vmem:[%s1318_s2] sm:$0xff]  ;;  %v659_v18 = vpack.c.bf16 %v76_v15, %v75_v13  ;;  %v61_v22 = vld [vmem:[%s1318_s2 + $0x10] sm:$0xff]  ;;  %v663_v23 = vpack.c.bf16 %v78_v21, %v77_v20  ;;  %v62_v24 = vld [vmem:[%s1318_s2 + $0x18] sm:$0xff] }
  0x15   :  { %v661_v19 = vpack.c.bf16 %v60_v17, %v59_v16  ;;  %v79_v25 = vld [vmem:[%s1318_s2 + $0xa0] sm:$0xff]  ;;  %v80_v26 = vld [vmem:[%s1318_s2 + $0xa8] sm:$0xff]  ;;  %v665_v29 = vpack.c.bf16 %v62_v24, %v61_v22  ;;  %v81_v34 = vld [vmem:[%s1318_s2 + $0xb0] sm:$0xff] }
  0x16   :  { %660 = vmatprep.subr.bf16.mxu0 %v659_v18  ;;  %691 = vmatprep.subr.bf16.mxu1 %v659_v18  ;;  %v32_v28 = vld [vmem:[%s1317_s1 + $0x28] sm:$0xff]  ;;  %v667_v31 = vpack.c.bf16 %v80_v26, %v79_v25  ;;  %v63_v32 = vld [vmem:[%s1318_s2 + $0x20] sm:$0xff]  ;;  %v82_v35 = vld [vmem:[%s1318_s2 + $0xb8] sm:$0xff] }
  0x17   :  { %712 = vxpose.xlu0.b32.cont [2/16] (narrow) %v711_v5, 96  ;;  %662 = vmatpush3.bf16.msra.mxu0 %v661_v19  ;;  %v48_v30 = vld [vmem:[%s1317_s1 + $0xa8] sm:$0xff]  ;;  %v33_v37 = vld [vmem:[%s1317_s1 + $0x30] sm:$0xff]  ;;  %v671_v40 = vpack.c.bf16 %v82_v35, %v81_v34  ;;  %v66_v42 = vld [vmem:[%s1318_s2 + $0x38] sm:$0xff] }
  0x18   :  { %664 = vmatprep.subr.bf16.mxu0 %v663_v23  ;;  %v64_v33 = vld [vmem:[%s1318_s2 + $0x28] sm:$0xff]  ;;  %699 = vmatpush3.bf16.msra.mxu1 %v661_v19  ;;  %v719_v36 = vpack.i.bf16 %v32_v28, %v48_v30  ;;  %v49_v39 = vld [vmem:[%s1317_s1 + $0xb0] sm:$0xff]  ;;  %v83_v43 = vld [vmem:[%s1318_s2 + $0xc0] sm:$0xff] }
  0x19   :  { %692 = vmatprep.subr.bf16.mxu1 %v663_v23  ;;  %v669_v38 = vpack.c.bf16 %v64_v33, %v63_v32  ;;  %v65_v41 = vld [vmem:[%s1318_s2 + $0x30] sm:$0xff]  ;;  %v84_v44 = vld [vmem:[%s1318_s2 + $0xc8] sm:$0xff]  ;;  %v721_v45 = vpack.i.bf16 %v33_v37, %v49_v39  ;;  %v34_v46 = vld [vmem:[%s1317_s1 + $0x38] sm:$0xff] }
  0x1a   :  { %v673_v47 = vpack.c.bf16 %v66_v42, %v65_v41  ;;  %v50_v48 = vld [vmem:[%s1317_s1 + $0xb8] sm:$0xff]  ;;  %v675_v49 = vpack.c.bf16 %v84_v44, %v83_v43  ;;  %v67_v50 = vld [vmem:[%s1318_s2 + $0x40] sm:$0xff]  ;;  %v68_v51 = vld [vmem:[%s1318_s2 + $0x48] sm:$0xff] }
  0x1b   :  { %714 = vxpose.xlu0.b32.cont [3/16] (narrow) %v713_v8, 96  ;;  %666 = vmatpush3.bf16.msra.mxu0 %v665_v29  ;;  %v85_v52 = vld [vmem:[%s1318_s2 + $0xd0] sm:$0xff]  ;;  %v86_v53 = vld [vmem:[%s1318_s2 + $0xd8] sm:$0xff]  ;;  %v723_v54 = vpack.i.bf16 %v34_v46, %v50_v48  ;;  %v35_v55 = vld [vmem:[%s1317_s1 + $0x40] sm:$0xff]  ;;  %v677_v56 = vpack.c.bf16 %v68_v51, %v67_v50 }
  0x1c   :  { %668 = vmatprep.subr.bf16.mxu0 %v667_v31  ;;  %700 = vmatpush3.bf16.msra.mxu1 %v665_v29  ;;  %v51_v57 = vld [vmem:[%s1317_s1 + $0xc0] sm:$0xff]  ;;  %v679_v58 = vpack.c.bf16 %v86_v53, %v85_v52  ;;  %v69_v59 = vld [vmem:[%s1318_s2 + $0x50] sm:$0xff]  ;;  %v70_v60 = vld [vmem:[%s1318_s2 + $0x58] sm:$0xff] }
  0x1d   :  { %693 = vmatprep.subr.bf16.mxu1 %v667_v31  ;;  %v87_v61 = vld [vmem:[%s1318_s2 + $0xe0] sm:$0xff]  ;;  %v88_v62 = vld [vmem:[%s1318_s2 + $0xe8] sm:$0xff]  ;;  %v725_v63 = vpack.i.bf16 %v35_v55, %v51_v57  ;;  %v681_v1 = vpack.c.bf16 %v70_v60, %v69_v59  ;;  %v89_v6 = vld [vmem:[%s1318_s2 + $0xf0] sm:$0xff] }
  0x1e   :  { %v36_v0 = vld [vmem:[%s1317_s1 + $0x48] sm:$0xff]  ;;  %v683_v3 = vpack.c.bf16 %v88_v62, %v87_v61  ;;  %v71_v4 = vld [vmem:[%s1318_s2 + $0x60] sm:$0xff]  ;;  %v90_v7 = vld [vmem:[%s1318_s2 + $0xf8] sm:$0xff] }
  0x1f   :  { %716 = vxpose.xlu0.b32.cont [4/16] (narrow) %v715_v14, 96  ;;  %670 = vmatpush3.bf16.msra.mxu0 %v669_v38  ;;  %v52_v2 = vld [vmem:[%s1317_s1 + $0xc8] sm:$0xff]  ;;  %v37_v9 = vld [vmem:[%s1317_s1 + $0x50] sm:$0xff]  ;;  %v687_v12 = vpack.c.bf16 %v90_v7, %v89_v6  ;;  %v74_v14 = vld [vmem:[%s1318_s2 + $0x78] sm:$0xff] }
  0x20   :  { %672 = vmatprep.subr.bf16.mxu0 %v671_v40  ;;  %701 = vmatpush3.bf16.msra.mxu1 %v669_v38  ;;  %v72_v5 = vld [vmem:[%s1318_s2 + $0x68] sm:$0xff]  ;;  %v727_v8 = vpack.i.bf16 %v36_v0, %v52_v2  ;;  %v53_v11 = vld [vmem:[%s1317_s1 + $0xd0] sm:$0xff]  ;;  %v38_v17 = vld [vmem:[%s1317_s1 + $0x58] sm:$0xff] }
  0x21   :  { %694 = vmatprep.subr.bf16.mxu1 %v671_v40  ;;  %v685_v10 = vpack.c.bf16 %v72_v5, %v71_v4  ;;  %v73_v13 = vld [vmem:[%s1318_s2 + $0x70] sm:$0xff]  ;;  %v729_v15 = vpack.i.bf16 %v37_v9, %v53_v11  ;;  %v54_v18 = vld [vmem:[%s1317_s1 + $0xd8] sm:$0xff]  ;;  %v39_v20 = vld [vmem:[%s1317_s1 + $0x60] sm:$0xff] }
  0x22   :  { %v689_v16 = vpack.c.bf16 %v74_v14, %v73_v13  ;;  %v731_v19 = vpack.i.bf16 %v38_v17, %v54_v18  ;;  %v55_v21 = vld [vmem:[%s1317_s1 + $0xe0] sm:$0xff]  ;;  %v40_v23 = vld [vmem:[%s1317_s1 + $0x68] sm:$0xff]  ;;  %v41_v26 = vld [vmem:[%s1317_s1 + $0x70] sm:$0xff] }
  0x23   :  { %718 = vxpose.xlu0.b32.cont [5/16] (narrow) %v717_v27, 96  ;;  %674 = vmatpush3.bf16.msra.mxu0 %v673_v47  ;;  %v733_v22 = vpack.i.bf16 %v39_v20, %v55_v21  ;;  %v56_v24 = vld [vmem:[%s1317_s1 + $0xe8] sm:$0xff]  ;;  %v57_v27 = vld [vmem:[%s1317_s1 + $0xf0] sm:$0xff]  ;;  %v42_v29 = vld [vmem:[%s1317_s1 + $0x78] sm:$0xff] }
  0x24   :  { %676 = vmatprep.subr.bf16.mxu0 %v675_v49  ;;  %702 = vmatpush3.bf16.msra.mxu1 %v673_v47  ;;  %v735_v25 = vpack.i.bf16 %v40_v23, %v56_v24  ;;  %v737_v28 = vpack.i.bf16 %v41_v26, %v57_v27  ;;  %v58_v30 = vld [vmem:[%s1317_s1 + $0xf8] sm:$0xff]  ;;  %s864_s1 = smov 96  }
  0x25   :  { %695 = vmatprep.subr.bf16.mxu1 %v675_v49  ;;  %v739_v31 = vpack.i.bf16 %v42_v29, %v58_v30 }
  0x27   :  { %720 = vxpose.xlu0.b32.cont [6/16] (narrow) %v719_v36, 96  ;;  %678 = vmatpush3.bf16.msra.mxu0 %v677_v56 }
  0x28   :  { %680 = vmatprep.subr.bf16.mxu0 %v679_v58  ;;  %703 = vmatpush3.bf16.msra.mxu1 %v677_v56 }
  0x29   :  { %696 = vmatprep.subr.bf16.mxu1 %v679_v58 }
  0x2b   :  { %722 = vxpose.xlu0.b32.cont [7/16] (narrow) %v721_v45, 96  ;;  %682 = vmatpush3.bf16.msra.mxu0 %v681_v1 }
  0x2c   :  { %684 = vmatprep.subr.bf16.mxu0 %v683_v3  ;;  %704 = vmatpush3.bf16.msra.mxu1 %v681_v1 }
  0x2d   :  { %697 = vmatprep.subr.bf16.mxu1 %v683_v3 }
  0x2f   :  { %724 = vxpose.xlu0.b32.cont [8/16] (narrow) %v723_v54, 96  ;;  %686 = vmatpush3.bf16.msra.mxu0 %v685_v10 }
  0x30   :  { %688 = vmatprep.subr.bf16.mxu0 %v687_v12  ;;  %705 = vmatpush3.bf16.msra.mxu1 %v685_v10 }
  0x31   :  { %698 = vmatprep.subr.bf16.mxu1 %v687_v12 }
  0x33   :  { %726 = vxpose.xlu0.b32.cont [9/16] (narrow) %v725_v63, 96  ;;  %690 = vmatpush3.bf16.msra.mxu0 %v689_v16 }
  0x34   :  { %706 = vmatpush3.bf16.msra.mxu1 %v689_v16 }
  0x37   :  { %728 = vxpose.xlu0.b32.cont [10/16] (narrow) %v727_v8, 96 }
  0x3b   :  { %730 = vxpose.xlu0.b32.cont [11/16] (narrow) %v729_v15, 96 }
  0x3f   :  { %732 = vxpose.xlu0.b32.cont [12/16] (narrow) %v731_v19, 96 }
  0x43   :  { %734 = vxpose.xlu0.b32.cont [13/16] (narrow) %v733_v22, 96 }
  0x47   :  { %736 = vxpose.xlu0.b32.cont [14/16] (narrow) %v735_v25, 96 }
  0x4b   :  { %738 = vxpose.xlu0.b32.cont [15/16] (narrow) %v737_v28, 96 }
  0x4f   :  { %740 = vxpose.xlu0.b32.end [16/16] (narrow) %v739_v31, 96 }
  0x93   :  { %v741_v32 = vpop.trf.xlu0 }
  0x94   :  { %v742_v33 = vunpack.i.l.bf16 %v741_v32  ;;  %v745_v34 = vunpack.i.h.bf16 %v741_v32 }
  0x96   :  { %219 = vmatprep.mubr.f32.mxu0 %v742_v33 }
  0x97   :  { %v746_v35 = vpop.trf.xlu0  ;;  %220 = vmatmul.mubr.f32.vlgmr.msra.gmra.mrb[0].mxu0 %v745_v34 }
  0x98   :  { %v747_v36 = vunpack.i.l.bf16 %v746_v35  ;;  %v750_v37 = vunpack.i.h.bf16 %v746_v35 }
  0x9a   :  { %224 = vmatprep.mubr.f32.mxu0 %v747_v36 }
  0x9b   :  { %v751_v38 = vpop.trf.xlu0  ;;  %225 = vmatmul.mubr.f32.gmra.mrb[2].mxu0 %v750_v37 }
  0x9c   :  { %v752_v39 = vunpack.i.l.bf16 %v751_v38  ;;  %v755_v40 = vunpack.i.h.bf16 %v751_v38 }
  0x9e   :  { %229 = vmatprep.mubr.f32.mxu0 %v752_v39 }
  0x9f   :  { %v756_v41 = vpop.trf.xlu0  ;;  %230 = vmatmul.mubr.f32.gmra.mrb[4].mxu0 %v755_v40 }
  0xa0   :  { %v757_v42 = vunpack.i.l.bf16 %v756_v41  ;;  %v760_v43 = vunpack.i.h.bf16 %v756_v41 }
  0xa2   :  { %234 = vmatprep.mubr.f32.mxu0 %v757_v42 }
  0xa3   :  { %v761_v44 = vpop.trf.xlu0  ;;  %235 = vmatmul.mubr.f32.gmra.mrb[6].mxu0 %v760_v43 }
  0xa4   :  { %v762_v45 = vunpack.i.l.bf16 %v761_v44  ;;  %v765_v46 = vunpack.i.h.bf16 %v761_v44 }
  0xa6   :  { %239 = vmatprep.mubr.f32.mxu0 %v762_v45 }
  0xa7   :  { %v766_v47 = vpop.trf.xlu0  ;;  %240 = vmatmul.mubr.f32.gmra.mrb[8].mxu0 %v765_v46 }
  0xa8   :  { %v767_v48 = vunpack.i.l.bf16 %v766_v47  ;;  %v770_v49 = vunpack.i.h.bf16 %v766_v47 }
  0xaa   :  { %244 = vmatprep.mubr.f32.mxu0 %v767_v48 }
  0xab   :  { %v771_v50 = vpop.trf.xlu0  ;;  %245 = vmatmul.mubr.f32.gmra.mrb[10].mxu0 %v770_v49 }
  0xac   :  { %v772_v51 = vunpack.i.l.bf16 %v771_v50  ;;  %v775_v52 = vunpack.i.h.bf16 %v771_v50 }
  0xae   :  { %249 = vmatprep.mubr.f32.mxu1 %v772_v51 }
  0xaf   :  { %v776_v53 = vpop.trf.xlu0  ;;  %250 = vmatmul.mubr.f32.vlgmr.msra.gmra.mrb[0].mxu1 %v775_v52 }
  0xb0   :  { %v777_v54 = vunpack.i.l.bf16 %v776_v53  ;;  %v780_v55 = vunpack.i.h.bf16 %v776_v53 }
  0xb2   :  { %254 = vmatprep.mubr.f32.mxu1 %v777_v54 }
  0xb3   :  { %v781_v56 = vpop.trf.xlu0  ;;  %255 = vmatmul.mubr.f32.gmra.mrb[2].mxu1 %v780_v55 }
  0xb4   :  { %v782_v57 = vunpack.i.l.bf16 %v781_v56  ;;  %v785_v58 = vunpack.i.h.bf16 %v781_v56 }
  0xb6   :  { %259 = vmatprep.mubr.f32.mxu1 %v782_v57 }
  0xb7   :  { %v786_v59 = vpop.trf.xlu0  ;;  %260 = vmatmul.mubr.f32.gmra.mrb[4].mxu1 %v785_v58 }
  0xb8   :  { %v787_v60 = vunpack.i.l.bf16 %v786_v59  ;;  %v790_v61 = vunpack.i.h.bf16 %v786_v59 }
  0xba   :  { %264 = vmatprep.mubr.f32.mxu1 %v787_v60 }
  0xbb   :  { %v791_v62 = vpop.trf.xlu0  ;;  %265 = vmatmul.mubr.f32.gmra.mrb[6].mxu1 %v790_v61 }
  0xbc   :  { %v792_v63 = vunpack.i.l.bf16 %v791_v62  ;;  %v795_v0 = vunpack.i.h.bf16 %v791_v62 }
  0xbe   :  { %269 = vmatprep.mubr.f32.mxu1 %v792_v63 }
  0xbf   :  { %v796_v1 = vpop.trf.xlu0  ;;  %270 = vmatmul.mubr.f32.gmra.mrb[8].mxu1 %v795_v0 }
  0xc0   :  { %v797_v2 = vunpack.i.l.bf16 %v796_v1  ;;  %v800_v3 = vunpack.i.h.bf16 %v796_v1 }
  0xc2   :  { %274 = vmatprep.mubr.f32.mxu1 %v797_v2 }
  0xc3   :  { %275 = vmatmul.mubr.f32.gmra.mrb[10].mxu1 %v800_v3 }
 0x16a   :  { %v623_v4 = vpop.f32.mrb[0].mxu0 }
 0x16b   :  { %v624_v5 = vpop.f32.mrb[1].mxu0 }
 0x16c   :  { %v1080_v6 = vadd.f32 %v624_v5, %v623_v4 }
 0x16e   :  { %v626_v7 = vpop.f32.mrb[2].mxu0  ;;  %v1084_v8 = vmul.f32 %v1080_v6, %v1080_v6 }
 0x16f   :  { %v627_v9 = vpop.f32.mrb[3].mxu0 }
 0x170   :  { %v1086_v10 = vadd.f32 %v627_v9, %v626_v7  ;;  %391 = vrot.lane.b32.xlu1 %v1084_v8, %s864_s1 }
 0x172   :  { %v629_v11 = vpop.f32.mrb[4].mxu0  ;;  %v1092_v12 = vmul.f32 %v1086_v10, %v1086_v10 }
 0x173   :  { %v630_v13 = vpop.f32.mrb[5].mxu0 }
 0x174   :  { %v1094_v14 = vadd.f32 %v630_v13, %v629_v11  ;;  %393 = vrot.lane.b32.xlu1 %v1092_v12, %s864_s1 }
 0x176   :  { %v632_v15 = vpop.f32.mrb[6].mxu0  ;;  %v1100_v16 = vmul.f32 %v1094_v14, %v1094_v14 }
 0x177   :  { %v633_v17 = vpop.f32.mrb[7].mxu0 }
 0x178   :  { %v1102_v18 = vadd.f32 %v633_v17, %v632_v15  ;;  %395 = vrot.lane.b32.xlu1 %v1100_v16, %s864_s1 }
 0x17a   :  { %v635_v19 = vpop.f32.mrb[8].mxu0  ;;  %v1108_v20 = vmul.f32 %v1102_v18, %v1102_v18 }
 0x17b   :  { %v636_v21 = vpop.f32.mrb[9].mxu0 }
 0x17c   :  { %v1110_v22 = vadd.f32 %v636_v21, %v635_v19  ;;  %397 = vrot.lane.b32.xlu1 %v1108_v20, %s864_s1  ;;  %v293_v19 = vsel %vm292_vm0, %v1084_v8, 0.0  ;;  %v296_v21 = vsel %vm292_vm0, %v1092_v12, 0.0 }
 0x17e   :  { %v638_v23 = vpop.f32.mrb[10].mxu0  ;;  %v1116_v24 = vmul.f32 %v1110_v22, %v1110_v22 }
 0x17f   :  { %v639_v25 = vpop.f32.mrb[11].mxu0 }
 0x180   :  { %v1118_v26 = vadd.f32 %v639_v25, %v638_v23  ;;  %399 = vrot.lane.b32.xlu1 %v1116_v24, %s864_s1  ;;  %v299_v23 = vsel %vm292_vm0, %v1100_v16, 0.0  ;;  %v302_v25 = vsel %vm292_vm0, %v1108_v20, 0.0 }
 0x182   :  { %v641_v27 = vpop.f32.mrb[0].mxu1  ;;  %v1124_v28 = vmul.f32 %v1118_v26, %v1118_v26 }
 0x183   :  { %v642_v29 = vpop.f32.mrb[1].mxu1 }
 0x184   :  { %v1126_v30 = vadd.f32 %v642_v29, %v641_v27  ;;  %401 = vrot.lane.b32.xlu1 %v1124_v28, %s864_s1  ;;  %v305_v27 = vsel %vm292_vm0, %v1116_v24, 0.0  ;;  %v308_v8 = vsel %vm292_vm0, %v1124_v28, 0.0 }
 0x186   :  { %v644_v31 = vpop.f32.mrb[2].mxu1  ;;  %v1132_v32 = vmul.f32 %v1126_v30, %v1126_v30 }
 0x187   :  { %v645_v33 = vpop.f32.mrb[3].mxu1 }
 0x188   :  { %v1134_v34 = vadd.f32 %v645_v33, %v644_v31  ;;  %403 = vrot.lane.b32.xlu1 %v1132_v32, %s864_s1  ;;  %v311_v29 = vsel %vm292_vm0, %v1132_v32, 0.0 }
 0x18a   :  { %v647_v35 = vpop.f32.mrb[4].mxu1  ;;  %v1140_v36 = vmul.f32 %v1134_v34, %v1134_v34 }
 0x18b   :  { %v648_v37 = vpop.f32.mrb[5].mxu1 }
 0x18c   :  { %v1142_v38 = vadd.f32 %v648_v37, %v647_v35  ;;  %405 = vrot.lane.b32.xlu1 %v1140_v36, %s864_s1  ;;  %v314_v12 = vsel %vm292_vm0, %v1140_v36, 0.0 }
 0x18e   :  { %v650_v39 = vpop.f32.mrb[6].mxu1  ;;  %v1148_v40 = vmul.f32 %v1142_v38, %v1142_v38 }
 0x18f   :  { %v651_v41 = vpop.f32.mrb[7].mxu1 }
 0x190   :  { %v1150_v42 = vadd.f32 %v651_v41, %v650_v39  ;;  %407 = vrot.lane.b32.xlu1 %v1148_v40, %s864_s1  ;;  %v317_v16 = vsel %vm292_vm0, %v1148_v40, 0.0 }
 0x192   :  { %v653_v43 = vpop.f32.mrb[8].mxu1  ;;  %v1156_v44 = vmul.f32 %v1150_v42, %v1150_v42 }
 0x193   :  { %v654_v45 = vpop.f32.mrb[9].mxu1 }
 0x194   :  { %v1158_v46 = vadd.f32 %v654_v45, %v653_v43  ;;  %409 = vrot.lane.b32.xlu1 %v1156_v44, %s864_s1  ;;  %v320_v20 = vsel %vm292_vm0, %v1156_v44, 0.0  ;;  %v1204_v43 = vstv %s590_s4 }
 0x196   :  { %v656_v47 = vpop.f32.mrb[10].mxu1  ;;  %v290_v48 = vmul.f32 %v1158_v46, %v1158_v46 }
 0x197   :  { %v657_v49 = vpop.f32.mrb[11].mxu1 }
 0x198   :  { %v1164_v50 = vadd.f32 %v657_v49, %v656_v47  ;;  %411 = vrot.lane.b32.xlu1 %v290_v48, %s864_s1  ;;  %v323_v24 = vsel %vm292_vm0, %v290_v48, 0.0 }
 0x19a   :  { %v291_v51 = vmul.f32 %v1164_v50, %v1164_v50 }
 0x19c   :  { %413 = vrot.lane.b32.xlu1 %v291_v51, %s864_s1  ;;  %v326_v28 = vsel %vm292_vm0, %v291_v51, 0.0 }
 0x1e2   :  { %v392_v52 = vpop.permute.xlu1 %391 }
 0x1e3   :  { %v427_v53 = vsel %vm292_vm0, %v392_v52, 0.0 }
 0x1e4   :  { %428 = vadd.xlane.f32.xlu1 %v427_v53 }
 0x1e6   :  { %v394_v54 = vpop.permute.xlu1 %393 }
 0x1e7   :  { %v430_v55 = vsel %vm292_vm0, %v394_v54, 0.0 }
 0x1e8   :  { %431 = vadd.xlane.f32.xlu0 %v430_v55 }
 0x1ea   :  { %v396_v56 = vpop.permute.xlu1 %395 }
 0x1eb   :  { %v433_v57 = vsel %vm292_vm0, %v396_v56, 0.0 }
 0x1ec   :  { %434 = vadd.xlane.f32.xlu1 %v433_v57 }
 0x1ee   :  { %v398_v58 = vpop.permute.xlu1 %397 }
 0x1ef   :  { %v436_v59 = vsel %vm292_vm0, %v398_v58, 0.0 }
 0x1f0   :  { %437 = vadd.xlane.f32.xlu1 %v436_v59 }
 0x1f2   :  { %v400_v60 = vpop.permute.xlu1 %399 }
 0x1f3   :  { %v439_v61 = vsel %vm292_vm0, %v400_v60, 0.0 }
 0x1f4   :  { %440 = vadd.xlane.f32.xlu1 %v439_v61 }
 0x1f6   :  { %v402_v62 = vpop.permute.xlu1 %401 }
 0x1f7   :  { %v442_v63 = vsel %vm292_vm0, %v402_v62, 0.0 }
 0x1f8   :  { %443 = vadd.xlane.f32.xlu1 %v442_v63 }
 0x1fa   :  { %v404_v0 = vpop.permute.xlu1 %403 }
 0x1fb   :  { %v445_v1 = vsel %vm292_vm0, %v404_v0, 0.0 }
 0x1fc   :  { %446 = vadd.xlane.f32.xlu1 %v445_v1 }
 0x1fe   :  { %v406_v2 = vpop.permute.xlu1 %405 }
 0x1ff   :  { %v448_v3 = vsel %vm292_vm0, %v406_v2, 0.0 }
 0x200   :  { %449 = vadd.xlane.f32.xlu1 %v448_v3 }
 0x202   :  { %v408_v4 = vpop.permute.xlu1 %407 }
 0x203   :  { %v451_v5 = vsel %vm292_vm0, %v408_v4, 0.0 }
 0x204   :  { %452 = vadd.xlane.f32.xlu1 %v451_v5 }
 0x206   :  { %v410_v7 = vpop.permute.xlu1 %409 }
 0x207   :  { %v454_v9 = vsel %vm292_vm0, %v410_v7, 0.0 }
 0x208   :  { %455 = vadd.xlane.f32.xlu0 %v454_v9 }
 0x20a   :  { %v412_v11 = vpop.permute.xlu1 %411 }
 0x20b   :  { %v457_v13 = vsel %vm292_vm0, %v412_v11, 0.0 }
 0x20c   :  { %458 = vadd.xlane.f32.xlu1 %v457_v13 }
 0x20e   :  { %v414_v15 = vpop.permute.xlu1 %413 }
 0x20f   :  { %v460_v17 = vsel %vm292_vm0, %v414_v15, 0.0 }
 0x210   :  { %461 = vadd.xlane.f32.xlu0 %v460_v17  ;;  %294 = vadd.xlane.f32.xlu1 %v293_v19 }
 0x214   :  { %297 = vadd.xlane.f32.xlu0 %v296_v21  ;;  %300 = vadd.xlane.f32.xlu1 %v299_v23 }
 0x218   :  { %303 = vadd.xlane.f32.xlu0 %v302_v25  ;;  %306 = vadd.xlane.f32.xlu1 %v305_v27 }
 0x21c   :  { %309 = vadd.xlane.f32.xlu0 %v308_v8  ;;  %312 = vadd.xlane.f32.xlu1 %v311_v29 }
 0x220   :  { %315 = vadd.xlane.f32.xlu0 %v314_v12  ;;  %318 = vadd.xlane.f32.xlu1 %v317_v16 }
 0x224   :  { %321 = vadd.xlane.f32.xlu0 %v320_v20  ;;  %324 = vadd.xlane.f32.xlu1 %v323_v24 }
 0x228   :  { %327 = vadd.xlane.f32.xlu0 %v326_v28 }
 0x271   :  { %v429_v31 = vpop.xlane.xlu1 %428 }
 0x272   :  { %v463_v32 = vadd.f32 1e-32, %v429_v31 }
 0x274   :  { %801 = vrsqrt.f32 %v463_v32 }
 0x275   :  { %v432_v33 = vpop.xlane.xlu0 %431 }
 0x276   :  { %v464_v35 = vadd.f32 1e-32, %v432_v33 }
 0x278   :  { %803 = vrsqrt.f32 %v464_v35 }
 0x279   :  { %v435_v36 = vpop.xlane.xlu1 %434 }
 0x27a   :  { %v465_v37 = vadd.f32 1e-32, %v435_v36 }
 0x27c   :  { %805 = vrsqrt.f32 %v465_v37 }
 0x27d   :  { %v438_v39 = vpop.xlane.xlu1 %437 }
 0x27e   :  { %v802_v40 = vpop.eup %801  ;;  %v466_v41 = vadd.f32 1e-32, %v438_v39 }
 0x27f   :  { %v487_v44 = vmul.f32 %v802_v40, %v1080_v6 }
 0x280   :  { %807 = vrsqrt.f32 %v466_v41 }
 0x281   :  { %v441_v45 = vpop.xlane.xlu1 %440  ;;  %v501_v47 = vmul.f32 %v1204_v43, %v487_v44 }
 0x282   :  { %v804_v48 = vpop.eup %803  ;;  %v467_v49 = vadd.f32 1e-32, %v441_v45 }
 0x283   :  { %525 = vrot.lane.b32.xlu1 %v501_v47, %s864_s1  ;;  %v488_v51 = vmul.f32 %v804_v48, %v1086_v10 }
 0x284   :  { %809 = vrsqrt.f32 %v467_v49 }
 0x285   :  { %v444_v52 = vpop.xlane.xlu1 %443  ;;  %v502_v53 = vmul.f32 %v1204_v43, %v488_v51 }
 0x286   :  { %v806_v54 = vpop.eup %805  ;;  %v468_v55 = vadd.f32 1e-32, %v444_v52 }
 0x287   :  { %527 = vrot.lane.b32.xlu0 %v502_v53, %s864_s1  ;;  %v489_v56 = vmul.f32 %v806_v54, %v1094_v14 }
 0x288   :  { %811 = vrsqrt.f32 %v468_v55 }
 0x289   :  { %v447_v57 = vpop.xlane.xlu1 %446  ;;  %v503_v58 = vmul.f32 %v1204_v43, %v489_v56 }
 0x28a   :  { %v808_v59 = vpop.eup %807  ;;  %v469_v60 = vadd.f32 1e-32, %v447_v57 }
 0x28b   :  { %529 = vrot.lane.b32.xlu1 %v503_v58, %s864_s1  ;;  %v490_v61 = vmul.f32 %v808_v59, %v1102_v18 }
 0x28c   :  { %813 = vrsqrt.f32 %v469_v60 }
 0x28d   :  { %v450_v62 = vpop.xlane.xlu1 %449  ;;  %v504_v63 = vmul.f32 %v1204_v43, %v490_v61 }
 0x28e   :  { %v810_v0 = vpop.eup %809  ;;  %v470_v1 = vadd.f32 1e-32, %v450_v62 }
 0x28f   :  { %531 = vrot.lane.b32.xlu1 %v504_v63, %s864_s1  ;;  %v491_v2 = vmul.f32 %v810_v0, %v1110_v22  ;;  %v1243_v0 = vstv %s365_s5 }
 0x290   :  { %815 = vrsqrt.f32 %v470_v1 }
 0x291   :  { %v453_v3 = vpop.xlane.xlu1 %452  ;;  %v505_v4 = vmul.f32 %v1204_v43, %v491_v2 }
 0x292   :  { %v812_v5 = vpop.eup %811  ;;  %v471_v7 = vadd.f32 1e-32, %v453_v3 }
 0x293   :  { %533 = vrot.lane.b32.xlu0 %v505_v4, %s864_s1  ;;  %v492_v9 = vmul.f32 %v812_v5, %v1118_v26 }
 0x294   :  { %817 = vrsqrt.f32 %v471_v7 }
 0x295   :  { %v456_v11 = vpop.xlane.xlu0 %455  ;;  %v506_v13 = vmul.f32 %v1204_v43, %v492_v9 }
 0x296   :  { %v814_v15 = vpop.eup %813  ;;  %v472_v17 = vadd.f32 1e-32, %v456_v11 }
 0x297   :  { %535 = vrot.lane.b32.xlu1 %v506_v13, %s864_s1  ;;  %v493_v19 = vmul.f32 %v814_v15, %v1126_v30 }
 0x298   :  { %819 = vrsqrt.f32 %v472_v17 }
 0x299   :  { %v459_v21 = vpop.xlane.xlu1 %458  ;;  %v507_v23 = vmul.f32 %v1204_v43, %v493_v19 }
 0x29a   :  { %v816_v25 = vpop.eup %815  ;;  %v473_v27 = vadd.f32 1e-32, %v459_v21 }
 0x29b   :  { %537 = vrot.lane.b32.xlu0 %v507_v23, %s864_s1  ;;  %v494_v8 = vmul.f32 %v816_v25, %v1134_v34 }
 0x29c   :  { %821 = vrsqrt.f32 %v473_v27 }
 0x29d   :  { %v462_v29 = vpop.xlane.xlu0 %461  ;;  %v508_v12 = vmul.f32 %v1204_v43, %v494_v8  ;;  %v295_v44 = vpop.xlane.xlu1 %294 }
 0x29e   :  { %v818_v16 = vpop.eup %817  ;;  %v474_v20 = vadd.f32 1e-32, %v462_v29  ;;  %v329_v49 = vadd.f32 1e-32, %v295_v44 }
 0x29f   :  { %539 = vrot.lane.b32.xlu1 %v508_v12, %s864_s1  ;;  %v495_v24 = vmul.f32 %v818_v16, %v1142_v38 }
 0x2a0   :  { %823 = vrsqrt.f32 %v474_v20 }
 0x2a1   :  { %v509_v28 = vmul.f32 %v1204_v43, %v495_v24  ;;  %v298_v45 = vpop.xlane.xlu0 %297  ;;  %v301_v47 = vpop.xlane.xlu1 %300  ;;  %825 = vrsqrt.f32 %v329_v49 }
 0x2a2   :  { %v820_v31 = vpop.eup %819  ;;  %v330_v52 = vadd.f32 1e-32, %v298_v45  ;;  %v331_v55 = vadd.f32 1e-32, %v301_v47 }
 0x2a3   :  { %541 = vrot.lane.b32.xlu0 %v509_v28, %s864_s1  ;;  %v496_v32 = vmul.f32 %v820_v31, %v1150_v42 }
 0x2a4   :  { %827 = vrsqrt.f32 %v330_v52 }
 0x2a5   :  { %v510_v33 = vmul.f32 %v1204_v43, %v496_v32  ;;  %v304_v48 = vpop.xlane.xlu0 %303  ;;  %v307_v51 = vpop.xlane.xlu1 %306  ;;  %829 = vrsqrt.f32 %v331_v55 }
 0x2a6   :  { %v822_v35 = vpop.eup %821  ;;  %v332_v57 = vadd.f32 1e-32, %v304_v48  ;;  %v333_v59 = vadd.f32 1e-32, %v307_v51 }
 0x2a7   :  { %543 = vrot.lane.b32.xlu1 %v510_v33, %s864_s1  ;;  %v497_v36 = vmul.f32 %v822_v35, %v1158_v46 }
 0x2a8   :  { %831 = vrsqrt.f32 %v332_v57 }
 0x2a9   :  { %v511_v37 = vmul.f32 %v1204_v43, %v497_v36  ;;  %v310_v53 = vpop.xlane.xlu0 %309  ;;  %v313_v54 = vpop.xlane.xlu1 %312  ;;  %833 = vrsqrt.f32 %v333_v59 }
 0x2aa   :  { %v824_v39 = vpop.eup %823  ;;  %v334_v1 = vadd.f32 1e-32, %v310_v53  ;;  %v335_v11 = vadd.f32 1e-32, %v313_v54 }
 0x2ab   :  { %545 = vrot.lane.b32.xlu0 %v511_v37, %s864_s1  ;;  %v498_v40 = vmul.f32 %v824_v39, %v1164_v50 }
 0x2ac   :  { %835 = vrsqrt.f32 %v334_v1 }
 0x2ad   :  { %v512_v41 = vmul.f32 %v1204_v43, %v498_v40  ;;  %v316_v56 = vpop.xlane.xlu0 %315  ;;  %v319_v58 = vpop.xlane.xlu1 %318  ;;  %837 = vrsqrt.f32 %v335_v11 }
 0x2ae   :  { %v826_v43 = vpop.eup %825  ;;  %v337_v29 = vadd.f32 1e-32, %v319_v58 }
 0x2af   :  { %547 = vrot.lane.b32.xlu1 %v512_v41, %s864_s1  ;;  %v353_v61 = vmul.f32 %v826_v43, %v1080_v6  ;;  %v828_v62 = vpop.eup %827 }
 0x2b0   :  { %v354_v3 = vmul.f32 %v828_v62, %v1086_v10  ;;  %v830_v4 = vpop.eup %829  ;;  %v336_v10 = vadd.f32 1e-32, %v316_v56 }
 0x2b1   :  { %v322_v60 = vpop.xlane.xlu0 %321  ;;  %v325_v63 = vpop.xlane.xlu1 %324  ;;  %v367_v2 = vmul.f32 %v1243_v0, %v353_v61  ;;  %v355_v13 = vmul.f32 %v830_v4, %v1094_v14 }
 0x2b2   :  { %v368_v6 = vmul.f32 %v1243_v0, %v354_v3  ;;  %v832_v15 = vpop.eup %831  ;;  %839 = vrsqrt.f32 %v336_v10  ;;  %v338_v28 = vadd.f32 1e-32, %v322_v60  ;;  %v339_v36 = vadd.f32 1e-32, %v325_v63 }
 0x2b3   :  { %v369_v21 = vmul.f32 %v1243_v0, %v355_v13  ;;  %v356_v23 = vmul.f32 %v832_v15, %v1102_v18  ;;  %v834_v25 = vpop.eup %833  ;;  %841 = vrsqrt.f32 %v337_v29 }
 0x2b4   :  { %v357_v12 = vmul.f32 %v834_v25, %v1110_v22  ;;  %843 = vrsqrt.f32 %v338_v28 }
 0x2b5   :  { %v328_v5 = vpop.xlane.xlu0 %327  ;;  %v370_v14 = vmul.f32 %v1243_v0, %v356_v23  ;;  %845 = vrsqrt.f32 %v339_v36 }
 0x2b6   :  { %v836_v16 = vpop.eup %835  ;;  %v371_v18 = vmul.f32 %v1243_v0, %v357_v12  ;;  %v340_v44 = vadd.f32 1e-32, %v328_v5 }
 0x2b7   :  { %v358_v31 = vmul.f32 %v836_v16, %v1118_v26  ;;  %v838_v32 = vpop.eup %837 }
 0x2b8   :  { %v359_v37 = vmul.f32 %v838_v32, %v1126_v30  ;;  %847 = vrsqrt.f32 %v340_v44 }
 0x2b9   :  { %v372_v22 = vmul.f32 %v1243_v0, %v358_v31 }
 0x2ba   :  { %v373_v26 = vmul.f32 %v1243_v0, %v359_v37 }
 0x2bc   :  { %v840_v39 = vpop.eup %839 }
 0x2bd   :  { %v360_v45 = vmul.f32 %v840_v39, %v1134_v34  ;;  %v842_v47 = vpop.eup %841 }
 0x2be   :  { %v361_v51 = vmul.f32 %v842_v47, %v1142_v38  ;;  %v844_v52 = vpop.eup %843 }
 0x2bf   :  { %v374_v30 = vmul.f32 %v1243_v0, %v360_v45  ;;  %v362_v55 = vmul.f32 %v844_v52, %v1150_v42  ;;  %v846_v56 = vpop.eup %845 }
 0x2c0   :  { %v375_v34 = vmul.f32 %v1243_v0, %v361_v51  ;;  %v363_v43 = vmul.f32 %v846_v56, %v1158_v46 }
 0x2c1   :  { %v376_v38 = vmul.f32 %v1243_v0, %v362_v55 }
 0x2c2   :  { %v848_v59 = vpop.eup %847  ;;  %v377_v42 = vmul.f32 %v1243_v0, %v363_v43 }
 0x2c3   :  { %v364_v62 = vmul.f32 %v848_v59, %v1164_v50 }
 0x2c5   :  { %v378_v46 = vmul.f32 %v1243_v0, %v364_v62 }
 0x2f5   :  { %v526_v7 = vpop.permute.xlu1 %525 }
 0x2f6   :  { %v561_v9 = vadd.f32 %v526_v7, %v367_v2 }
 0x2f8   :  { %573 = vst.msk [vmem:[%s1319_s3] sm:$0xff] %vm292_vm0, %v561_v9 }
 0x2f9   :  { %v528_v17 = vpop.permute.xlu0 %527 }
 0x2fa   :  { %v562_v19 = vadd.f32 %v528_v17, %v368_v6 }
 0x2fc   :  { %574 = vst.msk [vmem:[%s1319_s3 + $0x8] sm:$0xff] %vm292_vm0, %v562_v19 }
 0x2fd   :  { %v530_v27 = vpop.permute.xlu1 %529 }
 0x2fe   :  { %v563_v8 = vadd.f32 %v530_v27, %v369_v21 }
 0x300   :  { %575 = vst.msk [vmem:[%s1319_s3 + $0x10] sm:$0xff] %vm292_vm0, %v563_v8 }
 0x301   :  { %v532_v20 = vpop.permute.xlu1 %531 }
 0x302   :  { %v564_v24 = vadd.f32 %v532_v20, %v370_v14 }
 0x304   :  { %576 = vst.msk [vmem:[%s1319_s3 + $0x18] sm:$0xff] %vm292_vm0, %v564_v24 }
 0x305   :  { %v534_v33 = vpop.permute.xlu0 %533 }
 0x306   :  { %v565_v35 = vadd.f32 %v534_v33, %v371_v18 }
 0x308   :  { %577 = vst.msk [vmem:[%s1319_s3 + $0x20] sm:$0xff] %vm292_vm0, %v565_v35 }
 0x309   :  { %v536_v40 = vpop.permute.xlu1 %535 }
 0x30a   :  { %v566_v41 = vadd.f32 %v536_v40, %v372_v22 }
 0x30c   :  { %578 = vst.msk [vmem:[%s1319_s3 + $0x28] sm:$0xff] %vm292_vm0, %v566_v41 }
 0x30d   :  { %v538_v48 = vpop.permute.xlu0 %537 }
 0x30e   :  { %v567_v49 = vadd.f32 %v538_v48, %v373_v26 }
 0x310   :  { %579 = vst.msk [vmem:[%s1319_s3 + $0x30] sm:$0xff] %vm292_vm0, %v567_v49 }
 0x311   :  { %v540_v53 = vpop.permute.xlu1 %539 }
 0x312   :  { %v568_v54 = vadd.f32 %v540_v53, %v374_v30 }
 0x314   :  { %580 = vst.msk [vmem:[%s1319_s3 + $0x38] sm:$0xff] %vm292_vm0, %v568_v54 }
 0x315   :  { %v542_v57 = vpop.permute.xlu0 %541 }
 0x316   :  { %v569_v58 = vadd.f32 %v542_v57, %v375_v34 }
 0x318   :  { %581 = vst.msk [vmem:[%s1319_s3 + $0x40] sm:$0xff] %vm292_vm0, %v569_v58 }
 0x319   :  { %v544_v60 = vpop.permute.xlu1 %543 }
 0x31a   :  { %v570_v61 = vadd.f32 %v544_v60, %v376_v38 }
 0x31c   :  { %582 = vst.msk [vmem:[%s1319_s3 + $0x48] sm:$0xff] %vm292_vm0, %v570_v61 }
 0x31d   :  { %v546_v63 = vpop.permute.xlu0 %545 }
 0x31e   :  { %v571_v1 = vadd.f32 %v546_v63, %v377_v42 }
 0x320   :  { %583 = vst.msk [vmem:[%s1319_s3 + $0x50] sm:$0xff] %vm292_vm0, %v571_v1 }
 0x321   :  { %v548_v2 = vpop.permute.xlu1 %547 }
 0x322   :  { %v572_v3 = vadd.f32 %v548_v2, %v378_v46 }
 0x324   :  { %584 = vst.msk [vmem:[%s1319_s3 + $0x58] sm:$0xff] %vm292_vm0, %v572_v3 }
 0x325   :  { %589 = vsyncpa [#allocation3], 1 }

// kernel: recon_all_forward.13
= control target key start
LH: loop header
LB: loop body
LE: loop exit
PB: predicated region body
PF: predicated region fallthrough
CT: control target
= control target key end

     0   :  { %9 = vsyncpa [#allocation3], 0  ;;  %s984_s15 = smov 0   ;;  %s1284_s0 = inlined_call_operand.vmem [shape: f32[2], index: 0, kind: input, shape index: {}]   ;;  %s1285_s1 = inlined_call_operand.vmem [shape: f32[256,32], index: 1, kind: input, shape index: {}]   ;;  %s1286_s2 = inlined_call_operand.vmem [shape: f32[256,96], index: 2, kind: input, shape index: {}]   ;;  %s1287_s3 = inlined_call_operand.vmem [shape: f32[96,32], index: 3, kind: input, shape index: {}]   ;;  %s1288_s4 = inlined_call_operand.vmem [shape: f32[256,32], index: 4, kind: output, shape index: {}]  }
   0x1 LB: > { %s736_s16 = sadd.s32 4294967295, %s956_s15   ;;  %p738_p0 = scmp.ge.s32.totalorder %s956_s15, 1  ;;  %s956_s15 = sphi %s984_s15, %s15_s15  }
   0x2   : > { %p140_p1 = scmp.lt.s32.totalorder %s956_s15, 3  ;;  %s153_s19 = sshll.u32 %s1284_s0, 4  ;;  %s154_s19 = int_to_ptr.vmem [resolvable:$true] %s153_s19 }
   0x3   : > { %p999_p3 = scmp.eq.s32.totalorder %s736_s16, 0  ;;  %s931_s22 = scalar_lea.vmem %s154_s19, 16 }
   0x4   : > { %p995_p2 = pnand %p738_p0, %p140_p1  ;;  %p932_p6 = scmp.ne.s32.totalorder %s154_s19, %s931_s22 }
   0x5   : > { %p939_p10 = scmp.lt.s32.totalorder %s154_s19, %s154_s19  ;;  %p940_p11 = scmp.lt.s32.totalorder %s931_s22, %s931_s22 }
   0x6   : > { %p884_p4 = pneg %p995_p2 }
   0x7   : > { %p941_p12 = por %p940_p11, %p939_p10 }
   0x8   : > { %p885_p5 = pnand %p999_p3, %p884_p4 }
   0xa   : > { %p933_p7 = pneg %p885_p5 }
   0xc   : > { %p934_p8 = pnand %p933_p7, %p932_p6 }
   0xe   : > { %p935_p9 = pneg %p934_p8 }
  0x10   : > { %p942_p13 = pnand %p941_p12, %p935_p9 }
  0x12   : > { %945 = shalt.err (!%p942_p13)
}
  0x13   : > { %s958_s23 = smov [#allocation2]   ;;  %187 = sbr.rel (%p995_p2) target bundleno = 462 (0x1ce), region = 36 }
  0x14   : > { %887 = dma.vmem_to_smem (!%p885_p5), %s154_s19, 16, %s958_s23, [#allocation3]  }
  0x1a   : > { %951 = dma.done.wait (%p999_p3), [#allocation3], 16  }
  0x1b   : > { %953 = vsyncadd (%p999_p3), [#allocation3], 4294967280 }
  0x1c   : > { %193 = sfence }
  0x1d   : > { %v287_v0 = vld [vmem:[%s1287_s3] sm:$0xff]  ;;  %v288_v1 = vld [vmem:[%s1287_s3 + $0x8] sm:$0xff]  ;;  %v289_v2 = vld [vmem:[%s1287_s3 + $0x10] sm:$0xff]  ;;  %s743_s30 = sshll.u32 %s736_s16, 4  ;;  %vm299_vm0 = vcmask 785408   ;;  %vm509_vm1 = vcmask 261120  }
  0x1e   : > { %v844_v3 = vpack.c.bf16 %v288_v1, %v287_v0  ;;  %v290_v4 = vld [vmem:[%s1287_s3 + $0x18] sm:$0xff]  ;;  %p220_p0 = scmp.lt.s32.totalorder %s743_s30, 31  ;;  %v291_v6 = vld [vmem:[%s1287_s3 + $0x20] sm:$0xff]  ;;  %v292_v7 = vld [vmem:[%s1287_s3 + $0x28] sm:$0xff]  ;;  %s253_s28 = sld [smem:[#allocation2]] }
  0x1f   : > { %v848_v5 = vpack.c.bf16 %v290_v4, %v289_v2  ;;  %v852_v8 = vpack.c.bf16 %v292_v7, %v291_v6  ;;  %v293_v9 = vld [vmem:[%s1287_s3 + $0x30] sm:$0xff]  ;;  %v294_v10 = vld [vmem:[%s1287_s3 + $0x38] sm:$0xff]  ;;  %v295_v14 = vld [vmem:[%s1287_s3 + $0x40] sm:$0xff]  ;;  %s765_s29 = sld [smem:[#allocation2 + $0x1]] }
  0x20   : > { %845 = vmatprep.subr.bf16.mxu0 %v844_v3  ;;  %868 = vmatprep.subr.bf16.mxu1 %v844_v3  ;;  %s1292_s30 = smov (!%p220_p0, %s743_s30), 31  ;;  %v856_v13 = vpack.c.bf16 %v294_v10, %v293_v9  ;;  %v296_v15 = vld [vmem:[%s1287_s3 + $0x48] sm:$0xff]  ;;  %v297_v17 = vld [vmem:[%s1287_s3 + $0x50] sm:$0xff]  ;;  %v298_v18 = vld [vmem:[%s1287_s3 + $0x58] sm:$0xff] }
  0x21   : > { %847 = vmatpush3.bf16.msra.mxu0 %v844_v3  ;;  %874 = vmatpush3.bf16.msra.mxu1 %v844_v3  ;;  %s1031_s11 = sshll.u32 %s1292_s30, 3  ;;  %v860_v16 = vpack.c.bf16 %v296_v15, %v295_v14  ;;  %v864_v19 = vpack.c.bf16 %v298_v18, %v297_v17 }
  0x22   : > { %849 = vmatprep.subr.bf16.mxu0 %v848_v5  ;;  %869 = vmatprep.subr.bf16.mxu1 %v848_v5  ;;  %s1043_s19 = scalar_lea.vmem %s1286_s2, %s1031_s11  ;;  %s1173_s6 = scalar_lea.vmem %s1285_s1, %s1031_s11 }
  0x23   : > { %v271_v11 = vld [vmem:[%s1043_s19] sm:$0xff]  ;;  %v272_v20 = vld [vmem:[%s1043_s19 + $0x8] sm:$0xff]  ;;  %v273_v22 = vld [vmem:[%s1043_s19 + $0x10] sm:$0xff]  ;;  %s1192_s9 = scalar_lea.vmem %s1288_s4, %s1031_s11 }
  0x24   : > { %v279_v12 = vld [vmem:[%s1043_s19 + $0x40] sm:$0xff]  ;;  %820 = vmatprep.mubr.msk.f32.mxu0 %vm299_vm0, %v271_v11  ;;  %v280_v21 = vld [vmem:[%s1043_s19 + $0x48] sm:$0xff]  ;;  %v281_v23 = vld [vmem:[%s1043_s19 + $0x50] sm:$0xff] }
  0x25   : > { %851 = vmatpush3.bf16.msra.mxu0 %v848_v5  ;;  %875 = vmatpush3.bf16.msra.mxu1 %v848_v5  ;;  %v274_v24 = vld [vmem:[%s1043_s19 + $0x18] sm:$0xff]  ;;  %v275_v26 = vld [vmem:[%s1043_s19 + $0x20] sm:$0xff]  ;;  %v276_v28 = vld [vmem:[%s1043_s19 + $0x28] sm:$0xff] }
  0x26   : > { %853 = vmatprep.subr.bf16.mxu0 %v852_v8  ;;  %870 = vmatprep.subr.bf16.mxu1 %v852_v8  ;;  %v282_v25 = vld [vmem:[%s1043_s19 + $0x58] sm:$0xff]  ;;  %v283_v27 = vld [vmem:[%s1043_s19 + $0x60] sm:$0xff]  ;;  %v284_v29 = vld [vmem:[%s1043_s19 + $0x68] sm:$0xff] }
  0x27   : > { %832 = vmatprep.mubr.msk.f32.mxu1 %vm299_vm0, %v279_v12  ;;  %v277_v30 = vld [vmem:[%s1043_s19 + $0x30] sm:$0xff]  ;;  %v278_v32 = vld [vmem:[%s1043_s19 + $0x38] sm:$0xff] }
  0x28   : > { %v285_v31 = vld [vmem:[%s1043_s19 + $0x70] sm:$0xff]  ;;  %v286_v33 = vld [vmem:[%s1043_s19 + $0x78] sm:$0xff] }
  0x29   : > { %855 = vmatpush3.bf16.msra.mxu0 %v852_v8  ;;  %876 = vmatpush3.bf16.msra.mxu1 %v852_v8 }
  0x2a   : > { %857 = vmatprep.subr.bf16.mxu0 %v856_v13  ;;  %871 = vmatprep.subr.bf16.mxu1 %v856_v13 }
  0x2d   : > { %859 = vmatpush3.bf16.msra.mxu0 %v856_v13  ;;  %877 = vmatpush3.bf16.msra.mxu1 %v856_v13 }
  0x2e   : > { %861 = vmatprep.subr.bf16.mxu0 %v860_v16  ;;  %872 = vmatprep.subr.bf16.mxu1 %v860_v16 }
  0x31   : > { %863 = vmatpush3.bf16.msra.mxu0 %v860_v16  ;;  %878 = vmatpush3.bf16.msra.mxu1 %v860_v16 }
  0x32   : > { %865 = vmatprep.subr.bf16.mxu0 %v864_v19  ;;  %873 = vmatprep.subr.bf16.mxu1 %v864_v19 }
  0x35   : > { %867 = vmatpush3.bf16.msra.mxu0 %v864_v19  ;;  %879 = vmatpush3.bf16.msra.mxu1 %v864_v19 }
  0x38   : > { %821 = vmatmul.mubr.msk.f32.vlgmr.msra.gmra.mrb[0].mxu0 %vm299_vm0, %v272_v20  ;;  %833 = vmatmul.mubr.msk.f32.vlgmr.msra.gmra.mrb[0].mxu1 %vm299_vm0, %v280_v21 }
  0x39   : > { %823 = vmatprep.mubr.msk.f32.mxu0 %vm299_vm0, %v273_v22  ;;  %835 = vmatprep.mubr.msk.f32.mxu1 %vm299_vm0, %v281_v23 }
  0x3c   : > { %824 = vmatmul.mubr.msk.f32.gmra.mrb[2].mxu0 %vm299_vm0, %v274_v24  ;;  %836 = vmatmul.mubr.msk.f32.gmra.mrb[2].mxu1 %vm299_vm0, %v282_v25 }
  0x3d   : > { %826 = vmatprep.mubr.msk.f32.mxu0 %vm299_vm0, %v275_v26  ;;  %838 = vmatprep.mubr.msk.f32.mxu1 %vm299_vm0, %v283_v27 }
  0x40   : > { %827 = vmatmul.mubr.msk.f32.gmra.mrb[4].mxu0 %vm299_vm0, %v276_v28  ;;  %839 = vmatmul.mubr.msk.f32.gmra.mrb[4].mxu1 %vm299_vm0, %v284_v29 }
  0x41   : > { %829 = vmatprep.mubr.msk.f32.mxu0 %vm299_vm0, %v277_v30  ;;  %841 = vmatprep.mubr.msk.f32.mxu1 %vm299_vm0, %v285_v31  ;;  %v1175_v30 = vstv %s253_s28  ;;  %v246_v31 = vld [vmem:[%s1173_s6 + $0x48] sm:$0xff] }
  0x44   : > { %830 = vmatmul.mubr.msk.f32.gmra.mrb[6].mxu0 %vm299_vm0, %v278_v32  ;;  %842 = vmatmul.mubr.msk.f32.gmra.mrb[6].mxu1 %vm299_vm0, %v286_v33  ;;  %v238_v32 = vld [vmem:[%s1173_s6 + $0x8] sm:$0xff] }
 0x10b   : > { %v1089_v34 = vpop.f32.mrb[0].mxu0  ;;  %v1091_v35 = vpop.f32.mrb[0].mxu1 }
 0x10c   : > { %v1093_v36 = vpop.f32.mrb[1].mxu0  ;;  %v1095_v37 = vpop.f32.mrb[1].mxu1  ;;  %v502_v38 = vmul.f32 %v1091_v35, %v1091_v35  ;;  %v494_v39 = vmul.f32 %v1089_v34, %v1089_v34 }
 0x10d   : > { %v493_v40 = vmul.f32 %v1093_v36, %v1093_v36  ;;  %v501_v49 = vmul.f32 %v1095_v37, %v1095_v37 }
 0x10e   : > { %v537_v41 = vsel %vm509_vm1, %v502_v38, 0.0  ;;  %v513_v42 = vsel %vm509_vm1, %v494_v39, 0.0 }
 0x10f   : > { %538 = vadd.xlane.f32.xlu1 %v537_v41  ;;  %514 = vadd.xlane.f32.xlu0 %v513_v42  ;;  %v1105_v43 = vpop.f32.mrb[2].mxu0  ;;  %v1107_v44 = vpop.f32.mrb[2].mxu1  ;;  %v510_v50 = vsel %vm509_vm1, %v493_v40, 0.0  ;;  %v534_v59 = vsel %vm509_vm1, %v501_v49, 0.0  ;;  %v1179_v40 = vstv %s765_s29 }
 0x110   : > { %v496_v45 = vmul.f32 %v1105_v43, %v1105_v43  ;;  %v1111_v46 = vpop.f32.mrb[3].mxu0  ;;  %v504_v47 = vmul.f32 %v1107_v44, %v1107_v44  ;;  %v1115_v48 = vpop.f32.mrb[3].mxu1 }
 0x111   : > { %v495_v57 = vmul.f32 %v1111_v46, %v1111_v46  ;;  %v503_v58 = vmul.f32 %v1115_v48, %v1115_v48 }
 0x112   : > { %v519_v51 = vsel %vm509_vm1, %v496_v45, 0.0  ;;  %v543_v54 = vsel %vm509_vm1, %v504_v47, 0.0  ;;  %v264_v47 = vmul.f32 %v1175_v30, %v246_v31 }
 0x113   : > { %511 = vadd.xlane.f32.xlu0 %v510_v50  ;;  %520 = vadd.xlane.f32.xlu1 %v519_v51  ;;  %v1121_v52 = vpop.f32.mrb[4].mxu0  ;;  %v1123_v53 = vpop.f32.mrb[4].mxu1  ;;  %v540_v2 = vsel %vm509_vm1, %v503_v58, 0.0  ;;  %v516_v3 = vsel %vm509_vm1, %v495_v57, 0.0  ;;  %v256_v50 = vmul.f32 %v1175_v30, %v238_v32  ;;  %v240_v58 = vld [vmem:[%s1173_s6 + $0x18] sm:$0xff] }
 0x114   : > { %v1126_v55 = vpop.f32.mrb[5].mxu0  ;;  %v1128_v56 = vpop.f32.mrb[5].mxu1  ;;  %v498_v62 = vmul.f32 %v1121_v52, %v1121_v52  ;;  %v506_v4 = vmul.f32 %v1123_v53, %v1123_v53 }
 0x115   : > { %v497_v63 = vmul.f32 %v1126_v55, %v1126_v55  ;;  %v505_v5 = vmul.f32 %v1128_v56, %v1128_v56 }
 0x116   : > { %v525_v6 = vsel %vm509_vm1, %v498_v62, 0.0  ;;  %v549_v10 = vsel %vm509_vm1, %v506_v4, 0.0 }
 0x117   : > { %535 = vadd.xlane.f32.xlu0 %v534_v59  ;;  %544 = vadd.xlane.f32.xlu1 %v543_v54  ;;  %v1135_v60 = vpop.f32.mrb[6].mxu0  ;;  %v1137_v61 = vpop.f32.mrb[6].mxu1  ;;  %v522_v7 = vsel %vm509_vm1, %v497_v63, 0.0  ;;  %v546_v11 = vsel %vm509_vm1, %v505_v5, 0.0  ;;  %v237_v54 = vld [vmem:[%s1173_s6] sm:$0xff] }
 0x118   : > { %v1143_v0 = vpop.f32.mrb[7].mxu0  ;;  %v1145_v1 = vpop.f32.mrb[7].mxu1  ;;  %v500_v8 = vmul.f32 %v1135_v60, %v1135_v60  ;;  %v508_v12 = vmul.f32 %v1137_v61, %v1137_v61  ;;  %v255_v5 = vmul.f32 %v1175_v30, %v237_v54 }
 0x119   : > { %v499_v9 = vmul.f32 %v1143_v0, %v1143_v0  ;;  %v507_v13 = vmul.f32 %v1145_v1, %v1145_v1 }
 0x11a   : > { %v531_v14 = vsel %vm509_vm1, %v500_v8, 0.0  ;;  %v555_v16 = vsel %vm509_vm1, %v508_v12, 0.0  ;;  %v258_v8 = vmul.f32 %v1175_v30, %v240_v58  ;;  %v248_v12 = vld [vmem:[%s1173_s6 + $0x58] sm:$0xff] }
 0x11b   : > { %541 = vadd.xlane.f32.xlu0 %v540_v2  ;;  %517 = vadd.xlane.f32.xlu1 %v516_v3  ;;  %v528_v15 = vsel %vm509_vm1, %v499_v9, 0.0  ;;  %v552_v17 = vsel %vm509_vm1, %v507_v13, 0.0 }
 0x11f   : > { %526 = vadd.xlane.f32.xlu1 %v525_v6  ;;  %523 = vadd.xlane.f32.xlu0 %v522_v7 }
 0x123   : > { %550 = vadd.xlane.f32.xlu1 %v549_v10  ;;  %547 = vadd.xlane.f32.xlu0 %v546_v11  ;;  %v245_v10 = vld [vmem:[%s1173_s6 + $0x40] sm:$0xff] }
 0x127   : > { %532 = vadd.xlane.f32.xlu1 %v531_v14  ;;  %529 = vadd.xlane.f32.xlu0 %v528_v15 }
 0x12b   : > { %556 = vadd.xlane.f32.xlu1 %v555_v16  ;;  %553 = vadd.xlane.f32.xlu0 %v552_v17 }
 0x19c   : > { %v539_v18 = vpop.xlane.xlu1 %538  ;;  %v515_v19 = vpop.xlane.xlu0 %514 }
 0x19d   : > { %v567_v20 = vadd.f32 1e-32, %v539_v18  ;;  %v559_v21 = vadd.f32 1e-32, %v515_v19  ;;  %v263_v19 = vmul.f32 %v1175_v30, %v245_v10 }
 0x19f   : > { %899 = vrsqrt.f32 %v567_v20 }
 0x1a0   : > { %901 = vrsqrt.f32 %v559_v21  ;;  %v512_v22 = vpop.xlane.xlu0 %511  ;;  %v521_v23 = vpop.xlane.xlu1 %520 }
 0x1a1   : > { %v558_v24 = vadd.f32 1e-32, %v512_v22  ;;  %v561_v25 = vadd.f32 1e-32, %v521_v23  ;;  %v266_v22 = vmul.f32 %v1175_v30, %v248_v12 }
 0x1a3   : > { %903 = vrsqrt.f32 %v558_v24  ;;  %v247_v24 = vld [vmem:[%s1173_s6 + $0x50] sm:$0xff] }
 0x1a4   : > { %905 = vrsqrt.f32 %v561_v25  ;;  %v536_v26 = vpop.xlane.xlu0 %535  ;;  %v545_v27 = vpop.xlane.xlu1 %544 }
 0x1a5   : > { %v566_v28 = vadd.f32 1e-32, %v536_v26  ;;  %v569_v29 = vadd.f32 1e-32, %v545_v27  ;;  %v239_v26 = vld [vmem:[%s1173_s6 + $0x10] sm:$0xff] }
 0x1a7   : > { %907 = vrsqrt.f32 %v566_v28 }
 0x1a8   : > { %909 = vrsqrt.f32 %v569_v29  ;;  %v542_v33 = vpop.xlane.xlu0 %541  ;;  %v518_v38 = vpop.xlane.xlu1 %517 }
 0x1a9   : > { %v900_v39 = vpop.eup %899  ;;  %v568_v41 = vadd.f32 1e-32, %v542_v33  ;;  %v560_v42 = vadd.f32 1e-32, %v518_v38  ;;  %v265_v38 = vmul.f32 %v1175_v30, %v247_v24  ;;  %v251_v24 = vld [vmem:[%s1173_s6 + $0x70] sm:$0xff] }
 0x1aa   : > { %v902_v45 = vpop.eup %901  ;;  %v599_v49 = vmul.f32 %v900_v39, %v1091_v35 }
 0x1ab   : > { %v591_v51 = vmul.f32 %v902_v45, %v1089_v34  ;;  %911 = vrsqrt.f32 %v568_v41 }
 0x1ac   : > { %v617_v57 = vmul.f32 %v1179_v40, %v599_v49  ;;  %913 = vrsqrt.f32 %v560_v42  ;;  %v527_v59 = vpop.xlane.xlu1 %526  ;;  %v524_v62 = vpop.xlane.xlu0 %523  ;;  %v257_v42 = vmul.f32 %v1175_v30, %v239_v26 }
 0x1ad   : > { %v904_v63 = vpop.eup %903  ;;  %v609_v35 = vmul.f32 %v1179_v40, %v591_v51  ;;  %v563_v34 = vadd.f32 1e-32, %v527_v59  ;;  %v562_v2 = vadd.f32 1e-32, %v524_v62 }
 0x1ae   : > { %v906_v3 = vpop.eup %905  ;;  %v633_v4 = vadd.f32 %v617_v57, %v264_v47  ;;  %v590_v6 = vmul.f32 %v904_v63, %v1093_v36  ;;  %v242_v47 = vld [vmem:[%s1173_s6 + $0x28] sm:$0xff] }
 0x1af   : > { %v625_v7 = vadd.f32 %v609_v35, %v256_v50  ;;  %v593_v9 = vmul.f32 %v906_v3, %v1105_v43  ;;  %915 = vrsqrt.f32 %v563_v34  ;;  %v241_v50 = vld [vmem:[%s1173_s6 + $0x20] sm:$0xff]  ;;  %v260_v63 = vmul.f32 %v1175_v30, %v242_v47 }
 0x1b0   : > { %649 = vst.msk [vmem:[%s1192_s9 + $0x48] sm:$0xff] %vm509_vm1, %v633_v4  ;;  %v608_v11 = vmul.f32 %v1179_v40, %v590_v6  ;;  %917 = vrsqrt.f32 %v562_v2  ;;  %v551_v13 = vpop.xlane.xlu1 %550  ;;  %v548_v14 = vpop.xlane.xlu0 %547  ;;  %v259_v2 = vmul.f32 %v1175_v30, %v241_v50  ;;  %v250_v4 = vld [vmem:[%s1173_s6 + $0x68] sm:$0xff]  ;;  %v249_v6 = vld [vmem:[%s1173_s6 + $0x60] sm:$0xff] }
 0x1b1   : > { %v908_v15 = vpop.eup %907  ;;  %641 = vst.msk [vmem:[%s1192_s9 + $0x8] sm:$0xff] %vm509_vm1, %v625_v7  ;;  %v611_v36 = vmul.f32 %v1179_v40, %v593_v9  ;;  %v571_v16 = vadd.f32 1e-32, %v551_v13  ;;  %v570_v43 = vadd.f32 1e-32, %v548_v14  ;;  %v267_v12 = vmul.f32 %v1175_v30, %v249_v6  ;;  %v244_v14 = vld [vmem:[%s1173_s6 + $0x38] sm:$0xff] }
 0x1b2   : > { %v910_v17 = vpop.eup %909  ;;  %v624_v18 = vadd.f32 %v608_v11, %v255_v5  ;;  %v598_v20 = vmul.f32 %v908_v15, %v1095_v37 }
 0x1b3   : > { %v627_v21 = vadd.f32 %v611_v36, %v258_v8  ;;  %v601_v23 = vmul.f32 %v910_v17, %v1107_v44  ;;  %919 = vrsqrt.f32 %v571_v16  ;;  %v243_v36 = vld [vmem:[%s1173_s6 + $0x30] sm:$0xff] }
 0x1b4   : > { %640 = vst.msk [vmem:[%s1192_s9] sm:$0xff] %vm509_vm1, %v624_v18  ;;  %v616_v25 = vmul.f32 %v1179_v40, %v598_v20  ;;  %921 = vrsqrt.f32 %v570_v43  ;;  %v533_v27 = vpop.xlane.xlu1 %532  ;;  %v530_v28 = vpop.xlane.xlu0 %529  ;;  %v262_v18 = vmul.f32 %v1175_v30, %v244_v14  ;;  %v261_v20 = vmul.f32 %v1175_v30, %v243_v36 }
 0x1b5   : > { %v912_v29 = vpop.eup %911  ;;  %643 = vst.msk [vmem:[%s1192_s9 + $0x18] sm:$0xff] %vm509_vm1, %v627_v21  ;;  %v619_v37 = vmul.f32 %v1179_v40, %v601_v23  ;;  %v565_v31 = vadd.f32 1e-32, %v533_v27  ;;  %v564_v44 = vadd.f32 1e-32, %v530_v28 }
 0x1b6   : > { %v914_v32 = vpop.eup %913  ;;  %v632_v33 = vadd.f32 %v616_v25, %v263_v19  ;;  %v600_v39 = vmul.f32 %v912_v29, %v1115_v48 }
 0x1b7   : > { %v635_v41 = vadd.f32 %v619_v37, %v266_v22  ;;  %v592_v45 = vmul.f32 %v914_v32, %v1111_v46  ;;  %923 = vrsqrt.f32 %v565_v31  ;;  %v252_v22 = vld [vmem:[%s1173_s6 + $0x78] sm:$0xff]  ;;  %v269_v37 = vmul.f32 %v1175_v30, %v251_v24 }
 0x1b8   : > { %648 = vst.msk [vmem:[%s1192_s9 + $0x40] sm:$0xff] %vm509_vm1, %v632_v33  ;;  %v618_v49 = vmul.f32 %v1179_v40, %v600_v39  ;;  %925 = vrsqrt.f32 %v564_v44  ;;  %v557_v51 = vpop.xlane.xlu1 %556  ;;  %v554_v54 = vpop.xlane.xlu0 %553  ;;  %v270_v28 = vmul.f32 %v1175_v30, %v252_v22 }
 0x1b9   : > { %v916_v57 = vpop.eup %915  ;;  %651 = vst.msk [vmem:[%s1192_s9 + $0x58] sm:$0xff] %vm509_vm1, %v635_v41  ;;  %v610_v48 = vmul.f32 %v1179_v40, %v592_v45  ;;  %v573_v58 = vadd.f32 1e-32, %v557_v51  ;;  %v572_v46 = vadd.f32 1e-32, %v554_v54 }
 0x1ba   : > { %v918_v59 = vpop.eup %917  ;;  %v634_v62 = vadd.f32 %v618_v49, %v265_v38  ;;  %v595_v35 = vmul.f32 %v916_v57, %v1121_v52 }
 0x1bb   : > { %v626_v34 = vadd.f32 %v610_v48, %v257_v42  ;;  %v594_v3 = vmul.f32 %v918_v59, %v1126_v55  ;;  %927 = vrsqrt.f32 %v573_v58  ;;  %v268_v55 = vmul.f32 %v1175_v30, %v250_v4 }
 0x1bc   : > { %650 = vst.msk [vmem:[%s1192_s9 + $0x50] sm:$0xff] %vm509_vm1, %v634_v62  ;;  %v613_v5 = vmul.f32 %v1179_v40, %v595_v35  ;;  %929 = vrsqrt.f32 %v572_v46 }
 0x1bd   : > { %v920_v7 = vpop.eup %919  ;;  %642 = vst.msk [vmem:[%s1192_s9 + $0x10] sm:$0xff] %vm509_vm1, %v626_v34  ;;  %v612_v52 = vmul.f32 %v1179_v40, %v594_v3 }
 0x1be   : > { %v922_v8 = vpop.eup %921  ;;  %v629_v9 = vadd.f32 %v613_v5, %v260_v63  ;;  %v603_v10 = vmul.f32 %v920_v7, %v1123_v53 }
 0x1bf   : > { %v628_v11 = vadd.f32 %v612_v52, %v259_v2  ;;  %v602_v13 = vmul.f32 %v922_v8, %v1128_v56 }
 0x1c0   : > { %645 = vst.msk [vmem:[%s1192_s9 + $0x28] sm:$0xff] %vm509_vm1, %v629_v9  ;;  %v621_v15 = vmul.f32 %v1179_v40, %v603_v10 }
 0x1c1   : > { %v924_v16 = vpop.eup %923  ;;  %644 = vst.msk [vmem:[%s1192_s9 + $0x20] sm:$0xff] %vm509_vm1, %v628_v11  ;;  %v620_v53 = vmul.f32 %v1179_v40, %v602_v13 }
 0x1c2   : > { %v926_v43 = vpop.eup %925  ;;  %v637_v17 = vadd.f32 %v621_v15, %v268_v55  ;;  %v597_v56 = vmul.f32 %v924_v16, %v1135_v60 }
 0x1c3   : > { %v636_v19 = vadd.f32 %v620_v53, %v267_v12  ;;  %v596_v21 = vmul.f32 %v926_v43, %v1143_v0 }
 0x1c4   : > { %653 = vst.msk [vmem:[%s1192_s9 + $0x68] sm:$0xff] %vm509_vm1, %v637_v17  ;;  %v615_v23 = vmul.f32 %v1179_v40, %v597_v56 }
 0x1c5   : > { %v928_v25 = vpop.eup %927  ;;  %652 = vst.msk [vmem:[%s1192_s9 + $0x60] sm:$0xff] %vm509_vm1, %v636_v19  ;;  %v614_v60 = vmul.f32 %v1179_v40, %v596_v21 }
 0x1c6   : > { %v930_v26 = vpop.eup %929  ;;  %v631_v27 = vadd.f32 %v615_v23, %v262_v18  ;;  %v605_v0 = vmul.f32 %v928_v25, %v1137_v61 }
 0x1c7   : > { %v630_v29 = vadd.f32 %v614_v60, %v261_v20  ;;  %v604_v31 = vmul.f32 %v930_v26, %v1145_v1 }
 0x1c8   : > { %647 = vst.msk [vmem:[%s1192_s9 + $0x38] sm:$0xff] %vm509_vm1, %v631_v27  ;;  %v623_v44 = vmul.f32 %v1179_v40, %v605_v0 }
 0x1c9   : > { %646 = vst.msk [vmem:[%s1192_s9 + $0x30] sm:$0xff] %vm509_vm1, %v630_v29  ;;  %v622_v32 = vmul.f32 %v1179_v40, %v604_v31 }
 0x1ca   : > { %v639_v33 = vadd.f32 %v623_v44, %v270_v28 }
 0x1cb   : > { %v638_v38 = vadd.f32 %v622_v32, %v269_v37 }
 0x1cc   : > { %655 = vst.msk [vmem:[%s1192_s9 + $0x78] sm:$0xff] %vm509_vm1, %v639_v33 }
 0x1cd   : > { %654 = vst.msk [vmem:[%s1192_s9 + $0x70] sm:$0xff] %vm509_vm1, %v638_v38 }
 0x1ce PF: > { %s15_s15 = sadd.s32 1, %s956_s15  }
 0x1cf   : > { %p12_p1 = scmp.ge.s32.totalorder %s15_s15, 4  }
 0x1d1   :  { %14 = sbr.rel (!%p12_p1) target bundleno = 1 (0x1), region = 74 }
 0x1d8   :  { %678 = vsyncpa [#allocation3], 1 }
 0x1d9   :  { %680 = vsyncpa [#allocation3 + $0x1], 1 }

// kernel: recon_all_forward.17
= control target key start
LH: loop header
LB: loop body
LE: loop exit
PB: predicated region body
PF: predicated region fallthrough
CT: control target
= control target key end

     0   :  { %7 = vsyncpa [#allocation3], 0  ;;  %s1250_s0 = inlined_call_operand.vmem [shape: f32[256,32], index: 0, kind: input, shape index: {}]   ;;  %s1251_s1 = inlined_call_operand.vmem [shape: f32[384,32], index: 1, kind: input, shape index: {}]   ;;  %s1252_s2 = inlined_call_operand.hbm [shape: f32[256,384], index: 2, kind: output, shape index: {}]  }
   0x1   :  { %9 = vsyncpa [#allocation3 + $0x1], 0  ;;  %s964_s9 = smov 0   ;;  %s966_s10 = smov 0  }
   0x2   :  { %s968_s11 = smov 0   ;;  %s970_s12 = smov 0  }
   0x3   :  { %s972_s13 = smov 0   ;;  %s974_s14 = smov 0  }
   0x4   :  { %s976_s15 = smov 0   ;;  %s978_s16 = smov 0  }
   0x5 LB: > { %s574_s17 = sadd.s32 4294967295, %s943_s16   ;;  %s575_s18 = sadd.s32 4294967294, %s943_s16   ;;  %s943_s16 = sphi %s978_s16, %s15_s16   ;;  %s939_s15 = sphi %s976_s15, %s1263_s15   ;;  %s935_s14 = sphi %s974_s14, %s1262_s14   ;;  %s931_s13 = sphi %s972_s13, %s1261_s13   ;;  %s927_s12 = sphi %s970_s12, %s1260_s12   ;;  %s923_s11 = sphi %s968_s11, %s1259_s11   ;;  %s919_s10 = sphi %s966_s10, %s1258_s10   ;;  %s915_s9 = sphi %s964_s9, %s1257_s9  }
   0x6   : > { %s24_s19 = sadd.s32 1, %s935_s14  ;;  %s27_s20 = sadd.s32 1, %s939_s15 }
   0x7   : > { %p25_p0 = scmp.ge.s32.totalorder %s24_s19, 3  ;;  %p98_p1 = scmp.ne.s32.totalorder %s923_s11, %s919_s10 }
   0x8   : > { %p99_p2 = scmp.eq.s32.totalorder %s574_s17, 5  ;;  %p104_p5 = scmp.ne.s32.totalorder %s919_s10, %s915_s9 }
   0x9   : > { %s1265_s19 = smov (%p25_p0, %s24_s19), 0  ;;  %s1267_s20 = smov (!%p25_p0, %s27_s20), %s939_s15 }
   0xa   : > { %s84_s21 = ssub.s32 %s935_s14, %s1265_s19  ;;  %p1015_p3 = por %p99_p2, %p98_p1 }
   0xb   : > { %p29_p4 = scmp.ge.s32.totalorder %s1267_s20, 2  ;;  %p105_p6 = scmp.eq.s32.totalorder %s575_s18, 5 }
   0xc   : > { %p578_p7 = scmp.ge.s32.totalorder %s943_s16, 1  ;;  %p141_p9 = scmp.lt.s32.totalorder %s943_s16, 7 }
   0xd   : > { %s1269_s20 = smov (%p29_p4, %s1267_s20), 0  ;;  %p1024_p8 = por %p105_p6, %p104_p5 }
   0xe   : > { %s83_s24 = ssub.s32 %s939_s15, %s1269_s20  ;;  %s88_s25 = sadd.s32 1, %s923_s11 }
   0xf   : > { %s85_s26 = sor.u32 %s84_s21, %s83_s24  ;;  %p142_p10 = pnand %p578_p7, %p141_p9 }
  0x10   : > { %p86_p11 = scmp.eq.s32.totalorder %s85_s26, 0  ;;  %s582_s28 = sshll.u32 (!%p142_p10), %s927_s12, 4  ;;  %vm213_vm0 = vcmask (!%p142_p10), 261120  }
  0x11   : > { %145 = sbr.rel (%p142_p10) target bundleno = 335 (0x14f), region = 28  ;;  %s580_s29 = sshll.u32 (!%p142_p10), %s931_s13, 4  ;;  %vm1044_vm1 = vmpackc.low (!%p142_p10), %vm213_vm0, %vm213_vm0 }
  0x12   : > { %s1033_s27 = scalar_select %p86_p11, %s923_s11, %s88_s25  }
  0x13   : > { %p175_p12 = scmp.lt.s32.totalorder (!%p142_p10), %s582_s28, 47  ;;  %p169_p13 = scmp.lt.s32.totalorder (!%p142_p10), %s580_s29, 31 }
  0x14   : > { %s165_s18 = sand.u32 (!%p142_p10), 1, %s919_s10   ;;  %s774_s24 = smul.u32 (!%p142_p10), 48, %s931_s13 }
  0x15   : > { %s579_s21 = sshll.u32 (!%p142_p10), %s165_s18, 7  ;;  %s1198_s3 = scalar_lea.sflag (!%p142_p10), [#allocation3], %s165_s18 }
  0x16   : > { %s1169_s25 = scalar_lea.vmem (!%p142_p10), [#allocation2], %s579_s21  ;;  %s484_s13 = sadd.s32 (!%p142_p10), %s927_s12, %s774_s24 }
  0x17   : > { %s619_s26 = sshll.u32 (!%p142_p10), %s484_s13, 7 }
  0x18   : > { %s1271_s28 = smov (!%p175_p12, %s582_s28), 47  ;;  %s1273_s29 = smov (!%p169_p13, %s580_s29), 31 }
  0x19   : > { %s583_s30 = sshll.u32 %s1271_s28, 3  ;;  %s581_s6 = sshll.u32 %s1273_s29, 3 }
  0x1a   : > { %s1040_s5 = scalar_lea.vmem %s1251_s1, %s583_s30  ;;  %s1055_s17 = scalar_lea.vmem %s1250_s0, %s581_s6 }
  0x1b   : > { %v197_v1 = vld [vmem:[%s1040_s5] sm:$0xff]  ;;  %v198_v2 = vld [vmem:[%s1040_s5 + $0x8] sm:$0xff]  ;;  %v199_v3 = vld [vmem:[%s1040_s5 + $0x10] sm:$0xff]  ;;  %s487_s28 = sshll.u32 %s1169_s25, 4  ;;  %s1188_s30 = scalar_lea.hbm %s1252_s2, %s619_s26  ;;  %s1190_s28 = int_to_ptr.vmem [resolvable:$true] %s487_s28 }
  0x1c   : > { %v710_v4 = vpack.c.bf16 %v198_v2, %v197_v1  ;;  %v200_v5 = vld [vmem:[%s1040_s5 + $0x18] sm:$0xff]  ;;  %v181_v7 = vld [vmem:[%s1055_s17] sm:$0xff]  ;;  %v202_v10 = vld [vmem:[%s1040_s5 + $0x28] sm:$0xff]  ;;  %s849_s4 = scalar_lea.vmem %s1190_s28, 2048 }
  0x1d   : > { %v716_v6 = vpack.c.bf16 %v200_v5, %v199_v3  ;;  %v189_v8 = vld [vmem:[%s1055_s17 + $0x40] sm:$0xff]  ;;  %686 = vmatprep.mubr.msk.f32.mxu0 %vm213_vm0, %v181_v7  ;;  %v203_v12 = vld [vmem:[%s1040_s5 + $0x30] sm:$0xff]  ;;  %v204_v13 = vld [vmem:[%s1040_s5 + $0x38] sm:$0xff]  ;;  %p850_p0 = scmp.ne.s32.totalorder %s1190_s28, %s849_s4 }
  0x1e   : > { %712 = vmatprep.subr.msk.bf16.mxu0 %vm1044_vm1, %v710_v4  ;;  %758 = vmatprep.subr.msk.bf16.mxu1 %vm1044_vm1, %v710_v4  ;;  %v201_v9 = vld [vmem:[%s1040_s5 + $0x20] sm:$0xff]  ;;  %v728_v14 = vpack.c.bf16 %v204_v13, %v203_v12  ;;  %v206_v16 = vld [vmem:[%s1040_s5 + $0x48] sm:$0xff]  ;;  %v207_v18 = vld [vmem:[%s1040_s5 + $0x50] sm:$0xff] }
  0x1f   : > { %715 = vmatpush3.bf16.xpose.msk.msra.mxu0 %vm1044_vm1, %v710_v4  ;;  %766 = vmatpush3.bf16.xpose.msk.msra.mxu1 %vm1044_vm1, %v710_v4  ;;  %v722_v11 = vpack.c.bf16 %v202_v10, %v201_v9  ;;  %v205_v15 = vld [vmem:[%s1040_s5 + $0x40] sm:$0xff]  ;;  %v208_v19 = vld [vmem:[%s1040_s5 + $0x58] sm:$0xff]  ;;  %v210_v22 = vld [vmem:[%s1040_s5 + $0x68] sm:$0xff]  ;;  %p851_p1 = pnand %p850_p0, %p1015_p3 }
  0x20   : > { %718 = vmatprep.subr.msk.bf16.mxu0 %vm1044_vm1, %v716_v6  ;;  %759 = vmatprep.subr.msk.bf16.mxu1 %vm1044_vm1, %v716_v6  ;;  %v734_v17 = vpack.c.bf16 %v206_v16, %v205_v15  ;;  %v740_v20 = vpack.c.bf16 %v208_v19, %v207_v18  ;;  %v209_v21 = vld [vmem:[%s1040_s5 + $0x60] sm:$0xff]  ;;  %v211_v24 = vld [vmem:[%s1040_s5 + $0x70] sm:$0xff]  ;;  %v212_v25 = vld [vmem:[%s1040_s5 + $0x78] sm:$0xff]  ;;  %s945_s5 = smov [#allocation2]  }
  0x21   : > { %698 = vmatprep.mubr.msk.f32.mxu1 %vm213_vm0, %v189_v8  ;;  %v746_v23 = vpack.c.bf16 %v210_v22, %v209_v21  ;;  %v752_v26 = vpack.c.bf16 %v212_v25, %v211_v24  ;;  %v182_v27 = vld [vmem:[%s1055_s17 + $0x8] sm:$0xff]  ;;  %v183_v29 = vld [vmem:[%s1055_s17 + $0x10] sm:$0xff]  ;;  %v184_v31 = vld [vmem:[%s1055_s17 + $0x18] sm:$0xff]  ;;  %p852_p2 = pneg %p851_p1  ;;  %s853_s6 = sshll.u32 %s945_s5, 4  ;;  %s854_s6 = int_to_ptr.vmem [resolvable:$false] %s853_s6 }
  0x22   : > { %v190_v28 = vld [vmem:[%s1055_s17 + $0x48] sm:$0xff]  ;;  %v191_v30 = vld [vmem:[%s1055_s17 + $0x50] sm:$0xff]  ;;  %v192_v32 = vld [vmem:[%s1055_s17 + $0x58] sm:$0xff]  ;;  %s855_s7 = scalar_lea.vmem %s854_s6, 4096  ;;  %p856_p4 = scmp.lt.s32.totalorder %s1190_s28, %s854_s6 }
  0x23   : > { %v185_v33 = vld [vmem:[%s1055_s17 + $0x20] sm:$0xff]  ;;  %v186_v35 = vld [vmem:[%s1055_s17 + $0x28] sm:$0xff]  ;;  %v187_v37 = vld [vmem:[%s1055_s17 + $0x30] sm:$0xff]  ;;  %p857_p5 = scmp.lt.s32.totalorder %s855_s7, %s849_s4 }
  0x24   : > { %v193_v34 = vld [vmem:[%s1055_s17 + $0x60] sm:$0xff]  ;;  %v194_v36 = vld [vmem:[%s1055_s17 + $0x68] sm:$0xff]  ;;  %v195_v38 = vld [vmem:[%s1055_s17 + $0x70] sm:$0xff] }
  0x25   : > { %v188_v39 = vld [vmem:[%s1055_s17 + $0x38] sm:$0xff]  ;;  %p858_p6 = por %p857_p5, %p856_p4 }
  0x26   : > { %v196_v40 = vld [vmem:[%s1055_s17 + $0x78] sm:$0xff] }
  0x27   : > { %721 = vmatpush3.bf16.xpose.msk.msra.mxu0 %vm1044_vm1, %v716_v6  ;;  %767 = vmatpush3.bf16.xpose.msk.msra.mxu1 %vm1044_vm1, %v716_v6  ;;  %p859_p7 = pnand %p858_p6, %p852_p2 }
  0x28   : > { %724 = vmatprep.subr.msk.bf16.mxu0 %vm1044_vm1, %v722_v11  ;;  %760 = vmatprep.subr.msk.bf16.mxu1 %vm1044_vm1, %v722_v11 }
  0x2f   : > { %727 = vmatpush3.bf16.xpose.msk.msra.mxu0 %vm1044_vm1, %v722_v11  ;;  %768 = vmatpush3.bf16.xpose.msk.msra.mxu1 %vm1044_vm1, %v722_v11 }
  0x30   : > { %730 = vmatprep.subr.msk.bf16.mxu0 %vm1044_vm1, %v728_v14  ;;  %761 = vmatprep.subr.msk.bf16.mxu1 %vm1044_vm1, %v728_v14 }
  0x37   : > { %733 = vmatpush3.bf16.xpose.msk.msra.mxu0 %vm1044_vm1, %v728_v14  ;;  %769 = vmatpush3.bf16.xpose.msk.msra.mxu1 %vm1044_vm1, %v728_v14 }
  0x38   : > { %736 = vmatprep.subr.msk.bf16.mxu0 %vm1044_vm1, %v734_v17  ;;  %762 = vmatprep.subr.msk.bf16.mxu1 %vm1044_vm1, %v734_v17 }
  0x3f   : > { %739 = vmatpush3.bf16.xpose.msk.msra.mxu0 %vm1044_vm1, %v734_v17  ;;  %770 = vmatpush3.bf16.xpose.msk.msra.mxu1 %vm1044_vm1, %v734_v17 }
  0x40   : > { %742 = vmatprep.subr.msk.bf16.mxu0 %vm1044_vm1, %v740_v20  ;;  %763 = vmatprep.subr.msk.bf16.mxu1 %vm1044_vm1, %v740_v20 }
  0x47   : > { %745 = vmatpush3.bf16.xpose.msk.msra.mxu0 %vm1044_vm1, %v740_v20  ;;  %771 = vmatpush3.bf16.xpose.msk.msra.mxu1 %vm1044_vm1, %v740_v20 }
  0x48   : > { %748 = vmatprep.subr.msk.bf16.mxu0 %vm1044_vm1, %v746_v23  ;;  %764 = vmatprep.subr.msk.bf16.mxu1 %vm1044_vm1, %v746_v23 }
  0x4f   : > { %751 = vmatpush3.bf16.xpose.msk.msra.mxu0 %vm1044_vm1, %v746_v23  ;;  %772 = vmatpush3.bf16.xpose.msk.msra.mxu1 %vm1044_vm1, %v746_v23 }
  0x50   : > { %754 = vmatprep.subr.msk.bf16.mxu0 %vm1044_vm1, %v752_v26  ;;  %765 = vmatprep.subr.msk.bf16.mxu1 %vm1044_vm1, %v752_v26 }
  0x57   : > { %757 = vmatpush3.bf16.xpose.msk.msra.mxu0 %vm1044_vm1, %v752_v26  ;;  %773 = vmatpush3.bf16.xpose.msk.msra.mxu1 %vm1044_vm1, %v752_v26 }
  0x5e   : > { %687 = vmatmul.mubr.msk.f32.vlgmr.msra.gmra.mrb[0].mxu0 %vm213_vm0, %v182_v27  ;;  %699 = vmatmul.mubr.msk.f32.vlgmr.msra.gmra.mrb[0].mxu1 %vm213_vm0, %v190_v28 }
  0x5f   : > { %689 = vmatprep.mubr.msk.f32.mxu0 %vm213_vm0, %v183_v29  ;;  %701 = vmatprep.mubr.msk.f32.mxu1 %vm213_vm0, %v191_v30 }
  0x62   : > { %690 = vmatmul.mubr.msk.f32.gmra.mrb[2].mxu0 %vm213_vm0, %v184_v31  ;;  %702 = vmatmul.mubr.msk.f32.gmra.mrb[2].mxu1 %vm213_vm0, %v192_v32 }
  0x63   : > { %692 = vmatprep.mubr.msk.f32.mxu0 %vm213_vm0, %v185_v33  ;;  %704 = vmatprep.mubr.msk.f32.mxu1 %vm213_vm0, %v193_v34 }
  0x66   : > { %693 = vmatmul.mubr.msk.f32.gmra.mrb[4].mxu0 %vm213_vm0, %v186_v35  ;;  %705 = vmatmul.mubr.msk.f32.gmra.mrb[4].mxu1 %vm213_vm0, %v194_v36 }
  0x67   : > { %695 = vmatprep.mubr.msk.f32.mxu0 %vm213_vm0, %v187_v37  ;;  %707 = vmatprep.mubr.msk.f32.mxu1 %vm213_vm0, %v195_v38 }
  0x6a   : > { %696 = vmatmul.mubr.msk.f32.gmra.mrb[6].mxu0 %vm213_vm0, %v188_v39  ;;  %708 = vmatmul.mubr.msk.f32.gmra.mrb[6].mxu1 %vm213_vm0, %v196_v40 }
 0x131   : > { %v688_v41 = vpop.f32.mrb[0].mxu0  ;;  %v700_v42 = vpop.f32.mrb[0].mxu1 }
 0x132   : > { %456 = vst [vmem:[%s1169_s25 + $0x8] sm:$0xff] %v688_v41  ;;  %464 = vst [vmem:[%s1169_s25 + $0x48] sm:$0xff] %v700_v42  ;;  %v376_v43 = vpop.f32.mrb[1].mxu0  ;;  %v416_v44 = vpop.f32.mrb[1].mxu1 }
 0x133   : > { %455 = vst [vmem:[%s1169_s25] sm:$0xff] %v376_v43  ;;  %463 = vst [vmem:[%s1169_s25 + $0x40] sm:$0xff] %v416_v44 }
 0x135   : > { %v691_v45 = vpop.f32.mrb[2].mxu0  ;;  %v703_v46 = vpop.f32.mrb[2].mxu1 }
 0x136   : > { %458 = vst [vmem:[%s1169_s25 + $0x18] sm:$0xff] %v691_v45  ;;  %466 = vst [vmem:[%s1169_s25 + $0x58] sm:$0xff] %v703_v46  ;;  %v386_v47 = vpop.f32.mrb[3].mxu0  ;;  %v426_v48 = vpop.f32.mrb[3].mxu1 }
 0x137   : > { %457 = vst [vmem:[%s1169_s25 + $0x10] sm:$0xff] %v386_v47  ;;  %465 = vst [vmem:[%s1169_s25 + $0x50] sm:$0xff] %v426_v48 }
 0x139   : > { %v694_v49 = vpop.f32.mrb[4].mxu0  ;;  %v706_v50 = vpop.f32.mrb[4].mxu1 }
 0x13a   : > { %460 = vst [vmem:[%s1169_s25 + $0x28] sm:$0xff] %v694_v49  ;;  %468 = vst [vmem:[%s1169_s25 + $0x68] sm:$0xff] %v706_v50  ;;  %v396_v51 = vpop.f32.mrb[5].mxu0  ;;  %v436_v52 = vpop.f32.mrb[5].mxu1 }
 0x13b   : > { %459 = vst [vmem:[%s1169_s25 + $0x20] sm:$0xff] %v396_v51  ;;  %467 = vst [vmem:[%s1169_s25 + $0x60] sm:$0xff] %v436_v52 }
 0x13d   : > { %v697_v53 = vpop.f32.mrb[6].mxu0  ;;  %v709_v54 = vpop.f32.mrb[6].mxu1 }
 0x13e   : > { %462 = vst [vmem:[%s1169_s25 + $0x38] sm:$0xff] %v697_v53  ;;  %470 = vst [vmem:[%s1169_s25 + $0x78] sm:$0xff] %v709_v54  ;;  %v406_v55 = vpop.f32.mrb[7].mxu0  ;;  %v446_v56 = vpop.f32.mrb[7].mxu1 }
 0x13f   : > { %461 = vst [vmem:[%s1169_s25 + $0x30] sm:$0xff] %v406_v55  ;;  %469 = vst [vmem:[%s1169_s25 + $0x70] sm:$0xff] %v446_v56 }
 0x140   : > { %862 = shalt.err (!%p859_p7)
}
 0x141   : > { %s863_s8 = scalar_lea.hbm %s1188_s30, 2048  ;;  %s867_s21 = scalar_lea.hbm %s1252_s2, 12288 }
 0x142   : > { %p864_p9 = scmp.ne.s32.totalorder %s1188_s30, %s863_s8  ;;  %p868_p12 = scmp.lt.u32.totalorder %s1188_s30, %s1252_s2 }
 0x143   : > { %p869_p13 = scmp.lt.u32.totalorder %s867_s21, %s863_s8  ;;  %p871_p1 = scmp.lt.u32.totalorder %s863_s8, %s1188_s30 }
 0x144   : > { %p865_p10 = pnand %p864_p9, %p1015_p3 }
 0x145   : > { %p870_p0 = por %p869_p13, %p868_p12 }
 0x146   : > { %p866_p11 = pneg %p865_p10 }
 0x147   : > { %p872_p2 = por %p871_p1, %p870_p0 }
 0x149   : > { %p873_p4 = pnand %p872_p2, %p866_p11 }
 0x14b   : > { %876 = shalt.err (!%p873_p4)
}
 0x14c   : > { %s946_s13 = smov 128   ;;  %s947_s26 = smov 384  }
 0x14d   : > { %s948_s12 = smov 8  }
 0x14e   : > { %775 = dma.vmem_to_hbm [thread:$0]  (%p1015_p3), %s1190_s28, 2048, %s1188_s30, %s1198_s3, %s946_s13, %s947_s26, %s948_s12  }
 0x14f PF: > { %p781_p5 = scmp.ge.s32.totalorder %s943_s16, 2  ;;  %s502_s29 = sand.u32 1, %s915_s9  }
 0x150   : > { %s503_s4 = scalar_lea.sflag [#allocation3], %s502_s29 }
 0x151   : > { %p778_p6 = pnand %p781_p5, %p1024_p8 }
 0x153   : > { %910 = dma.done.wait (!%p778_p6), %s503_s4, 2048  }
 0x154   : > { %912 = vsyncadd (!%p778_p6), %s503_s4, 4294965248  ;;  %s15_s16 = sadd.s32 1, %s943_s16   ;;  %s1257_s9 = smov %s919_s10 }
 0x155   : > { %p12_p7 = scmp.ge.s32.totalorder %s15_s16, 8   ;;  %s1258_s10 = smov %s923_s11 }
 0x156   : > { %s1259_s11 = smov %s1033_s27  ;;  %s1260_s12 = smov %s935_s14 }
 0x157   : > { %s1261_s13 = smov %s939_s15  ;;  %s1262_s14 = smov %s1265_s19 }
 0x158   : > { %s1263_s15 = smov %s1269_s20  ;;  %14 = sbr.rel (!%p12_p7) target bundleno = 5 (0x5), region = 66 }
 0x15f   :  { %508 = vsyncpa [#allocation3], 1 }
 0x160   :  { %510 = vsyncpa [#allocation3 + $0x1], 1 }

// kernel: recon_all_forward.16
= control target key start
LH: loop header
LB: loop body
LE: loop exit
PB: predicated region body
PF: predicated region fallthrough
CT: control target
= control target key end

     0   :  { %9 = vsyncpa [#allocation3], 0  ;;  %s1424_s15 = smov 0   ;;  %s1426_s16 = smov 0   ;;  %s1938_s0 = inlined_call_operand.vmem [shape: f32[2], index: 0, kind: input, shape index: {}]   ;;  %s1939_s1 = inlined_call_operand.vmem [shape: f32[256,384], index: 1, kind: input, shape index: {}]   ;;  %s1940_s2 = inlined_call_operand.vmem [shape: f32[256,64], index: 2, kind: input, shape index: {}]   ;;  %s1941_s3 = inlined_call_operand.vmem [shape: f32[384,32], index: 3, kind: input, shape index: {}]   ;;  %s1942_s4 = inlined_call_operand.vmem [shape: f32[384,32], index: 4, kind: output, shape index: {}]  }
   0x1   :  { %s1428_s17 = smov 0  }
   0x2 LB: > { %s1029_s18 = sadd.s32 4294967295, %s1395_s17   ;;  %s1441_s19 = sadd.s32 1, %s1395_s17   ;;  %s1395_s17 = sphi %s1428_s17, %s1948_s17   ;;  %s1391_s16 = sphi %s1426_s16, %s1947_s16   ;;  %s1387_s15 = sphi %s1424_s15, %s1946_s15  }
   0x3   : > { %s40_s20 = ssub.s32 %s1395_s17, %s1441_s19  ;;  %s43_s21 = sadd.s32 1, %s1391_s16 }
   0x4   : > { %p41_p0 = scmp.eq.s32.totalorder %s40_s20, 0  ;;  %p50_p1 = scmp.ne.s32.totalorder %s1391_s16, %s1387_s15 }
   0x5   : > { %p51_p2 = scmp.eq.s32.totalorder %s1395_s17, 0  ;;  %p1031_p3 = scmp.ge.s32.totalorder %s1395_s17, 1 }
   0x6   : > { %s1451_s22 = scalar_select %p41_p0, %s1391_s16, %s43_s21  }
   0x7   : > { %p1453_p4 = por %p51_p2, %p50_p1  ;;  %p140_p5 = scmp.lt.s32.totalorder %s1395_s17, 4 }
   0x8   : > { %p1460_p6 = scmp.eq.s32.totalorder %s1029_s18, 0  ;;  %s153_s28 = sshll.u32 %s1938_s0, 4  ;;  %s154_s28 = int_to_ptr.vmem [resolvable:$true] %s153_s28 }
   0x9   : > { %p1464_p7 = pnand %p1031_p3, %p140_p5  ;;  %s1354_s29 = scalar_lea.vmem %s154_s28, 16 }
   0xa   : > { %p1355_p10 = scmp.ne.s32.totalorder %s154_s28, %s1354_s29  ;;  %p1362_p0 = scmp.lt.s32.totalorder %s154_s28, %s154_s28 }
   0xb   : > { %p1178_p8 = pneg %p1464_p7  ;;  %p1363_p1 = scmp.lt.s32.totalorder %s1354_s29, %s1354_s29 }
   0xd   : > { %p1179_p9 = pnand %p1460_p6, %p1178_p8  ;;  %p1364_p2 = por %p1363_p1, %p1362_p0 }
   0xf   : > { %p1356_p11 = pneg %p1179_p9 }
  0x11   : > { %p1357_p12 = pnand %p1356_p11, %p1355_p10 }
  0x13   : > { %p1358_p13 = pneg %p1357_p12 }
  0x15   : > { %p1365_p3 = pnand %p1364_p2, %p1358_p13 }
  0x17   : > { %1368 = shalt.err (!%p1365_p3)
}
  0x18   : > { %s1397_s30 = smov [#allocation2]   ;;  %p1033_p5 = scmp.ge.s32.totalorder %s1395_s17, 3 }
  0x19   : > { %1181 = dma.vmem_to_smem (!%p1179_p9), %s154_s28, 16, %s1397_s30, [#allocation3]  }
  0x1a   : > { %163 = sbr.rel (%p1033_p5) target bundleno = 53 (0x35), region = 24 }
  0x21   : > { %166 = sbr.rel (!%p1453_p4) target bundleno = 53 (0x35), region = 28  ;;  %s168_s5 = sand.u32 (%p1453_p4), 1, %s1391_s16  }
  0x22   : > { %s1035_s6 = sshll.u32 (%p1453_p4), %s1395_s17, 3  ;;  %s1034_s7 = sshll.u32 (%p1453_p4), %s168_s5, 8 }
  0x23   : > { %s1483_s10 = scalar_lea.vmem (%p1453_p4), %s1939_s1, %s1035_s6  ;;  %s1488_s11 = scalar_lea.vmem (%p1453_p4), [#allocation4], %s1034_s7 }
  0x24   : > { %v262_v0 = vld [vmem:[%s1483_s10] sm:$0xff] (%p1453_p4)  ;;  %v264_v1 = vld [vmem:[%s1483_s10 + $0x18] sm:$0xff] (%p1453_p4)  ;;  %v266_v2 = vld [vmem:[%s1483_s10 + $0x30] sm:$0xff] (%p1453_p4) }
  0x25   : > { %263 = vst [vmem:[%s1488_s11] sm:$0xff] (%p1453_p4), %v262_v0  ;;  %265 = vst [vmem:[%s1488_s11 + $0x8] sm:$0xff] (%p1453_p4), %v264_v1  ;;  %v268_v3 = vld [vmem:[%s1483_s10 + $0x48] sm:$0xff] (%p1453_p4)  ;;  %v270_v4 = vld [vmem:[%s1483_s10 + $0x60] sm:$0xff] (%p1453_p4) }
  0x26   : > { %267 = vst [vmem:[%s1488_s11 + $0x10] sm:$0xff] (%p1453_p4), %v266_v2  ;;  %v272_v5 = vld [vmem:[%s1483_s10 + $0x78] sm:$0xff] (%p1453_p4)  ;;  %269 = vst [vmem:[%s1488_s11 + $0x18] sm:$0xff] (%p1453_p4), %v268_v3  ;;  %v274_v6 = vld [vmem:[%s1483_s10 + $0x90] sm:$0xff] (%p1453_p4) }
  0x27   : > { %271 = vst [vmem:[%s1488_s11 + $0x20] sm:$0xff] (%p1453_p4), %v270_v4  ;;  %273 = vst [vmem:[%s1488_s11 + $0x28] sm:$0xff] (%p1453_p4), %v272_v5  ;;  %v276_v7 = vld [vmem:[%s1483_s10 + $0xa8] sm:$0xff] (%p1453_p4)  ;;  %v278_v8 = vld [vmem:[%s1483_s10 + $0xc0] sm:$0xff] (%p1453_p4) }
  0x28   : > { %275 = vst [vmem:[%s1488_s11 + $0x30] sm:$0xff] %v274_v6  ;;  %277 = vst [vmem:[%s1488_s11 + $0x38] sm:$0xff] %v276_v7  ;;  %v280_v9 = vld [vmem:[%s1483_s10 + $0xd8] sm:$0xff]  ;;  %v282_v10 = vld [vmem:[%s1483_s10 + $0xf0] sm:$0xff] }
  0x29   : > { %279 = vst [vmem:[%s1488_s11 + $0x40] sm:$0xff] %v278_v8  ;;  %v284_v11 = vld [vmem:[%s1483_s10 + $0x108] sm:$0xff]  ;;  %281 = vst [vmem:[%s1488_s11 + $0x48] sm:$0xff] %v280_v9  ;;  %v286_v12 = vld [vmem:[%s1483_s10 + $0x120] sm:$0xff] }
  0x2a   : > { %283 = vst [vmem:[%s1488_s11 + $0x50] sm:$0xff] %v282_v10  ;;  %285 = vst [vmem:[%s1488_s11 + $0x58] sm:$0xff] %v284_v11  ;;  %v288_v13 = vld [vmem:[%s1483_s10 + $0x138] sm:$0xff]  ;;  %v290_v14 = vld [vmem:[%s1483_s10 + $0x150] sm:$0xff] }
  0x2b   : > { %287 = vst [vmem:[%s1488_s11 + $0x60] sm:$0xff] %v286_v12  ;;  %289 = vst [vmem:[%s1488_s11 + $0x68] sm:$0xff] %v288_v13  ;;  %v292_v15 = vld [vmem:[%s1483_s10 + $0x168] sm:$0xff]  ;;  %v294_v16 = vld [vmem:[%s1483_s10 + $0x180] sm:$0xff] }
  0x2c   : > { %291 = vst [vmem:[%s1488_s11 + $0x70] sm:$0xff] %v290_v14  ;;  %v296_v17 = vld [vmem:[%s1483_s10 + $0x198] sm:$0xff]  ;;  %293 = vst [vmem:[%s1488_s11 + $0x78] sm:$0xff] %v292_v15  ;;  %v298_v18 = vld [vmem:[%s1483_s10 + $0x1b0] sm:$0xff] }
  0x2d   : > { %295 = vst [vmem:[%s1488_s11 + $0x80] sm:$0xff] %v294_v16  ;;  %297 = vst [vmem:[%s1488_s11 + $0x88] sm:$0xff] %v296_v17  ;;  %v300_v19 = vld [vmem:[%s1483_s10 + $0x1c8] sm:$0xff]  ;;  %v302_v20 = vld [vmem:[%s1483_s10 + $0x1e0] sm:$0xff] }
  0x2e   : > { %299 = vst [vmem:[%s1488_s11 + $0x90] sm:$0xff] %v298_v18  ;;  %301 = vst [vmem:[%s1488_s11 + $0x98] sm:$0xff] %v300_v19  ;;  %v304_v21 = vld [vmem:[%s1483_s10 + $0x1f8] sm:$0xff]  ;;  %v306_v22 = vld [vmem:[%s1483_s10 + $0x210] sm:$0xff] }
  0x2f   : > { %303 = vst [vmem:[%s1488_s11 + $0xa0] sm:$0xff] %v302_v20  ;;  %v308_v23 = vld [vmem:[%s1483_s10 + $0x228] sm:$0xff]  ;;  %305 = vst [vmem:[%s1488_s11 + $0xa8] sm:$0xff] %v304_v21  ;;  %v310_v24 = vld [vmem:[%s1483_s10 + $0x240] sm:$0xff] }
  0x30   : > { %307 = vst [vmem:[%s1488_s11 + $0xb0] sm:$0xff] %v306_v22  ;;  %309 = vst [vmem:[%s1488_s11 + $0xb8] sm:$0xff] %v308_v23  ;;  %v312_v25 = vld [vmem:[%s1483_s10 + $0x258] sm:$0xff]  ;;  %v314_v26 = vld [vmem:[%s1483_s10 + $0x270] sm:$0xff] }
  0x31   : > { %311 = vst [vmem:[%s1488_s11 + $0xc0] sm:$0xff] %v310_v24  ;;  %313 = vst [vmem:[%s1488_s11 + $0xc8] sm:$0xff] %v312_v25  ;;  %v316_v27 = vld [vmem:[%s1483_s10 + $0x288] sm:$0xff]  ;;  %v318_v28 = vld [vmem:[%s1483_s10 + $0x2a0] sm:$0xff] }
  0x32   : > { %315 = vst [vmem:[%s1488_s11 + $0xd0] sm:$0xff] %v314_v26  ;;  %v320_v29 = vld [vmem:[%s1483_s10 + $0x2b8] sm:$0xff]  ;;  %317 = vst [vmem:[%s1488_s11 + $0xd8] sm:$0xff] %v316_v27  ;;  %v322_v30 = vld [vmem:[%s1483_s10 + $0x2d0] sm:$0xff] }
  0x33   : > { %319 = vst [vmem:[%s1488_s11 + $0xe0] sm:$0xff] %v318_v28  ;;  %321 = vst [vmem:[%s1488_s11 + $0xe8] sm:$0xff] %v320_v29  ;;  %v324_v31 = vld [vmem:[%s1483_s10 + $0x2e8] sm:$0xff] }
  0x34   : > { %323 = vst [vmem:[%s1488_s11 + $0xf0] sm:$0xff] %v322_v30  ;;  %325 = vst [vmem:[%s1488_s11 + $0xf8] sm:$0xff] %v324_v31 }
  0x35 PF: > { %343 = sbr.rel (%p1464_p7) target bundleno = 1133 (0x46d), region = 70 }
  0x3c   : > { %1382 = dma.done.wait (%p1460_p6), [#allocation3], 16  }
  0x3d   : > { %1384 = vsyncadd (%p1460_p6), [#allocation3], 4294967280  ;;  %s350_s12 = sand.u32 1, %s1387_s15  }
  0x3e   : > { %s1038_s13 = sshll.u32 %s350_s12, 8 }
  0x3f   : > { %s1558_s14 = scalar_lea.vmem [#allocation4], %s1038_s13 }
  0x40   : > { %356 = sfence }
  0x41   : > { %v393_v32 = vld [vmem:[%s1558_s14] sm:$0xff]  ;;  %v394_v34 = vld [vmem:[%s1558_s14 + $0x8] sm:$0xff]  ;;  %v395_v38 = vld [vmem:[%s1558_s14 + $0x10] sm:$0xff]  ;;  %vm682_vm0 = vcmask 261120   ;;  %s1039_s24 = sshll.u32 %s1029_s18, 4  ;;  %s779_s25 = sld [smem:[#allocation2]] }
  0x42   : > { %v409_v33 = vld [vmem:[%s1558_s14 + $0x80] sm:$0xff]  ;;  %v410_v36 = vld [vmem:[%s1558_s14 + $0x88] sm:$0xff]  ;;  %v411_v39 = vld [vmem:[%s1558_s14 + $0x90] sm:$0xff]  ;;  %p382_p4 = scmp.lt.s32.totalorder %s1039_s24, 47  ;;  %s1043_s26 = sld [smem:[#allocation2 + $0x1]] }
  0x43   : > { %v1210_v35 = vpack.i.bf16 %v393_v32, %v409_v33  ;;  %v1212_v37 = vpack.i.bf16 %v394_v34, %v410_v36  ;;  %v1214_v40 = vpack.i.bf16 %v395_v38, %v411_v39  ;;  %v396_v41 = vld [vmem:[%s1558_s14 + $0x18] sm:$0xff]  ;;  %v397_v43 = vld [vmem:[%s1558_s14 + $0x20] sm:$0xff]  ;;  %v442_v47 = vld [vmem:[%s1940_s2 + $0x88] sm:$0xff] }
  0x44   : > { %v412_v42 = vld [vmem:[%s1558_s14 + $0x98] sm:$0xff]  ;;  %v413_v44 = vld [vmem:[%s1558_s14 + $0xa0] sm:$0xff]  ;;  %v426_v49 = vld [vmem:[%s1940_s2 + $0x8] sm:$0xff]  ;;  %s1950_s24 = smov (!%p382_p4, %s1039_s24), 47 }
  0x45   : > { %1211 = vxpose.xlu0.b32.start [1/16] %v1210_v35, 128  ;;  %v441_v45 = vld [vmem:[%s1940_s2 + $0x80] sm:$0xff]  ;;  %v1216_v46 = vpack.i.bf16 %v396_v41, %v412_v42  ;;  %v443_v52 = vld [vmem:[%s1940_s2 + $0x90] sm:$0xff]  ;;  %v444_v53 = vld [vmem:[%s1940_s2 + $0x98] sm:$0xff]  ;;  %v1218_v59 = vpack.i.bf16 %v397_v43, %v413_v44  ;;  %s1040_s27 = sshll.u32 %s1950_s24, 3 }
  0x46   : > { %v425_v48 = vld [vmem:[%s1940_s2] sm:$0xff]  ;;  %v1126_v50 = vpack.c.bf16 %v442_v47, %v441_v45  ;;  %v427_v54 = vld [vmem:[%s1940_s2 + $0x10] sm:$0xff]  ;;  %v1130_v55 = vpack.c.bf16 %v444_v53, %v443_v52  ;;  %v428_v56 = vld [vmem:[%s1940_s2 + $0x18] sm:$0xff]  ;;  %s1734_s28 = scalar_lea.vmem %s1941_s3, %s1040_s27  ;;  %s1752_s5 = scalar_lea.vmem %s1942_s4, %s1040_s27 }
  0x47   : > { %v1128_v51 = vpack.c.bf16 %v426_v49, %v425_v48  ;;  %v445_v57 = vld [vmem:[%s1940_s2 + $0xa0] sm:$0xff]  ;;  %v446_v58 = vld [vmem:[%s1940_s2 + $0xa8] sm:$0xff]  ;;  %v1132_v61 = vpack.c.bf16 %v428_v56, %v427_v54  ;;  %v447_v2 = vld [vmem:[%s1940_s2 + $0xb0] sm:$0xff] }
  0x48   : > { %1127 = vmatprep.subr.bf16.mxu0 %v1126_v50  ;;  %1158 = vmatprep.subr.bf16.mxu1 %v1126_v50  ;;  %v398_v60 = vld [vmem:[%s1558_s14 + $0x28] sm:$0xff]  ;;  %v1134_v63 = vpack.c.bf16 %v446_v58, %v445_v57  ;;  %v429_v0 = vld [vmem:[%s1940_s2 + $0x20] sm:$0xff]  ;;  %v448_v3 = vld [vmem:[%s1940_s2 + $0xb8] sm:$0xff] }
  0x49   : > { %1213 = vxpose.xlu0.b32.cont [2/16] %v1212_v37, 128  ;;  %1129 = vmatpush3.bf16.msra.mxu0 %v1128_v51  ;;  %v414_v62 = vld [vmem:[%s1558_s14 + $0xa8] sm:$0xff]  ;;  %v399_v5 = vld [vmem:[%s1558_s14 + $0x30] sm:$0xff]  ;;  %v1138_v8 = vpack.c.bf16 %v448_v3, %v447_v2  ;;  %v432_v10 = vld [vmem:[%s1940_s2 + $0x38] sm:$0xff] }
  0x4a   : > { %1131 = vmatprep.subr.bf16.mxu0 %v1130_v55  ;;  %v430_v1 = vld [vmem:[%s1940_s2 + $0x28] sm:$0xff]  ;;  %1166 = vmatpush3.bf16.msra.mxu1 %v1128_v51  ;;  %v1220_v4 = vpack.i.bf16 %v398_v60, %v414_v62  ;;  %v415_v7 = vld [vmem:[%s1558_s14 + $0xb0] sm:$0xff]  ;;  %v449_v11 = vld [vmem:[%s1940_s2 + $0xc0] sm:$0xff] }
  0x4b   : > { %1159 = vmatprep.subr.bf16.mxu1 %v1130_v55  ;;  %v1136_v6 = vpack.c.bf16 %v430_v1, %v429_v0  ;;  %v431_v9 = vld [vmem:[%s1940_s2 + $0x30] sm:$0xff]  ;;  %v450_v12 = vld [vmem:[%s1940_s2 + $0xc8] sm:$0xff]  ;;  %v1222_v13 = vpack.i.bf16 %v399_v5, %v415_v7  ;;  %v400_v14 = vld [vmem:[%s1558_s14 + $0x38] sm:$0xff] }
  0x4c   : > { %v1140_v15 = vpack.c.bf16 %v432_v10, %v431_v9  ;;  %v416_v16 = vld [vmem:[%s1558_s14 + $0xb8] sm:$0xff]  ;;  %v1142_v17 = vpack.c.bf16 %v450_v12, %v449_v11  ;;  %v433_v18 = vld [vmem:[%s1940_s2 + $0x40] sm:$0xff]  ;;  %v434_v19 = vld [vmem:[%s1940_s2 + $0x48] sm:$0xff] }
  0x4d   : > { %1215 = vxpose.xlu0.b32.cont [3/16] %v1214_v40, 128  ;;  %1133 = vmatpush3.bf16.msra.mxu0 %v1132_v61  ;;  %v451_v20 = vld [vmem:[%s1940_s2 + $0xd0] sm:$0xff]  ;;  %v452_v21 = vld [vmem:[%s1940_s2 + $0xd8] sm:$0xff]  ;;  %v1224_v22 = vpack.i.bf16 %v400_v14, %v416_v16  ;;  %v401_v23 = vld [vmem:[%s1558_s14 + $0x40] sm:$0xff]  ;;  %v1144_v24 = vpack.c.bf16 %v434_v19, %v433_v18 }
  0x4e   : > { %1135 = vmatprep.subr.bf16.mxu0 %v1134_v63  ;;  %1167 = vmatpush3.bf16.msra.mxu1 %v1132_v61  ;;  %v417_v25 = vld [vmem:[%s1558_s14 + $0xc0] sm:$0xff]  ;;  %v1146_v26 = vpack.c.bf16 %v452_v21, %v451_v20  ;;  %v435_v27 = vld [vmem:[%s1940_s2 + $0x50] sm:$0xff]  ;;  %v436_v28 = vld [vmem:[%s1940_s2 + $0x58] sm:$0xff] }
  0x4f   : > { %1160 = vmatprep.subr.bf16.mxu1 %v1134_v63  ;;  %v453_v29 = vld [vmem:[%s1940_s2 + $0xe0] sm:$0xff]  ;;  %v454_v30 = vld [vmem:[%s1940_s2 + $0xe8] sm:$0xff]  ;;  %v1226_v31 = vpack.i.bf16 %v401_v23, %v417_v25  ;;  %v1148_v33 = vpack.c.bf16 %v436_v28, %v435_v27  ;;  %v455_v38 = vld [vmem:[%s1940_s2 + $0xf0] sm:$0xff] }
  0x50   : > { %v402_v32 = vld [vmem:[%s1558_s14 + $0x48] sm:$0xff]  ;;  %v1150_v35 = vpack.c.bf16 %v454_v30, %v453_v29  ;;  %v437_v36 = vld [vmem:[%s1940_s2 + $0x60] sm:$0xff]  ;;  %v456_v39 = vld [vmem:[%s1940_s2 + $0xf8] sm:$0xff] }
  0x51   : > { %1217 = vxpose.xlu0.b32.cont [4/16] %v1216_v46, 128  ;;  %1137 = vmatpush3.bf16.msra.mxu0 %v1136_v6  ;;  %v418_v34 = vld [vmem:[%s1558_s14 + $0xc8] sm:$0xff]  ;;  %v403_v41 = vld [vmem:[%s1558_s14 + $0x50] sm:$0xff]  ;;  %v1154_v44 = vpack.c.bf16 %v456_v39, %v455_v38  ;;  %v440_v46 = vld [vmem:[%s1940_s2 + $0x78] sm:$0xff] }
  0x52   : > { %1139 = vmatprep.subr.bf16.mxu0 %v1138_v8  ;;  %1168 = vmatpush3.bf16.msra.mxu1 %v1136_v6  ;;  %v438_v37 = vld [vmem:[%s1940_s2 + $0x68] sm:$0xff]  ;;  %v1228_v40 = vpack.i.bf16 %v402_v32, %v418_v34  ;;  %v419_v43 = vld [vmem:[%s1558_s14 + $0xd0] sm:$0xff]  ;;  %v404_v49 = vld [vmem:[%s1558_s14 + $0x58] sm:$0xff] }
  0x53   : > { %1161 = vmatprep.subr.bf16.mxu1 %v1138_v8  ;;  %v1152_v42 = vpack.c.bf16 %v438_v37, %v437_v36  ;;  %v439_v45 = vld [vmem:[%s1940_s2 + $0x70] sm:$0xff]  ;;  %v1230_v47 = vpack.i.bf16 %v403_v41, %v419_v43  ;;  %v420_v50 = vld [vmem:[%s1558_s14 + $0xd8] sm:$0xff]  ;;  %v405_v52 = vld [vmem:[%s1558_s14 + $0x60] sm:$0xff] }
  0x54   : > { %v1156_v48 = vpack.c.bf16 %v440_v46, %v439_v45  ;;  %v1232_v51 = vpack.i.bf16 %v404_v49, %v420_v50  ;;  %v421_v53 = vld [vmem:[%s1558_s14 + $0xe0] sm:$0xff]  ;;  %v406_v55 = vld [vmem:[%s1558_s14 + $0x68] sm:$0xff]  ;;  %v407_v58 = vld [vmem:[%s1558_s14 + $0x70] sm:$0xff] }
  0x55   : > { %1219 = vxpose.xlu0.b32.cont [5/16] %v1218_v59, 128  ;;  %1141 = vmatpush3.bf16.msra.mxu0 %v1140_v15  ;;  %v1234_v54 = vpack.i.bf16 %v405_v52, %v421_v53  ;;  %v422_v56 = vld [vmem:[%s1558_s14 + $0xe8] sm:$0xff]  ;;  %v423_v59 = vld [vmem:[%s1558_s14 + $0xf0] sm:$0xff]  ;;  %v408_v61 = vld [vmem:[%s1558_s14 + $0x78] sm:$0xff] }
  0x56   : > { %1143 = vmatprep.subr.bf16.mxu0 %v1142_v17  ;;  %1169 = vmatpush3.bf16.msra.mxu1 %v1140_v15  ;;  %v1236_v57 = vpack.i.bf16 %v406_v55, %v422_v56  ;;  %v1238_v60 = vpack.i.bf16 %v407_v58, %v423_v59  ;;  %v424_v62 = vld [vmem:[%s1558_s14 + $0xf8] sm:$0xff]  ;;  %s1398_s14 = smov 96  }
  0x57   : > { %1162 = vmatprep.subr.bf16.mxu1 %v1142_v17  ;;  %v1240_v63 = vpack.i.bf16 %v408_v61, %v424_v62 }
  0x59   : > { %1221 = vxpose.xlu0.b32.cont [6/16] %v1220_v4, 128  ;;  %1145 = vmatpush3.bf16.msra.mxu0 %v1144_v24 }
  0x5a   : > { %1147 = vmatprep.subr.bf16.mxu0 %v1146_v26  ;;  %1170 = vmatpush3.bf16.msra.mxu1 %v1144_v24 }
  0x5b   : > { %1163 = vmatprep.subr.bf16.mxu1 %v1146_v26 }
  0x5d   : > { %1223 = vxpose.xlu0.b32.cont [7/16] %v1222_v13, 128  ;;  %1149 = vmatpush3.bf16.msra.mxu0 %v1148_v33 }
  0x5e   : > { %1151 = vmatprep.subr.bf16.mxu0 %v1150_v35  ;;  %1171 = vmatpush3.bf16.msra.mxu1 %v1148_v33 }
  0x5f   : > { %1164 = vmatprep.subr.bf16.mxu1 %v1150_v35 }
  0x61   : > { %1225 = vxpose.xlu0.b32.cont [8/16] %v1224_v22, 128  ;;  %1153 = vmatpush3.bf16.msra.mxu0 %v1152_v42 }
  0x62   : > { %1155 = vmatprep.subr.bf16.mxu0 %v1154_v44  ;;  %1172 = vmatpush3.bf16.msra.mxu1 %v1152_v42 }
  0x63   : > { %1165 = vmatprep.subr.bf16.mxu1 %v1154_v44 }
  0x65   : > { %1227 = vxpose.xlu0.b32.cont [9/16] %v1226_v31, 128  ;;  %1157 = vmatpush3.bf16.msra.mxu0 %v1156_v48 }
  0x66   : > { %1173 = vmatpush3.bf16.msra.mxu1 %v1156_v48 }
  0x69   : > { %1229 = vxpose.xlu0.b32.cont [10/16] %v1228_v40, 128 }
  0x6d   : > { %1231 = vxpose.xlu0.b32.cont [11/16] %v1230_v47, 128 }
  0x71   : > { %1233 = vxpose.xlu0.b32.cont [12/16] %v1232_v51, 128 }
  0x75   : > { %1235 = vxpose.xlu0.b32.cont [13/16] %v1234_v54, 128 }
  0x79   : > { %1237 = vxpose.xlu0.b32.cont [14/16] %v1236_v57, 128 }
  0x7d   : > { %1239 = vxpose.xlu0.b32.cont [15/16] %v1238_v60, 128 }
  0x81   : > { %1241 = vxpose.xlu0.b32.end [16/16] %v1240_v63, 128 }
  0xc5   : > { %v1242_v0 = vpop.trf.xlu0 }
  0xc6   : > { %v1243_v1 = vunpack.i.l.bf16 %v1242_v0  ;;  %v1246_v2 = vunpack.i.h.bf16 %v1242_v0 }
  0xc8   : > { %585 = vmatprep.mubr.f32.mxu0 %v1243_v1 }
  0xc9   : > { %586 = vmatmul.mubr.f32.vlgmr.msra.gmra.mrb[0].mxu0 %v1246_v2  ;;  %v1247_v3 = vpop.trf.xlu0 }
  0xca   : > { %v1248_v4 = vunpack.i.l.bf16 %v1247_v3  ;;  %v1251_v5 = vunpack.i.h.bf16 %v1247_v3 }
  0xcc   : > { %590 = vmatprep.mubr.f32.mxu0 %v1248_v4 }
  0xcd   : > { %591 = vmatmul.mubr.f32.gmra.mrb[2].mxu0 %v1251_v5  ;;  %v1252_v6 = vpop.trf.xlu0 }
  0xce   : > { %v1253_v7 = vunpack.i.l.bf16 %v1252_v6  ;;  %v1256_v8 = vunpack.i.h.bf16 %v1252_v6 }
  0xd0   : > { %595 = vmatprep.mubr.f32.mxu0 %v1253_v7  ;;  %v1736_v7 = vstv %s779_s25 }
  0xd1   : > { %596 = vmatmul.mubr.f32.gmra.mrb[4].mxu0 %v1256_v8  ;;  %v1257_v9 = vpop.trf.xlu0 }
  0xd2   : > { %v1258_v10 = vunpack.i.l.bf16 %v1257_v9  ;;  %v1261_v11 = vunpack.i.h.bf16 %v1257_v9  ;;  %v1738_v9 = vstv %s1043_s26 }
  0xd4   : > { %600 = vmatprep.mubr.f32.mxu0 %v1258_v10  ;;  %v877_v10 = vld [vmem:[%s1734_s28] sm:$0xff] }
  0xd5   : > { %601 = vmatmul.mubr.f32.gmra.mrb[6].mxu0 %v1261_v11  ;;  %v1262_v12 = vpop.trf.xlu0 }
  0xd6   : > { %v1263_v13 = vunpack.i.l.bf16 %v1262_v12  ;;  %v1266_v14 = vunpack.i.h.bf16 %v1262_v12 }
  0xd8   : > { %605 = vmatprep.mubr.f32.mxu0 %v1263_v13 }
  0xd9   : > { %606 = vmatmul.mubr.f32.gmra.mrb[8].mxu0 %v1266_v14  ;;  %v1267_v15 = vpop.trf.xlu0 }
  0xda   : > { %v1268_v16 = vunpack.i.l.bf16 %v1267_v15  ;;  %v1271_v17 = vunpack.i.h.bf16 %v1267_v15 }
  0xdc   : > { %610 = vmatprep.mubr.f32.mxu0 %v1268_v16  ;;  %v895_v16 = vmul.f32 %v1738_v9, %v877_v10 }
  0xdd   : > { %611 = vmatmul.mubr.f32.gmra.mrb[10].mxu0 %v1271_v17  ;;  %v1272_v18 = vpop.trf.xlu0 }
  0xde   : > { %v1273_v19 = vunpack.i.l.bf16 %v1272_v18  ;;  %v1276_v20 = vunpack.i.h.bf16 %v1272_v18 }
  0xe0   : > { %615 = vmatprep.mubr.f32.mxu0 %v1273_v19 }
  0xe1   : > { %616 = vmatmul.mubr.f32.gmra.mrb[12].mxu0 %v1276_v20  ;;  %v1277_v21 = vpop.trf.xlu0 }
  0xe2   : > { %v1278_v30 = vunpack.i.l.bf16 %v1277_v21  ;;  %v1281_v31 = vunpack.i.h.bf16 %v1277_v21 }
  0xe4   : > { %620 = vmatprep.mubr.f32.mxu0 %v1278_v30 }
  0xe5   : > { %v1282_v22 = vpop.trf.xlu0  ;;  %621 = vmatmul.mubr.f32.gmra.mrb[14].mxu0 %v1281_v31 }
  0xe6   : > { %v1283_v46 = vunpack.i.l.bf16 %v1282_v22  ;;  %v1286_v47 = vunpack.i.h.bf16 %v1282_v22 }
  0xe8   : > { %625 = vmatprep.mubr.f32.mxu1 %v1283_v46 }
  0xe9   : > { %v1287_v23 = vpop.trf.xlu0  ;;  %626 = vmatmul.mubr.f32.vlgmr.msra.gmra.mrb[0].mxu1 %v1286_v47 }
  0xea   : > { %v1288_v49 = vunpack.i.l.bf16 %v1287_v23  ;;  %v1291_v50 = vunpack.i.h.bf16 %v1287_v23 }
  0xec   : > { %630 = vmatprep.mubr.f32.mxu1 %v1288_v49 }
  0xed   : > { %v1292_v24 = vpop.trf.xlu0  ;;  %631 = vmatmul.mubr.f32.gmra.mrb[2].mxu1 %v1291_v50 }
  0xee   : > { %v1293_v55 = vunpack.i.l.bf16 %v1292_v24  ;;  %v1296_v56 = vunpack.i.h.bf16 %v1292_v24 }
  0xf0   : > { %635 = vmatprep.mubr.f32.mxu1 %v1293_v55 }
  0xf1   : > { %v1297_v25 = vpop.trf.xlu0  ;;  %636 = vmatmul.mubr.f32.gmra.mrb[4].mxu1 %v1296_v56 }
  0xf2   : > { %v1298_v61 = vunpack.i.l.bf16 %v1297_v25  ;;  %v1301_v62 = vunpack.i.h.bf16 %v1297_v25 }
  0xf4   : > { %640 = vmatprep.mubr.f32.mxu1 %v1298_v61 }
  0xf5   : > { %v1688_v26 = vpop.trf.xlu0  ;;  %641 = vmatmul.mubr.f32.gmra.mrb[6].mxu1 %v1301_v62 }
  0xf6   : > { %v1303_v0 = vunpack.i.l.bf16 %v1688_v26  ;;  %v1306_v1 = vunpack.i.h.bf16 %v1688_v26 }
  0xf8   : > { %645 = vmatprep.mubr.f32.mxu1 %v1303_v0 }
  0xf9   : > { %v1690_v27 = vpop.trf.xlu0  ;;  %646 = vmatmul.mubr.f32.gmra.mrb[8].mxu1 %v1306_v1 }
  0xfa   : > { %v1308_v12 = vunpack.i.l.bf16 %v1690_v27  ;;  %v1311_v13 = vunpack.i.h.bf16 %v1690_v27 }
  0xfc   : > { %650 = vmatprep.mubr.f32.mxu1 %v1308_v12 }
  0xfd   : > { %v1692_v28 = vpop.trf.xlu0  ;;  %651 = vmatmul.mubr.f32.gmra.mrb[10].mxu1 %v1311_v13 }
  0xfe   : > { %v1313_v23 = vunpack.i.l.bf16 %v1692_v28  ;;  %v1316_v24 = vunpack.i.h.bf16 %v1692_v28 }
 0x100   : > { %655 = vmatprep.mubr.f32.mxu1 %v1313_v23 }
 0x101   : > { %v1694_v29 = vpop.trf.xlu0  ;;  %656 = vmatmul.mubr.f32.gmra.mrb[12].mxu1 %v1316_v24  ;;  %v881_v24 = vld [vmem:[%s1734_s28 + $0x20] sm:$0xff] }
 0x102   : > { %v1318_v25 = vunpack.i.l.bf16 %v1694_v29  ;;  %v1321_v30 = vunpack.i.h.bf16 %v1694_v29 }
 0x104   : > { %660 = vmatprep.mubr.f32.mxu1 %v1318_v25 }
 0x105   : > { %661 = vmatmul.mubr.f32.gmra.mrb[14].mxu1 %v1321_v30 }
 0x19c   : > { %v1078_v32 = vpop.f32.mrb[0].mxu0 }
 0x19d   : > { %v1079_v33 = vpop.f32.mrb[1].mxu0 }
 0x19e   : > { %v1696_v34 = vadd.f32 %v1079_v33, %v1078_v32 }
 0x1a0   : > { %813 = vrot.lane.b32.xlu0 %v1696_v34, %s1398_s14  ;;  %v666_v35 = vmul.f32 %v1696_v34, %v1696_v34  ;;  %v1081_v36 = vpop.f32.mrb[2].mxu0 }
 0x1a1   : > { %v1082_v37 = vpop.f32.mrb[3].mxu0 }
 0x1a2   : > { %v683_v38 = vsel %vm682_vm0, %v666_v35, 0.0  ;;  %v1703_v39 = vadd.f32 %v1082_v37, %v1081_v36 }
 0x1a3   : > { %684 = vadd.xlane.f32.xlu1 %v683_v38 }
 0x1a4   : > { %v1084_v40 = vpop.f32.mrb[4].mxu0  ;;  %v667_v53 = vmul.f32 %v1703_v39, %v1703_v39 }
 0x1a5   : > { %v1085_v41 = vpop.f32.mrb[5].mxu0 }
 0x1a6   : > { %v1705_v42 = vadd.f32 %v1085_v41, %v1084_v40  ;;  %v686_v54 = vsel %vm682_vm0, %v667_v53, 0.0  ;;  %v879_v53 = vld [vmem:[%s1734_s28 + $0x10] sm:$0xff] }
 0x1a8   : > { %v1087_v43 = vpop.f32.mrb[6].mxu0  ;;  %v668_v60 = vmul.f32 %v1705_v42, %v1705_v42 }
 0x1a9   : > { %v1088_v44 = vpop.f32.mrb[7].mxu0 }
 0x1aa   : > { %v1707_v45 = vadd.f32 %v1088_v44, %v1087_v43  ;;  %v689_v63 = vsel %vm682_vm0, %v668_v60, 0.0 }
 0x1ac   : > { %v1090_v48 = vpop.f32.mrb[8].mxu0  ;;  %v669_v11 = vmul.f32 %v1707_v45, %v1707_v45 }
 0x1ad   : > { %v1091_v51 = vpop.f32.mrb[9].mxu0 }
 0x1ae   : > { %v1711_v52 = vadd.f32 %v1091_v51, %v1090_v48  ;;  %v692_v18 = vsel %vm682_vm0, %v669_v11, 0.0 }
 0x1b0   : > { %v1093_v57 = vpop.f32.mrb[10].mxu0  ;;  %v670_v28 = vmul.f32 %v1711_v52, %v1711_v52 }
 0x1b1   : > { %v1094_v58 = vpop.f32.mrb[11].mxu0 }
 0x1b2   : > { %v1718_v59 = vadd.f32 %v1094_v58, %v1093_v57  ;;  %v695_v38 = vsel %vm682_vm0, %v670_v28, 0.0  ;;  %v897_v57 = vmul.f32 %v1738_v9, %v879_v53 }
 0x1b4   : > { %815 = vrot.lane.b32.xlu1 %v1703_v39, %s1398_s14  ;;  %v1096_v3 = vpop.f32.mrb[12].mxu0 }
 0x1b5   : > { %v1097_v5 = vpop.f32.mrb[13].mxu0 }
 0x1b6   : > { %v1729_v6 = vadd.f32 %v1097_v5, %v1096_v3 }
 0x1b8   : > { %v1099_v27 = vpop.f32.mrb[14].mxu0  ;;  %v672_v5 = vmul.f32 %v1729_v6, %v1729_v6 }
 0x1b9   : > { %v1100_v31 = vpop.f32.mrb[15].mxu0 }
 0x1ba   : > { %v1762_v32 = vadd.f32 %v1100_v31, %v1099_v27  ;;  %v899_v31 = vmul.f32 %v1738_v9, %v881_v24 }
 0x1bc   : > { %v1102_v41 = vpop.f32.mrb[0].mxu1  ;;  %v673_v25 = vmul.f32 %v1762_v32, %v1762_v32 }
 0x1bd   : > { %v1103_v43 = vpop.f32.mrb[1].mxu1 }
 0x1be   : > { %v1775_v44 = vadd.f32 %v1103_v43, %v1102_v41 }
 0x1c0   : > { %829 = vrot.lane.b32.xlu0 %v1775_v44, %s1398_s14  ;;  %v1105_v48 = vpop.f32.mrb[2].mxu1  ;;  %v674_v28 = vmul.f32 %v1775_v44, %v1775_v44 }
 0x1c1   : > { %v1106_v49 = vpop.f32.mrb[3].mxu1 }
 0x1c2   : > { %v1779_v50 = vadd.f32 %v1106_v49, %v1105_v48 }
 0x1c4   : > { %v1108_v62 = vpop.f32.mrb[4].mxu1 }
 0x1c5   : > { %v1109_v0 = vpop.f32.mrb[5].mxu1 }
 0x1c6   : > { %v1792_v1 = vadd.f32 %v1109_v0, %v1108_v62 }
 0x1c8   : > { %833 = vrot.lane.b32.xlu0 %v1792_v1, %s1398_s14  ;;  %v1111_v10 = vpop.f32.mrb[6].mxu1 }
 0x1c9   : > { %v1112_v13 = vpop.f32.mrb[7].mxu1 }
 0x1d8   : > { %687 = vadd.xlane.f32.xlu1 %v686_v54  ;;  %v671_v54 = vmul.f32 %v1718_v59, %v1718_v59 }
 0x1da   : > { %v698_v58 = vsel %vm682_vm0, %v671_v54, 0.0 }
 0x1e9   : > { %817 = vrot.lane.b32.xlu1 %v1705_v42, %s1398_s14 }
 0x20d   : > { %690 = vadd.xlane.f32.xlu1 %v689_v63 }
 0x212   : > { %v814_v17 = vpop.permute.xlu0 %813 }
 0x21e   : > { %819 = vrot.lane.b32.xlu1 %v1707_v45, %s1398_s14 }
 0x230   : > { %v685_v2 = vpop.xlane.xlu1 %684 }
 0x231   : > { %v731_v4 = vadd.f32 1e-32, %v685_v2 }
 0x233   : > { %1322 = vrsqrt.f32 %v731_v4  ;;  %v880_v4 = vld [vmem:[%s1734_s28 + $0x18] sm:$0xff] }
 0x234   : > { %v816_v21 = vpop.permute.xlu1 %815  ;;  %v898_v12 = vmul.f32 %v1738_v9, %v880_v4 }
 0x23d   : > { %v1323_v8 = vpop.eup %1322 }
 0x23e   : > { %v763_v14 = vmul.f32 %v1323_v8, %v1696_v34  ;;  %v878_v34 = vld [vmem:[%s1734_s28 + $0x8] sm:$0xff] }
 0x23f   : > { %v896_v37 = vmul.f32 %v1738_v9, %v878_v34  ;;  %v704_v34 = vsel %vm682_vm0, %v673_v25, 0.0 }
 0x240   : > { %v781_v15 = vmul.f32 %v1736_v7, %v763_v14  ;;  %v701_v14 = vsel %vm682_vm0, %v672_v5, 0.0 }
 0x242   : > { %v861_v19 = vadd.f32 %v814_v17, %v781_v15  ;;  %693 = vadd.xlane.f32.xlu1 %v692_v18  ;;  %v1803_v15 = vadd.f32 %v1112_v13, %v1111_v10  ;;  %v1114_v18 = vpop.f32.mrb[8].mxu1 }
 0x244   : > { %v911_v20 = vadd.f32 %v895_v16, %v861_v19 }
 0x246   : > { %927 = vst.msk [vmem:[%s1752_s5] sm:$0xff] %vm682_vm0, %v911_v20  ;;  %v1115_v20 = vpop.f32.mrb[9].mxu1 }
 0x247   : > { %v1117_v27 = vpop.f32.mrb[10].mxu1 }
 0x253   : > { %821 = vrot.lane.b32.xlu1 %v1711_v52, %s1398_s14 }
 0x265   : > { %v688_v22 = vpop.xlane.xlu1 %687 }
 0x266   : > { %v732_v26 = vadd.f32 1e-32, %v688_v22  ;;  %v1809_v22 = vadd.f32 %v1115_v20, %v1114_v18  ;;  %v884_v20 = vld [vmem:[%s1734_s28 + $0x38] sm:$0xff] }
 0x267   : > { %v902_v24 = vmul.f32 %v1738_v9, %v884_v20 }
 0x268   : > { %1324 = vrsqrt.f32 %v732_v26  ;;  %837 = vrot.lane.b32.xlu0 %v1809_v22, %s1398_s14  ;;  %v678_v13 = vmul.f32 %v1809_v22, %v1809_v22 }
 0x272   : > { %v1325_v33 = vpop.eup %1324 }
 0x273   : > { %v764_v35 = vmul.f32 %v1325_v33, %v1703_v39  ;;  %v818_v39 = vpop.permute.xlu1 %817  ;;  %v1118_v33 = vpop.f32.mrb[11].mxu1 }
 0x274   : > { %v1120_v41 = vpop.f32.mrb[12].mxu1 }
 0x275   : > { %v782_v36 = vmul.f32 %v1736_v7, %v764_v35  ;;  %v1822_v35 = vadd.f32 %v1118_v33, %v1117_v27  ;;  %v1121_v43 = vpop.f32.mrb[13].mxu1 }
 0x277   : > { %v862_v40 = vadd.f32 %v816_v21, %v782_v36  ;;  %696 = vadd.xlane.f32.xlu1 %v695_v38  ;;  %v707_v38 = vsel %vm682_vm0, %v674_v28, 0.0  ;;  %v830_v28 = vpop.permute.xlu0 %829 }
 0x279   : > { %v912_v29 = vadd.f32 %v896_v37, %v862_v40 }
 0x27b   : > { %928 = vst.msk [vmem:[%s1752_s5 + $0x8] sm:$0xff] %vm682_vm0, %v912_v29 }
 0x288   : > { %823 = vrot.lane.b32.xlu1 %v1718_v59, %s1398_s14 }
 0x29a   : > { %v691_v46 = vpop.xlane.xlu1 %690 }
 0x29b   : > { %v733_v47 = vadd.f32 1e-32, %v691_v46  ;;  %v1123_v46 = vpop.f32.mrb[14].mxu1 }
 0x29d   : > { %1326 = vrsqrt.f32 %v733_v47  ;;  %v1124_v47 = vpop.f32.mrb[15].mxu1 }
 0x29e   : > { %v820_v63 = vpop.permute.xlu1 %819  ;;  %v1833_v48 = vadd.f32 %v1124_v47, %v1123_v46 }
 0x2a7   : > { %v1327_v51 = vpop.eup %1326 }
 0x2a8   : > { %v765_v55 = vmul.f32 %v1327_v51, %v1705_v42  ;;  %v882_v51 = vld [vmem:[%s1734_s28 + $0x28] sm:$0xff] }
 0x2aa   : > { %v783_v56 = vmul.f32 %v1736_v7, %v765_v55  ;;  %v900_v55 = vmul.f32 %v1738_v9, %v882_v51 }
 0x2ac   : > { %v863_v60 = vadd.f32 %v818_v39, %v783_v56  ;;  %699 = vadd.xlane.f32.xlu1 %v698_v58  ;;  %v1829_v39 = vadd.f32 %v1121_v43, %v1120_v41  ;;  %v675_v56 = vmul.f32 %v1779_v50, %v1779_v50 }
 0x2ae   : > { %v913_v61 = vadd.f32 %v897_v57, %v863_v60  ;;  %841 = vrot.lane.b32.xlu0 %v1829_v39, %s1398_s14  ;;  %v710_v60 = vsel %vm682_vm0, %v675_v56, 0.0 }
 0x2b0   : > { %929 = vst.msk [vmem:[%s1752_s5 + $0x10] sm:$0xff] %vm682_vm0, %v913_v61  ;;  %v676_v61 = vmul.f32 %v1792_v1, %v1792_v1 }
 0x2bd   : > { %825 = vrot.lane.b32.xlu1 %v1729_v6, %s1398_s14 }
 0x2cf   : > { %v694_v42 = vpop.xlane.xlu1 %693 }
 0x2d0   : > { %v734_v2 = vadd.f32 1e-32, %v694_v42 }
 0x2d2   : > { %1328 = vrsqrt.f32 %v734_v2  ;;  %v883_v2 = vld [vmem:[%s1734_s28 + $0x30] sm:$0xff] }
 0x2d3   : > { %v901_v5 = vmul.f32 %v1738_v9, %v883_v2 }
 0x2dc   : > { %v1329_v3 = vpop.eup %1328 }
 0x2dd   : > { %v766_v8 = vmul.f32 %v1329_v3, %v1707_v45  ;;  %v822_v45 = vpop.permute.xlu1 %821 }
 0x2df   : > { %v784_v11 = vmul.f32 %v1736_v7, %v766_v8 }
 0x2e1   : > { %v864_v16 = vadd.f32 %v820_v63, %v784_v11  ;;  %702 = vadd.xlane.f32.xlu1 %v701_v14  ;;  %v677_v11 = vmul.f32 %v1803_v15, %v1803_v15 }
 0x2e3   : > { %v914_v17 = vadd.f32 %v898_v12, %v864_v16  ;;  %v716_v12 = vsel %vm682_vm0, %v677_v11, 0.0 }
 0x2e5   : > { %930 = vst.msk [vmem:[%s1752_s5 + $0x18] sm:$0xff] %vm682_vm0, %v914_v17 }
 0x2f2   : > { %827 = vrot.lane.b32.xlu1 %v1762_v32, %s1398_s14 }
 0x304   : > { %v697_v19 = vpop.xlane.xlu1 %696 }
 0x305   : > { %v735_v21 = vadd.f32 1e-32, %v697_v19 }
 0x307   : > { %1330 = vrsqrt.f32 %v735_v21 }
 0x311   : > { %v1331_v23 = vpop.eup %1330 }
 0x312   : > { %v767_v26 = vmul.f32 %v1331_v23, %v1711_v52  ;;  %v824_v52 = vpop.permute.xlu1 %823 }
 0x314   : > { %v785_v30 = vmul.f32 %v1736_v7, %v767_v26  ;;  %v885_v26 = vld [vmem:[%s1734_s28 + $0x40] sm:$0xff] }
 0x316   : > { %v865_v36 = vadd.f32 %v822_v45, %v785_v30  ;;  %705 = vadd.xlane.f32.xlu1 %v704_v34  ;;  %v903_v34 = vmul.f32 %v1738_v9, %v885_v26 }
 0x318   : > { %v915_v37 = vadd.f32 %v899_v31, %v865_v36 }
 0x31a   : > { %931 = vst.msk [vmem:[%s1752_s5 + $0x20] sm:$0xff] %vm682_vm0, %v915_v37  ;;  %708 = vadd.xlane.f32.xlu1 %v707_v38 }
 0x32b   : > { %831 = vrot.lane.b32.xlu1 %v1779_v50, %s1398_s14 }
 0x339   : > { %v700_v40 = vpop.xlane.xlu1 %699 }
 0x33a   : > { %v736_v29 = vadd.f32 1e-32, %v700_v40  ;;  %v681_v40 = vmul.f32 %v1833_v48, %v1833_v48 }
 0x33c   : > { %1332 = vrsqrt.f32 %v736_v29  ;;  %v728_v29 = vsel %vm682_vm0, %v681_v40, 0.0 }
 0x33d   : > { %v826_v62 = vpop.permute.xlu1 %825 }
 0x346   : > { %v1333_v49 = vpop.eup %1332 }
 0x347   : > { %v768_v53 = vmul.f32 %v1333_v49, %v1718_v59  ;;  %v713_v59 = vsel %vm682_vm0, %v676_v61, 0.0 }
 0x349   : > { %v786_v54 = vmul.f32 %v1736_v7, %v768_v53  ;;  %v886_v53 = vld [vmem:[%s1734_s28 + $0x48] sm:$0xff] }
 0x34a   : > { %v904_v56 = vmul.f32 %v1738_v9, %v886_v53 }
 0x34b   : > { %v866_v57 = vadd.f32 %v824_v52, %v786_v54 }
 0x34d   : > { %v916_v58 = vadd.f32 %v900_v55, %v866_v57 }
 0x34f   : > { %932 = vst.msk [vmem:[%s1752_s5 + $0x28] sm:$0xff] %vm682_vm0, %v916_v58  ;;  %711 = vadd.xlane.f32.xlu1 %v710_v60  ;;  %v887_v58 = vld [vmem:[%s1734_s28 + $0x50] sm:$0xff] }
 0x353   : > { %714 = vadd.xlane.f32.xlu1 %v713_v59 }
 0x364   : > { %835 = vrot.lane.b32.xlu1 %v1803_v15, %s1398_s14 }
 0x36e   : > { %v703_v63 = vpop.xlane.xlu1 %702 }
 0x36f   : > { %v737_v0 = vadd.f32 1e-32, %v703_v63  ;;  %v905_v63 = vmul.f32 %v1738_v9, %v887_v58 }
 0x371   : > { %1334 = vrsqrt.f32 %v737_v0  ;;  %v834_v0 = vpop.permute.xlu0 %833 }
 0x372   : > { %v828_v14 = vpop.permute.xlu1 %827 }
 0x375   : > { %v838_v20 = vpop.permute.xlu0 %837 }
 0x37b   : > { %v1335_v42 = vpop.eup %1334 }
 0x37c   : > { %v769_v3 = vmul.f32 %v1335_v42, %v1729_v6  ;;  %v719_v6 = vsel %vm682_vm0, %v678_v13, 0.0 }
 0x37e   : > { %v787_v4 = vmul.f32 %v1736_v7, %v769_v3 }
 0x380   : > { %v867_v8 = vadd.f32 %v826_v62, %v787_v4 }
 0x382   : > { %v917_v10 = vadd.f32 %v901_v5, %v867_v8 }
 0x384   : > { %933 = vst.msk [vmem:[%s1752_s5 + $0x30] sm:$0xff] %vm682_vm0, %v917_v10  ;;  %v888_v10 = vld [vmem:[%s1734_s28 + $0x58] sm:$0xff] }
 0x385   : > { %v906_v13 = vmul.f32 %v1738_v9, %v888_v10 }
 0x388   : > { %717 = vadd.xlane.f32.xlu1 %v716_v12 }
 0x38c   : > { %720 = vadd.xlane.f32.xlu1 %v719_v6 }
 0x39d   : > { %839 = vrot.lane.b32.xlu1 %v1822_v35, %s1398_s14 }
 0x3a3   : > { %v706_v16 = vpop.xlane.xlu1 %705 }
 0x3a4   : > { %v738_v17 = vadd.f32 1e-32, %v706_v16 }
 0x3a6   : > { %1336 = vrsqrt.f32 %v738_v17 }
 0x3a7   : > { %v709_v45 = vpop.xlane.xlu1 %708 }
 0x3a8   : > { %v739_v18 = vadd.f32 1e-32, %v709_v45 }
 0x3aa   : > { %1338 = vrsqrt.f32 %v739_v18 }
 0x3ab   : > { %v832_v41 = vpop.permute.xlu1 %831 }
 0x3b0   : > { %v1337_v19 = vpop.eup %1336 }
 0x3b1   : > { %v770_v21 = vmul.f32 %v1337_v19, %v1762_v32  ;;  %v679_v32 = vmul.f32 %v1822_v35, %v1822_v35 }
 0x3b3   : > { %v788_v23 = vmul.f32 %v1736_v7, %v770_v21  ;;  %v722_v38 = vsel %vm682_vm0, %v679_v32, 0.0  ;;  %v891_v32 = vld [vmem:[%s1734_s28 + $0x70] sm:$0xff] }
 0x3b4   : > { %v1339_v25 = vpop.eup %1338 }
 0x3b5   : > { %v868_v27 = vadd.f32 %v828_v14, %v788_v23  ;;  %v771_v30 = vmul.f32 %v1339_v25, %v1775_v44  ;;  %v680_v44 = vmul.f32 %v1829_v39, %v1829_v39  ;;  %v889_v14 = vld [vmem:[%s1734_s28 + $0x60] sm:$0xff] }
 0x3b6   : > { %v907_v19 = vmul.f32 %v1738_v9, %v889_v14 }
 0x3b7   : > { %v918_v31 = vadd.f32 %v902_v24, %v868_v27  ;;  %v789_v33 = vmul.f32 %v1736_v7, %v771_v30  ;;  %v725_v52 = vsel %vm682_vm0, %v680_v44, 0.0 }
 0x3b9   : > { %934 = vst.msk [vmem:[%s1752_s5 + $0x38] sm:$0xff] %vm682_vm0, %v918_v31  ;;  %v869_v36 = vadd.f32 %v830_v28, %v789_v33  ;;  %v890_v33 = vld [vmem:[%s1734_s28 + $0x68] sm:$0xff] }
 0x3bb   : > { %v919_v37 = vadd.f32 %v903_v34, %v869_v36  ;;  %v908_v36 = vmul.f32 %v1738_v9, %v890_v33 }
 0x3bd   : > { %935 = vst.msk [vmem:[%s1752_s5 + $0x40] sm:$0xff] %vm682_vm0, %v919_v37 }
 0x3c1   : > { %723 = vadd.xlane.f32.xlu1 %v722_v38 }
 0x3c5   : > { %726 = vadd.xlane.f32.xlu1 %v725_v52 }
 0x3c9   : > { %729 = vadd.xlane.f32.xlu1 %v728_v29  ;;  %v909_v29 = vmul.f32 %v1738_v9, %v891_v32 }
 0x3da   : > { %843 = vrot.lane.b32.xlu1 %v1833_v48, %s1398_s14 }
 0x3dc   : > { %v712_v43 = vpop.xlane.xlu1 %711 }
 0x3dd   : > { %v740_v46 = vadd.f32 1e-32, %v712_v43  ;;  %v842_v43 = vpop.permute.xlu0 %841 }
 0x3df   : > { %1340 = vrsqrt.f32 %v740_v46  ;;  %v892_v46 = vld [vmem:[%s1734_s28 + $0x78] sm:$0xff] }
 0x3e0   : > { %v715_v47 = vpop.xlane.xlu1 %714  ;;  %v910_v53 = vmul.f32 %v1738_v9, %v892_v46 }
 0x3e1   : > { %v741_v49 = vadd.f32 1e-32, %v715_v47 }
 0x3e3   : > { %1342 = vrsqrt.f32 %v741_v49 }
 0x3e4   : > { %v836_v2 = vpop.permute.xlu1 %835 }
 0x3e9   : > { %v1341_v51 = vpop.eup %1340 }
 0x3ea   : > { %v772_v54 = vmul.f32 %v1341_v51, %v1779_v50 }
 0x3ec   : > { %v790_v55 = vmul.f32 %v1736_v7, %v772_v54 }
 0x3ed   : > { %v1343_v57 = vpop.eup %1342 }
 0x3ee   : > { %v870_v60 = vadd.f32 %v832_v41, %v790_v55  ;;  %v773_v61 = vmul.f32 %v1343_v57, %v1792_v1 }
 0x3f0   : > { %v920_v59 = vadd.f32 %v904_v56, %v870_v60  ;;  %v791_v62 = vmul.f32 %v1736_v7, %v773_v61 }
 0x3f2   : > { %936 = vst.msk [vmem:[%s1752_s5 + $0x48] sm:$0xff] %vm682_vm0, %v920_v59  ;;  %v871_v42 = vadd.f32 %v834_v0, %v791_v62 }
 0x3f4   : > { %v921_v50 = vadd.f32 %v905_v63, %v871_v42 }
 0x3f6   : > { %937 = vst.msk [vmem:[%s1752_s5 + $0x50] sm:$0xff] %vm682_vm0, %v921_v50 }
 0x415   : > { %v718_v3 = vpop.xlane.xlu1 %717 }
 0x416   : > { %v742_v4 = vadd.f32 1e-32, %v718_v3 }
 0x418   : > { %1344 = vrsqrt.f32 %v742_v4 }
 0x419   : > { %v721_v5 = vpop.xlane.xlu1 %720 }
 0x41a   : > { %v743_v1 = vadd.f32 1e-32, %v721_v5 }
 0x41c   : > { %1346 = vrsqrt.f32 %v743_v1 }
 0x41d   : > { %v840_v23 = vpop.permute.xlu1 %839 }
 0x422   : > { %v1345_v8 = vpop.eup %1344 }
 0x423   : > { %v774_v11 = vmul.f32 %v1345_v8, %v1803_v15 }
 0x425   : > { %v792_v12 = vmul.f32 %v1736_v7, %v774_v11 }
 0x426   : > { %v1347_v6 = vpop.eup %1346 }
 0x427   : > { %v872_v16 = vadd.f32 %v836_v2, %v792_v12  ;;  %v775_v17 = vmul.f32 %v1347_v6, %v1809_v22 }
 0x429   : > { %v922_v45 = vadd.f32 %v906_v13, %v872_v16  ;;  %v793_v18 = vmul.f32 %v1736_v7, %v775_v17 }
 0x42b   : > { %938 = vst.msk [vmem:[%s1752_s5 + $0x58] sm:$0xff] %vm682_vm0, %v922_v45  ;;  %v873_v21 = vadd.f32 %v838_v20, %v793_v18 }
 0x42d   : > { %v923_v15 = vadd.f32 %v907_v19, %v873_v21 }
 0x42f   : > { %939 = vst.msk [vmem:[%s1752_s5 + $0x60] sm:$0xff] %vm682_vm0, %v923_v15 }
 0x44e   : > { %v724_v24 = vpop.xlane.xlu1 %723 }
 0x44f   : > { %v744_v25 = vadd.f32 1e-32, %v724_v24 }
 0x451   : > { %1348 = vrsqrt.f32 %v744_v25 }
 0x452   : > { %v727_v26 = vpop.xlane.xlu1 %726 }
 0x453   : > { %v745_v22 = vadd.f32 1e-32, %v727_v26 }
 0x455   : > { %1350 = vrsqrt.f32 %v745_v22 }
 0x456   : > { %v730_v27 = vpop.xlane.xlu1 %729 }
 0x457   : > { %v746_v30 = vadd.f32 1e-32, %v730_v27 }
 0x459   : > { %1352 = vrsqrt.f32 %v746_v30 }
 0x45b   : > { %v1349_v31 = vpop.eup %1348 }
 0x45c   : > { %v776_v34 = vmul.f32 %v1349_v31, %v1822_v35 }
 0x45e   : > { %v794_v28 = vmul.f32 %v1736_v7, %v776_v34 }
 0x45f   : > { %v1351_v37 = vpop.eup %1350 }
 0x460   : > { %v874_v38 = vadd.f32 %v840_v23, %v794_v28  ;;  %v777_v44 = vmul.f32 %v1351_v37, %v1829_v39  ;;  %v844_v39 = vpop.permute.xlu1 %843 }
 0x462   : > { %v924_v52 = vadd.f32 %v908_v36, %v874_v38  ;;  %v795_v40 = vmul.f32 %v1736_v7, %v777_v44 }
 0x463   : > { %v1353_v41 = vpop.eup %1352 }
 0x464   : > { %940 = vst.msk [vmem:[%s1752_s5 + $0x68] sm:$0xff] %vm682_vm0, %v924_v52  ;;  %v875_v35 = vadd.f32 %v842_v43, %v795_v40  ;;  %v778_v47 = vmul.f32 %v1353_v41, %v1833_v48 }
 0x466   : > { %v925_v49 = vadd.f32 %v909_v29, %v875_v35  ;;  %v796_v51 = vmul.f32 %v1736_v7, %v778_v47 }
 0x468   : > { %941 = vst.msk [vmem:[%s1752_s5 + $0x70] sm:$0xff] %vm682_vm0, %v925_v49  ;;  %v876_v54 = vadd.f32 %v844_v39, %v796_v51 }
 0x46a   : > { %v926_v55 = vadd.f32 %v910_v53, %v876_v54 }
 0x46c   : > { %942 = vst.msk [vmem:[%s1752_s5 + $0x78] sm:$0xff] %vm682_vm0, %v926_v55 }
 0x46d PF: > { %p12_p6 = scmp.ge.s32.totalorder %s1441_s19, 5   ;;  %s1946_s15 = smov %s1391_s16 }
 0x46e   : > { %s1947_s16 = smov %s1451_s22  ;;  %s1948_s17 = smov %s1441_s19 }
 0x46f   :  { %14 = sbr.rel (!%p12_p6) target bundleno = 2 (0x2), region = 117 }
 0x476   :  { %965 = vsyncpa [#allocation3], 1 }
 0x477   :  { %967 = vsyncpa [#allocation3 + $0x1], 1 }

</bundles_post_ra>
